<compile_context>
chip_gen: v5e
topology: v5e:2x2
jax: 0.10.0
libtpu: 0.0.40
codegen_flags: <defaults>
</compile_context>

<pallas_src>
import functools
import math

import jax
import jax.numpy as jnp
from jax.experimental import pallas as pl
from jax.experimental.pallas import tpu as pltpu

FEAT_C = 16
NUM_ANCHORS = 3
ANCHOR_SIZES = (4.0, 8.0, 12.0)
NUM_CLASSES = 5            # including background class 0
POST_NMS_TOP_N = 16
POOL = 4
BBOX_CLAMP = math.log(1000.0 / 16.0)
IMG_MEAN = (0.485, 0.456, 0.406)
IMG_STD = (0.229, 0.224, 0.225)

CIN = 3
CIN_PAD = 8                # input channels padded so im2col lane offsets are 8-aligned
RPN_HEAD_N = 16            # 3 objectness + 12 bbox deltas, padded to 16 lanes
OUT_N = FEAT_C + RPN_HEAD_N  # packed kernel-1 output: feat | rpn head
ROI_HEAD_N = 32            # 5 cls + 20 bbox deltas, padded to 32 lanes
CANVAS_OFF = 1             # 1-px zero ring around the image inside the canvas


# ----------------------------- helpers (glue) -----------------------------

def make_anchors(H, W):
    ys, xs = jnp.meshgrid(jnp.arange(H, dtype=jnp.float32) + 0.5,
                          jnp.arange(W, dtype=jnp.float32) + 0.5, indexing="ij")
    centers = jnp.stack([xs, ys], axis=-1).reshape(-1, 2)   # (cx, cy) per location
    per_size = []
    for s in ANCHOR_SIZES:
        half = s / 2.0
        per_size.append(jnp.concatenate([centers - half, centers + half], axis=-1))
    return jnp.stack(per_size, axis=1).reshape(-1, 4)        # [H*W*A, 4]


def decode_boxes(anchors, deltas, weights=(1.0, 1.0, 1.0, 1.0)):
    """Batched box decoding (torchvision BoxCoder semantics)."""
    wx, wy, ww, wh = weights
    wa = anchors[..., 2] - anchors[..., 0]
    ha = anchors[..., 3] - anchors[..., 1]
    cxa = anchors[..., 0] + 0.5 * wa
    cya = anchors[..., 1] + 0.5 * ha
    dx = deltas[..., 0] / wx
    dy = deltas[..., 1] / wy
    dw = jnp.minimum(deltas[..., 2] / ww, BBOX_CLAMP)
    dh = jnp.minimum(deltas[..., 3] / wh, BBOX_CLAMP)
    cx = dx * wa + cxa
    cy = dy * ha + cya
    w = jnp.exp(dw) * wa
    h = jnp.exp(dh) * ha
    return jnp.stack([cx - 0.5 * w, cy - 0.5 * h, cx + 0.5 * w, cy + 0.5 * h], axis=-1)


def clip_boxes(boxes, h, w):
    x1 = jnp.clip(boxes[..., 0], 0.0, float(w))
    y1 = jnp.clip(boxes[..., 1], 0.0, float(h))
    x2 = jnp.clip(boxes[..., 2], 0.0, float(w))
    y2 = jnp.clip(boxes[..., 3], 0.0, float(h))
    return jnp.stack([x1, y1, x2, y2], axis=-1)


def roi_pool(features, boxes, out_size):
    """Nearest-neighbour RoI pooling.  features: [H,W,C], boxes: [R,4] -> [R, S*S*C]."""
    # TODO(synk): torchvision MultiScaleRoIAlign (bilinear) replaced by nearest-neighbour
    # gather glue; fusing this gather into the RoI-head kernel (scalar-prefetch indices)
    # is left for a future revision.
    H, W, C = features.shape
    x1, y1, x2, y2 = boxes[:, 0], boxes[:, 1], boxes[:, 2], boxes[:, 3]
    g = (jnp.arange(out_size, dtype=jnp.float32) + 0.5) / out_size
    ys = y1[:, None] + g[None, :] * (y2 - y1)[:, None]
    xs = x1[:, None] + g[None, :] * (x2 - x1)[:, None]
    yi = jnp.clip(jnp.round(ys).astype(jnp.int32), 0, H - 1)
    xi = jnp.clip(jnp.round(xs).astype(jnp.int32), 0, W - 1)
    pooled = features[yi[:, :, None], xi[:, None, :]]        # [R,S,S,C]
    return pooled.reshape(boxes.shape[0], out_size * out_size * C)


# ------------------- Pallas kernel 1: normalize + backbone + RPN -------------------

def _fused_backbone_rpn_kernel(img_ref, mask_ref, scale_ref, shift_ref,
                               w1_ref, b1_ref, w2_ref, b2_ref, wh_ref, bh_ref,
                               out_ref, c1_ref, c2_ref, *, sw, ss, margin):
    taps = [(ky - 1) * sw + (kx - 1) for ky in range(3) for kx in range(3)]
    m = mask_ref[...] > 0.5                               # [ss,1] true-image positions

    # ---- transform: fused per-channel normalize (x*scale + shift); ring -> 0 ----
    x = img_ref[0]                                        # [ss, CIN_PAD] f32
    xn = jnp.where(m, x * scale_ref[...] + shift_ref[...], 0.0)

    def zero_margins(c_ref):
        cols = c_ref.shape[1]
        c_ref[pl.ds(0, margin), :] = jnp.zeros((margin, cols), c_ref.dtype)
        c_ref[pl.ds(margin + ss, margin), :] = jnp.zeros((margin, cols), c_ref.dtype)

    def conv3x3(src_ref, w_ref, b_ref):
        # im2col in registers: 9 shifted canvas reads concatenated along lanes, then a
        # single wide-K MXU matmul with f32 accumulation (no per-tap accumulate adds).
        # Mosaic splits K>128 internally on v5e's 128-deep MXU.
        xcol = jnp.concatenate(
            [src_ref[pl.ds(margin + s, ss), :] for s in taps], axis=-1)
        return jnp.maximum(
            jnp.dot(xcol, w_ref[...], preferred_element_type=jnp.float32)
            + b_ref[...], 0.0)

    # ---- backbone: 3x3 conv + ReLU (bf16 canvas; only margins zeroed each step) ----
    zero_margins(c1_ref)
    c1_ref[pl.ds(margin, ss), :] = xn.astype(jnp.bfloat16)
    feat = conv3x3(c1_ref, w1_ref, b1_ref)                # [ss, FEAT_C] f32
    feat = jnp.where(m, feat, 0.0)        # ring of exact zeros == padding for RPN conv
    out_ref[0, :, 0:FEAT_C] = feat        # write now; frees feat before the next conv

    # ---- RPN: shared 3x3 conv + ReLU, then fused (objectness | bbox) 1x1 head ----
    zero_margins(c2_ref)
    c2_ref[pl.ds(margin, ss), :] = feat.astype(jnp.bfloat16)
    t = conv3x3(c2_ref, w2_ref, b2_ref)                   # [ss, FEAT_C] f32
    head = jnp.dot(t.astype(jnp.bfloat16), wh_ref[...],
                   preferred_element_type=jnp.float32) + bh_ref[...]
    out_ref[0, :, FEAT_C:OUT_N] = head


def fused_backbone_rpn(images_nhwc, w1, b1, w2, b2, wh, bh):
    B, H, W, Cin = images_nhwc.shape
    sh, sw = H + 2 * CANVAS_OFF, W + 2 * CANVAS_OFF       # canvas: image + 1-px ring
    ss = sh * sw
    margin = ((sw + 1 + 15) // 16) * 16   # >= max |tap shift| (sw+1), 16-aligned (bf16)
    crows = ss + 2 * margin

    padded = jnp.pad(images_nhwc,
                     ((0, 0), (CANVAS_OFF, CANVAS_OFF), (CANVAS_OFF, CANVAS_OFF),
                      (0, CIN_PAD - Cin))).reshape(B, ss, CIN_PAD)

    uu = jnp.arange(sh, dtype=jnp.int32)[:, None]
    vv = jnp.arange(sw, dtype=jnp.int32)[None, :]
    mask = ((uu >= CANVAS_OFF) & (uu < CANVAS_OFF + H) &
            (vv >= CANVAS_OFF) & (vv < CANVAS_OFF + W)).astype(jnp.float32)
    mask = mask.reshape(ss, 1)

    mean = jnp.array(IMG_MEAN, jnp.float32)
    std = jnp.array(IMG_STD, jnp.float32)
    scale = jnp.concatenate([1.0 / std, jnp.ones((CIN_PAD - Cin,), jnp.float32)])
    shift = jnp.concatenate([-mean / std, jnp.zeros((CIN_PAD - Cin,), jnp.float32)])
    scale = scale.reshape(1, CIN_PAD)
    shift = shift.reshape(1, CIN_PAD)

    kernel = functools.partial(_fused_backbone_rpn_kernel, sw=sw, ss=ss, margin=margin)
    out = pl.pallas_call(
        kernel,
        out_shape=jax.ShapeDtypeStruct((B, ss, OUT_N), jnp.float32),
        grid=(B,),
        in_specs=[
            pl.BlockSpec((1, ss, CIN_PAD), lambda b: (b, 0, 0)),      # padded image
            pl.BlockSpec((ss, 1), lambda b: (0, 0)),                  # true-image mask
            pl.BlockSpec((1, CIN_PAD), lambda b: (0, 0)),             # 1/std
            pl.BlockSpec((1, CIN_PAD), lambda b: (0, 0)),             # -mean/std
            pl.BlockSpec((9 * CIN_PAD, FEAT_C), lambda b: (0, 0)),    # backbone conv w
            pl.BlockSpec((1, FEAT_C), lambda b: (0, 0)),              # backbone conv b
            pl.BlockSpec((9 * FEAT_C, FEAT_C), lambda b: (0, 0)),     # rpn conv w
            pl.BlockSpec((1, FEAT_C), lambda b: (0, 0)),              # rpn conv b
            pl.BlockSpec((FEAT_C, RPN_HEAD_N), lambda b: (0, 0)),     # fused rpn head w
            pl.BlockSpec((1, RPN_HEAD_N), lambda b: (0, 0)),          # fused rpn head b
        ],
        out_specs=pl.BlockSpec((1, ss, OUT_N), lambda b: (b, 0, 0)),
        scratch_shapes=[pltpu.VMEM((crows, CIN_PAD), jnp.bfloat16),
                        pltpu.VMEM((crows, FEAT_C), jnp.bfloat16)],
        compiler_params=pltpu.CompilerParams(dimension_semantics=("parallel",)),
    )(padded, mask, scale, shift, w1, b1, w2, b2, wh, bh)

    out = out.reshape(B, sh, sw, OUT_N)[:, CANVAS_OFF:CANVAS_OFF + H,
                                        CANVAS_OFF:CANVAS_OFF + W, :]
    feat = out[..., :FEAT_C]
    rpn = out[..., FEAT_C:].reshape(B, H * W, RPN_HEAD_N)
    return feat, rpn


# ------------------- Pallas kernel 2: RoI heads (fc6/fc7/cls+bbox + softmax) ------------

def _roi_head_kernel(x_ref, w6_ref, b6_ref, w7_ref, b7_ref, wh_ref, bh_ref, o_ref):
    x = x_ref[...]                                                   # [R, 256] bf16
    h6 = jnp.maximum(jnp.dot(x, w6_ref[...], preferred_element_type=jnp.float32)
                     + b6_ref[...], 0.0)
    h7 = jnp.maximum(jnp.dot(h6.astype(jnp.bfloat16), w7_ref[...],
                             preferred_element_type=jnp.float32) + b7_ref[...], 0.0)
    head = jnp.dot(h7.astype(jnp.bfloat16), wh_ref[...],
                   preferred_element_type=jnp.float32) + bh_ref[...]  # [R, 32]

    # fused softmax over the class lanes (exp -> EUP, row-reduce -> XLU: free under MXU)
    lane = jax.lax.broadcasted_iota(jnp.int32, head.shape, 1)
    is_cls = lane < NUM_CLASSES
    logits = jnp.where(is_cls, head, -1e30)
    e = jnp.where(is_cls, jnp.exp(logits - jnp.max(logits, axis=-1, keepdims=True)), 0.0)
    probs = e * pl.reciprocal(jnp.sum(e, axis=-1, keepdims=True), approx=True)
    o_ref[...] = jnp.where(is_cls, probs, head)   # lanes 0:5 = cls probs, 5:25 = deltas


def roi_head(x, w6, b6, w7, b7, wh, bh):
    R, K = x.shape
    return pl.pallas_call(
        _roi_head_kernel,
        out_shape=jax.ShapeDtypeStruct((R, ROI_HEAD_N), jnp.float32),
        grid=(1,),
        in_specs=[
            pl.BlockSpec((R, K), lambda i: (0, 0)),
            pl.BlockSpec(w6.shape, lambda i: (0, 0)),
            pl.BlockSpec(b6.shape, lambda i: (0, 0)),
            pl.BlockSpec(w7.shape, lambda i: (0, 0)),
            pl.BlockSpec(b7.shape, lambda i: (0, 0)),
            pl.BlockSpec(wh.shape, lambda i: (0, 0)),
            pl.BlockSpec(bh.shape, lambda i: (0, 0)),
        ],
        out_specs=pl.BlockSpec((R, ROI_HEAD_N), lambda i: (0, 0)),
        compiler_params=pltpu.CompilerParams(dimension_semantics=("arbitrary",)),
    )(x, w6, b6, w7, b7, wh, bh)


# ----------------------------- model definition ---------------------------

def init_params(key):
    ks = jax.random.split(key, 9)
    s = 0.05

    def w(k, shape):
        return s * jax.random.normal(k, shape, dtype=jnp.float32)

    return {
        "backbone_w": w(ks[0], (9 * CIN, FEAT_C)),
        "backbone_b": jnp.zeros((FEAT_C,), jnp.float32),
        "rpn_conv_w": w(ks[1], (9 * FEAT_C, FEAT_C)),
        "rpn_conv_b": jnp.zeros((FEAT_C,), jnp.float32),
        "rpn_cls_w": w(ks[2], (FEAT_C, NUM_ANCHORS)),
        "rpn_cls_b": jnp.zeros((NUM_ANCHORS,), jnp.float32),
        "rpn_bbox_w": w(ks[3], (FEAT_C, 4 * NUM_ANCHORS)),
        "rpn_bbox_b": jnp.zeros((4 * NUM_ANCHORS,), jnp.float32),
        "fc6_w": w(ks[4], (POOL * POOL * FEAT_C, 64)),
        "fc6_b": jnp.zeros((64,), jnp.float32),
        "fc7_w": w(ks[5], (64, 64)),
        "fc7_b": jnp.zeros((64,), jnp.float32),
        "cls_w": w(ks[6], (64, NUM_CLASSES)),
        "cls_b": jnp.zeros((NUM_CLASSES,), jnp.float32),
        "bbox_w": w(ks[7], (64, 4 * NUM_CLASSES)),
        "bbox_b": jnp.zeros((4 * NUM_CLASSES,), jnp.float32),
    }


def generalized_rcnn_forward(images_nchw, params):
    """Eval-mode GeneralizedRCNN.forward: returns list of per-image detections."""
    images = jnp.transpose(images_nchw, (0, 2, 3, 1)).astype(jnp.float32)  # -> NHWC
    B, H, W, Cin = images.shape
    original_image_sizes = [(H, W)] * B     # original H,W recorded before transform
    image_sizes = [(H, W)] * B              # transform does not resize at this scale

    # one-time tiny weight preparation: tap-major conv weights (channel dim lane-padded),
    # fused + lane-padded heads, bf16 MXU operands (biases stay f32 for the epilogues).
    w1 = params["backbone_w"].reshape(9, Cin, FEAT_C)
    w1 = jnp.pad(w1, ((0, 0), (0, CIN_PAD - Cin), (0, 0)))
    w1 = w1.reshape(9 * CIN_PAD, FEAT_C).astype(jnp.bfloat16)
    b1 = params["backbone_b"].reshape(1, FEAT_C)
    w2 = params["rpn_conv_w"].astype(jnp.bfloat16)                  # [9*FEAT_C, FEAT_C]
    b2 = params["rpn_conv_b"].reshape(1, FEAT_C)
    wh_rpn = jnp.concatenate([params["rpn_cls_w"], params["rpn_bbox_w"]], axis=1)
    wh_rpn = jnp.pad(wh_rpn, ((0, 0), (0, RPN_HEAD_N - wh_rpn.shape[1]))).astype(jnp.bfloat16)
    bh_rpn = jnp.concatenate([params["rpn_cls_b"], params["rpn_bbox_b"]])
    bh_rpn = jnp.pad(bh_rpn, (0, RPN_HEAD_N - bh_rpn.shape[0])).reshape(1, RPN_HEAD_N)
    w6 = params["fc6_w"].astype(jnp.bfloat16)
    b6 = params["fc6_b"].reshape(1, -1)
    w7 = params["fc7_w"].astype(jnp.bfloat16)
    b7 = params["fc7_b"].reshape(1, -1)
    wh_roi = jnp.concatenate([params["cls_w"], params["bbox_w"]], axis=1)
    wh_roi = jnp.pad(wh_roi, ((0, 0), (0, ROI_HEAD_N - wh_roi.shape[1]))).astype(jnp.bfloat16)
    bh_roi = jnp.concatenate([params["cls_b"], params["bbox_b"]])
    bh_roi = jnp.pad(bh_roi, (0, ROI_HEAD_N - bh_roi.shape[0])).reshape(1, ROI_HEAD_N)

    # ---- fused Pallas kernel: transform normalize + backbone + RPN conv/heads ----
    feat, rpn = fused_backbone_rpn(images, w1, b1, w2, b2, wh_rpn, bh_rpn)
    objectness = rpn[..., :NUM_ANCHORS].reshape(B, H * W * NUM_ANCHORS)
    rpn_deltas = rpn[..., NUM_ANCHORS:NUM_ANCHORS + 4 * NUM_ANCHORS]
    rpn_deltas = rpn_deltas.reshape(B, H * W * NUM_ANCHORS, 4)

    # ---- RPN proposal selection (batched decode + top-k) ----
    # TODO(synk): torchvision RPN per-level NMS has no clean Pallas equivalent;
    # proposal selection uses plain top-k on objectness instead.
    anchors = make_anchors(H, W)
    boxes_all = clip_boxes(decode_boxes(anchors[None], rpn_deltas), H, W)    # [B, HWA, 4]
    _, top = jax.lax.top_k(objectness, POST_NMS_TOP_N)                       # [B, R]
    proposals = jnp.take_along_axis(boxes_all, top[..., None], axis=1)       # [B, R, 4]

    # ---- RoI heads: pool (glue, bf16) -> fused fc6/fc7/cls+bbox kernel with softmax ----
    roi_feats = jax.vmap(lambda f, p: roi_pool(f, p, POOL))(feat, proposals)
    roi_feats = roi_feats.reshape(B * POST_NMS_TOP_N,
                                  POOL * POOL * FEAT_C).astype(jnp.bfloat16)
    roi_out = roi_head(roi_feats, w6, b6, w7, b7, wh_roi, bh_roi)            # [B*R, 32]

    R = POST_NMS_TOP_N
    cls_probs = roi_out[:, :NUM_CLASSES].reshape(B, R, NUM_CLASSES)
    box_deltas = roi_out[:, NUM_CLASSES:NUM_CLASSES + 4 * NUM_CLASSES]
    box_deltas = box_deltas.reshape(B, R, NUM_CLASSES, 4)

    fg = cls_probs[..., 1:]
    labels = jnp.argmax(fg, axis=-1) + 1                                     # [B, R]
    scores = jnp.max(fg, axis=-1)                                            # [B, R]
    sel = jnp.take_along_axis(box_deltas, labels[:, :, None, None], axis=2)[:, :, 0, :]
    boxes = clip_boxes(
        decode_boxes(proposals, sel, weights=(10.0, 10.0, 5.0, 5.0)), H, W)  # [B, R, 4]

    # ---- transform.postprocess: rescale boxes back to original image size ----
    scales = jnp.array([[ow / iw, oh / ih, ow / iw, oh / ih]
                        for (oh, ow), (ih, iw) in zip(original_image_sizes, image_sizes)],
                       jnp.float32)
    boxes = boxes * scales[:, None, :]

    # TODO(synk): torchvision roi_heads postprocess NMS / score filtering not implemented;
    # all POST_NMS_TOP_N boxes are returned per image.
    return [{"boxes": boxes[b], "labels": labels[b], "scores": scores[b]} for b in range(B)]


if __name__ == "__main__":
    key = jax.random.PRNGKey(0)
    k_img, k_par = jax.random.split(key)
    # images: batch of 2 RGB images, 16x16, values in [0, 1] (NCHW like PyTorch)
    images = jax.random.uniform(k_img, (2, 3, 16, 16), dtype=jnp.float32)
    params = init_params(k_par)

    forward = jax.jit(generalized_rcnn_forward)
    detections = forward(images, params)
    for det in detections:
        jax.block_until_ready(det["boxes"])
        jax.block_until_ready(det["labels"])
        jax.block_until_ready(det["scores"])

    assert detections[0]["boxes"].shape == (POST_NMS_TOP_N, 4)
    assert detections[0]["scores"].shape == (POST_NMS_TOP_N,)
    assert detections[0]["labels"].shape == (POST_NMS_TOP_N,)
    print("KERNEL_OK")
</pallas_src>

<mosaic_0001>
module attributes {stable_mosaic.version = 11 : i64} {
  func.func @_fused_backbone_rpn_kernel(%arg0: i32, %arg1: memref<1x324x8xf32, #tpu.memory_space<vmem>>, %arg2: memref<324x1xf32, #tpu.memory_space<vmem>>, %arg3: memref<1x8xf32, #tpu.memory_space<vmem>>, %arg4: memref<1x8xf32, #tpu.memory_space<vmem>>, %arg5: memref<72x16xbf16, #tpu.memory_space<vmem>>, %arg6: memref<1x16xf32, #tpu.memory_space<vmem>>, %arg7: memref<144x16xbf16, #tpu.memory_space<vmem>>, %arg8: memref<1x16xf32, #tpu.memory_space<vmem>>, %arg9: memref<16x16xbf16, #tpu.memory_space<vmem>>, %arg10: memref<1x16xf32, #tpu.memory_space<vmem>>, %arg11: memref<1x324x32xf32, #tpu.memory_space<vmem>>, %arg12: memref<388x8xbf16, #tpu.memory_space<vmem>>, %arg13: memref<388x16xbf16, #tpu.memory_space<vmem>>) attributes {dimension_semantics = [#tpu.dimension_semantics<parallel>], iteration_bounds = array<i64: 2>, scalar_prefetch = 0 : i64, scratch_operands = 2 : i64, tpu.core_type = #tpu.core_type<tc>, window_params = [{transform_indices = @transform_0, window_bounds = array<i64: 1, 324, 8>}, {pipeline_mode = #tpu.pipeline_mode<synchronous>, transform_indices = @transform_1, window_bounds = array<i64: 324, 1>}, {pipeline_mode = #tpu.pipeline_mode<synchronous>, transform_indices = @transform_2, window_bounds = array<i64: 1, 8>}, {pipeline_mode = #tpu.pipeline_mode<synchronous>, transform_indices = @transform_3, window_bounds = array<i64: 1, 8>}, {pipeline_mode = #tpu.pipeline_mode<synchronous>, transform_indices = @transform_4, window_bounds = array<i64: 72, 16>}, {pipeline_mode = #tpu.pipeline_mode<synchronous>, transform_indices = @transform_5, window_bounds = array<i64: 1, 16>}, {pipeline_mode = #tpu.pipeline_mode<synchronous>, transform_indices = @transform_6, window_bounds = array<i64: 144, 16>}, {pipeline_mode = #tpu.pipeline_mode<synchronous>, transform_indices = @transform_7, window_bounds = array<i64: 1, 16>}, {pipeline_mode = #tpu.pipeline_mode<synchronous>, transform_indices = @transform_8, window_bounds = array<i64: 16, 16>}, {pipeline_mode = #tpu.pipeline_mode<synchronous>, transform_indices = @transform_9, window_bounds = array<i64: 1, 16>}, {transform_indices = @transform_10, window_bounds = array<i64: 1, 324, 32>}]} {
    %c0 = arith.constant 0 : index
    %c0_0 = arith.constant 0 : index
    %0 = vector.load %arg2[%c0, %c0_0] : memref<324x1xf32, #tpu.memory_space<vmem>>, vector<324x1xf32>
    %cst = arith.constant 5.000000e-01 : f32
    %1 = vector.broadcast %cst : f32 to vector<324x1xf32>
    %2 = arith.cmpf ogt, %0, %1 : vector<324x1xf32>
    %c0_1 = arith.constant 0 : index
    %c0_2 = arith.constant 0 : index
    %c0_3 = arith.constant 0 : index
    %3 = vector.load %arg1[%c0_1, %c0_2, %c0_3] : memref<1x324x8xf32, #tpu.memory_space<vmem>>, vector<1x324x8xf32>
    %4 = vector.shape_cast %3 : vector<1x324x8xf32> to vector<324x8xf32>
    %c0_4 = arith.constant 0 : index
    %c0_5 = arith.constant 0 : index
    %5 = vector.load %arg3[%c0_4, %c0_5] : memref<1x8xf32, #tpu.memory_space<vmem>>, vector<1x8xf32>
    %6 = vector.broadcast %5 : vector<1x8xf32> to vector<324x8xf32>
    %7 = arith.mulf %4, %6 : vector<324x8xf32>
    %c0_6 = arith.constant 0 : index
    %c0_7 = arith.constant 0 : index
    %8 = vector.load %arg4[%c0_6, %c0_7] : memref<1x8xf32, #tpu.memory_space<vmem>>, vector<1x8xf32>
    %9 = vector.broadcast %8 : vector<1x8xf32> to vector<324x8xf32>
    %10 = arith.addf %7, %9 : vector<324x8xf32>
    %cst_8 = arith.constant 0.000000e+00 : f32
    %11 = vector.shape_cast %2 : vector<324x1xi1> to vector<324x1xi1>
    %12 = vector.broadcast %11 : vector<324x1xi1> to vector<324x8xi1>
    %13 = vector.broadcast %cst_8 : f32 to vector<324x8xf32>
    %14 = arith.select %12, %10, %13 : vector<324x8xi1>, vector<324x8xf32>
    %cst_9 = arith.constant 0.000000e+00 : bf16
    %15 = vector.broadcast %cst_9 : bf16 to vector<32x8xbf16>
    %c0_10 = arith.constant 0 : index
    %c0_11 = arith.constant 0 : index
    %16 = vector.load %arg12[%c0_10, %c0_11] : memref<388x8xbf16, #tpu.memory_space<vmem>>, vector<32x8xbf16>
    tpu.vector_store %arg12[%c0_10, %c0_11], %15 {strides = array<i32>} : memref<388x8xbf16, #tpu.memory_space<vmem>>, vector<32x8xbf16>,
    %cst_12 = arith.constant 0.000000e+00 : bf16
    %17 = vector.broadcast %cst_12 : bf16 to vector<32x8xbf16>
    %c356 = arith.constant 356 : index
    %c0_13 = arith.constant 0 : index
    %18 = vector.load %arg12[%c356, %c0_13] : memref<388x8xbf16, #tpu.memory_space<vmem>>, vector<32x8xbf16>
    tpu.vector_store %arg12[%c356, %c0_13], %17 {strides = array<i32>} : memref<388x8xbf16, #tpu.memory_space<vmem>>, vector<32x8xbf16>,
    %19 = arith.truncf %14 : vector<324x8xf32> to vector<324x8xbf16>
    %c32 = arith.constant 32 : index
    %c0_14 = arith.constant 0 : index
    %20 = vector.load %arg12[%c32, %c0_14] : memref<388x8xbf16, #tpu.memory_space<vmem>>, vector<324x8xbf16>
    tpu.vector_store %arg12[%c32, %c0_14], %19 {strides = array<i32>} : memref<388x8xbf16, #tpu.memory_space<vmem>>, vector<324x8xbf16>,
    %c13 = arith.constant 13 : index
    %c0_15 = arith.constant 0 : index
    %21 = vector.load %arg12[%c13, %c0_15] : memref<388x8xbf16, #tpu.memory_space<vmem>>, vector<324x8xbf16>
    %c14 = arith.constant 14 : index
    %c0_16 = arith.constant 0 : index
    %22 = vector.load %arg12[%c14, %c0_16] : memref<388x8xbf16, #tpu.memory_space<vmem>>, vector<324x8xbf16>
    %c15 = arith.constant 15 : index
    %c0_17 = arith.constant 0 : index
    %23 = vector.load %arg12[%c15, %c0_17] : memref<388x8xbf16, #tpu.memory_space<vmem>>, vector<324x8xbf16>
    %c31 = arith.constant 31 : index
    %c0_18 = arith.constant 0 : index
    %24 = vector.load %arg12[%c31, %c0_18] : memref<388x8xbf16, #tpu.memory_space<vmem>>, vector<324x8xbf16>
    %c32_19 = arith.constant 32 : index
    %c0_20 = arith.constant 0 : index
    %25 = vector.load %arg12[%c32_19, %c0_20] : memref<388x8xbf16, #tpu.memory_space<vmem>>, vector<324x8xbf16>
    %c33 = arith.constant 33 : index
    %c0_21 = arith.constant 0 : index
    %26 = vector.load %arg12[%c33, %c0_21] : memref<388x8xbf16, #tpu.memory_space<vmem>>, vector<324x8xbf16>
    %c49 = arith.constant 49 : index
    %c0_22 = arith.constant 0 : index
    %27 = vector.load %arg12[%c49, %c0_22] : memref<388x8xbf16, #tpu.memory_space<vmem>>, vector<324x8xbf16>
    %c50 = arith.constant 50 : index
    %c0_23 = arith.constant 0 : index
    %28 = vector.load %arg12[%c50, %c0_23] : memref<388x8xbf16, #tpu.memory_space<vmem>>, vector<324x8xbf16>
    %c51 = arith.constant 51 : index
    %c0_24 = arith.constant 0 : index
    %29 = vector.load %arg12[%c51, %c0_24] : memref<388x8xbf16, #tpu.memory_space<vmem>>, vector<324x8xbf16>
    %30 = tpu.concatenate %21, %22, %23, %24, %25, %26, %27, %28, %29 in 1 : vector<324x8xbf16>, vector<324x8xbf16>, vector<324x8xbf16>, vector<324x8xbf16>, vector<324x8xbf16>, vector<324x8xbf16>, vector<324x8xbf16>, vector<324x8xbf16>, vector<324x8xbf16> -> vector<324x72xbf16>
    %c0_25 = arith.constant 0 : index
    %c0_26 = arith.constant 0 : index
    %31 = vector.load %arg5[%c0_25, %c0_26] : memref<72x16xbf16, #tpu.memory_space<vmem>>, vector<72x16xbf16>
    %cst_27 = arith.constant dense<0.000000e+00> : vector<324x16xf32>
    %32 = tpu.matmul %30, %31, %cst_27 {dimension_numbers = #tpu.dot_dimension_numbers<[1], [0], [0], [1], [0, 0, 1, 1], [], []>} : vector<324x72xbf16>, vector<72x16xbf16>, vector<324x16xf32> -> vector<324x16xf32>
    %c0_28 = arith.constant 0 : index
    %c0_29 = arith.constant 0 : index
    %33 = vector.load %arg6[%c0_28, %c0_29] : memref<1x16xf32, #tpu.memory_space<vmem>>, vector<1x16xf32>
    %34 = vector.broadcast %33 : vector<1x16xf32> to vector<324x16xf32>
    %35 = arith.addf %32, %34 : vector<324x16xf32>
    %cst_30 = arith.constant 0.000000e+00 : f32
    %36 = vector.broadcast %cst_30 : f32 to vector<324x16xf32>
    %37 = arith.maximumf %35, %36 : vector<324x16xf32>
    %cst_31 = arith.constant 0.000000e+00 : f32
    %38 = vector.shape_cast %2 : vector<324x1xi1> to vector<324x1xi1>
    %39 = vector.broadcast %38 : vector<324x1xi1> to vector<324x16xi1>
    %40 = vector.broadcast %cst_31 : f32 to vector<324x16xf32>
    %41 = arith.select %39, %37, %40 : vector<324x16xi1>, vector<324x16xf32>
    %c0_32 = arith.constant 0 : index
    %c0_33 = arith.constant 0 : index
    %c0_34 = arith.constant 0 : index
    %42 = vector.load %arg11[%c0_32, %c0_33, %c0_34] : memref<1x324x32xf32, #tpu.memory_space<vmem>>, vector<1x324x16xf32>
    %43 = vector.shape_cast %42 : vector<1x324x16xf32> to vector<324x16xf32>
    %44 = vector.shape_cast %41 : vector<324x16xf32> to vector<1x324x16xf32>
    tpu.vector_store %arg11[%c0_32, %c0_33, %c0_34], %44 {strides = array<i32>} : memref<1x324x32xf32, #tpu.memory_space<vmem>>, vector<1x324x16xf32>,
    %cst_35 = arith.constant 0.000000e+00 : bf16
    %45 = vector.broadcast %cst_35 : bf16 to vector<32x16xbf16>
    %c0_36 = arith.constant 0 : index
    %c0_37 = arith.constant 0 : index
    %46 = vector.load %arg13[%c0_36, %c0_37] : memref<388x16xbf16, #tpu.memory_space<vmem>>, vector<32x16xbf16>
    tpu.vector_store %arg13[%c0_36, %c0_37], %45 {strides = array<i32>} : memref<388x16xbf16, #tpu.memory_space<vmem>>, vector<32x16xbf16>,
    %cst_38 = arith.constant 0.000000e+00 : bf16
    %47 = vector.broadcast %cst_38 : bf16 to vector<32x16xbf16>
    %c356_39 = arith.constant 356 : index
    %c0_40 = arith.constant 0 : index
    %48 = vector.load %arg13[%c356_39, %c0_40] : memref<388x16xbf16, #tpu.memory_space<vmem>>, vector<32x16xbf16>
    tpu.vector_store %arg13[%c356_39, %c0_40], %47 {strides = array<i32>} : memref<388x16xbf16, #tpu.memory_space<vmem>>, vector<32x16xbf16>,
    %49 = arith.truncf %41 : vector<324x16xf32> to vector<324x16xbf16>
    %c32_41 = arith.constant 32 : index
    %c0_42 = arith.constant 0 : index
    %50 = vector.load %arg13[%c32_41, %c0_42] : memref<388x16xbf16, #tpu.memory_space<vmem>>, vector<324x16xbf16>
    tpu.vector_store %arg13[%c32_41, %c0_42], %49 {strides = array<i32>} : memref<388x16xbf16, #tpu.memory_space<vmem>>, vector<324x16xbf16>,
    %c13_43 = arith.constant 13 : index
    %c0_44 = arith.constant 0 : index
    %51 = vector.load %arg13[%c13_43, %c0_44] : memref<388x16xbf16, #tpu.memory_space<vmem>>, vector<324x16xbf16>
    %c14_45 = arith.constant 14 : index
    %c0_46 = arith.constant 0 : index
    %52 = vector.load %arg13[%c14_45, %c0_46] : memref<388x16xbf16, #tpu.memory_space<vmem>>, vector<324x16xbf16>
    %c15_47 = arith.constant 15 : index
    %c0_48 = arith.constant 0 : index
    %53 = vector.load %arg13[%c15_47, %c0_48] : memref<388x16xbf16, #tpu.memory_space<vmem>>, vector<324x16xbf16>
    %c31_49 = arith.constant 31 : index
    %c0_50 = arith.constant 0 : index
    %54 = vector.load %arg13[%c31_49, %c0_50] : memref<388x16xbf16, #tpu.memory_space<vmem>>, vector<324x16xbf16>
    %c32_51 = arith.constant 32 : index
    %c0_52 = arith.constant 0 : index
    %55 = vector.load %arg13[%c32_51, %c0_52] : memref<388x16xbf16, #tpu.memory_space<vmem>>, vector<324x16xbf16>
    %c33_53 = arith.constant 33 : index
    %c0_54 = arith.constant 0 : index
    %56 = vector.load %arg13[%c33_53, %c0_54] : memref<388x16xbf16, #tpu.memory_space<vmem>>, vector<324x16xbf16>
    %c49_55 = arith.constant 49 : index
    %c0_56 = arith.constant 0 : index
    %57 = vector.load %arg13[%c49_55, %c0_56] : memref<388x16xbf16, #tpu.memory_space<vmem>>, vector<324x16xbf16>
    %c50_57 = arith.constant 50 : index
    %c0_58 = arith.constant 0 : index
    %58 = vector.load %arg13[%c50_57, %c0_58] : memref<388x16xbf16, #tpu.memory_space<vmem>>, vector<324x16xbf16>
    %c51_59 = arith.constant 51 : index
    %c0_60 = arith.constant 0 : index
    %59 = vector.load %arg13[%c51_59, %c0_60] : memref<388x16xbf16, #tpu.memory_space<vmem>>, vector<324x16xbf16>
    %60 = tpu.concatenate %51, %52, %53, %54, %55, %56, %57, %58, %59 in 1 : vector<324x16xbf16>, vector<324x16xbf16>, vector<324x16xbf16>, vector<324x16xbf16>, vector<324x16xbf16>, vector<324x16xbf16>, vector<324x16xbf16>, vector<324x16xbf16>, vector<324x16xbf16> -> vector<324x144xbf16>
    %c0_61 = arith.constant 0 : index
    %c0_62 = arith.constant 0 : index
    %61 = vector.load %arg7[%c0_61, %c0_62] : memref<144x16xbf16, #tpu.memory_space<vmem>>, vector<144x16xbf16>
    %cst_63 = arith.constant dense<0.000000e+00> : vector<324x16xf32>
    %62 = tpu.matmul %60, %61, %cst_63 {dimension_numbers = #tpu.dot_dimension_numbers<[1], [0], [0], [1], [0, 0, 1, 1], [], []>} : vector<324x144xbf16>, vector<144x16xbf16>, vector<324x16xf32> -> vector<324x16xf32>
    %c0_64 = arith.constant 0 : index
    %c0_65 = arith.constant 0 : index
    %63 = vector.load %arg8[%c0_64, %c0_65] : memref<1x16xf32, #tpu.memory_space<vmem>>, vector<1x16xf32>
    %64 = vector.broadcast %63 : vector<1x16xf32> to vector<324x16xf32>
    %65 = arith.addf %62, %64 : vector<324x16xf32>
    %cst_66 = arith.constant 0.000000e+00 : f32
    %66 = vector.broadcast %cst_66 : f32 to vector<324x16xf32>
    %67 = arith.maximumf %65, %66 : vector<324x16xf32>
    %68 = arith.truncf %67 : vector<324x16xf32> to vector<324x16xbf16>
    %c0_67 = arith.constant 0 : index
    %c0_68 = arith.constant 0 : index
    %69 = vector.load %arg9[%c0_67, %c0_68] : memref<16x16xbf16, #tpu.memory_space<vmem>>, vector<16x16xbf16>
    %cst_69 = arith.constant dense<0.000000e+00> : vector<324x16xf32>
    %70 = tpu.matmul %68, %69, %cst_69 {dimension_numbers = #tpu.dot_dimension_numbers<[1], [0], [0], [1], [0, 0, 1, 1], [], []>} : vector<324x16xbf16>, vector<16x16xbf16>, vector<324x16xf32> -> vector<324x16xf32>
    %c0_70 = arith.constant 0 : index
    %c0_71 = arith.constant 0 : index
    %71 = vector.load %arg10[%c0_70, %c0_71] : memref<1x16xf32, #tpu.memory_space<vmem>>, vector<1x16xf32>
    %72 = vector.broadcast %71 : vector<1x16xf32> to vector<324x16xf32>
    %73 = arith.addf %70, %72 : vector<324x16xf32>
    %c0_72 = arith.constant 0 : index
    %c0_73 = arith.constant 0 : index
    %c16 = arith.constant 16 : index
    %74 = vector.load %arg11[%c0_72, %c0_73, %c16] : memref<1x324x32xf32, #tpu.memory_space<vmem>>, vector<1x324x16xf32>
    %75 = vector.shape_cast %74 : vector<1x324x16xf32> to vector<324x16xf32>
    %76 = vector.shape_cast %73 : vector<324x16xf32> to vector<1x324x16xf32>
    tpu.vector_store %arg11[%c0_72, %c0_73, %c16], %76 {strides = array<i32>} : memref<1x324x32xf32, #tpu.memory_space<vmem>>, vector<1x324x16xf32>,
    return
  }
  func.func @transform_0(%arg0: i32) -> (i32, i32, i32) {
    %c0_i32 = arith.constant 0 : i32
    %c0_i32_0 = arith.constant 0 : i32
    %c0_i32_1 = arith.constant 0 : i32
    return %arg0, %c0_i32, %c0_i32_0 : i32, i32, i32
  }
  func.func @transform_1(%arg0: i32) -> (i32, i32) {
    %c0_i32 = arith.constant 0 : i32
    %c0_i32_0 = arith.constant 0 : i32
    %c0_i32_1 = arith.constant 0 : i32
    return %c0_i32, %c0_i32_0 : i32, i32
  }
  func.func @transform_2(%arg0: i32) -> (i32, i32) {
    %c0_i32 = arith.constant 0 : i32
    %c0_i32_0 = arith.constant 0 : i32
    %c0_i32_1 = arith.constant 0 : i32
    return %c0_i32, %c0_i32_0 : i32, i32
  }
  func.func @transform_3(%arg0: i32) -> (i32, i32) {
    %c0_i32 = arith.constant 0 : i32
    %c0_i32_0 = arith.constant 0 : i32
    %c0_i32_1 = arith.constant 0 : i32
    return %c0_i32, %c0_i32_0 : i32, i32
  }
  func.func @transform_4(%arg0: i32) -> (i32, i32) {
    %c0_i32 = arith.constant 0 : i32
    %c0_i32_0 = arith.constant 0 : i32
    %c0_i32_1 = arith.constant 0 : i32
    return %c0_i32, %c0_i32_0 : i32, i32
  }
  func.func @transform_5(%arg0: i32) -> (i32, i32) {
    %c0_i32 = arith.constant 0 : i32
    %c0_i32_0 = arith.constant 0 : i32
    %c0_i32_1 = arith.constant 0 : i32
    return %c0_i32, %c0_i32_0 : i32, i32
  }
  func.func @transform_6(%arg0: i32) -> (i32, i32) {
    %c0_i32 = arith.constant 0 : i32
    %c0_i32_0 = arith.constant 0 : i32
    %c0_i32_1 = arith.constant 0 : i32
    return %c0_i32, %c0_i32_0 : i32, i32
  }
  func.func @transform_7(%arg0: i32) -> (i32, i32) {
    %c0_i32 = arith.constant 0 : i32
    %c0_i32_0 = arith.constant 0 : i32
    %c0_i32_1 = arith.constant 0 : i32
    return %c0_i32, %c0_i32_0 : i32, i32
  }
  func.func @transform_8(%arg0: i32) -> (i32, i32) {
    %c0_i32 = arith.constant 0 : i32
    %c0_i32_0 = arith.constant 0 : i32
    %c0_i32_1 = arith.constant 0 : i32
    return %c0_i32, %c0_i32_0 : i32, i32
  }
  func.func @transform_9(%arg0: i32) -> (i32, i32) {
    %c0_i32 = arith.constant 0 : i32
    %c0_i32_0 = arith.constant 0 : i32
    %c0_i32_1 = arith.constant 0 : i32
    return %c0_i32, %c0_i32_0 : i32, i32
  }
  func.func @transform_10(%arg0: i32) -> (i32, i32, i32) {
    %c0_i32 = arith.constant 0 : i32
    %c0_i32_0 = arith.constant 0 : i32
    %c0_i32_1 = arith.constant 0 : i32
    return %arg0, %c0_i32, %c0_i32_0 : i32, i32, i32
  }
}

module attributes {stable_mosaic.version = 11 : i64} {
  func.func @_roi_head_kernel(%arg0: i32, %arg1: memref<32x256xbf16, #tpu.memory_space<vmem>>, %arg2: memref<256x64xbf16, #tpu.memory_space<vmem>>, %arg3: memref<1x64xf32, #tpu.memory_space<vmem>>, %arg4: memref<64x64xbf16, #tpu.memory_space<vmem>>, %arg5: memref<1x64xf32, #tpu.memory_space<vmem>>, %arg6: memref<64x32xbf16, #tpu.memory_space<vmem>>, %arg7: memref<1x32xf32, #tpu.memory_space<vmem>>, %arg8: memref<32x32xf32, #tpu.memory_space<vmem>>) attributes {dimension_semantics = [#tpu.dimension_semantics<arbitrary>], iteration_bounds = array<i64: 1>, scalar_prefetch = 0 : i64, scratch_operands = 0 : i64, tpu.core_type = #tpu.core_type<tc>, window_params = [{pipeline_mode = #tpu.pipeline_mode<synchronous>, transform_indices = @transform_0, window_bounds = array<i64: 32, 256>}, {pipeline_mode = #tpu.pipeline_mode<synchronous>, transform_indices = @transform_1, window_bounds = array<i64: 256, 64>}, {pipeline_mode = #tpu.pipeline_mode<synchronous>, transform_indices = @transform_2, window_bounds = array<i64: 1, 64>}, {pipeline_mode = #tpu.pipeline_mode<synchronous>, transform_indices = @transform_3, window_bounds = array<i64: 64, 64>}, {pipeline_mode = #tpu.pipeline_mode<synchronous>, transform_indices = @transform_4, window_bounds = array<i64: 1, 64>}, {pipeline_mode = #tpu.pipeline_mode<synchronous>, transform_indices = @transform_5, window_bounds = array<i64: 64, 32>}, {pipeline_mode = #tpu.pipeline_mode<synchronous>, transform_indices = @transform_6, window_bounds = array<i64: 1, 32>}, {pipeline_mode = #tpu.pipeline_mode<synchronous>, transform_indices = @transform_7, window_bounds = array<i64: 32, 32>}]} {
    %c0 = arith.constant 0 : index
    %c0_0 = arith.constant 0 : index
    %0 = vector.load %arg1[%c0, %c0_0] : memref<32x256xbf16, #tpu.memory_space<vmem>>, vector<32x256xbf16>
    %c0_1 = arith.constant 0 : index
    %c0_2 = arith.constant 0 : index
    %1 = vector.load %arg2[%c0_1, %c0_2] : memref<256x64xbf16, #tpu.memory_space<vmem>>, vector<256x64xbf16>
    %cst = arith.constant dense<0.000000e+00> : vector<32x64xf32>
    %2 = tpu.matmul %0, %1, %cst {dimension_numbers = #tpu.dot_dimension_numbers<[1], [0], [0], [1], [0, 0, 1, 1], [], []>} : vector<32x256xbf16>, vector<256x64xbf16>, vector<32x64xf32> -> vector<32x64xf32>
    %c0_3 = arith.constant 0 : index
    %c0_4 = arith.constant 0 : index
    %3 = vector.load %arg3[%c0_3, %c0_4] : memref<1x64xf32, #tpu.memory_space<vmem>>, vector<1x64xf32>
    %4 = vector.broadcast %3 : vector<1x64xf32> to vector<32x64xf32>
    %5 = arith.addf %2, %4 : vector<32x64xf32>
    %cst_5 = arith.constant 0.000000e+00 : f32
    %6 = vector.broadcast %cst_5 : f32 to vector<32x64xf32>
    %7 = arith.maximumf %5, %6 : vector<32x64xf32>
    %8 = arith.truncf %7 : vector<32x64xf32> to vector<32x64xbf16>
    %c0_6 = arith.constant 0 : index
    %c0_7 = arith.constant 0 : index
    %9 = vector.load %arg4[%c0_6, %c0_7] : memref<64x64xbf16, #tpu.memory_space<vmem>>, vector<64x64xbf16>
    %cst_8 = arith.constant dense<0.000000e+00> : vector<32x64xf32>
    %10 = tpu.matmul %8, %9, %cst_8 {dimension_numbers = #tpu.dot_dimension_numbers<[1], [0], [0], [1], [0, 0, 1, 1], [], []>} : vector<32x64xbf16>, vector<64x64xbf16>, vector<32x64xf32> -> vector<32x64xf32>
    %c0_9 = arith.constant 0 : index
    %c0_10 = arith.constant 0 : index
    %11 = vector.load %arg5[%c0_9, %c0_10] : memref<1x64xf32, #tpu.memory_space<vmem>>, vector<1x64xf32>
    %12 = vector.broadcast %11 : vector<1x64xf32> to vector<32x64xf32>
    %13 = arith.addf %10, %12 : vector<32x64xf32>
    %cst_11 = arith.constant 0.000000e+00 : f32
    %14 = vector.broadcast %cst_11 : f32 to vector<32x64xf32>
    %15 = arith.maximumf %13, %14 : vector<32x64xf32>
    %16 = arith.truncf %15 : vector<32x64xf32> to vector<32x64xbf16>
    %c0_12 = arith.constant 0 : index
    %c0_13 = arith.constant 0 : index
    %17 = vector.load %arg6[%c0_12, %c0_13] : memref<64x32xbf16, #tpu.memory_space<vmem>>, vector<64x32xbf16>
    %cst_14 = arith.constant dense<0.000000e+00> : vector<32x32xf32>
    %18 = tpu.matmul %16, %17, %cst_14 {dimension_numbers = #tpu.dot_dimension_numbers<[1], [0], [0], [1], [0, 0, 1, 1], [], []>} : vector<32x64xbf16>, vector<64x32xbf16>, vector<32x32xf32> -> vector<32x32xf32>
    %c0_15 = arith.constant 0 : index
    %c0_16 = arith.constant 0 : index
    %19 = vector.load %arg7[%c0_15, %c0_16] : memref<1x32xf32, #tpu.memory_space<vmem>>, vector<1x32xf32>
    %20 = vector.broadcast %19 : vector<1x32xf32> to vector<32x32xf32>
    %21 = arith.addf %18, %20 : vector<32x32xf32>
    %22 = tpu.iota {dimensions = array<i32: 1>} : vector<32x32xi32>
    %c5_i32 = arith.constant 5 : i32
    %23 = vector.broadcast %c5_i32 : i32 to vector<32x32xi32>
    %24 = arith.cmpi slt, %22, %23 : vector<32x32xi32>
    %cst_17 = arith.constant -1.000000e+30 : f32
    %25 = vector.broadcast %cst_17 : f32 to vector<32x32xf32>
    %26 = arith.select %24, %21, %25 : vector<32x32xi1>, vector<32x32xf32>
    %cst_18 = arith.constant dense<0xFF800000> : vector<32xf32>
    %27 = vector.multi_reduction <maximumf>, %26, %cst_18 [1] : vector<32x32xf32> to vector<32xf32>
    %28 = vector.shape_cast %27 : vector<32xf32> to vector<32x1xf32>
    %29 = vector.broadcast %28 : vector<32x1xf32> to vector<32x32xf32>
    %30 = arith.subf %26, %29 : vector<32x32xf32>
    %31 = math.exp %30 : vector<32x32xf32>
    %cst_19 = arith.constant 0.000000e+00 : f32
    %32 = vector.broadcast %cst_19 : f32 to vector<32x32xf32>
    %33 = arith.select %24, %31, %32 : vector<32x32xi1>, vector<32x32xf32>
    %cst_20 = arith.constant dense<0.000000e+00> : vector<32xf32>
    %34 = vector.multi_reduction <add>, %33, %cst_20 [1] : vector<32x32xf32> to vector<32xf32>
    %35 = vector.shape_cast %34 : vector<32xf32> to vector<32x1xf32>
    %36 = tpu.reciprocal %35 {approx = true} : vector<32x1xf32> -> vector<32x1xf32>
    %37 = vector.broadcast %36 : vector<32x1xf32> to vector<32x32xf32>
    %38 = arith.mulf %33, %37 : vector<32x32xf32>
    %39 = arith.select %24, %38, %21 : vector<32x32xi1>, vector<32x32xf32>
    %c0_21 = arith.constant 0 : index
    %c0_22 = arith.constant 0 : index
    %40 = vector.load %arg8[%c0_21, %c0_22] : memref<32x32xf32, #tpu.memory_space<vmem>>, vector<32x32xf32>
    tpu.vector_store %arg8[%c0_21, %c0_22], %39 {strides = array<i32>} : memref<32x32xf32, #tpu.memory_space<vmem>>, vector<32x32xf32>,
    return
  }
  func.func @transform_0(%arg0: i32) -> (i32, i32) {
    %c0_i32 = arith.constant 0 : i32
    %c0_i32_0 = arith.constant 0 : i32
    %c0_i32_1 = arith.constant 0 : i32
    return %c0_i32, %c0_i32_0 : i32, i32
  }
  func.func @transform_1(%arg0: i32) -> (i32, i32) {
    %c0_i32 = arith.constant 0 : i32
    %c0_i32_0 = arith.constant 0 : i32
    %c0_i32_1 = arith.constant 0 : i32
    return %c0_i32, %c0_i32_0 : i32, i32
  }
  func.func @transform_2(%arg0: i32) -> (i32, i32) {
    %c0_i32 = arith.constant 0 : i32
    %c0_i32_0 = arith.constant 0 : i32
    %c0_i32_1 = arith.constant 0 : i32
    return %c0_i32, %c0_i32_0 : i32, i32
  }
  func.func @transform_3(%arg0: i32) -> (i32, i32) {
    %c0_i32 = arith.constant 0 : i32
    %c0_i32_0 = arith.constant 0 : i32
    %c0_i32_1 = arith.constant 0 : i32
    return %c0_i32, %c0_i32_0 : i32, i32
  }
  func.func @transform_4(%arg0: i32) -> (i32, i32) {
    %c0_i32 = arith.constant 0 : i32
    %c0_i32_0 = arith.constant 0 : i32
    %c0_i32_1 = arith.constant 0 : i32
    return %c0_i32, %c0_i32_0 : i32, i32
  }
  func.func @transform_5(%arg0: i32) -> (i32, i32) {
    %c0_i32 = arith.constant 0 : i32
    %c0_i32_0 = arith.constant 0 : i32
    %c0_i32_1 = arith.constant 0 : i32
    return %c0_i32, %c0_i32_0 : i32, i32
  }
  func.func @transform_6(%arg0: i32) -> (i32, i32) {
    %c0_i32 = arith.constant 0 : i32
    %c0_i32_0 = arith.constant 0 : i32
    %c0_i32_1 = arith.constant 0 : i32
    return %c0_i32, %c0_i32_0 : i32, i32
  }
  func.func @transform_7(%arg0: i32) -> (i32, i32) {
    %c0_i32 = arith.constant 0 : i32
    %c0_i32_0 = arith.constant 0 : i32
    %c0_i32_1 = arith.constant 0 : i32
    return %c0_i32, %c0_i32_0 : i32, i32
  }
}

</mosaic_0001>

<bundles_post_ra>
// kernel: generalized_rcnn_forward.2
= control target key start
LH: loop header
LB: loop body
LE: loop exit
PB: predicated region body
PF: predicated region fallthrough
CT: control target
= control target key end

     0   :  { %s6393_s13 = smov 0   ;;  %s10417_s0 = inlined_call_operand.vmem [shape: f32[2,324,8], index: 0, kind: input, shape index: {}]   ;;  %s10418_s1 = inlined_call_operand.vmem [shape: f32[324,1], index: 1, kind: input, shape index: {}]   ;;  %s10419_s2 = inlined_call_operand.vmem [shape: f32[1,8], index: 2, kind: input, shape index: {}]   ;;  %s10420_s3 = inlined_call_operand.vmem [shape: f32[1,8], index: 3, kind: input, shape index: {}]   ;;  %s10421_s4 = inlined_call_operand.vmem [shape: bf16[72,16], index: 4, kind: input, shape index: {}]   ;;  %s10422_s5 = inlined_call_operand.vmem [shape: f32[1,16], index: 5, kind: input, shape index: {}]   ;;  %s10423_s6 = inlined_call_operand.vmem [shape: bf16[144,16], index: 6, kind: input, shape index: {}]   ;;  %s10424_s7 = inlined_call_operand.vmem [shape: f32[1,16], index: 7, kind: input, shape index: {}]   ;;  %s10425_s8 = inlined_call_operand.vmem [shape: bf16[16,16], index: 8, kind: input, shape index: {}]   ;;  %s10426_s9 = inlined_call_operand.vmem [shape: f32[1,16], index: 9, kind: input, shape index: {}]   ;;  %s10427_s10 = inlined_call_operand.vmem [shape: f32[2,324,32], index: 10, kind: output, shape index: {}]  }
   0x1 LB: > { %s5652_s14 = sadd.s32 4294967295, %s6324_s13   ;;  %p5656_p0 = scmp.ge.s32.totalorder %s6324_s13, 1  ;;  %s6324_s13 = sphi %s6393_s13, %s20_s13  }
   0x2   : > { %p312_p1 = scmp.lt.s32.totalorder %s6324_s13, 3 }
   0x4   : > { %p313_p2 = pnand %p5656_p0, %p312_p1 }
   0x6   : > { %316 = sbr.rel (%p313_p2) target bundleno = 1671 (0x687), region = 60 }
   0xb   : > { %v365_v0 = vld [vmem:[%s10418_s1 + $0x20] sm:$0xff]  ;;  %v363_v1 = vld [vmem:[%s10418_s1 + $0x10] sm:$0xff]  ;;  %v10441_v3 = vmov 0   ;;  %v366_v7 = vld [vmem:[%s10418_s1 + $0x28] sm:$0xff]  ;;  %p350_p3 = scmp.lt.s32.totalorder %s5652_s14, 1  ;;  %s6327_s17 = smov 8  }
   0xc   : > { %v361_v2 = vld [vmem:[%s10418_s1] sm:$0xff]  ;;  %6275 = vset.pattern.permute.xlu2 %v10441_v3  ;;  %6274 = vset.pattern.permute.xlu1 %v10441_v3  ;;  %vm406_vm0 = vcmp.gt.f32.partialorder %v365_v0, 0.5  ;;  %vm404_vm1 = vcmp.gt.f32.partialorder %v363_v1, 0.5  ;;  %v364_v8 = vld [vmem:[%s10418_s1 + $0x18] sm:$0xff]  ;;  %v362_v9 = vld [vmem:[%s10418_s1 + $0x8] sm:$0xff]  ;;  %vm407_vm3 = vcmp.gt.f32.partialorder %v366_v7, 0.5 }
   0xd   : > { %vm402_vm2 = vcmp.gt.f32.partialorder %v361_v2, 0.5  ;;  %6273 = vset.pattern.permute.xlu0 %v10441_v3  ;;  %v578_v4 = vsel %vm406_vm0, 1, %v10441_v3  ;;  %v576_v5 = vsel %vm404_vm1, 1, %v10441_v3  ;;  %vm405_vm4 = vcmp.gt.f32.partialorder %v364_v8, 0.5  ;;  %v369_v13 = vld [vmem:[%s10418_s1 + $0x40] sm:$0xff]  ;;  %v368_v14 = vld [vmem:[%s10418_s1 + $0x38] sm:$0xff] }
   0xe   : > { %v574_v6 = vsel %vm402_vm2, 1, %v10441_v3  ;;  %628 = vperm.xlu2 %6275, %v578_v4   ;;  %622 = vperm.xlu1 %6274, %v576_v5   ;;  %vm403_vm5 = vcmp.gt.f32.partialorder %v362_v9, 0.5  ;;  %v579_v10 = vsel %vm407_vm3, 1, %v10441_v3  ;;  %v577_v11 = vsel %vm405_vm4, 1, %v10441_v3  ;;  %v367_v15 = vld [vmem:[%s10418_s1 + $0x30] sm:$0xff]  ;;  %v372_v19 = vld [vmem:[%s10418_s1 + $0x58] sm:$0xff] }
   0xf   : > { %616 = vperm.xlu0 %6273, %v574_v6   ;;  %v575_v12 = vsel %vm403_vm5, 1, %v10441_v3  ;;  %vm410_vm6 = vcmp.gt.f32.partialorder %v369_v13, 0.5  ;;  %vm409_vm7 = vcmp.gt.f32.partialorder %v368_v14, 0.5  ;;  %vm408_vm8 = vcmp.gt.f32.partialorder %v367_v15, 0.5  ;;  %v371_v20 = vld [vmem:[%s10418_s1 + $0x50] sm:$0xff]  ;;  %v370_v21 = vld [vmem:[%s10418_s1 + $0x48] sm:$0xff] }
  0x10   : > { %v582_v16 = vsel %vm410_vm6, 1, %v10441_v3  ;;  %v581_v17 = vsel %vm409_vm7, 1, %v10441_v3  ;;  %v580_v18 = vsel %vm408_vm8, 1, %v10441_v3  ;;  %vm413_vm9 = vcmp.gt.f32.partialorder %v372_v19, 0.5  ;;  %v375_v25 = vld [vmem:[%s10418_s1 + $0x70] sm:$0xff]  ;;  %v374_v26 = vld [vmem:[%s10418_s1 + $0x68] sm:$0xff] }
  0x11   : > { %vm412_vm10 = vcmp.gt.f32.partialorder %v371_v20, 0.5  ;;  %vm411_vm11 = vcmp.gt.f32.partialorder %v370_v21, 0.5  ;;  %v585_v22 = vsel %vm413_vm9, 1, %v10441_v3  ;;  %v373_v27 = vld [vmem:[%s10418_s1 + $0x60] sm:$0xff]  ;;  %vm416_vm12 = vcmp.gt.f32.partialorder %v375_v25, 0.5  ;;  %v378_v31 = vld [vmem:[%s10418_s1 + $0x88] sm:$0xff] }
  0x12   : > { %v584_v23 = vsel %vm412_vm10, 1, %v10441_v3  ;;  %v583_v24 = vsel %vm411_vm11, 1, %v10441_v3  ;;  %vm415_vm13 = vcmp.gt.f32.partialorder %v374_v26, 0.5  ;;  %vm414_vm14 = vcmp.gt.f32.partialorder %v373_v27, 0.5  ;;  %v377_v32 = vld [vmem:[%s10418_s1 + $0x80] sm:$0xff]  ;;  %v376_v33 = vld [vmem:[%s10418_s1 + $0x78] sm:$0xff] }
  0x13   : > { %v588_v28 = vsel %vm416_vm12, 1, %v10441_v3  ;;  %v587_v29 = vsel %vm415_vm13, 1, %v10441_v3  ;;  %v586_v30 = vsel %vm414_vm14, 1, %v10441_v3  ;;  %vm419_vm15 = vcmp.gt.f32.partialorder %v378_v31, 0.5  ;;  %v381_v37 = vld [vmem:[%s10418_s1 + $0xa0] sm:$0xff]  ;;  %v380_v38 = vld [vmem:[%s10418_s1 + $0x98] sm:$0xff] }
  0x14   : > { %vm418_vm0 = vcmp.gt.f32.partialorder %v377_v32, 0.5  ;;  %vm417_vm1 = vcmp.gt.f32.partialorder %v376_v33, 0.5  ;;  %v591_v34 = vsel %vm419_vm15, 1, %v10441_v3  ;;  %v379_v39 = vld [vmem:[%s10418_s1 + $0x90] sm:$0xff]  ;;  %vm422_vm2 = vcmp.gt.f32.partialorder %v381_v37, 0.5  ;;  %v384_v43 = vld [vmem:[%s10418_s1 + $0xb8] sm:$0xff] }
  0x15   : > { %v590_v35 = vsel %vm418_vm0, 1, %v10441_v3  ;;  %v589_v36 = vsel %vm417_vm1, 1, %v10441_v3  ;;  %vm421_vm3 = vcmp.gt.f32.partialorder %v380_v38, 0.5  ;;  %vm420_vm4 = vcmp.gt.f32.partialorder %v379_v39, 0.5  ;;  %v383_v44 = vld [vmem:[%s10418_s1 + $0xb0] sm:$0xff]  ;;  %v382_v45 = vld [vmem:[%s10418_s1 + $0xa8] sm:$0xff] }
  0x16   : > { %631 = vperm.xlu2 %6275, %v579_v10   ;;  %625 = vperm.xlu1 %6274, %v577_v11   ;;  %v594_v40 = vsel %vm422_vm2, 1, %v10441_v3  ;;  %v593_v41 = vsel %vm421_vm3, 1, %v10441_v3  ;;  %v592_v42 = vsel %vm420_vm4, 1, %v10441_v3  ;;  %vm425_vm5 = vcmp.gt.f32.partialorder %v384_v43, 0.5  ;;  %v387_v49 = vld [vmem:[%s10418_s1 + $0xd0] sm:$0xff]  ;;  %v386_v50 = vld [vmem:[%s10418_s1 + $0xc8] sm:$0xff] }
  0x17   : > { %619 = vperm.xlu0 %6273, %v575_v12   ;;  %vm424_vm6 = vcmp.gt.f32.partialorder %v383_v44, 0.5  ;;  %vm423_vm7 = vcmp.gt.f32.partialorder %v382_v45, 0.5  ;;  %v597_v46 = vsel %vm425_vm5, 1, %v10441_v3  ;;  %v385_v51 = vld [vmem:[%s10418_s1 + $0xc0] sm:$0xff]  ;;  %vm820_vm8 = vcmask 60416   ;;  %v390_v55 = vld [vmem:[%s10418_s1 + $0xe8] sm:$0xff] }
  0x18   : > { %v596_v47 = vsel %vm424_vm6, 1, %v10441_v3  ;;  %v595_v48 = vsel %vm423_vm7, 1, %v10441_v3  ;;  %vm428_vm9 = vcmp.gt.f32.partialorder %v387_v49, 0.5  ;;  %vm427_vm10 = vcmp.gt.f32.partialorder %v386_v50, 0.5  ;;  %822 = vst.msk [vmem:[#allocation2 + $0x4] sm:$0xf] %vm820_vm8, %v10441_v3 }
  0x19   : > { %vm426_vm11 = vcmp.gt.f32.partialorder %v385_v51, 0.5  ;;  %823 = vst.msk [vmem:[#allocation2 + $0x8] sm:$0xf] %vm820_vm8, %v10441_v3  ;;  %v600_v52 = vsel %vm428_vm9, 1, %v10441_v3  ;;  %v599_v53 = vsel %vm427_vm10, 1, %v10441_v3  ;;  %v389_v56 = vld [vmem:[%s10418_s1 + $0xe0] sm:$0xff] }
  0x1a   : > { %824 = vst.msk [vmem:[#allocation2 + $0xc] sm:$0xf] %vm820_vm8, %v10441_v3  ;;  %v598_v54 = vsel %vm426_vm11, 1, %v10441_v3  ;;  %v388_v57 = vld [vmem:[%s10418_s1 + $0xd8] sm:$0xff]  ;;  %vm431_vm12 = vcmp.gt.f32.partialorder %v390_v55, 0.5  ;;  %vm430_vm13 = vcmp.gt.f32.partialorder %v389_v56, 0.5 }
  0x1b   : > { %827 = vst.msk [vmem:[#allocation2 + $0xb4] sm:$0xf] %vm820_vm8, %v10441_v3  ;;  %vm429_vm14 = vcmp.gt.f32.partialorder %v388_v57, 0.5  ;;  %v603_v58 = vsel %vm431_vm12, 1, %v10441_v3  ;;  %v602_v59 = vsel %vm430_vm13, 1, %v10441_v3  ;;  %s10888_s14 = smov (!%p350_p3, %s5652_s14), 1 }
  0x1c   : > { %828 = vst.msk [vmem:[#allocation2 + $0xb8] sm:$0xf] %vm820_vm8, %v10441_v3  ;;  %v601_v60 = vsel %vm429_vm14, 1, %v10441_v3  ;;  %v393_v61 = vld [vmem:[%s10418_s1 + $0x100] sm:$0xff]  ;;  %v392_v62 = vld [vmem:[%s10418_s1 + $0xf8] sm:$0xff]  ;;  %v391_v63 = vld [vmem:[%s10418_s1 + $0xf0] sm:$0xff] }
  0x1d   : > { %vm434_vm15 = vcmp.gt.f32.partialorder %v393_v61, 0.5  ;;  %vm433_vm0 = vcmp.gt.f32.partialorder %v392_v62, 0.5  ;;  %s6252_s27 = smul.u32 328, %s10888_s14  ;;  %vm432_vm1 = vcmp.gt.f32.partialorder %v391_v63, 0.5  ;;  %v396_v4 = vld [vmem:[%s10418_s1 + $0x118] sm:$0xff]  ;;  %v395_v5 = vld [vmem:[%s10418_s1 + $0x110] sm:$0xff] }
  0x1e   : > { %640 = vperm.xlu2 %6275, %v582_v16   ;;  %637 = vperm.xlu1 %6274, %v581_v17   ;;  %v606_v0 = vsel %vm434_vm15, 1, %v10441_v3  ;;  %v605_v1 = vsel %vm433_vm0, 1, %v10441_v3  ;;  %v604_v2 = vsel %vm432_vm1, 1, %v10441_v3  ;;  %v394_v6 = vld [vmem:[%s10418_s1 + $0x108] sm:$0xff]  ;;  %v6572_v7 = vld [vmem:[%s10419_s2] ss:$0 sm:$0xff] }
  0x1f   : > { %634 = vperm.xlu0 %6273, %v580_v18   ;;  %s6558_s30 = scalar_lea.vmem %s10417_s0, %s6252_s27  ;;  %vm437_vm2 = vcmp.gt.f32.partialorder %v396_v4, 0.5  ;;  %vm436_vm3 = vcmp.gt.f32.partialorder %v395_v5, 0.5  ;;  %vm435_vm4 = vcmp.gt.f32.partialorder %v394_v6, 0.5  ;;  %v6578_v9 = vld [vmem:[%s10420_s3] ss:$0 sm:$0xff]  ;;  %v399_v14 = vld [vmem:[%s10418_s1 + $0x130] sm:$0xff]  ;;  %s7907_s29 = scalar_lea.vmem %s10427_s10, %s6252_s27 }
  0x20   : > { %v447_v8 = vld [vmem:[%s6558_s30 + $0x20] sm:$0xff]  ;;  %v609_v11 = vsel %vm437_vm2, 1, %v10441_v3  ;;  %v608_v12 = vsel %vm436_vm3, 1, %v10441_v3  ;;  %v607_v13 = vsel %vm435_vm4, 1, %v10441_v3  ;;  %v398_v15 = vld [vmem:[%s10418_s1 + $0x128] sm:$0xff]  ;;  %vm440_vm5 = vcmp.gt.f32.partialorder %v399_v14, 0.5 }
  0x21   : > { %v492_v10 = vmul.f32 %v6572_v7, %v447_v8  ;;  %v397_v17 = vld [vmem:[%s10418_s1 + $0x120] sm:$0xff]  ;;  %v448_v18 = vld [vmem:[%s6558_s30 + $0x28] sm:$0xff]  ;;  %vm439_vm6 = vcmp.gt.f32.partialorder %v398_v15, 0.5  ;;  %v454_v37 = vld [vmem:[%s6558_s30 + $0x58] sm:$0xff]  ;;  %s6329_s18 = smov 24   ;;  %s6330_s19 = smov 32  }
  0x22   : > { %vm438_vm9 = vcmp.gt.f32.partialorder %v397_v17, 0.5  ;;  %v493_v21 = vmul.f32 %v6572_v7, %v448_v18  ;;  %v401_v26 = vld [vmem:[%s10418_s1 + $0x140] sm:$0xf]  ;;  %v445_v38 = vld [vmem:[%s6558_s30 + $0x10] sm:$0xff]  ;;  %v446_v50 = vld [vmem:[%s6558_s30 + $0x18] sm:$0xff]  ;;  %s6331_s20 = smov 40  }
  0x23   : > { %v537_v16 = vadd.f32 %v6578_v9, %v492_v10  ;;  %v610_v25 = vsel %vm438_vm9, 1, %v10441_v3  ;;  %vm442_vm10 = vcmp.gt.f32.partialorder %v401_v26, 0.5  ;;  %v490_v43 = vmul.f32 %v6572_v7, %v445_v38  ;;  %v460_v5 = vld [vmem:[%s6558_s30 + $0x88] sm:$0xff]  ;;  %v450_v6 = vld [vmem:[%s6558_s30 + $0x38] sm:$0xff]  ;;  %v449_v10 = vld [vmem:[%s6558_s30 + $0x30] sm:$0xff]  ;;  %s6332_s21 = smov 48  }
  0x24   : > { %v538_v27 = vadd.f32 %v6578_v9, %v493_v21  ;;  %v495_v17 = vmul.f32 %v6572_v7, %v450_v6  ;;  %v494_v21 = vmul.f32 %v6572_v7, %v449_v10  ;;  %s6333_s22 = smov 56   ;;  %s6334_s23 = smov 64  }
  0x25   : > { %s6335_s11 = smov 80   ;;  %s6336_s12 = smov 96  }
  0x26   : > { %649 = vperm.xlu2 %6275, %v585_v22   ;;  %646 = vperm.xlu1 %6274, %v584_v23   ;;  %v612_v23 = vsel %vm440_vm5, 1, %v10441_v3  ;;  %s6337_s15 = smov 112  }
  0x27   : > { %643 = vperm.xlu0 %6273, %v583_v24   ;;  %v611_v24 = vsel %vm439_vm6, 1, %v10441_v3 }
  0x2e   : > { %658 = vperm.xlu2 %6275, %v588_v28   ;;  %655 = vperm.xlu1 %6274, %v587_v29   ;;  %v400_v28 = vld [vmem:[%s10418_s1 + $0x138] sm:$0xff]  ;;  %v451_v29 = vld [vmem:[%s6558_s30 + $0x40] sm:$0xff] }
  0x2f   : > { %652 = vperm.xlu0 %6273, %v586_v30   ;;  %vm441_vm12 = vcmp.gt.f32.partialorder %v400_v28, 0.5  ;;  %v496_v32 = vmul.f32 %v6572_v7, %v451_v29  ;;  %v540_v29 = vadd.f32 %v6578_v9, %v495_v17 }
  0x36   : > { %667 = vperm.xlu2 %6275, %v591_v34   ;;  %664 = vperm.xlu1 %6274, %v590_v35   ;;  %v614_v34 = vsel %vm442_vm10, 1, %v10441_v3  ;;  %v613_v35 = vsel %vm441_vm12, 1, %v10441_v3 }
  0x37   : > { %661 = vperm.xlu0 %6273, %v589_v36   ;;  %v541_v36 = vadd.f32 %v6578_v9, %v496_v32  ;;  %v452_v32 = vld [vmem:[%s6558_s30 + $0x48] sm:$0xff] }
  0x3e   : > { %676 = vperm.xlu2 %6275, %v594_v40   ;;  %673 = vperm.xlu1 %6274, %v593_v41   ;;  %v443_v40 = vld [vmem:[%s6558_s30] sm:$0xff] }
  0x3f   : > { %670 = vperm.xlu0 %6273, %v592_v42   ;;  %v499_v42 = vmul.f32 %v6572_v7, %v454_v37  ;;  %v488_v45 = vmul.f32 %v6572_v7, %v443_v40 }
  0x41   : > { %v533_v49 = vadd.f32 %v6578_v9, %v488_v45 }
  0x46   : > { %685 = vperm.xlu2 %6275, %v597_v46   ;;  %682 = vperm.xlu1 %6274, %v596_v47   ;;  %v544_v46 = vadd.f32 %v6578_v9, %v499_v42  ;;  %v535_v47 = vadd.f32 %v6578_v9, %v490_v43 }
  0x47   : > { %679 = vperm.xlu0 %6273, %v595_v48   ;;  %v457_v48 = vld [vmem:[%s6558_s30 + $0x70] sm:$0xff] }
  0x48   : > { %v502_v55 = vmul.f32 %v6572_v7, %v457_v48 }
  0x4e   : > { %694 = vperm.xlu2 %6275, %v600_v52   ;;  %691 = vperm.xlu1 %6274, %v599_v53   ;;  %v444_v53 = vld [vmem:[%s6558_s30 + $0x8] sm:$0xff] }
  0x4f   : > { %688 = vperm.xlu0 %6273, %v598_v54   ;;  %v489_v62 = vmul.f32 %v6572_v7, %v444_v53  ;;  %v466_v53 = vld [vmem:[%s6558_s30 + $0xb8] sm:$0xff] }
  0x50   : > { %v511_v6 = vmul.f32 %v6572_v7, %v466_v53 }
  0x51   : > { %v534_v8 = vadd.f32 %v6578_v9, %v489_v62 }
  0x56   : > { %703 = vperm.xlu2 %6275, %v603_v58   ;;  %700 = vperm.xlu1 %6274, %v602_v59   ;;  %v491_v58 = vmul.f32 %v6572_v7, %v446_v50 }
  0x57   : > { %697 = vperm.xlu0 %6273, %v601_v60  }
  0x58   : > { %v536_v4 = vadd.f32 %v6578_v9, %v491_v58  ;;  %v455_v58 = vld [vmem:[%s6558_s30 + $0x60] sm:$0xff] }
  0x5e   : > { %712 = vperm.xlu2 %6275, %v606_v0   ;;  %709 = vperm.xlu1 %6274, %v605_v1   ;;  %v6659_v0 = vld [vmem:[#allocation2 + $0x8] sm:$0xff]   ;;  %v956_v1 = vld [vmem:[#allocation2 + $0x4] sm:$0x8] }
  0x5f   : > { %706 = vperm.xlu0 %6273, %v604_v2   ;;  %v547_v2 = vadd.f32 %v6578_v9, %v502_v55 }
  0x66   : > { %721 = vperm.xlu2 %6275, %v609_v11   ;;  %718 = vperm.xlu1 %6274, %v608_v12   ;;  %v10437_v11 = vunpack.c.l.b16 %v6659_v0  ;;  %v1074_v12 = vunpack.c.l.b16 %v956_v1 }
  0x67   : > { %715 = vperm.xlu0 %6273, %v607_v13  }
  0x68   : > { %v6595_v19 = vpop.permute.xlu2 %628 }
  0x69   : > { %10542 = vst [vmem:[#allocation4_spill] sm:$0xff] %v6595_v19  ;;  %vm10521_vm7 = vcmp.eq.s32.totalorder %v6595_v19, 1 }
  0x6a   : > { %v783_v20 = vsel %vm10521_vm7, %v537_v16, 0.0  ;;  %v505_v16 = vmul.f32 %v6572_v7, %v460_v5  ;;  %vm2272_vm7 = vcmask 392192  }
  0x6b   : > { %v836_v22 = vpack.c.bf16 %v783_v20, %v783_v20 }
  0x6c   : > { %v550_v28 = vadd.f32 %v6578_v9, %v505_v16 }
  0x6d   : > { %877 = vst.msk [vmem:[#allocation2 + $0x20] sm:$0xf] %vm820_vm8, %v836_v22 }
  0x6e   : > { %730 = vperm.xlu2 %6275, %v612_v23   ;;  %727 = vperm.xlu1 %6274, %v611_v24  }
  0x6f   : > { %724 = vperm.xlu0 %6273, %v610_v25   ;;  %v6691_v25 = vpack.c.b16 %v10437_v11, %v1074_v12 }
  0x70   : > { %v6613_v30 = vpop.permute.xlu2 %631 }
  0x71   : > { %10543 = vst [vmem:[#allocation5_spill] sm:$0xff] %v6613_v30  ;;  %vm10520_vm11 = vcmp.eq.s32.totalorder %v6613_v30, 1 }
  0x72   : > { %v784_v31 = vsel %vm10520_vm11, %v538_v27, 0.0  ;;  %v463_v27 = vld [vmem:[%s6558_s30 + $0xa0] sm:$0xff]  ;;  %vm2229_vm11 = vcmask 326656  }
  0x73   : > { %v837_v33 = vpack.c.bf16 %v784_v31, %v784_v31  ;;  %v453_v31 = vld [vmem:[%s6558_s30 + $0x50] sm:$0xff]  ;;  %v508_v37 = vmul.f32 %v6572_v7, %v463_v27 }
  0x74   : > { %v498_v40 = vmul.f32 %v6572_v7, %v453_v31 }
  0x75   : > { %878 = vst.msk [vmem:[#allocation2 + $0x24] sm:$0xf] %vm820_vm8, %v837_v33  ;;  %v539_v33 = vadd.f32 %v6578_v9, %v494_v21 }
  0x76   : > { %736 = vperm.xlu1 %6274, %v614_v34   ;;  %v1080_v34 = vshll.u32 %v6691_v25, 16 }
  0x77   : > { %733 = vperm.xlu0 %6273, %v613_v35  }
  0x78   : > { %v6625_v39 = vpop.permute.xlu2 %640 }
  0x79   : > { %10544 = vst [vmem:[#allocation6_spill] sm:$0xff] %v6625_v39  ;;  %vm10468_vm13 = vcmp.eq.s32.totalorder %v6625_v39, 1 }
  0x7a   : > { %v787_v41 = vsel %vm10468_vm13, %v541_v36, 0.0 }
  0x7b   : > { %v840_v44 = vpack.c.bf16 %v787_v41, %v787_v41  ;;  %v497_v41 = vmul.f32 %v6572_v7, %v452_v32 }
  0x7c   : > { %v5975_v48 = vld [vmem:[#allocation2 + $0x20] sm:$0xff]  }
  0x7d   : > { %881 = vst.msk [vmem:[#allocation2 + $0x30] sm:$0xf] %vm820_vm8, %v840_v44  ;;  %v1078_v44 = vshrl.u32 %v6691_v25, 16 }
  0x80   : > { %v6640_v51 = vpop.permute.xlu2 %649  ;;  %v6642_v52 = vpop.permute.xlu1 %622 }
  0x81   : > { %10545 = vst [vmem:[#allocation7_spill] sm:$0xff] %v6640_v51  ;;  %vm10431_vm14 = vcmp.eq.s32.totalorder %v6640_v51, 1  ;;  %vm10525_vm15 = vcmp.eq.s32.totalorder %v6642_v52, 1  ;;  %v6647_v54 = vpop.permute.xlu0 %616 }
  0x82   : > { %10546 = vst [vmem:[#allocation8_spill] sm:$0xff] %v6642_v52  ;;  %v790_v56 = vsel %vm10431_vm14, %v544_v46, 0.0  ;;  %v781_v57 = vsel %vm10525_vm15, %v535_v47, 0.0  ;;  %vm738_vm0 = vcmp.eq.s32.totalorder %v6647_v54, 1  ;;  %vm10528_vm15 = vcmask 588800  }
  0x83   : > { %10547 = vst [vmem:[#allocation9_spill] sm:$0xff] %v6647_v54  ;;  %v843_v59 = vpack.c.bf16 %v790_v56, %v790_v56  ;;  %v834_v60 = vpack.c.bf16 %v781_v57, %v781_v57  ;;  %v779_v61 = vsel %vm738_vm0, %v533_v49, 0.0  ;;  %v1082_v49 = vrot.slane %v1080_v34, 1  ;;  %v456_v57 = vld [vmem:[%s6558_s30 + $0x68] sm:$0xff] }
  0x84   : > { %v832_v63 = vpack.c.bf16 %v779_v61, %v779_v61  ;;  %v5807_v56 = vunpack.c.h.b16 %v6659_v0  ;;  %v501_v17 = vmul.f32 %v6572_v7, %v456_v57 }
  0x85   : > { %884 = vst.msk [vmem:[#allocation2 + $0x3c] sm:$0xf] %vm820_vm8, %v843_v59  ;;  %v553_v59 = vadd.f32 %v6578_v9, %v508_v37  ;;  %v1083_v5 = vor.u32 %v1082_v49, %v1078_v44 }
  0x86   : > { %875 = vst.msk [vmem:[#allocation2 + $0x18] sm:$0xf] %vm820_vm8, %v834_v60  ;;  %v543_v60 = vadd.f32 %v6578_v9, %v498_v40  ;;  %v546_v44 = vadd.f32 %v6578_v9, %v501_v17 }
  0x87   : > { %873 = vst.msk [vmem:[#allocation2 + $0x10] sm:$0xf] %vm820_vm8, %v832_v63  ;;  %v5818_v63 = vunpack.c.l.b16 %v5975_v48 }
  0x88   : > { %v6671_v13 = vpop.permute.xlu2 %658  ;;  %v6673_v14 = vpop.permute.xlu1 %625 }
  0x89   : > { %10548 = vst [vmem:[#allocation10_spill] sm:$0xff] %v6671_v13  ;;  %vm10430_vm1 = vcmp.eq.s32.totalorder %v6671_v13, 1  ;;  %vm10524_vm2 = vcmp.eq.s32.totalorder %v6673_v14, 1  ;;  %v6677_v15 = vpop.permute.xlu0 %619 }
  0x8a   : > { %10549 = vst [vmem:[#allocation11_spill] sm:$0xff] %v6673_v14  ;;  %v793_v18 = vsel %vm10430_vm1, %v547_v2, 0.0  ;;  %v782_v20 = vsel %vm10524_vm2, %v536_v4, 0.0  ;;  %vm739_vm3 = vcmp.eq.s32.totalorder %v6677_v15, 1  ;;  %v542_v2 = vadd.f32 %v6578_v9, %v497_v41  ;;  %v469_v41 = vld [vmem:[%s6558_s30 + $0xd0] sm:$0xff] }
  0x8b   : > { %10550 = vst [vmem:[#allocation12_spill] sm:$0xff] %v6677_v15  ;;  %v846_v22 = vpack.c.bf16 %v793_v18, %v793_v18  ;;  %v835_v23 = vpack.c.bf16 %v782_v20, %v782_v20  ;;  %v780_v24 = vsel %vm739_vm3, %v534_v8, 0.0  ;;  %v500_v18 = vmul.f32 %v6572_v7, %v455_v58 }
  0x8c   : > { %v833_v26 = vpack.c.bf16 %v780_v24, %v780_v24  ;;  %v514_v58 = vmul.f32 %v6572_v7, %v469_v41  ;;  %vm2414_vm2 = vsmask.f32 5376 }
  0x8d   : > { %887 = vst.msk [vmem:[#allocation2 + $0x48] sm:$0xf] %vm820_vm8, %v846_v22  ;;  %v545_v48 = vadd.f32 %v6578_v9, %v500_v18 }
  0x8e   : > { %876 = vst.msk [vmem:[#allocation2 + $0x1c] sm:$0xf] %vm820_vm8, %v835_v23 }
  0x8f   : > { %874 = vst.msk [vmem:[#allocation2 + $0x14] sm:$0xf] %vm820_vm8, %v833_v26 }
  0x90   : > { %v6703_v35 = vpop.permute.xlu2 %667  ;;  %v6705_v36 = vpop.permute.xlu1 %637 }
  0x91   : > { %10551 = vst [vmem:[#allocation13_spill] sm:$0xff] %v6703_v35  ;;  %vm10428_vm4 = vcmp.eq.s32.totalorder %v6703_v35, 1  ;;  %vm10518_vm5 = vcmp.eq.s32.totalorder %v6705_v36, 1  ;;  %v6710_v38 = vpop.permute.xlu0 %634  ;;  %v468_v35 = vld [vmem:[%s6558_s30 + $0xc8] sm:$0xff] }
  0x92   : > { %10552 = vst [vmem:[#allocation14_spill] sm:$0xff] %v6705_v36  ;;  %v796_v42 = vsel %vm10428_vm4, %v550_v28, 0.0  ;;  %v786_v43 = vsel %vm10518_vm5, %v540_v29, 0.0  ;;  %vm10519_vm6 = vcmp.eq.s32.totalorder %v6710_v38, 1  ;;  %vm10522_vm4 = vsmask.f32 7424 }
  0x93   : > { %10553 = vst [vmem:[#allocation15_spill] sm:$0xff] %v6710_v38  ;;  %v849_v45 = vpack.c.bf16 %v796_v42, %v796_v42  ;;  %v839_v46 = vpack.c.bf16 %v786_v43, %v786_v43  ;;  %v785_v47 = vsel %vm10519_vm6, %v539_v33, 0.0  ;;  %v556_v43 = vadd.f32 %v6578_v9, %v511_v6 }
  0x94   : > { %v838_v50 = vpack.c.bf16 %v785_v47, %v785_v47  ;;  %vm2143_vm5 = vcmask 195584   ;;  %vm2186_vm6 = vcmask 261120  }
  0x95   : > { %890 = vst.msk [vmem:[#allocation2 + $0x54] sm:$0xf] %vm820_vm8, %v849_v45  ;;  %v6724_v55 = vld [vmem:[#allocation2 + $0x18] sm:$0xff]  }
  0x96   : > { %880 = vst.msk [vmem:[#allocation2 + $0x2c] sm:$0xf] %vm820_vm8, %v839_v46  ;;  %v6732_v61 = vld [vmem:[#allocation2 + $0x14] sm:$0xff]   ;;  %v10439_v62 = vunpack.c.h.b16 %v6724_v55  ;;  %v459_v46 = vld [vmem:[%s6558_s30 + $0x80] sm:$0xff] }
  0x97   : > { %v6735_v1 = vld [vmem:[#allocation2 + $0x10] sm:$0xff]   ;;  %879 = vst.msk [vmem:[#allocation2 + $0x28] sm:$0xf] %vm820_vm8, %v838_v50  ;;  %v1093_v16 = vshll.u32 %v6732_v61, 16  ;;  %v1097_v21 = vshrl.u32 %v6732_v61, 16 }
  0x98   : > { %v10440_v4 = vunpack.c.l.b16 %v6735_v1  ;;  %v6741_v8 = vpop.permute.xlu2 %676  ;;  %v6743_v10 = vpop.permute.xlu1 %646  ;;  %v6747_v12 = vpack.c.b16 %v5818_v63, %v10439_v62 }
  0x99   : > { %10554 = vst [vmem:[#allocation16_spill] sm:$0xff] %v6741_v8  ;;  %vm10429_vm9 = vcmp.eq.s32.totalorder %v6741_v8, 1  ;;  %vm10451_vm10 = vcmp.eq.s32.totalorder %v6743_v10, 1  ;;  %v6754_v20 = vpop.permute.xlu0 %643  ;;  %v6766_v26 = vrot.slane %v1093_v16, 1 }
  0x9a   : > { %10555 = vst [vmem:[#allocation17_spill] sm:$0xff] %v6743_v10  ;;  %v6759_v22 = vpack.c.b16 %v10440_v4, %v5807_v56  ;;  %v799_v23 = vsel %vm10429_vm9, %v553_v59, 0.0  ;;  %v789_v24 = vsel %vm10451_vm10, %v543_v60, 0.0  ;;  %vm10452_vm12 = vcmp.eq.s32.totalorder %v6754_v20, 1  ;;  %v458_v59 = vld [vmem:[%s6558_s30 + $0x78] sm:$0xff] }
  0x9b   : > { %10556 = vst [vmem:[#allocation18_spill] sm:$0xff] %v6754_v20  ;;  %v852_v27 = vpack.c.bf16 %v799_v23, %v799_v23  ;;  %v842_v28 = vpack.c.bf16 %v789_v24, %v789_v24  ;;  %v788_v29 = vsel %vm10452_vm12, %v542_v2, 0.0  ;;  %v1101_v31 = vshll.u32 %v6747_v12, 16 }
  0x9c   : > { %v841_v32 = vpack.c.bf16 %v788_v29, %v788_v29  ;;  %v1099_v33 = vor.u32 %v1097_v21, %v6766_v26  ;;  %v1085_v34 = vshll.u32 %v6759_v22, 16  ;;  %v504_v2 = vmul.f32 %v6572_v7, %v459_v46  ;;  %v472_v29 = vld [vmem:[%s6558_s30 + $0xe8] sm:$0xff] }
  0x9d   : > { %893 = vst.msk [vmem:[#allocation2 + $0x60] sm:$0xf] %vm820_vm8, %v852_v27  ;;  %v6774_v37 = vrot.slane %v1101_v31, 1  ;;  %v6776_v40 = vld [vmem:[#allocation2 + $0x2c] sm:$0xff]   ;;  %v503_v23 = vmul.f32 %v6572_v7, %v458_v59  ;;  %v462_v31 = vld [vmem:[%s6558_s30 + $0x98] sm:$0xff] }
  0x9e   : > { %883 = vst.msk [vmem:[#allocation2 + $0x38] sm:$0xf] %vm820_vm8, %v842_v28  ;;  %v6780_v42 = vrot.slane %v1085_v34, 1  ;;  %v6784_v45 = vld [vmem:[#allocation2 + $0x24] sm:$0xff]   ;;  %v1117_v57 = vshll.u32 %v6776_v40, 16  ;;  %v549_v34 = vadd.f32 %v6578_v9, %v504_v2  ;;  %v1121_v46 = vshrl.u32 %v6776_v40, 16 }
  0x9f   : > { %882 = vst.msk [vmem:[#allocation2 + $0x34] sm:$0xf] %vm820_vm8, %v841_v32  ;;  %v1104_v47 = vsel %vm10522_vm4, %v1099_v33, %v6774_v37  ;;  %v1109_v56 = vshll.u32 %v6784_v45, 16  ;;  %v1113_v63 = vshrl.u32 %v6784_v45, 16  ;;  %v559_v33 = vadd.f32 %v6578_v9, %v514_v58 }
  0xa0   : > { %1248 = vrot.lane.b32.xlu1 %v1104_v47, %s6327_s17  ;;  %v1088_v49 = vsel %vm10522_vm4, %v1083_v5, %v6780_v42  ;;  %v6794_v50 = vpop.permute.xlu2 %685  ;;  %v6796_v53 = vpop.permute.xlu1 %655  ;;  %v1119_v28 = vrot.slane %v1117_v57, 1  ;;  %v507_v57 = vmul.f32 %v6572_v7, %v462_v31  ;;  %v465_v31 = vld [vmem:[%s6558_s30 + $0xb0] sm:$0xff] }
  0xa1   : > { %10557 = vst [vmem:[#allocation19_spill] sm:$0xff] %v6794_v50  ;;  %1244 = vrot.lane.b32.xlu2 %v1088_v49, %s6327_s17  ;;  %vm10432_vm9 = vcmp.eq.s32.totalorder %v6794_v50, 1  ;;  %vm10433_vm1 = vcmp.eq.s32.totalorder %v6796_v53, 1  ;;  %v6805_v60 = vpop.permute.xlu0 %652  ;;  %v6814_v16 = vrot.slane %v1109_v56, 1  ;;  %v517_v56 = vmul.f32 %v6572_v7, %v472_v29 }
  0xa2   : > { %10558 = vst [vmem:[#allocation20_spill] sm:$0xff] %v6796_v53  ;;  %v802_v5 = vsel %vm10432_vm9, %v556_v43, 0.0  ;;  %v792_v6 = vsel %vm10433_vm1, %v546_v44, 0.0  ;;  %vm10434_vm14 = vcmp.eq.s32.totalorder %v6805_v60, 1  ;;  %v461_v43 = vld [vmem:[%s6558_s30 + $0x90] sm:$0xff]  ;;  %v548_v44 = vadd.f32 %v6578_v9, %v503_v23 }
  0xa3   : > { %10559 = vst [vmem:[#allocation21_spill] sm:$0xff] %v6805_v60  ;;  %v855_v17 = vpack.c.bf16 %v802_v5, %v802_v5  ;;  %v845_v18 = vpack.c.bf16 %v792_v6, %v792_v6  ;;  %v791_v21 = vsel %vm10434_vm14, %v545_v48, 0.0  ;;  %v1115_v27 = vor.u32 %v1113_v63, %v6814_v16 }
  0xa4   : > { %v844_v24 = vpack.c.bf16 %v791_v21, %v791_v21  ;;  %v1123_v59 = vor.u32 %v1121_v46, %v1119_v28  ;;  %v506_v63 = vmul.f32 %v6572_v7, %v461_v43 }
  0xa5   : > { %896 = vst.msk [vmem:[#allocation2 + $0x6c] sm:$0xf] %vm820_vm8, %v855_v17  ;;  %v1120_v32 = vsel %vm10522_vm4, %v1115_v27, %v1119_v28  ;;  %v475_v27 = vld [vmem:[%s6558_s30 + $0x100] sm:$0xff]  ;;  %v562_v28 = vadd.f32 %v6578_v9, %v517_v56 }
  0xa6   : > { %886 = vst.msk [vmem:[#allocation2 + $0x44] sm:$0xf] %vm820_vm8, %v845_v18  ;;  %v6827_v41 = vld [vmem:[#allocation2 + $0x34] sm:$0xff]   ;;  %1252 = vrot.lane.b32.xlu0 %v1120_v32, %s6327_s17  ;;  %v464_v32 = vld [vmem:[%s6558_s30 + $0xa8] sm:$0xff]  ;;  %v551_v43 = vadd.f32 %v6578_v9, %v506_v63 }
  0xa7   : > { %885 = vst.msk [vmem:[#allocation2 + $0x40] sm:$0xf] %vm820_vm8, %v844_v24  ;;  %v1125_v49 = vshll.u32 %v6827_v41, 16  ;;  %v1129_v46 = vshrl.u32 %v6827_v41, 16  ;;  %v5977_v39 = vld [vmem:[#allocation2 + $0x30] sm:$0xff]  }
  0xa8   : > { %v6834_v47 = vpop.permute.xlu2 %694  ;;  %v6836_v48 = vpop.permute.xlu1 %664 }
  0xa9   : > { %10560 = vst [vmem:[#allocation22_spill] sm:$0xff] %v6834_v47  ;;  %vm10435_vm9 = vcmp.eq.s32.totalorder %v6834_v47, 1  ;;  %vm10436_vm1 = vcmp.eq.s32.totalorder %v6836_v48, 1  ;;  %v6843_v58 = vpop.permute.xlu0 %661  ;;  %v1127_v6 = vrot.slane %v1125_v49, 1  ;;  %v1463_v49 = vshrl.u32 %v6724_v55, 16 }
  0xaa   : > { %10561 = vst [vmem:[#allocation23_spill] sm:$0xff] %v6836_v48  ;;  %v805_v2 = vsel %vm10435_vm9, %v559_v33, 0.0  ;;  %v795_v5 = vsel %vm10436_vm1, %v549_v34, 0.0  ;;  %vm10438_vm14 = vcmp.eq.s32.totalorder %v6843_v58, 1  ;;  %v1455_v33 = vshrl.u32 %v6735_v1, 16 }
  0xab   : > { %10562 = vst [vmem:[#allocation24_spill] sm:$0xff] %v6843_v58  ;;  %v858_v17 = vpack.c.bf16 %v805_v2, %v805_v2  ;;  %v848_v18 = vpack.c.bf16 %v795_v5, %v795_v5  ;;  %v794_v21 = vsel %vm10438_vm14, %v548_v44, 0.0  ;;  %v1128_v24 = vsel %vm10522_vm4, %v1123_v59, %v1127_v6 }
  0xac   : > { %v847_v23 = vpack.c.bf16 %v794_v21, %v794_v21  ;;  %1254 = vrot.lane.b32.xlu1 %v1128_v24, %s6327_s17  ;;  %v552_v34 = vadd.f32 %v6578_v9, %v507_v57  ;;  %v520_v59 = vmul.f32 %v6572_v7, %v475_v27  ;;  %v1458_v2 = vshll.u32 %v6735_v1, 16 }
  0xad   : > { %899 = vst.msk [vmem:[#allocation2 + $0x78] sm:$0xf] %vm820_vm8, %v858_v17  ;;  %v6858_v29 = vld [vmem:[#allocation2 + $0x44] sm:$0xff]   ;;  %v1466_v5 = vshll.u32 %v6724_v55, 16  ;;  %v1131_v63 = vor.u32 %v1129_v46, %v1127_v6  ;;  %v510_v21 = vmul.f32 %v6572_v7, %v465_v31  ;;  %v509_v24 = vmul.f32 %v6572_v7, %v464_v32 }
  0xae   : > { %889 = vst.msk [vmem:[#allocation2 + $0x50] sm:$0xf] %vm820_vm8, %v848_v18  ;;  %v6866_v44 = vld [vmem:[#allocation2 + $0x3c] sm:$0xff]   ;;  %v1141_v56 = vshll.u32 %v6858_v29, 16  ;;  %v1457_v11 = vrot.slane %v1455_v33, 5 }
  0xaf   : > { %888 = vst.msk [vmem:[#allocation2 + $0x4c] sm:$0xf] %vm820_vm8, %v847_v23  ;;  %v1133_v18 = vshll.u32 %v6866_v44, 16  ;;  %v1137_v27 = vshrl.u32 %v6866_v44, 16  ;;  %v478_v33 = vld [vmem:[%s6558_s30 + $0x118] sm:$0xff] }
  0xb0   : > { %v6875_v17 = vpop.permute.xlu2 %703  ;;  %v6877_v57 = vpop.permute.xlu1 %673  ;;  %v1143_v3 = vrot.slane %v1141_v56, 1  ;;  %v554_v56 = vadd.f32 %v6578_v9, %v509_v24  ;;  %v467_v24 = vld [vmem:[%s6558_s30 + $0xc0] sm:$0xff] }
  0xb1   : > { %10563 = vst [vmem:[#allocation25_spill] sm:$0xff] %v6875_v17  ;;  %vm10448_vm9 = vcmp.eq.s32.totalorder %v6875_v17, 1  ;;  %vm10449_vm1 = vcmp.eq.s32.totalorder %v6877_v57, 1  ;;  %v6884_v23 = vpop.permute.xlu0 %670  ;;  %v1135_v31 = vrot.slane %v1133_v18, 1  ;;  %v1460_v17 = vrot.slane %v1458_v2, 6 }
  0xb2   : > { %10564 = vst [vmem:[#allocation26_spill] sm:$0xff] %v6877_v57  ;;  %v808_v6 = vsel %vm10448_vm9, %v562_v28, 0.0  ;;  %v798_v46 = vsel %vm10449_vm1, %v552_v34, 0.0  ;;  %vm10450_vm14 = vcmp.eq.s32.totalorder %v6884_v23, 1  ;;  %v565_v28 = vadd.f32 %v6578_v9, %v520_v59 }
  0xb3   : > { %10565 = vst [vmem:[#allocation27_spill] sm:$0xff] %v6884_v23  ;;  %v861_v32 = vpack.c.bf16 %v808_v6, %v808_v6  ;;  %v851_v62 = vpack.c.bf16 %v798_v46, %v798_v46  ;;  %v797_v4 = vsel %vm10450_vm14, %v551_v43, 0.0  ;;  %v1136_v50 = vsel %vm10522_vm4, %v1131_v63, %v1135_v31 }
  0xb4   : > { %v850_v47 = vpack.c.bf16 %v797_v4, %v797_v4  ;;  %v1139_v8 = vor.u32 %v1137_v27, %v1135_v31  ;;  %1256 = vrot.lane.b32.xlu2 %v1136_v50, %s6327_s17  ;;  %v1145_v34 = vshrl.u32 %v6858_v29, 16  ;;  %v1465_v18 = vrot.slane %v1463_v49, 5 }
  0xb5   : > { %902 = vst.msk [vmem:[#allocation2 + $0x84] sm:$0xf] %vm820_vm8, %v861_v32  ;;  %v555_v43 = vadd.f32 %v6578_v9, %v510_v21  ;;  %v1468_v2 = vrot.slane %v1466_v5, 6  ;;  %v523_v59 = vmul.f32 %v6572_v7, %v478_v33  ;;  %v513_v49 = vmul.f32 %v6572_v7, %v468_v35 }
  0xb6   : > { %892 = vst.msk [vmem:[#allocation2 + $0x5c] sm:$0xf] %vm820_vm8, %v851_v62  ;;  %v1144_v4 = vsel %vm10522_vm4, %v1139_v8, %v1143_v3  ;;  %v6905_v63 = vld [vmem:[#allocation2 + $0x4c] sm:$0xff]   ;;  %v1147_v50 = vor.u32 %v1145_v34, %v1143_v3  ;;  %vm10527_vm9 = vsmask.f32 2304  ;;  %v6917_v27 = vor.u32 %v1460_v17, %v1457_v11 }
  0xb7   : > { %891 = vst.msk [vmem:[#allocation2 + $0x58] sm:$0xf] %vm820_vm8, %v850_v47  ;;  %1258 = vrot.lane.b32.xlu0 %v1144_v4, %s6327_s17  ;;  %v1149_v21 = vshll.u32 %v6905_v63, 16  ;;  %v10453_v5 = vrot.slane %v6735_v1, 6  ;;  %vm1687_vm1 = vcmask 1041408   ;;  %v6924_v35 = vor.u32 %v1468_v2, %v1465_v18  ;;  %v481_v4 = vld [vmem:[%s6558_s30 + $0x130] sm:$0xff] }
  0xb8   : > { %v6911_v62 = vpop.permute.xlu2 %712  ;;  %v6913_v8 = vpop.permute.xlu1 %682  ;;  %v6927_v47 = vrot.slane %v6724_v55, 6  ;;  %v512_v33 = vmul.f32 %v6572_v7, %v467_v24 }
  0xb9   : > { %10566 = vst [vmem:[#allocation28_spill] sm:$0xff] %v6911_v62  ;;  %vm10454_vm14 = vcmp.eq.s32.totalorder %v6911_v62, 1  ;;  %vm10455_vm10 = vcmp.eq.s32.totalorder %v6913_v8, 1  ;;  %v6922_v3 = vpop.permute.xlu0 %679  ;;  %v1151_v6 = vrot.slane %v1149_v21, 1  ;;  %v6947_v2 = vsel %vm10527_vm9, %v6917_v27, %v6924_v35 }
  0xba   : > { %10567 = vst [vmem:[#allocation29_spill] sm:$0xff] %v6913_v8  ;;  %v811_v11 = vsel %vm10454_vm14, %v565_v28, 0.0  ;;  %v801_v17 = vsel %vm10455_vm10, %v555_v43, 0.0  ;;  %vm10459_vm12 = vcmp.eq.s32.totalorder %v6922_v3, 1  ;;  %v471_v43 = vld [vmem:[%s6558_s30 + $0xe0] sm:$0xff]  ;;  %v558_v21 = vadd.f32 %v6578_v9, %v513_v49 }
  0xbb   : > { %10568 = vst [vmem:[#allocation30_spill] sm:$0xff] %v6922_v3  ;;  %v864_v46 = vpack.c.bf16 %v811_v11, %v811_v11  ;;  %v854_v31 = vpack.c.bf16 %v801_v17, %v801_v17  ;;  %v800_v32 = vsel %vm10459_vm12, %v554_v56, 0.0  ;;  %v1152_v18 = vsel %vm10522_vm4, %v1147_v50, %v1151_v6 }
  0xbc   : > { %v853_v34 = vpack.c.bf16 %v800_v32, %v800_v32  ;;  %1260 = vrot.lane.b32.xlu1 %v1152_v18, %s6327_s17  ;;  %v6953_v56 = vsel %vm1687_vm1, %v10453_v5, %v6927_v47  ;;  %v568_v50 = vadd.f32 %v6578_v9, %v523_v59  ;;  %v557_v11 = vadd.f32 %v6578_v9, %v512_v33  ;;  %v470_v5 = vld [vmem:[%s6558_s30 + $0xd8] sm:$0xff] }
  0xbd   : > { %905 = vst.msk [vmem:[#allocation2 + $0x90] sm:$0xf] %vm820_vm8, %v864_v46  ;;  %v6940_v28 = vld [vmem:[#allocation2 + $0x5c] sm:$0xff]   ;;  %v1153_v17 = vshrl.u32 %v6905_v63, 16  ;;  %v526_v59 = vmul.f32 %v6572_v7, %v481_v4  ;;  %v516_v49 = vmul.f32 %v6572_v7, %v471_v43  ;;  %v515_v48 = vmul.f32 %v6572_v7, %v470_v5 }
  0xbe   : > { %895 = vst.msk [vmem:[#allocation2 + $0x68] sm:$0xf] %vm820_vm8, %v854_v31  ;;  %v6958_v24 = vld [vmem:[#allocation2 + $0x54] sm:$0xff]   ;;  %v1165_v31 = vshll.u32 %v6940_v28, 16 }
  0xbf   : > { %894 = vst.msk [vmem:[#allocation2 + $0x64] sm:$0xf] %vm820_vm8, %v853_v34  ;;  %v1157_v18 = vshll.u32 %v6958_v24, 16  ;;  %v1155_v34 = vor.u32 %v1153_v17, %v1151_v6  ;;  %v1161_v62 = vshrl.u32 %v6958_v24, 16  ;;  %v474_v5 = vld [vmem:[%s6558_s30 + $0xf8] sm:$0xff] }
  0xc0   : > { %v6963_v46 = vpop.permute.xlu2 %721  ;;  %v6965_v32 = vpop.permute.xlu1 %691 }
  0xc1   : > { %10569 = vst [vmem:[#allocation31_spill] sm:$0xff] %v6963_v46  ;;  %vm10465_vm14 = vcmp.eq.s32.totalorder %v6963_v46, 1  ;;  %vm10466_vm10 = vcmp.eq.s32.totalorder %v6965_v32, 1  ;;  %v6974_v33 = vpop.permute.xlu0 %688  ;;  %v1159_v4 = vrot.slane %v1157_v18, 1  ;;  %v1167_v46 = vrot.slane %v1165_v31, 1 }
  0xc2   : > { %10570 = vst [vmem:[#allocation32_spill] sm:$0xff] %v6965_v32  ;;  %v814_v8 = vsel %vm10465_vm14, %v568_v50, 0.0  ;;  %v804_v3 = vsel %vm10466_vm10, %v558_v21, 0.0  ;;  %vm10467_vm12 = vcmp.eq.s32.totalorder %v6974_v33, 1  ;;  %v561_v50 = vadd.f32 %v6578_v9, %v516_v49 }
  0xc3   : > { %10571 = vst [vmem:[#allocation33_spill] sm:$0xff] %v6974_v33  ;;  %v867_v43 = vpack.c.bf16 %v814_v8, %v814_v8  ;;  %v857_v57 = vpack.c.bf16 %v804_v3, %v804_v3  ;;  %v803_v23 = vsel %vm10467_vm12, %v557_v11, 0.0  ;;  %v1160_v17 = vsel %vm10522_vm4, %v1155_v34, %v1159_v4 }
  0xc4   : > { %v856_v6 = vpack.c.bf16 %v803_v23, %v803_v23  ;;  %v1163_v58 = vor.u32 %v1161_v62, %v1159_v4  ;;  %1262 = vrot.lane.b32.xlu2 %v1160_v17, %s6327_s17  ;;  %v571_v3 = vadd.f32 %v6578_v9, %v526_v59  ;;  %v1089_v23 = vshrl.u32 %v6759_v22, 16  ;;  %v473_v59 = vld [vmem:[%s6558_s30 + $0xf0] sm:$0xff] }
  0xc5   : > { %908 = vst.msk [vmem:[#allocation2 + $0x9c] sm:$0xf] %vm820_vm8, %v867_v43  ;;  %v560_v62 = vadd.f32 %v6578_v9, %v515_v48  ;;  %vm830_vm14 = vcmask 58368   ;;  %v519_v48 = vmul.f32 %v6572_v7, %v474_v5 }
  0xc6   : > { %898 = vst.msk [vmem:[#allocation2 + $0x74] sm:$0xf] %vm820_vm8, %v857_v57  ;;  %v1168_v8 = vsel %vm10522_vm4, %v1163_v58, %v1167_v46  ;;  %v6992_v21 = vld [vmem:[#allocation2 + $0x64] sm:$0xff]   ;;  %v1169_v57 = vshrl.u32 %v6940_v28, 16  ;;  %v1091_v31 = vor.u32 %v1089_v23, %v6780_v42  ;;  %v518_v23 = vmul.f32 %v6572_v7, %v473_v59 }
  0xc7   : > { %897 = vst.msk [vmem:[#allocation2 + $0x70] sm:$0xf] %vm820_vm8, %v856_v6  ;;  %1264 = vrot.lane.b32.xlu0 %v1168_v8, %s6327_s17  ;;  %v1173_v18 = vshll.u32 %v6992_v21, 16 }
  0xc8   : > { %v7000_v11 = vpop.permute.xlu2 %730  ;;  %v7002_v58 = vpop.permute.xlu1 %700  ;;  %v1171_v34 = vor.u32 %v1169_v57, %v1167_v46  ;;  %v564_v57 = vadd.f32 %v6578_v9, %v519_v48  ;;  %v563_v59 = vadd.f32 %v6578_v9, %v518_v23 }
  0xc9   : > { %10572 = vst [vmem:[#allocation34_spill] sm:$0xff] %v7000_v11  ;;  %vm10469_vm10 = vcmp.eq.s32.totalorder %v7000_v11, 1  ;;  %vm10470_vm12 = vcmp.eq.s32.totalorder %v7002_v58, 1  ;;  %v7009_v49 = vpop.permute.xlu0 %697  ;;  %v1175_v42 = vrot.slane %v1173_v18, 1  ;;  %v477_v18 = vld [vmem:[%s6558_s30 + $0x110] sm:$0xff] }
  0xca   : > { %10573 = vst [vmem:[#allocation35_spill] sm:$0xff] %v7002_v58  ;;  %v817_v4 = vsel %vm10469_vm10, %v571_v3, 0.0  ;;  %v807_v43 = vsel %vm10470_vm12, %v561_v50, 0.0  ;;  %vm10517_vm13 = vcmp.eq.s32.totalorder %v7009_v49, 1  ;;  %v1096_v50 = vsel %vm10522_vm4, %v1091_v31, %v6766_v26  ;;  %v476_v26 = vld [vmem:[%s6558_s30 + $0x108] sm:$0xff] }
  0xcb   : > { %10574 = vst [vmem:[#allocation36_spill] sm:$0xff] %v7009_v49  ;;  %v870_v6 = vpack.c.bf16 %v817_v4, %v817_v4  ;;  %v860_v17 = vpack.c.bf16 %v807_v43, %v807_v43  ;;  %v806_v8 = vsel %vm10517_vm13, %v560_v62, 0.0  ;;  %v1176_v5 = vsel %vm10522_vm4, %v1171_v34, %v1175_v42 }
  0xcc   : > { %v859_v46 = vpack.c.bf16 %v806_v8, %v806_v8  ;;  %1266 = vrot.lane.b32.xlu1 %v1176_v5, %s6327_s17  ;;  %v1177_v34 = vshrl.u32 %v6992_v21, 16  ;;  %v521_v11 = vmul.f32 %v6572_v7, %v476_v26  ;;  %vm2100_vm13 = vcmask 130048  }
  0xcd   : > { %911 = vst.msk [vmem:[#allocation2 + $0xa8] sm:$0xf] %vm820_vm8, %v870_v6  ;;  %v7023_v3 = vld [vmem:[#allocation2 + $0x74] sm:$0xff]  }
  0xce   : > { %901 = vst.msk [vmem:[#allocation2 + $0x80] sm:$0xf] %vm820_vm8, %v860_v17  ;;  %v7029_v62 = vld [vmem:[#allocation2 + $0x6c] sm:$0xff]   ;;  %v1189_v6 = vshll.u32 %v7023_v3, 16  ;;  %v1179_v48 = vor.u32 %v1177_v34, %v1175_v42  ;;  %v522_v17 = vmul.f32 %v6572_v7, %v477_v18  ;;  %v566_v26 = vadd.f32 %v6578_v9, %v521_v11 }
  0xcf   : > { %900 = vst.msk [vmem:[#allocation2 + $0x7c] sm:$0xf] %vm820_vm8, %v859_v46  ;;  %1246 = vrot.lane.b32.xlu0 %v1096_v50, %s6327_s17  ;;  %v1181_v43 = vshll.u32 %v7029_v62, 16  ;;  %v1185_v46 = vshrl.u32 %v7029_v62, 16 }
  0xd0   : > { %v7036_v4 = vpop.permute.xlu1 %709  ;;  %v1191_v34 = vrot.slane %v1189_v6, 1 }
  0xd1   : > { %10575 = vst [vmem:[#allocation37_spill] sm:$0xff] %v7036_v4  ;;  %vm10473_vm10 = vcmp.eq.s32.totalorder %v7036_v4, 1  ;;  %v7042_v31 = vpop.permute.xlu0 %706  ;;  %v1183_v23 = vrot.slane %v1181_v43, 1  ;;  %v567_v43 = vadd.f32 %v6578_v9, %v522_v17 }
  0xd2   : > { %10576 = vst [vmem:[#allocation38_spill] sm:$0xff] %v7042_v31  ;;  %v810_v8 = vsel %vm10473_vm10, %v564_v57, 0.0  ;;  %vm10474_vm12 = vcmp.eq.s32.totalorder %v7042_v31, 1 }
  0xd3   : > { %v863_v5 = vpack.c.bf16 %v810_v8, %v810_v8  ;;  %v809_v50 = vsel %vm10474_vm12, %v563_v59, 0.0  ;;  %v1184_v42 = vsel %vm10522_vm4, %v1179_v48, %v1183_v23  ;;  %v1187_v18 = vor.u32 %v1185_v46, %v1183_v23  ;;  %v480_v59 = vld [vmem:[%s6558_s30 + $0x128] sm:$0xff] }
  0xd4   : > { %v862_v58 = vpack.c.bf16 %v809_v50, %v809_v50  ;;  %1268 = vrot.lane.b32.xlu2 %v1184_v42, %s6327_s17  ;;  %v1105_v48 = vshrl.u32 %v6747_v12, 16  ;;  %v1193_v23 = vshrl.u32 %v7023_v3, 16  ;;  %v525_v50 = vmul.f32 %v6572_v7, %v480_v59 }
  0xd5   : > { %904 = vst.msk [vmem:[#allocation2 + $0x8c] sm:$0xf] %vm820_vm8, %v863_v5  ;;  %v1192_v57 = vsel %vm10522_vm4, %v1187_v18, %v1191_v34 }
  0xd6   : > { %903 = vst.msk [vmem:[#allocation2 + $0x88] sm:$0xf] %vm820_vm8, %v862_v58  ;;  %v7058_v8 = vld [vmem:[#allocation2 + $0x7c] sm:$0xff]   ;;  %v1107_v17 = vor.u32 %v1105_v48, %v6774_v37  ;;  %v1195_v42 = vor.u32 %v1193_v23, %v1191_v34 }
  0xd7   : > { %1270 = vrot.lane.b32.xlu0 %v1192_v57, %s6327_s17  ;;  %v1197_v46 = vshll.u32 %v7058_v8, 16  ;;  %v479_v58 = vld [vmem:[%s6558_s30 + $0x120] sm:$0xff] }
  0xd8   : > { %v7064_v6 = vpop.permute.xlu1 %718  ;;  %v524_v31 = vmul.f32 %v6572_v7, %v479_v58  ;;  %v1112_v59 = vsel %vm10522_vm4, %v1107_v17, %v6814_v16  ;;  %v1201_v16 = vshrl.u32 %v7058_v8, 16  ;;  %v482_v58 = vld [vmem:[%s6558_s30 + $0x138] sm:$0xff] }
  0xd9   : > { %10577 = vst [vmem:[#allocation39_spill] sm:$0xff] %v7064_v6  ;;  %vm10478_vm10 = vcmp.eq.s32.totalorder %v7064_v6, 1  ;;  %v7070_v5 = vpop.permute.xlu0 %715  ;;  %v1199_v18 = vrot.slane %v1197_v46, 1 }
  0xda   : > { %10578 = vst [vmem:[#allocation40_spill] sm:$0xff] %v7070_v5  ;;  %v813_v11 = vsel %vm10478_vm10, %v567_v43, 0.0  ;;  %vm10479_vm12 = vcmp.eq.s32.totalorder %v7070_v5, 1  ;;  %v483_v43 = vld [vmem:[%s6558_s30 + $0x140] sm:$0xf]  ;;  %v569_v23 = vadd.f32 %v6578_v9, %v524_v31  ;;  %s6328_s30 = smov 16  }
  0xdb   : > { %v866_v57 = vpack.c.bf16 %v813_v11, %v813_v11  ;;  %v812_v4 = vsel %vm10479_vm12, %v566_v26, 0.0  ;;  %v1200_v37 = vsel %vm10522_vm4, %v1195_v42, %v1199_v18  ;;  %v528_v11 = vmul.f32 %v6572_v7, %v483_v43 }
  0xdc   : > { %v865_v49 = vpack.c.bf16 %v812_v4, %v812_v4  ;;  %v7083_v48 = vld [vmem:[#allocation2 + $0x8c] sm:$0xff]   ;;  %1272 = vrot.lane.b32.xlu1 %v1200_v37, %s6327_s17  ;;  %1250 = vrot.lane.b32.xlu2 %v1112_v59, %s6327_s17  ;;  %v570_v4 = vadd.f32 %v6578_v9, %v525_v50  ;;  %v527_v59 = vmul.f32 %v6572_v7, %v482_v58 }
  0xdd   : > { %907 = vst.msk [vmem:[#allocation2 + $0x98] sm:$0xf] %vm820_vm8, %v866_v57  ;;  %v7088_v34 = vld [vmem:[#allocation2 + $0x84] sm:$0xff]   ;;  %v1213_v26 = vshll.u32 %v7083_v48, 16  ;;  %v573_v7 = vadd.f32 %v6578_v9, %v528_v11 }
  0xde   : > { %906 = vst.msk [vmem:[#allocation2 + $0x94] sm:$0xf] %vm820_vm8, %v865_v49  ;;  %v1205_v46 = vshll.u32 %v7088_v34, 16  ;;  %v1203_v49 = vor.u32 %v1201_v16, %v1199_v18  ;;  %v1209_v50 = vshrl.u32 %v7088_v34, 16 }
  0xdf   : > { %v1215_v37 = vrot.slane %v1213_v26, 1  ;;  %v572_v26 = vadd.f32 %v6578_v9, %v527_v59 }
  0xe0   : > { %v7098_v17 = vpop.permute.xlu1 %727  ;;  %v1207_v57 = vrot.slane %v1205_v46, 1 }
  0xe1   : > { %10579 = vst [vmem:[#allocation41_spill] sm:$0xff] %v7098_v17  ;;  %vm10484_vm10 = vcmp.eq.s32.totalorder %v7098_v17, 1  ;;  %v7102_v42 = vpop.permute.xlu0 %724 }
  0xe2   : > { %10580 = vst [vmem:[#allocation42_spill] sm:$0xff] %v7102_v42  ;;  %v816_v31 = vsel %vm10484_vm10, %v570_v4, 0.0  ;;  %vm10485_vm12 = vcmp.eq.s32.totalorder %v7102_v42, 1  ;;  %v1208_v5 = vsel %vm10522_vm4, %v1203_v49, %v1207_v57  ;;  %v1211_v32 = vor.u32 %v1209_v50, %v1207_v57  ;;  %v955_v49 = vld [vmem:[#allocation2 + $0xa8] sm:$0x1] }
  0xe3   : > { %v869_v6 = vpack.c.bf16 %v816_v31, %v816_v31  ;;  %v815_v43 = vsel %vm10485_vm12, %v569_v23, 0.0  ;;  %v1217_v23 = vshrl.u32 %v7083_v48, 16  ;;  %v1051_v59 = vunpack.c.l.b16 %v955_v49 }
  0xe4   : > { %v868_v33 = vpack.c.bf16 %v815_v43, %v815_v43  ;;  %1274 = vrot.lane.b32.xlu2 %v1208_v5, %s6327_s17  ;;  %v1216_v18 = vsel %vm10522_vm4, %v1211_v32, %v1215_v37 }
  0xe5   : > { %910 = vst.msk [vmem:[#allocation2 + $0xa4] sm:$0xf] %vm820_vm8, %v869_v6  ;;  %v7115_v4 = vld [vmem:[#allocation2 + $0x94] sm:$0xff]   ;;  %1276 = vrot.lane.b32.xlu0 %v1216_v18, %s6327_s17  ;;  %v1219_v32 = vor.u32 %v1217_v23, %v1215_v37 }
  0xe6   : > { %909 = vst.msk [vmem:[#allocation2 + $0xa0] sm:$0xf] %vm820_vm8, %v868_v33  ;;  %v1221_v16 = vshll.u32 %v7115_v4, 16  ;;  %v1225_v43 = vshrl.u32 %v7115_v4, 16 }
  0xe8   : > { %v7123_v46 = vpop.permute.xlu1 %736  ;;  %v1223_v5 = vrot.slane %v1221_v16, 1 }
  0xe9   : > { %10581 = vst [vmem:[#allocation43_spill] sm:$0xff] %v7123_v46  ;;  %vm10500_vm10 = vcmp.eq.s32.totalorder %v7123_v46, 1  ;;  %v7126_v6 = vpop.permute.xlu0 %733  ;;  %v1319_v46 = vrot.slane %v7058_v8, 1  ;;  %v1321_v8 = vrot.slane %v7088_v34, 1 }
  0xea   : > { %10582 = vst [vmem:[#allocation44_spill] sm:$0xff] %v7126_v6  ;;  %v819_v33 = vsel %vm10500_vm10, %v573_v7, 0.0  ;;  %vm10514_vm12 = vcmp.eq.s32.totalorder %v7126_v6, 1  ;;  %v1224_v11 = vsel %vm10522_vm4, %v1219_v32, %v1223_v5  ;;  %v10588_v6 = vmov 0  }
  0xeb   : > { %v872_v58 = vpack.c.bf16 %v819_v33, %v819_v33  ;;  %v818_v9 = vsel %vm10514_vm12, %v572_v26, 0.0  ;;  %1278 = vrot.lane.b32.xlu1 %v1224_v11, %s6327_s17  ;;  %v1227_v26 = vor.u32 %v1225_v43, %v1223_v5  ;;  %v1290_v5 = vrot.slane %v6691_v25, 1 }
  0xec   : > { %v871_v57 = vpack.c.bf16 %v818_v9, %v818_v9  ;;  %v1295_v43 = vrot.slane %v6747_v12, 1  ;;  %vm10541_vm10 = vcmask 1040384   ;;  %vm2673_vm12 = vcmask 1043456  }
  0xed   : > { %913 = vst.msk [vmem:[#allocation2 + $0xb0] sm:$0x3] %vm830_vm14, %v872_v58  ;;  %v7136_v50 = vld [vmem:[#allocation2 + $0x9c] sm:$0xff]   ;;  %vm825_vm14 = vcmask 60418  }
  0xee   : > { %v5991_v31 = vld [vmem:[#allocation2 + $0xa0] sm:$0xff]   ;;  %912 = vst.msk [vmem:[#allocation2 + $0xac] sm:$0xf] %vm820_vm8, %v871_v57  ;;  %v1229_v18 = vshll.u32 %v7136_v50, 16  ;;  %v1233_v16 = vshrl.u32 %v7136_v50, 16  ;;  %vm10523_vm8 = vcmask 1046528  }
  0xef   : > { %v7139_v37 = vunpack.c.h.b16 %v5991_v31  ;;  %v1291_v31 = vrot.slane %v6759_v22, 1  ;;  %826 = vst.msk [vmem:[#allocation2 + $0xb0] sm:$0xc] %vm825_vm14, %v10588_v6  ;;  %vm10526_vm14 = vsmask.f32 1280 }
  0xf0   : > { %v1231_v23 = vrot.slane %v1229_v18, 1  ;;  %v7160_v18 = vrot.slane %v6732_v61, 1  ;;  %v1301_v61 = vrot.slane %v6827_v41, 1 }
  0xf1   : > { %v7144_v7 = vpack.c.b16 %v1051_v59, %v7139_v37  ;;  %v1292_v59 = vsel %vm10523_vm8, %v1290_v5, %v1291_v31  ;;  %v7212_v5 = vld [vmem:[#allocation2 + $0x90] sm:$0xff]  }
  0xf2   : > { %v1232_v33 = vsel %vm10522_vm4, %v1227_v26, %v1231_v23  ;;  %v1235_v58 = vor.u32 %v1233_v16, %v1231_v23  ;;  %v1294_v26 = vsel %vm10523_vm8, %v1291_v31, %v7160_v18  ;;  %v7167_v25 = vsel %vm10523_vm8, %v7160_v18, %v1295_v43 }
  0xf3   : > { %10583 = vst [vmem:[#allocation45_spill] sm:$0xff] %v7144_v7  ;;  %v1237_v32 = vshll.u32 %v7144_v7, 16  ;;  %1280 = vrot.lane.b32.xlu2 %v1232_v33, %s6327_s17  ;;  %v1241_v11 = vshrl.u32 %v7144_v7, 16  ;;  %v1297_v23 = vrot.slane %v6784_v45, 1  ;;  %v1299_v16 = vrot.slane %v6776_v40, 1 }
  0xf4   : > { %v1305_v40 = vrot.slane %v6858_v29, 1  ;;  %v1309_v29 = vrot.slane %v6958_v24, 1  ;;  %v1311_v31 = vrot.slane %v6940_v28, 1  ;;  %v10489_v24 = vshll.u32 %v7212_v5, 16 }
  0xf5   : > { %v1239_v9 = vrot.slane %v1237_v32, 1  ;;  %v7174_v32 = vsel %vm10523_vm8, %v1295_v43, %v1297_v23  ;;  %v7180_v33 = vsel %vm10523_vm8, %v1297_v23, %v1299_v16  ;;  %v7185_v45 = vsel %vm10523_vm8, %v1299_v16, %v1301_v61 }
  0xf6   : > { %v1313_v43 = vrot.slane %v6992_v21, 1  ;;  %v1603_v21 = vrot.slane %v10489_v24, 6  ;;  %v1317_v24 = vrot.slane %v7023_v3, 1 }
  0xf7   : > { %v1240_v49 = vsel %vm10522_vm4, %v1235_v58, %v1239_v9  ;;  %v1243_v57 = vor.u32 %v1241_v11, %v1239_v9  ;;  %v1303_v58 = vrot.slane %v6866_v44, 1  ;;  %v1307_v9 = vrot.slane %v6905_v63, 1  ;;  %v7197_v11 = vld [vmem:[#allocation2 + $0x88] sm:$0xff]  }
  0xf8   : > { %1282 = vrot.lane.b32.xlu0 %v1240_v49, %s6327_s17  ;;  %v10488_v63 = vshrl.u32 %v7197_v11, 16  ;;  %vm2315_vm4 = vcmask 457728  }
  0xf9   : > { %1284 = vrot.lane.b32.xlu1 %v1243_v57, %s6327_s17  ;;  %v7192_v41 = vsel %vm10523_vm8, %v1301_v61, %v1303_v58  ;;  %v7200_v49 = vsel %vm10523_vm8, %v1303_v58, %v1305_v40  ;;  %v7205_v44 = vsel %vm10523_vm8, %v1305_v40, %v1307_v9  ;;  %v10486_v57 = vshll.u32 %v7197_v11, 16 }
  0xfa   : > { %v1591_v23 = vrot.slane %v10488_v63, 5  ;;  %v7230_v61 = vsel %vm10523_vm8, %v1309_v29, %v1311_v31  ;;  %v7237_v58 = vsel %vm10523_vm8, %v1311_v31, %v1313_v43  ;;  %v1315_v40 = vrot.slane %v7029_v62, 1 }
  0xfb   : > { %1331 = vrot.lane.b32.xlu2 %v1292_v59, %s6328_s30  ;;  %v7216_v59 = vsel %vm10523_vm8, %v1307_v9, %v1309_v29  ;;  %v1594_v16 = vrot.slane %v10486_v57, 6  ;;  %v5992_v9 = vld [vmem:[#allocation2 + $0xa8] sm:$0xff]   ;;  %v7246_v63 = vpop.permute.xlu2 %1244 }
  0xfc   : > { %v5886_v29 = vunpack.c.l.b16 %v5992_v9  ;;  %v7255_v62 = vsel %vm10523_vm8, %v1313_v43, %v1315_v40  ;;  %v7271_v43 = vsel %vm10523_vm8, %v1317_v24, %v1319_v46 }
  0xfd   : > { %v7242_v57 = vor.u32 %v1594_v16, %v1591_v23  ;;  %v1327_v16 = vrot.slane %v7136_v50, 1  ;;  %v957_v50 = vld [vmem:[#allocation2 + $0xa8] sm:$0x3] }
  0xfe   : > { %v7259_v23 = vpack.c.b16 %v5886_v29, %v7139_v37  ;;  %v7285_v29 = vsel %vm10523_vm8, %v1319_v46, %v1321_v8  ;;  %v1287_v34 = vunpack.c.l.b16 %v957_v50 }
 0x100   : > { %1333 = vrot.lane.b32.xlu0 %v1294_v26, %s6328_s30  ;;  %v10487_v26 = vshrl.u32 %v7212_v5, 16  ;;  %10586 = vst [vmem:[#allocation48_spill] sm:$0xff] %v7259_v23  ;;  %v10491_v3 = vrot.slane %v7259_v23, 1  ;;  %v1288_v42 = vpack.c.b16 %v1287_v34, %v7139_v37 }
 0x101   : > { %1335 = vrot.lane.b32.xlu1 %v7167_v25, %s6328_s30 }
 0x102   : > { %v1600_v28 = vrot.slane %v10487_v26, 5  ;;  %v1329_v50 = vrot.slane %v1288_v42, 1 }
 0x103   : > { %1337 = vrot.lane.b32.xlu2 %v7174_v32, %s6328_s30 }
 0x104   : > { %v7244_v26 = vor.u32 %v1603_v21, %v1600_v28  ;;  %v7266_v28 = vsel %vm10523_vm8, %v1315_v40, %v1317_v24  ;;  %v7277_v21 = vsel %vm10523_vm8, %v1327_v16, %v10491_v3  ;;  %v1323_v40 = vrot.slane %v7083_v48, 1  ;;  %v958_v3 = vld [vmem:[#allocation2 + $0xc] sm:$0x8] }
 0x105   : > { %10587 = vst [vmem:[#allocation49_spill] sm:$0xff] %v7277_v21  ;;  %v1325_v24 = vrot.slane %v7115_v4, 1  ;;  %v1377_v4 = vunpack.c.l.b16 %v958_v3  ;;  %v1330_v37 = vsel %vm10523_vm8, %v1327_v16, %v1329_v50 }
 0x106   : > { %10584 = vst [vmem:[#allocation46_spill] sm:$0xff] %v7244_v26  ;;  %v7252_v31 = vsel %vm10527_vm9, %v7242_v57, %v7244_v26  ;;  %v7292_v17 = vsel %vm10523_vm8, %v1321_v8, %v1323_v40  ;;  %v10592_v8 = vunpack.c.l.b16 %v6735_v1 }
 0x107   : > { %10585 = vst [vmem:[#allocation47_spill] sm:$0xff] %v7252_v31  ;;  %v7298_v48 = vsel %vm10523_vm8, %v1323_v40, %v1325_v24  ;;  %v7305_v7 = vsel %vm10523_vm8, %v1325_v24, %v1327_v16 }
 0x108   : > { %1339 = vrot.lane.b32.xlu0 %v7180_v33, %s6328_s30  ;;  %10589 = vst [vmem:[#allocation50_spill] sm:$0xff] %v7298_v48  ;;  %v1381_v23 = vpack.c.b16 %v10592_v8, %v1377_v4 }
 0x109   : > { %1341 = vrot.lane.b32.xlu1 %v7185_v45, %s6328_s30  ;;  %10591 = vst [vmem:[#allocation52_spill] sm:$0xff] %v7305_v7 }
 0x10a   : > { %v1384_v3 = vrot.slane %v1381_v23, 1 }
 0x10b   : > { %1343 = vrot.lane.b32.xlu2 %v7192_v41, %s6328_s30 }
 0x10c   : > { %v1385_v42 = vsel %vm10523_vm8, %v1384_v3, %v7160_v18  ;;  %v966_v18 = vld [vmem:[#allocation2 + $0x18] sm:$0xe]  ;;  %v6281_v3 = vld [vmem:[#allocation2 + $0x20] sm:$0xff]   ;;  %vm2358_vm8 = vcmask 523264  }
 0x10e   : > { %v7281_v9 = vpop.permute.xlu2 %1256 }
 0x110   : > { %1345 = vrot.lane.b32.xlu0 %v7200_v49, %s6328_s30 }
 0x111   : > { %1347 = vrot.lane.b32.xlu1 %v7205_v44, %s6328_s30 }
 0x112   : > { %v7325_v16 = vpop.permute.xlu1 %1248 }
 0x113   : > { %1349 = vrot.lane.b32.xlu2 %v7216_v59, %s6328_s30 }
 0x118   : > { %1351 = vrot.lane.b32.xlu0 %v7230_v61, %s6328_s30  ;;  %v7319_v24 = vpop.permute.xlu0 %1252 }
 0x119   : > { %1353 = vrot.lane.b32.xlu1 %v7237_v58, %s6328_s30 }
 0x11b   : > { %1355 = vrot.lane.b32.xlu2 %v7255_v62, %s6328_s30 }
 0x11e   : > { %v7302_v46 = vpop.permute.xlu2 %1262 }
 0x11f   : > { %10590 = vst [vmem:[#allocation51_spill] sm:$0xff] %v7302_v46 }
 0x120   : > { %1357 = vrot.lane.b32.xlu0 %v7266_v28, %s6328_s30 }
 0x121   : > { %1359 = vrot.lane.b32.xlu1 %v7271_v43, %s6328_s30 }
 0x123   : > { %1361 = vrot.lane.b32.xlu2 %v7285_v29, %s6328_s30 }
 0x128   : > { %1363 = vrot.lane.b32.xlu0 %v7292_v17, %s6328_s30 }
 0x129   : > { %1365 = vrot.lane.b32.xlu1 %v7298_v48, %s6328_s30  ;;  %v7331_v34 = vpop.permute.xlu0 %1258 }
 0x12b   : > { %1367 = vrot.lane.b32.xlu2 %v7305_v7, %s6328_s30  ;;  %v1974_v7 = vrot.slane %v6281_v3, 7 }
 0x12e   : > { %v7314_v40 = vpop.permute.xlu2 %1268 }
 0x12f   : > { %10593 = vst [vmem:[#allocation53_spill] sm:$0xff] %v7314_v40 }
 0x130   : > { %1369 = vrot.lane.b32.xlu0 %v1330_v37, %s6328_s30 }
 0x131   : > { %1371 = vrot.lane.b32.xlu1 %v1329_v50, %s6328_s30 }
 0x133   : > { %1390 = vrot.lane.b32.xlu2 %v1385_v42, %s6329_s18  ;;  %v1472_v42 = vshrl.u32 %v6281_v3, 16 }
 0x135   : > { %v1474_v60 = vrot.slane %v1472_v42, 5 }
 0x136   : > { %v7327_v23 = vpop.permute.xlu2 %1250 }
 0x138   : > { %1392 = vrot.lane.b32.xlu0 %v7167_v25, %s6329_s18  ;;  %v7337_v25 = vpop.permute.xlu1 %1254 }
 0x139   : > { %1394 = vrot.lane.b32.xlu1 %v7174_v32, %s6329_s18  ;;  %v1826_v32 = vunpack.c.l.b16 %v966_v18  ;;  %v7341_v4 = vpop.permute.xlu0 %1264  ;;  %v1475_v18 = vshll.u32 %v6281_v3, 16 }
 0x13a   : > { %10594 = vst [vmem:[#allocation54_spill] sm:$0xff] %v7341_v4 }
 0x13b   : > { %1396 = vrot.lane.b32.xlu2 %v7180_v33, %s6329_s18  ;;  %v10596_v33 = vunpack.c.h.b16 %v6724_v55  ;;  %v1691_v55 = vrot.slane %v6281_v3, 6 }
 0x13d   : > { %v1827_v8 = vpack.c.b16 %v10596_v33, %v1826_v32 }
 0x13e   : > { %v7343_v50 = vpop.permute.xlu2 %1274 }
 0x13f   : > { %10595 = vst [vmem:[#allocation55_spill] sm:$0xff] %v7343_v50  ;;  %v1830_v37 = vshrl.u32 %v1827_v8, 16  ;;  %v1973_v53 = vrot.slane %v1827_v8, 7 }
 0x140   : > { %1398 = vrot.lane.b32.xlu0 %v7185_v45, %s6329_s18  ;;  %v10597_v45 = vrot.slane %v6735_v1, 6  ;;  %v1692_v1 = vsel %vm1687_vm1, %v6927_v47, %v1691_v55 }
 0x141   : > { %1400 = vrot.lane.b32.xlu1 %v7192_v41, %s6329_s18  ;;  %v7352_v41 = vpop.permute.xlu1 %1260  ;;  %v1832_v33 = vrot.slane %v1830_v37, 6  ;;  %v7358_v21 = vpop.permute.xlu0 %1246 }
 0x143   : > { %1642 = vrot.lane.b32.xlu2 %v6917_v27, %s6330_s19  ;;  %v1833_v27 = vshll.u32 %v1827_v8, 16  ;;  %v1975_v8 = vsel %vm10541_vm10, %v1973_v53, %v1974_v7 }
 0x148   : > { %1644 = vrot.lane.b32.xlu0 %v6947_v2, %s6330_s19  ;;  %v1835_v2 = vrot.slane %v1833_v27, 7 }
 0x149   : > { %1729 = vrot.lane.b32.xlu1 %v10597_v45, %s6331_s20  ;;  %v1838_v45 = vrot.slane %v1475_v18, 7  ;;  %v7365_v13 = vpop.permute.xlu1 %1266 }
 0x14a   : > { %10599 = vst [vmem:[#allocation57_spill] sm:$0xff] %v7365_v13  ;;  %v1836_v26 = vor.u32 %v1835_v2, %v1832_v33  ;;  %v1477_v33 = vrot.slane %v1475_v18, 6  ;;  %v7375_v2 = vpop.permute.xlu0 %1270  ;;  %v7526_v13 = vld [vmem:[#allocation2 + $0x58] sm:$0xff]  }
 0x14b   : > { %1731 = vrot.lane.b32.xlu2 %v6953_v56, %s6331_s20  ;;  %v1837_v56 = vrot.slane %v1472_v42, 6  ;;  %10600 = vst [vmem:[#allocation58_spill] sm:$0xff] %v7375_v2 }
 0x14d   : > { %v7356_v32 = vpop.permute.xlu2 %1280  ;;  %v1839_v37 = vor.u32 %v1838_v45, %v1837_v56  ;;  %v1478_v45 = vor.u32 %v1477_v33, %v1474_v60 }
 0x14e   : > { %10598 = vst [vmem:[#allocation56_spill] sm:$0xff] %v7356_v32 }
 0x14f   : > { %v1840_v27 = vsel %vm10526_vm14, %v1836_v26, %v1839_v37 }
 0x150   : > { %1783 = vrot.lane.b32.xlu0 %v6927_v47, %s6332_s21  ;;  %v7372_v47 = vld [vmem:[#allocation2 + $0x28] sm:$0xff]  }
 0x151   : > { %1785 = vrot.lane.b32.xlu1 %v1692_v1, %s6332_s21  ;;  %v7377_v51 = vpop.permute.xlu1 %1272  ;;  %v1484_v56 = vshll.u32 %v7372_v47, 16  ;;  %v1693_v3 = vrot.slane %v7372_v47, 6  ;;  %v1976_v33 = vrot.slane %v7372_v47, 7 }
 0x152   : > { %10601 = vst [vmem:[#allocation59_spill] sm:$0xff] %v7377_v51 }
 0x153   : > { %1927 = vrot.lane.b32.xlu2 %v1836_v26, %s6333_s22  ;;  %v1481_v26 = vshrl.u32 %v7372_v47, 16  ;;  %v1842_v18 = vrot.slane %v1484_v56, 7  ;;  %v1694_v60 = vsel %vm1687_vm1, %v1691_v55, %v1693_v3 }
 0x155   : > { %v7369_v32 = vpop.permute.xlu2 %1331  ;;  %v1841_v42 = vrot.slane %v1481_v26, 6 }
 0x157   : > { %v7390_v20 = vpop.permute.xlu0 %1276 }
 0x158   : > { %1929 = vrot.lane.b32.xlu0 %v1840_v27, %s6333_s22  ;;  %v1479_v27 = vsel %vm10527_vm9, %v6924_v35, %v1478_v45  ;;  %10602 = vst [vmem:[#allocation60_spill] sm:$0xff] %v7390_v20  ;;  %v1483_v35 = vrot.slane %v1481_v26, 5 }
 0x159   : > { %2014 = vrot.lane.b32.xlu1 %v1973_v53, %s6334_s23  ;;  %v1843_v53 = vor.u32 %v1842_v18, %v1841_v42  ;;  %v1493_v42 = vshll.u32 %v5977_v39, 16 }
 0x15b   : > { %2016 = vrot.lane.b32.xlu2 %v1975_v8, %s6334_s23  ;;  %v1486_v8 = vrot.slane %v1484_v56, 6  ;;  %v1695_v56 = vrot.slane %v5977_v39, 6 }
 0x15d   : > { %v7385_v10 = vpop.permute.xlu2 %1337  ;;  %v7392_v50 = vpop.permute.xlu1 %1278  ;;  %v1487_v20 = vor.u32 %v1486_v8, %v1483_v35 }
 0x15e   : > { %10603 = vst [vmem:[#allocation61_spill] sm:$0xff] %v7392_v50  ;;  %v1490_v50 = vshrl.u32 %v5977_v39, 16 }
 0x15f   : > { %v1488_v26 = vsel %vm10527_vm9, %v1478_v45, %v1487_v20 }
 0x160   : > { %1646 = vrot.lane.b32.xlu0 %v1479_v27, %s6330_s19  ;;  %v1844_v27 = vsel %vm10526_vm14, %v1839_v37, %v1843_v53  ;;  %v1845_v18 = vrot.slane %v1490_v50, 6  ;;  %v1846_v37 = vrot.slane %v1493_v42, 7  ;;  %v1492_v8 = vrot.slane %v1490_v50, 5 }
 0x161   : > { %1733 = vrot.lane.b32.xlu1 %v1692_v1, %s6331_s20  ;;  %v1977_v1 = vsel %vm10541_vm10, %v1974_v7, %v1976_v33  ;;  %v1696_v7 = vsel %vm1687_vm1, %v1693_v3, %v1695_v56 }
 0x162   : > { %v1847_v35 = vor.u32 %v1846_v37, %v1845_v18 }
 0x163   : > { %1787 = vrot.lane.b32.xlu2 %v1694_v60, %s6332_s21 }
 0x164   : > { %v1848_v38 = vsel %vm10526_vm14, %v1843_v53, %v1847_v35 }
 0x165   : > { %v7398_v36 = vpop.permute.xlu2 %1343 }
 0x168   : > { %1931 = vrot.lane.b32.xlu0 %v1844_v27, %s6333_s22  ;;  %v1495_v27 = vrot.slane %v1493_v42, 6 }
 0x169   : > { %2018 = vrot.lane.b32.xlu1 %v1977_v1, %s6334_s23  ;;  %v5978_v1 = vld [vmem:[#allocation2 + $0x38] sm:$0xff]  }
 0x16a   : > { %v7403_v55 = vpop.permute.xlu0 %1282  ;;  %v1499_v51 = vshrl.u32 %v5978_v1, 16  ;;  %v1502_v48 = vshll.u32 %v5978_v1, 16  ;;  %v1697_v37 = vrot.slane %v5978_v1, 6  ;;  %v1980_v30 = vrot.slane %v5978_v1, 7 }
 0x16b   : > { %10604 = vst [vmem:[#allocation62_spill] sm:$0xff] %v7403_v55  ;;  %v7405_v47 = vpop.permute.xlu1 %1284  ;;  %1648 = vrot.lane.b32.xlu2 %v1488_v26, %s6330_s19  ;;  %v1978_v55 = vrot.slane %v5977_v39, 7  ;;  %v1496_v26 = vor.u32 %v1495_v27, %v1492_v8 }
 0x16c   : > { %10605 = vst [vmem:[#allocation63_spill] sm:$0xff] %v7405_v47  ;;  %v1849_v42 = vrot.slane %v1499_v51, 6  ;;  %v1850_v18 = vrot.slane %v1502_v48, 7  ;;  %v1501_v27 = vrot.slane %v1499_v51, 5 }
 0x16d   : > { %v7409_v31 = vpop.permute.xlu2 %1349  ;;  %v1979_v3 = vsel %vm10541_vm10, %v1976_v33, %v1978_v55  ;;  %v1497_v50 = vsel %vm10527_vm9, %v1487_v20, %v1496_v26 }
 0x16e   : > { %10606 = vst [vmem:[#allocation64_spill] sm:$0xff] %v7409_v31  ;;  %v1851_v8 = vor.u32 %v1850_v18, %v1849_v42  ;;  %v10619_v31 = vunpack.c.l.b16 %v6659_v0 }
 0x170   : > { %1735 = vrot.lane.b32.xlu0 %v1694_v60, %s6331_s20  ;;  %v1852_v20 = vsel %vm10526_vm14, %v1847_v35, %v1851_v8 }
 0x171   : > { %1789 = vrot.lane.b32.xlu1 %v1696_v7, %s6332_s21 }
 0x172   : > { %v7414_v47 = vpop.permute.xlu0 %1333 }
 0x173   : > { %v7416_v45 = vpop.permute.xlu1 %1335  ;;  %1933 = vrot.lane.b32.xlu2 %v1848_v38, %s6333_s22  ;;  %v1698_v38 = vsel %vm1687_vm1, %v1695_v56, %v1697_v37  ;;  %v1981_v56 = vsel %vm10541_vm10, %v1978_v55, %v1980_v30 }
 0x175   : > { %v7421_v60 = vpop.permute.xlu2 %1355 }
 0x176   : > { %10607 = vst [vmem:[#allocation65_spill] sm:$0xff] %v7421_v60 }
 0x178   : > { %2020 = vrot.lane.b32.xlu0 %v1979_v3, %s6334_s23  ;;  %v1504_v3 = vrot.slane %v1502_v48, 6 }
 0x179   : > { %1650 = vrot.lane.b32.xlu1 %v1497_v50, %s6330_s19  ;;  %v5979_v50 = vld [vmem:[#allocation2 + $0x40] sm:$0xff]  }
 0x17a   : > { %v7426_v39 = vpop.permute.xlu0 %1339  ;;  %v1505_v42 = vor.u32 %v1504_v3, %v1501_v27  ;;  %v1511_v18 = vshll.u32 %v5979_v50, 16  ;;  %v1982_v14 = vrot.slane %v5979_v50, 7 }
 0x17b   : > { %v7428_v53 = vpop.permute.xlu1 %1341  ;;  %1737 = vrot.lane.b32.xlu2 %v1696_v7, %s6331_s20  ;;  %v1508_v7 = vshrl.u32 %v5979_v50, 16 }
 0x17c   : > { %v1506_v51 = vsel %vm10527_vm9, %v1496_v26, %v1505_v42  ;;  %v1854_v1 = vrot.slane %v1511_v18, 7  ;;  %v1513_v60 = vrot.slane %v1511_v18, 6 }
 0x17d   : > { %v7432_v33 = vpop.permute.xlu2 %1361  ;;  %v1853_v35 = vrot.slane %v1508_v7, 6 }
 0x17e   : > { %10608 = vst [vmem:[#allocation66_spill] sm:$0xff] %v7432_v33 }
 0x17f   : > { %v1855_v3 = vor.u32 %v1854_v1, %v1853_v35 }
 0x180   : > { %1791 = vrot.lane.b32.xlu0 %v1698_v38, %s6332_s21 }
 0x181   : > { %1935 = vrot.lane.b32.xlu1 %v1852_v20, %s6333_s22  ;;  %v1699_v20 = vrot.slane %v5979_v50, 6  ;;  %v1856_v26 = vsel %vm10526_vm14, %v1851_v8, %v1855_v3 }
 0x182   : > { %v7437_v2 = vpop.permute.xlu0 %1345 }
 0x183   : > { %v7439_v19 = vpop.permute.xlu1 %1347  ;;  %2022 = vrot.lane.b32.xlu2 %v1981_v56, %s6334_s23  ;;  %v1700_v55 = vsel %vm1687_vm1, %v1697_v37, %v1699_v20 }
 0x184   : > { %10609 = vst [vmem:[#allocation67_spill] sm:$0xff] %v7439_v19 }
 0x185   : > { %v7444_v48 = vpop.permute.xlu2 %1367 }
 0x186   : > { %10610 = vst [vmem:[#allocation68_spill] sm:$0xff] %v7444_v48  ;;  %v1510_v48 = vrot.slane %v1508_v7, 5 }
 0x188   : > { %1652 = vrot.lane.b32.xlu0 %v1506_v51, %s6330_s19  ;;  %v7459_v51 = vld [vmem:[#allocation2 + $0x48] sm:$0xff]   ;;  %v1514_v50 = vor.u32 %v1513_v60, %v1510_v48 }
 0x189   : > { %1739 = vrot.lane.b32.xlu1 %v1698_v38, %s6331_s20  ;;  %v1983_v38 = vsel %vm10541_vm10, %v1980_v30, %v1982_v14  ;;  %v1517_v1 = vshrl.u32 %v7459_v51, 16  ;;  %v1520_v8 = vshll.u32 %v7459_v51, 16 }
 0x18a   : > { %v7448_v33 = vpop.permute.xlu0 %1351  ;;  %v1515_v7 = vsel %vm10527_vm9, %v1505_v42, %v1514_v50 }
 0x18b   : > { %10611 = vst [vmem:[#allocation69_spill] sm:$0xff] %v7448_v33  ;;  %v7450_v27 = vpop.permute.xlu1 %1353  ;;  %1793 = vrot.lane.b32.xlu2 %v1700_v55, %s6332_s21  ;;  %v1857_v30 = vrot.slane %v1517_v1, 6  ;;  %v1522_v52 = vrot.slane %v1520_v8, 6 }
 0x18c   : > { %10612 = vst [vmem:[#allocation70_spill] sm:$0xff] %v7450_v27 }
 0x18d   : > { %v7455_v56 = vpop.permute.xlu2 %1390 }
 0x190   : > { %1937 = vrot.lane.b32.xlu0 %v1856_v26, %s6333_s22  ;;  %v1858_v26 = vrot.slane %v1520_v8, 7 }
 0x191   : > { %2024 = vrot.lane.b32.xlu1 %v1983_v38, %s6334_s23  ;;  %v1701_v38 = vrot.slane %v7459_v51, 6 }
 0x192   : > { %v7462_v35 = vpop.permute.xlu0 %1357 }
 0x193   : > { %10613 = vst [vmem:[#allocation71_spill] sm:$0xff] %v7462_v35  ;;  %v7464_v37 = vpop.permute.xlu1 %1359  ;;  %1402 = vrot.lane.b32.xlu2 %v7200_v49, %s6329_s18  ;;  %v1702_v35 = vsel %vm1687_vm1, %v1699_v20, %v1701_v38  ;;  %v1984_v49 = vrot.slane %v7459_v51, 7  ;;  %v2409_v20 = vld [vmem:[%s10421_s4 + $0x20] sm:$0xf] }
 0x194   : > { %10614 = vst [vmem:[#allocation72_spill] sm:$0xff] %v7464_v37  ;;  %v1859_v37 = vor.u32 %v1858_v26, %v1857_v30  ;;  %v2599_v51 = vunpack.c.l.b16 %v2409_v20 }
 0x195   : > { %v7471_v18 = vpop.permute.xlu2 %1396 }
 0x196   : > { %v1860_v42 = vsel %vm10526_vm14, %v1855_v3, %v1859_v37 }
 0x198   : > { %1654 = vrot.lane.b32.xlu0 %v1515_v7, %s6330_s19  ;;  %v1519_v7 = vrot.slane %v1517_v1, 5 }
 0x199   : > { %1741 = vrot.lane.b32.xlu1 %v1700_v55, %s6331_s20  ;;  %v1985_v55 = vsel %vm10541_vm10, %v1982_v14, %v1984_v49  ;;  %v2604_v14 = vpack.c.b16 %v2599_v51, %v2599_v51 }
 0x19a   : > { %v7476_v60 = vpop.permute.xlu0 %1363  ;;  %v1523_v1 = vor.u32 %v1522_v52, %v1519_v7 }
 0x19b   : > { %10615 = vst [vmem:[#allocation73_spill] sm:$0xff] %v7476_v60  ;;  %v7478_v48 = vpop.permute.xlu1 %1365  ;;  %1795 = vrot.lane.b32.xlu2 %v1702_v35, %s6332_s21  ;;  %v7488_v60 = vld [vmem:[#allocation2 + $0x50] sm:$0xff]  }
 0x19c   : > { %10616 = vst [vmem:[#allocation74_spill] sm:$0xff] %v7478_v48  ;;  %v1526_v8 = vshrl.u32 %v7488_v60, 16  ;;  %v1529_v26 = vshll.u32 %v7488_v60, 16  ;;  %v1524_v20 = vsel %vm10527_vm9, %v1514_v50, %v1523_v1  ;;  %v1703_v7 = vrot.slane %v7488_v60, 6 }
 0x19d   : > { %v7484_v40 = vpop.permute.xlu2 %1642  ;;  %v1986_v48 = vrot.slane %v7488_v60, 7 }
 0x19e   : > { %v1862_v52 = vrot.slane %v1529_v26, 7  ;;  %v1528_v15 = vrot.slane %v1526_v8, 5 }
 0x19f   : > { %v1987_v27 = vsel %vm10541_vm10, %v1984_v49, %v1986_v48  ;;  %v5789_v49 = vld [vmem:[%s10421_s4] sm:$0xff] }
 0x1a0   : > { %1939 = vrot.lane.b32.xlu0 %v1860_v42, %s6333_s22  ;;  %v2675_v42 = vsel %vm2673_vm12, %v2604_v14, 0  ;;  %vm2056_vm12 = vcmask 64512  }
 0x1a1   : > { %2026 = vrot.lane.b32.xlu1 %v1985_v55, %s6334_s23  ;;  %2680 = vmatpush.bf16.msra.mxu0 %v2675_v42  ;;  %v5792_v55 = vld [vmem:[%s10421_s4 + $0x18] sm:$0xff]  ;;  %v1704_v42 = vsel %vm1687_vm1, %v1701_v38, %v1703_v7  ;;  %v5790_v38 = vld [vmem:[%s10421_s4 + $0x8] sm:$0xff] }
 0x1a2   : > { %v7494_v30 = vpop.permute.xlu0 %1369 }
 0x1a3   : > { %10617 = vst [vmem:[#allocation75_spill] sm:$0xff] %v7494_v30  ;;  %v7496_v3 = vpop.permute.xlu1 %1371  ;;  %1404 = vrot.lane.b32.xlu2 %v7205_v44, %s6329_s18  ;;  %v5791_v44 = vld [vmem:[%s10421_s4 + $0x10] sm:$0xff] }
 0x1a4   : > { %10618 = vst [vmem:[#allocation76_spill] sm:$0xff] %v7496_v3  ;;  %v1861_v3 = vrot.slane %v1526_v8, 6  ;;  %v1535_v8 = vshrl.u32 %v7526_v13, 16 }
 0x1a5   : > { %v7506_v30 = vpop.permute.xlu2 %1731  ;;  %2681 = vmatpush.bf16.msra.mxu0 %v5792_v55  ;;  %v1531_v55 = vrot.slane %v1529_v26, 6  ;;  %v1538_v26 = vshll.u32 %v7526_v13, 16 }
 0x1a6   : > { %v1863_v50 = vor.u32 %v1862_v52, %v1861_v3  ;;  %v1537_v46 = vrot.slane %v1535_v8, 5 }
 0x1a7   : > { %v1540_v19 = vrot.slane %v1538_v26, 6 }
 0x1a8   : > { %1656 = vrot.lane.b32.xlu0 %v1524_v20, %s6330_s19  ;;  %v1864_v20 = vsel %vm10526_vm14, %v1859_v37, %v1863_v50  ;;  %v1532_v37 = vor.u32 %v1531_v55, %v1528_v15  ;;  %v914_v15 = vld [vmem:[#allocation2 + $0x4] sm:$0xc]  ;;  %v1705_v55 = vrot.slane %v7526_v13, 6 }
 0x1a9   : > { %1743 = vrot.lane.b32.xlu1 %v1702_v35, %s6331_s20  ;;  %2682 = vmatpush.bf16.msra.mxu0 %v5791_v44  ;;  %v1865_v44 = vrot.slane %v1535_v8, 6  ;;  %v1010_v54 = vunpack.c.l.b16 %v914_v15 }
 0x1aa   : > { %v7511_v51 = vpop.permute.xlu0 %1392 }
 0x1ab   : > { %v7516_v14 = vpop.permute.xlu1 %1394  ;;  %1797 = vrot.lane.b32.xlu2 %v1704_v42, %s6332_s21 }
 0x1ad   : > { %v7522_v35 = vpop.permute.xlu2 %1927  ;;  %2683 = vmatpush.bf16.msra.mxu0 %v5790_v38 }
 0x1b0   : > { %1941 = vrot.lane.b32.xlu0 %v1864_v20, %s6333_s22  ;;  %v1866_v20 = vrot.slane %v1538_v26, 7  ;;  %v7571_v26 = vor.u32 %v1540_v19, %v1537_v46 }
 0x1b1   : > { %2028 = vrot.lane.b32.xlu1 %v1987_v27, %s6334_s23  ;;  %v1533_v27 = vsel %vm10527_vm9, %v1523_v1, %v1532_v37  ;;  %2684 = vmatpush.bf16.msra.mxu0 %v5789_v49  ;;  %v1988_v1 = vrot.slane %v7526_v13, 7  ;;  %v1052_v49 = vpack.c.b16 %v10619_v31, %v1010_v54 }
 0x1b2   : > { %v7532_v60 = vpop.permute.xlu0 %1398  ;;  %v1867_v4 = vor.u32 %v1866_v20, %v1865_v44 }
 0x1b3   : > { %v7534_v3 = vpop.permute.xlu1 %1400  ;;  %1406 = vrot.lane.b32.xlu2 %v7216_v59, %s6329_s18  ;;  %v1706_v59 = vsel %vm1687_vm1, %v1703_v7, %v1705_v55  ;;  %v1989_v7 = vsel %vm10541_vm10, %v1986_v48, %v1988_v1 }
 0x1b4   : > { %v1868_v6 = vsel %vm10526_vm14, %v1863_v50, %v1867_v4  ;;  %v2059_v50 = vsel %vm2056_vm12, %v1052_v49, %v7246_v63 }
 0x1b5   : > { %v7544_v52 = vpop.permute.xlu2 %2016  ;;  %v2102_v48 = vsel %vm2100_vm13, %v2059_v50, %v7369_v32 }
 0x1b6   : > { %v2145_v20 = vsel %vm2143_vm5, %v2102_v48, %v7455_v56 }
 0x1b7   : > { %v2188_v19 = vsel %vm2186_vm6, %v2145_v20, %v7484_v40 }
 0x1b8   : > { %1658 = vrot.lane.b32.xlu0 %v1533_v27, %s6330_s19 }
 0x1b9   : > { %1745 = vrot.lane.b32.xlu1 %v1704_v42, %s6331_s20  ;;  %v7557_v42 = vld [vmem:[#allocation2 + $0x60] sm:$0xff]  }
 0x1ba   : > { %v1645_v38 = vpop.permute.xlu0 %1644  ;;  %v1544_v0 = vshrl.u32 %v7557_v42, 16  ;;  %v1547_v31 = vshll.u32 %v7557_v42, 16 }
 0x1bb   : > { %v1730_v33 = vpop.permute.xlu1 %1729  ;;  %1799 = vrot.lane.b32.xlu2 %v1706_v59, %s6332_s21 }
 0x1bc   : > { %v1870_v46 = vrot.slane %v1547_v31, 7  ;;  %v2231_v32 = vsel %vm2229_vm11, %v2188_v19, %v1730_v33  ;;  %v1546_v20 = vrot.slane %v1544_v0, 5 }
 0x1bd   : > { %v7555_v27 = vpop.permute.xlu2 %1787 }
 0x1c0   : > { %1943 = vrot.lane.b32.xlu0 %v1868_v6, %s6333_s22  ;;  %v2061_v6 = vsel %vm2056_vm12, %v6759_v22, %v7358_v21  ;;  %v1869_v21 = vrot.slane %v1544_v0, 6 }
 0x1c1   : > { %2030 = vrot.lane.b32.xlu1 %v1989_v7, %s6334_s23  ;;  %v2104_v44 = vsel %vm2100_vm13, %v2061_v6, %v7414_v47  ;;  %v1542_v47 = vsel %vm10527_vm9, %v1532_v37, %v7571_v26 }
 0x1c2   : > { %v1784_v54 = vpop.permute.xlu0 %1783  ;;  %v2147_v63 = vsel %vm2143_vm5, %v2104_v44, %v7511_v51 }
 0x1c3   : > { %v1786_v8 = vpop.permute.xlu1 %1785  ;;  %1408 = vrot.lane.b32.xlu2 %v7230_v61, %s6329_s18  ;;  %v2190_v22 = vsel %vm2186_vm6, %v2147_v63, %v1645_v38  ;;  %v2274_v51 = vsel %vm2272_vm7, %v2231_v32, %v1784_v54  ;;  %v1707_v61 = vrot.slane %v7557_v42, 6  ;;  %v7598_v38 = vor.u32 %v1870_v46, %v1869_v21 }
 0x1c4   : > { %v2233_v40 = vsel %vm2229_vm11, %v2190_v22, %v7506_v30  ;;  %v2317_v7 = vsel %vm2315_vm4, %v2274_v51, %v7522_v35  ;;  %v1549_v63 = vrot.slane %v1547_v31, 6 }
 0x1c5   : > { %v7589_v56 = vpop.permute.xlu2 %1648  ;;  %v2276_v33 = vsel %vm2272_vm7, %v2233_v40, %v1786_v8  ;;  %v1708_v30 = vsel %vm1687_vm1, %v1705_v55, %v1707_v61  ;;  %v1872_v35 = vsel %vm10526_vm14, %v1867_v4, %v7598_v38  ;;  %v7615_v55 = vld [vmem:[#allocation2 + $0x68] sm:$0xff]   ;;  %v6282_v4 = vld [vmem:[#allocation2 + $0x14] sm:$0xff]  }
 0x1c6   : > { %v2063_v0 = vsel %vm2056_vm12, %v6282_v4, %v7325_v16  ;;  %v1556_v16 = vshll.u32 %v7615_v55, 16 }
 0x1c7   : > { %v2106_v51 = vsel %vm2100_vm13, %v2063_v0, %v7416_v45  ;;  %v2065_v0 = vsel %vm2056_vm12, %v6747_v12, %v7327_v23 }
 0x1c8   : > { %1660 = vrot.lane.b32.xlu0 %v1542_v47, %s6330_s19  ;;  %v2149_v13 = vsel %vm2143_vm5, %v2106_v51, %v7516_v14 }
 0x1c9   : > { %1747 = vrot.lane.b32.xlu1 %v1706_v59, %s6331_s20  ;;  %v1990_v59 = vrot.slane %v7557_v42, 7 }
 0x1ca   : > { %v1930_v15 = vpop.permute.xlu0 %1929 }
 0x1cb   : > { %v2319_v37 = vsel %vm2315_vm4, %v2276_v33, %v1930_v15  ;;  %v2015_v49 = vpop.permute.xlu1 %2014  ;;  %1801 = vrot.lane.b32.xlu2 %v1708_v30, %s6332_s21  ;;  %v1991_v32 = vsel %vm10541_vm10, %v1988_v1, %v1990_v59  ;;  %v1553_v33 = vshrl.u32 %v7615_v55, 16 }
 0x1cc   : > { %v2362_v54 = vsel %vm2358_vm8, %v2319_v37, %v7544_v52  ;;  %v2360_v50 = vsel %vm2358_vm8, %v2317_v7, %v2015_v49  ;;  %v1550_v37 = vor.u32 %v1549_v63, %v1546_v20  ;;  %v1992_v63 = vrot.slane %v7615_v55, 7 }
 0x1cd   : > { %v2422_v6 = vshrl.u32 %v2362_v54, 16  ;;  %v2425_v8 = vshll.u32 %v2362_v54, 16  ;;  %v2415_v48 = vshrl.u32 %v2360_v50, 16  ;;  %v2418_v44 = vshll.u32 %v2360_v50, 16  ;;  %v7613_v46 = vpop.permute.xlu2 %1933 }
 0x1ce   : > { %v1551_v7 = vsel %vm10527_vm9, %v7571_v26, %v1550_v37  ;;  %v1873_v14 = vrot.slane %v1553_v33, 6  ;;  %v1874_v50 = vrot.slane %v1556_v16, 7 }
 0x1cf   : > { %v2424_v52 = vrot.slane %v2422_v6, 2  ;;  %v2427_v19 = vrot.slane %v2425_v8, 3  ;;  %v2417_v22 = vrot.slane %v2415_v48, 2  ;;  %v2420_v21 = vrot.slane %v2418_v44, 3 }
 0x1d0   : > { %1945 = vrot.lane.b32.xlu0 %v1872_v35, %s6333_s22  ;;  %v1709_v6 = vrot.slane %v7615_v55, 6  ;;  %v1875_v35 = vor.u32 %v1874_v50, %v1873_v14  ;;  %v7665_v55 = vld [vmem:[#allocation2 + $0x70] sm:$0xff]   ;;  %v6283_v50 = vld [vmem:[#allocation2 + $0x24] sm:$0xff]  }
 0x1d1   : > { %v2421_v31 = vor.u32 %v2420_v21, %v2417_v22  ;;  %2032 = vrot.lane.b32.xlu1 %v1991_v32, %s6334_s23  ;;  %v2428_v47 = vor.u32 %v2427_v19, %v2424_v52  ;;  %v1558_v22 = vrot.slane %v1556_v16, 6 }
 0x1d2   : > { %v1647_v40 = vpop.permute.xlu0 %1646  ;;  %v1710_v20 = vsel %vm1687_vm1, %v1707_v61, %v1709_v6  ;;  %v1876_v32 = vsel %vm10526_vm14, %v7598_v38, %v1875_v35  ;;  %v1993_v61 = vsel %vm10541_vm10, %v1990_v59, %v1992_v63  ;;  %v1562_v59 = vshrl.u32 %v7665_v55, 16 }
 0x1d3   : > { %v1734_v1 = vpop.permute.xlu1 %1733  ;;  %v2429_v15 = vsel %vm2414_vm2, %v2421_v31, %v2428_v47  ;;  %v2192_v49 = vsel %vm2186_vm6, %v2149_v13, %v1647_v40  ;;  %1410 = vrot.lane.b32.xlu2 %v7237_v58, %s6329_s18  ;;  %v2108_v31 = vsel %vm2100_vm13, %v2065_v0, %v7385_v10  ;;  %v1565_v13 = vshll.u32 %v7665_v55, 16 }
 0x1d4   : > { %5679 = vmatmul.msk.bf16.vlgmr.msra.gmra.mxu0 %vm10528_vm15, %v2429_v15  ;;  %v2235_v45 = vsel %vm2229_vm11, %v2192_v49, %v1734_v1  ;;  %v2151_v38 = vsel %vm2143_vm5, %v2108_v31, %v7471_v18  ;;  %v1711_v18 = vrot.slane %v7665_v55, 6 }
 0x1d5   : > { %v7640_v54 = vpop.permute.xlu2 %1737  ;;  %v2278_v48 = vsel %vm2272_vm7, %v2235_v45, %v7555_v27  ;;  %v2194_v12 = vsel %vm2186_vm6, %v2151_v38, %v7589_v56  ;;  %v1878_v16 = vrot.slane %v1565_v13, 7 }
 0x1d6   : > { %v1712_v14 = vsel %vm1687_vm1, %v1709_v6, %v1711_v18 }
 0x1d8   : > { %1662 = vrot.lane.b32.xlu0 %v1551_v7, %s6330_s19 }
 0x1d9   : > { %1749 = vrot.lane.b32.xlu1 %v1708_v30, %s6331_s20  ;;  %v1555_v30 = vrot.slane %v1553_v33, 5 }
 0x1da   : > { %v1932_v8 = vpop.permute.xlu0 %1931 }
 0x1db   : > { %v2321_v58 = vsel %vm2315_vm4, %v2278_v48, %v1932_v8  ;;  %v2019_v44 = vpop.permute.xlu1 %2018  ;;  %1803 = vrot.lane.b32.xlu2 %v1710_v20, %s6332_s21  ;;  %v1559_v33 = vor.u32 %v1558_v22, %v1555_v30  ;;  %v2067_v8 = vsel %vm2056_vm12, %v6283_v50, %v7319_v24  ;;  %v1564_v24 = vrot.slane %v1562_v59, 5 }
 0x1dc   : > { %v2364_v26 = vsel %vm2358_vm8, %v2321_v58, %v2019_v44  ;;  %v1994_v44 = vrot.slane %v7665_v55, 7  ;;  %v1567_v22 = vrot.slane %v1565_v13, 6 }
 0x1dd   : > { %v2430_v52 = vshrl.u32 %v2364_v26, 16  ;;  %v2433_v19 = vshll.u32 %v2364_v26, 16  ;;  %v7656_v4 = vpop.permute.xlu2 %2022  ;;  %v1560_v56 = vsel %vm10527_vm9, %v1550_v37, %v1559_v33  ;;  %v2110_v26 = vsel %vm2100_vm13, %v2067_v8, %v7426_v39 }
 0x1de   : > { %v1995_v39 = vsel %vm10541_vm10, %v1992_v63, %v1994_v44  ;;  %v1568_v38 = vor.u32 %v1567_v22, %v1564_v24 }
 0x1df   : > { %v2432_v21 = vrot.slane %v2430_v52, 2  ;;  %v2435_v27 = vrot.slane %v2433_v19, 3 }
 0x1e0   : > { %1947 = vrot.lane.b32.xlu0 %v1876_v32, %s6333_s22 }
 0x1e1   : > { %v2436_v51 = vor.u32 %v2435_v27, %v2432_v21  ;;  %2034 = vrot.lane.b32.xlu1 %v1993_v61, %s6334_s23  ;;  %v7706_v21 = vld [vmem:[#allocation2 + $0x78] sm:$0xff]  }
 0x1e2   : > { %v1736_v40 = vpop.permute.xlu0 %1735 }
 0x1e3   : > { %v1790_v23 = vpop.permute.xlu1 %1789  ;;  %v2437_v42 = vsel %vm2414_vm2, %v2428_v47, %v2436_v51  ;;  %v2237_v10 = vsel %vm2229_vm11, %v2194_v12, %v1736_v40  ;;  %1412 = vrot.lane.b32.xlu2 %v7255_v62, %s6329_s18  ;;  %v1877_v47 = vrot.slane %v1562_v59, 6  ;;  %v1574_v40 = vshll.u32 %v7706_v21, 16 }
 0x1e4   : > { %5680 = vmatmul.msk.bf16.gmra.mxu0 %vm10528_vm15, %v2437_v42  ;;  %v2280_v1 = vsel %vm2272_vm7, %v2237_v10, %v1790_v23  ;;  %v1569_v42 = vsel %vm10527_vm9, %v1559_v33, %v1568_v38  ;;  %v1713_v10 = vrot.slane %v7706_v21, 6 }
 0x1e5   : > { %v7684_v15 = vpop.permute.xlu2 %1793  ;;  %v2323_v45 = vsel %vm2315_vm4, %v2280_v1, %v7613_v46  ;;  %v1879_v37 = vor.u32 %v1878_v16, %v1877_v47  ;;  %v2153_v46 = vsel %vm2143_vm5, %v2110_v26, %v7532_v60  ;;  %v1882_v13 = vrot.slane %v1574_v40, 7  ;;  %v6284_v1 = vld [vmem:[#allocation2 + $0x2c] sm:$0xff]  }
 0x1e7   : > { %v1880_v19 = vsel %vm10526_vm14, %v1875_v35, %v1879_v37  ;;  %v1571_v35 = vshrl.u32 %v7706_v21, 16 }
 0x1e8   : > { %1664 = vrot.lane.b32.xlu0 %v1560_v56, %s6330_s19  ;;  %v2069_v56 = vsel %vm2056_vm12, %v6284_v1, %v7337_v25  ;;  %v1996_v25 = vrot.slane %v7706_v21, 7 }
 0x1e9   : > { %1751 = vrot.lane.b32.xlu1 %v1710_v20, %s6331_s20 }
 0x1ea   : > { %v2021_v49 = vpop.permute.xlu0 %2020  ;;  %v1997_v55 = vsel %vm10541_vm10, %v1994_v44, %v1996_v25 }
 0x1eb   : > { %v2366_v62 = vsel %vm2358_vm8, %v2323_v45, %v2021_v49  ;;  %v1651_v7 = vpop.permute.xlu1 %1650  ;;  %1805 = vrot.lane.b32.xlu2 %v1712_v14, %s6332_s21 }
 0x1ec   : > { %v2438_v48 = vshrl.u32 %v2366_v62, 16  ;;  %v2441_v58 = vshll.u32 %v2366_v62, 16  ;;  %v2196_v6 = vsel %vm2186_vm6, %v2153_v46, %v1651_v7  ;;  %v1714_v7 = vsel %vm1687_vm1, %v1711_v18, %v1713_v10 }
 0x1ed   : > { %v7704_v30 = vpop.permute.xlu2 %1402  ;;  %v2239_v32 = vsel %vm2229_vm11, %v2196_v6, %v7640_v54  ;;  %v1881_v54 = vrot.slane %v1571_v35, 6 }
 0x1ee   : > { %v2440_v20 = vrot.slane %v2438_v48, 2  ;;  %v2443_v52 = vrot.slane %v2441_v58, 3  ;;  %v1576_v48 = vrot.slane %v1574_v40, 6  ;;  %v7745_v58 = vld [vmem:[#allocation2 + $0x80] sm:$0xff]  }
 0x1ef   : > { %v1883_v45 = vor.u32 %v1882_v13, %v1881_v54  ;;  %v1580_v46 = vshrl.u32 %v7745_v58, 16 }
 0x1f0   : > { %v2444_v27 = vor.u32 %v2443_v52, %v2440_v20  ;;  %1949 = vrot.lane.b32.xlu0 %v1880_v19, %s6333_s22  ;;  %v1583_v19 = vshll.u32 %v7745_v58, 16 }
 0x1f1   : > { %2036 = vrot.lane.b32.xlu1 %v1995_v39, %s6334_s23  ;;  %v1884_v50 = vsel %vm10526_vm14, %v1879_v37, %v1883_v45  ;;  %v1885_v44 = vrot.slane %v1580_v46, 6 }
 0x1f2   : > { %v1792_v60 = vpop.permute.xlu0 %1791  ;;  %v2445_v0 = vsel %vm2414_vm2, %v2436_v51, %v2444_v27 }
 0x1f3   : > { %v2282_v61 = vsel %vm2272_vm7, %v2239_v32, %v1792_v60  ;;  %v1936_v31 = vpop.permute.xlu1 %1935  ;;  %1414 = vrot.lane.b32.xlu2 %v7266_v28, %s6329_s18  ;;  %v2112_v28 = vsel %vm2100_vm13, %v2069_v56, %v7428_v53  ;;  %v1886_v60 = vrot.slane %v1583_v19, 7  ;;  %v6285_v32 = vld [vmem:[#allocation2 + $0x34] sm:$0xff]  }
 0x1f4   : > { %v2325_v12 = vsel %vm2315_vm4, %v2282_v61, %v1936_v31  ;;  %5681 = vmatmul.msk.bf16.gmra.mxu0 %vm10528_vm15, %v2445_v0  ;;  %v2155_v33 = vsel %vm2143_vm5, %v2112_v28, %v7534_v3  ;;  %v2071_v0 = vsel %vm2056_vm12, %v6285_v32, %v7281_v9  ;;  %v1582_v9 = vrot.slane %v1580_v46, 5 }
 0x1f5   : > { %v2368_v63 = vsel %vm2358_vm8, %v2325_v12, %v7656_v4  ;;  %v7724_v59 = vpop.permute.xlu2 %1795  ;;  %v1887_v12 = vor.u32 %v1886_v60, %v1885_v44  ;;  %v10622_v32 = vshrl.u32 %v7212_v5, 16 }
 0x1f6   : > { %v2446_v51 = vshrl.u32 %v2368_v63, 16  ;;  %v2449_v23 = vshll.u32 %v2368_v63, 16 }
 0x1f8   : > { %1666 = vrot.lane.b32.xlu0 %v1569_v42, %s6330_s19  ;;  %v2448_v47 = vrot.slane %v2446_v51, 2  ;;  %v2451_v16 = vrot.slane %v2449_v23, 3  ;;  %v1998_v51 = vrot.slane %v7745_v58, 7  ;;  %v1888_v42 = vsel %vm10526_vm14, %v1883_v45, %v1887_v12 }
 0x1f9   : > { %1753 = vrot.lane.b32.xlu1 %v1712_v14, %s6331_s20  ;;  %v1573_v14 = vrot.slane %v1571_v35, 5 }
 0x1fa   : > { %v1653_v4 = vpop.permute.xlu0 %1652  ;;  %v2452_v8 = vor.u32 %v2451_v16, %v2448_v47  ;;  %v1999_v1 = vsel %vm10541_vm10, %v1996_v25, %v1998_v51 }
 0x1fb   : > { %v1740_v49 = vpop.permute.xlu1 %1739  ;;  %v2198_v62 = vsel %vm2186_vm6, %v2155_v33, %v1653_v4  ;;  %1807 = vrot.lane.b32.xlu2 %v1714_v7, %s6332_s21  ;;  %v1577_v6 = vor.u32 %v1576_v48, %v1573_v14  ;;  %v10621_v14 = vshll.u32 %v7197_v11, 16  ;;  %v6287_v48 = vld [vmem:[#allocation2 + $0x3c] sm:$0xff]  }
 0x1fc   : > { %v2241_v53 = vsel %vm2229_vm11, %v2198_v62, %v1740_v49  ;;  %v2453_v52 = vsel %vm2414_vm2, %v2444_v27, %v2452_v8  ;;  %v1715_v27 = vrot.slane %v7745_v58, 6  ;;  %v10620_v49 = vshrl.u32 %v7197_v11, 16 }
 0x1fd   : > { %v7743_v3 = vpop.permute.xlu2 %1404  ;;  %v2284_v26 = vsel %vm2272_vm7, %v2241_v53, %v7684_v15  ;;  %v1578_v21 = vsel %vm10527_vm9, %v1568_v38, %v1577_v6  ;;  %v1890_v53 = vrot.slane %v10621_v14, 7  ;;  %v6290_v14 = vld [vmem:[#allocation2 + $0x4c] sm:$0xff]  }
 0x1fe   : > { %v1716_v54 = vsel %vm1687_vm1, %v1713_v10, %v1715_v27  ;;  %v1889_v45 = vrot.slane %v10620_v49, 6 }
 0x200   : > { %1951 = vrot.lane.b32.xlu0 %v1884_v50, %s6333_s22  ;;  %v6286_v50 = vld [vmem:[#allocation2 + $0x88] sm:$0xff]  }
 0x201   : > { %2038 = vrot.lane.b32.xlu1 %v1997_v55, %s6334_s23 }
 0x202   : > { %v1938_v18 = vpop.permute.xlu0 %1937 }
 0x203   : > { %v2327_v37 = vsel %vm2315_vm4, %v2284_v26, %v1938_v18  ;;  %v2025_v20 = vpop.permute.xlu1 %2024  ;;  %1416 = vrot.lane.b32.xlu2 %v7271_v43, %s6329_s18  ;;  %v2114_v43 = vsel %vm2100_vm13, %v2071_v0, %v7398_v36  ;;  %v1893_v0 = vrot.slane %v10622_v32, 6 }
 0x204   : > { %v2370_v24 = vsel %vm2358_vm8, %v2327_v37, %v2025_v20  ;;  %5682 = vmatmul.msk.bf16.gmra.mxu0 %vm10528_vm15, %v2453_v52  ;;  %v2157_v61 = vsel %vm2143_vm5, %v2114_v43, %v7704_v30  ;;  %v1585_v30 = vrot.slane %v1583_v19, 6  ;;  %v1891_v37 = vor.u32 %v1890_v53, %v1889_v45  ;;  %v10625_v53 = vld [vmem:[#allocation51_spill] sm:$0xff] }
 0x205   : > { %v2454_v22 = vshrl.u32 %v2370_v24, 16  ;;  %v2457_v15 = vshll.u32 %v2370_v24, 16  ;;  %v7761_v39 = vpop.permute.xlu2 %1797 }
 0x206   : > { %v1586_v47 = vor.u32 %v1585_v30, %v1582_v9 }
 0x207   : > { %v2456_v31 = vrot.slane %v2454_v22, 2  ;;  %v2459_v38 = vrot.slane %v2457_v15, 3 }
 0x208   : > { %1668 = vrot.lane.b32.xlu0 %v1578_v21, %s6330_s19 }
 0x209   : > { %1755 = vrot.lane.b32.xlu1 %v1714_v7, %s6331_s20  ;;  %v2460_v23 = vor.u32 %v2459_v38, %v2456_v31  ;;  %v7829_v38 = vld [vmem:[#allocation2 + $0x90] sm:$0xff]  }
 0x20a   : > { %v1655_v35 = vpop.permute.xlu0 %1654 }
 0x20b   : > { %v1742_v40 = vpop.permute.xlu1 %1741  ;;  %v2200_v63 = vsel %vm2186_vm6, %v2157_v61, %v1655_v35  ;;  %1809 = vrot.lane.b32.xlu2 %v1716_v54, %s6332_s21  ;;  %v2461_v33 = vsel %vm2414_vm2, %v2452_v8, %v2460_v23  ;;  %v1717_v8 = vrot.slane %v6286_v50, 6  ;;  %v10623_v61 = vshll.u32 %v7212_v5, 16 }
 0x20c   : > { %v2243_v36 = vsel %vm2229_vm11, %v2200_v63, %v1742_v40  ;;  %v1719_v40 = vrot.slane %v7829_v38, 6 }
 0x20d   : > { %v7778_v13 = vpop.permute.xlu2 %1406  ;;  %v2286_v56 = vsel %vm2272_vm7, %v2243_v36, %v7724_v59  ;;  %v1587_v59 = vsel %vm10527_vm9, %v1577_v6, %v1586_v47  ;;  %v1718_v52 = vsel %vm1687_vm1, %v1715_v27, %v1717_v8  ;;  %v2000_v6 = vrot.slane %v6286_v50, 7 }
 0x20e   : > { %v1894_v31 = vrot.slane %v10623_v61, 7  ;;  %v2077_v50 = vsel %vm2056_vm12, %v6290_v14, %v10625_v53 }
 0x210   : > { %1953 = vrot.lane.b32.xlu0 %v1888_v42, %s6333_s22  ;;  %v7839_v42 = vor.u32 %v1894_v31, %v1893_v0 }
 0x211   : > { %2040 = vrot.lane.b32.xlu1 %v1999_v1, %s6334_s23  ;;  %v2002_v1 = vrot.slane %v7829_v38, 7 }
 0x212   : > { %v1940_v10 = vpop.permute.xlu0 %1939 }
 0x213   : > { %v2329_v28 = vsel %vm2315_vm4, %v2286_v56, %v1940_v10  ;;  %v2027_v4 = vpop.permute.xlu1 %2026  ;;  %1418 = vrot.lane.b32.xlu2 %v7285_v29, %s6329_s18  ;;  %v2073_v29 = vsel %vm2056_vm12, %v6287_v48, %v7331_v34  ;;  %v1896_v56 = vsel %vm10526_vm14, %v1891_v37, %v7839_v42 }
 0x214   : > { %v2372_v16 = vsel %vm2358_vm8, %v2329_v28, %v2027_v4  ;;  %5683 = vmatmul.msk.bf16.gmra.mxu0 %vm10528_vm15, %v2461_v33  ;;  %v2116_v58 = vsel %vm2100_vm13, %v2073_v29, %v7437_v2  ;;  %v1892_v2 = vsel %vm10526_vm14, %v1887_v12, %v1891_v37  ;;  %v6289_v12 = vld [vmem:[#allocation2 + $0x44] sm:$0xff]   ;;  %v2003_v28 = vsel %vm10541_vm10, %v2000_v6, %v2002_v1 }
 0x215   : > { %v2462_v62 = vshrl.u32 %v2372_v16, 16  ;;  %v2465_v7 = vshll.u32 %v2372_v16, 16  ;;  %v7794_v25 = vpop.permute.xlu2 %1799  ;;  %v2159_v18 = vsel %vm2143_vm5, %v2116_v58, %v7743_v3  ;;  %v2001_v3 = vsel %vm10541_vm10, %v1998_v51, %v2000_v6 }
 0x216   : > { %vm2912_vm14 = vcmask 125952  }
 0x217   : > { %v2464_v26 = vrot.slane %v2462_v62, 2  ;;  %v2467_v11 = vrot.slane %v2465_v7, 3 }
 0x218   : > { %1670 = vrot.lane.b32.xlu0 %v1587_v59, %s6330_s19 }
 0x219   : > { %1757 = vrot.lane.b32.xlu1 %v1716_v54, %s6331_s20  ;;  %v2468_v34 = vor.u32 %v2467_v11, %v2464_v26  ;;  %v10624_v54 = vld [vmem:[#allocation67_spill] sm:$0xff] }
 0x21a   : > { %v1657_v55 = vpop.permute.xlu0 %1656 }
 0x21b   : > { %v1744_v46 = vpop.permute.xlu1 %1743  ;;  %v2202_v20 = vsel %vm2186_vm6, %v2159_v18, %v1657_v55  ;;  %1811 = vrot.lane.b32.xlu2 %v1718_v52, %s6332_s21  ;;  %v2469_v60 = vsel %vm2414_vm2, %v2460_v23, %v2468_v34 }
 0x21c   : > { %v2245_v19 = vsel %vm2229_vm11, %v2202_v20, %v1744_v46 }
 0x21d   : > { %v1409_v24 = vpop.permute.xlu2 %1408  ;;  %v2288_v22 = vsel %vm2272_vm7, %v2245_v19, %v7761_v39  ;;  %v1596_v39 = vsel %vm10527_vm9, %v1586_v47, %v7242_v57  ;;  %vm10641_vm9 = vsmask.f32 7424 }
 0x220   : > { %1955 = vrot.lane.b32.xlu0 %v1892_v2, %s6333_s22 }
 0x221   : > { %2042 = vrot.lane.b32.xlu1 %v2001_v3, %s6334_s23 }
 0x222   : > { %v1942_v44 = vpop.permute.xlu0 %1941 }
 0x223   : > { %v2331_v15 = vsel %vm2315_vm4, %v2288_v22, %v1942_v44  ;;  %v2029_v21 = vpop.permute.xlu1 %2028  ;;  %1420 = vrot.lane.b32.xlu2 %v7292_v17, %s6329_s18  ;;  %v2075_v17 = vsel %vm2056_vm12, %v6289_v12, %v7352_v41  ;;  %v7845_v41 = vsel %vm1687_vm1, %v1717_v8, %v1719_v40  ;;  %v10626_v8 = vmov 0   ;;  %v7895_v12 = vld [vmem:[%s10422_s5] ss:$0 sm:$0xff] }
 0x224   : > { %v2374_v27 = vsel %vm2358_vm8, %v2331_v15, %v2029_v21  ;;  %5684 = vmatmul.msk.bf16.gmra.mxu0 %vm10528_vm15, %v2469_v60  ;;  %v2118_v51 = vsel %vm2100_vm13, %v2075_v17, %v10624_v54  ;;  %2915 = vst.msk [vmem:[#allocation3 + $0x4] sm:$0xf] %vm2912_vm14, %v10626_v8  ;;  %v6291_v15 = vld [vmem:[#allocation2 + $0x54] sm:$0xff]  }
 0x225   : > { %v2470_v43 = vshrl.u32 %v2374_v27, 16  ;;  %v2473_v35 = vshll.u32 %v2374_v27, 16  ;;  %v1802_v63 = vpop.permute.xlu2 %1801  ;;  %v2161_v5 = vsel %vm2143_vm5, %v2118_v51, %v7778_v13  ;;  %2916 = vst.msk [vmem:[#allocation3 + $0x8] sm:$0xf] %vm2912_vm14, %v10626_v8  ;;  %v10628_v21 = vld [vmem:[#allocation54_spill] sm:$0xff]  ;;  %v10629_v27 = vld [vmem:[#allocation69_spill] sm:$0xff] }
 0x226   : > { %2917 = vst.msk [vmem:[#allocation3 + $0xc] sm:$0xf] %vm2912_vm14, %v10626_v8  ;;  %v2079_v60 = vsel %vm2056_vm12, %v6291_v15, %v10628_v21 }
 0x227   : > { %v2472_v9 = vrot.slane %v2470_v43, 2  ;;  %v2475_v23 = vrot.slane %v2473_v35, 3  ;;  %2920 = vst.msk [vmem:[#allocation3 + $0xb4] sm:$0xf] %vm2912_vm14, %v10626_v8  ;;  %v2122_v32 = vsel %vm2100_vm13, %v2079_v60, %v10629_v27 }
 0x228   : > { %1672 = vrot.lane.b32.xlu0 %v1596_v39, %s6330_s19  ;;  %2921 = vst.msk [vmem:[#allocation3 + $0xb8] sm:$0xf] %vm2912_vm14, %v10626_v8 }
 0x229   : > { %1759 = vrot.lane.b32.xlu1 %v1718_v52, %s6331_s20  ;;  %v2476_v10 = vor.u32 %v2475_v23, %v2472_v9 }
 0x22a   : > { %v1659_v57 = vpop.permute.xlu0 %1658 }
 0x22b   : > { %v1746_v36 = vpop.permute.xlu1 %1745  ;;  %v2204_v30 = vsel %vm2186_vm6, %v2161_v5, %v1659_v57  ;;  %1813 = vrot.lane.b32.xlu2 %v7845_v41, %s6332_s21  ;;  %v2477_v45 = vsel %vm2414_vm2, %v2468_v34, %v2476_v10 }
 0x22c   : > { %v2247_v13 = vsel %vm2229_vm11, %v2204_v30, %v1746_v36 }
 0x22d   : > { %v2290_v33 = vsel %vm2272_vm7, %v2247_v13, %v7794_v25  ;;  %v1411_v47 = vpop.permute.xlu2 %1410  ;;  %v10627_v25 = vld [vmem:[#allocation64_spill] sm:$0xff] }
 0x22e   : > { %v2120_v48 = vsel %vm2100_vm13, %v2077_v50, %v10627_v25  ;;  %v2165_v43 = vsel %vm2143_vm5, %v2122_v32, %v1411_v47  ;;  %v7921_v50 = vld [vmem:[#allocation3 + $0x8] sm:$0xff]   ;;  %v3049_v25 = vld [vmem:[#allocation3 + $0x4] sm:$0x8] }
 0x22f   : > { %v2163_v58 = vsel %vm2143_vm5, %v2120_v48, %v1409_v24 }
 0x230   : > { %1957 = vrot.lane.b32.xlu0 %v1896_v56, %s6333_s22 }
 0x231   : > { %2044 = vrot.lane.b32.xlu1 %v2003_v28, %s6334_s23 }
 0x232   : > { %v1944_v4 = vpop.permute.xlu0 %1943 }
 0x233   : > { %v2333_v16 = vsel %vm2315_vm4, %v2290_v33, %v1944_v4  ;;  %v2031_v49 = vpop.permute.xlu1 %2030 }
 0x234   : > { %v2376_v62 = vsel %vm2358_vm8, %v2333_v16, %v2031_v49  ;;  %5685 = vmatmul.msk.bf16.gmra.mxu0 %vm10528_vm15, %v2477_v45  ;;  %v6292_v16 = vld [vmem:[#allocation2 + $0x5c] sm:$0xff]   ;;  %v10631_v49 = vld [vmem:[#allocation57_spill] sm:$0xff] }
 0x235   : > { %v2478_v7 = vshrl.u32 %v2376_v62, 16  ;;  %v2481_v59 = vshll.u32 %v2376_v62, 16  ;;  %v1804_v46 = vpop.permute.xlu2 %1803  ;;  %v2081_v45 = vsel %vm2056_vm12, %v6292_v16, %v10631_v49 }
 0x237   : > { %v2480_v55 = vrot.slane %v2478_v7, 2  ;;  %v2483_v18 = vrot.slane %v2481_v59, 3  ;;  %v10632_v7 = vld [vmem:[#allocation70_spill] sm:$0xff] }
 0x238   : > { %v2124_v59 = vsel %vm2100_vm13, %v2081_v45, %v10632_v7 }
 0x239   : > { %v2484_v37 = vor.u32 %v2483_v18, %v2480_v55 }
 0x23a   : > { %v1661_v29 = vpop.permute.xlu0 %1660 }
 0x23b   : > { %v1748_v26 = vpop.permute.xlu1 %1747  ;;  %v2206_v11 = vsel %vm2186_vm6, %v2163_v58, %v1661_v29  ;;  %v2485_v2 = vsel %vm2414_vm2, %v2476_v10, %v2484_v37 }
 0x23c   : > { %v2249_v20 = vsel %vm2229_vm11, %v2206_v11, %v1748_v26 }
 0x23d   : > { %v2292_v6 = vsel %vm2272_vm7, %v2249_v20, %v1802_v63  ;;  %v1413_v3 = vpop.permute.xlu2 %1412 }
 0x23e   : > { %v2167_v48 = vsel %vm2143_vm5, %v2124_v59, %v1413_v3 }
 0x242   : > { %v1946_v52 = vpop.permute.xlu0 %1945 }
 0x243   : > { %v2335_v34 = vsel %vm2315_vm4, %v2292_v6, %v1946_v52  ;;  %v2033_v19 = vpop.permute.xlu1 %2032 }
 0x244   : > { %v2378_v24 = vsel %vm2358_vm8, %v2335_v34, %v2033_v19  ;;  %5686 = vmatmul.msk.bf16.gmra.mxu0 %vm10528_vm15, %v2485_v2 }
 0x245   : > { %v2486_v44 = vshrl.u32 %v2378_v24, 16  ;;  %v2489_v22 = vshll.u32 %v2378_v24, 16  ;;  %v1806_v54 = vpop.permute.xlu2 %1805 }
 0x247   : > { %v2488_v35 = vrot.slane %v2486_v44, 2  ;;  %v2491_v39 = vrot.slane %v2489_v22, 3 }
 0x249   : > { %v2492_v17 = vor.u32 %v2491_v39, %v2488_v35  ;;  %v10634_v35 = vld [vmem:[#allocation8_spill] sm:$0xff] }
 0x24a   : > { %v1663_v0 = vpop.permute.xlu0 %1662 }
 0x24b   : > { %v1750_v61 = vpop.permute.xlu1 %1749  ;;  %v2208_v31 = vsel %vm2186_vm6, %v2165_v43, %v1663_v0  ;;  %v2493_v30 = vsel %vm2414_vm2, %v2484_v37, %v2492_v17  ;;  %v3167_v37 = vunpack.c.l.b16 %v3049_v25 }
 0x24c   : > { %v2251_v63 = vsel %vm2229_vm11, %v2208_v31, %v1750_v61 }
 0x24d   : > { %v2294_v9 = vsel %vm2272_vm7, %v2251_v63, %v1804_v46  ;;  %v1415_v29 = vpop.permute.xlu2 %1414  ;;  %v10531_v46 = vunpack.c.l.b16 %v7921_v50 }
 0x24f   : > { %v3168_v24 = vpack.c.b16 %v10531_v46, %v3167_v37 }
 0x251   : > { %v2686_v51 = vpop.f32.mrf.mxu0  ;;  %v3172_v43 = vshll.u32 %v3168_v24, 16 }
 0x252   : > { %v2687_v57 = vadd.f32 %v7895_v12, %v2686_v51  ;;  %v1948_v5 = vpop.permute.xlu0 %1947 }
 0x253   : > { %v2337_v23 = vsel %vm2315_vm4, %v2294_v9, %v1948_v5  ;;  %v2035_v36 = vpop.permute.xlu1 %2034 }
 0x254   : > { %v2790_v10 = vmax.f32 %v2687_v57, 0.0  ;;  %v2380_v13 = vsel %vm2358_vm8, %v2337_v23, %v2035_v36  ;;  %5687 = vmatmul.msk.bf16.gmra.mxu0 %vm10528_vm15, %v2493_v30  ;;  %v10636_v57 = vld [vmem:[#allocation53_spill] sm:$0xff]  ;;  %v3170_v36 = vshrl.u32 %v3168_v24, 16  ;;  %v3174_v30 = vrot.slane %v3172_v43, 1 }
 0x255   : > { %v2494_v33 = vshrl.u32 %v2380_v13, 16  ;;  %v2497_v47 = vshll.u32 %v2380_v13, 16  ;;  %v1808_v0 = vpop.permute.xlu2 %1807 }
 0x256   : > { %v2831_v28 = vsel %vm738_vm0, %v2790_v10, 0.0  ;;  %vm10635_vm0 = vcmp.eq.s32.totalorder %v10634_v35, 1  ;;  %v10637_v10 = vld [vmem:[#allocation65_spill] sm:$0xff] }
 0x257   : > { %2872 = vst.msk [vmem:[%s7907_s29] sm:$0xff] %vm2100_vm13, %v2831_v28  ;;  %v2925_v4 = vpack.c.bf16 %v2831_v28, %v2831_v28  ;;  %v2496_v58 = vrot.slane %v2494_v33, 2  ;;  %v2499_v55 = vrot.slane %v2497_v47, 3  ;;  %v3051_v47 = vld [vmem:[#allocation3 + $0xc] sm:$0x8] }
 0x259   : > { %2966 = vst.msk [vmem:[#allocation3 + $0x10] sm:$0xf] %vm2912_vm14, %v2925_v4  ;;  %v2688_v62 = vpop.f32.mrf.mxu0  ;;  %v7928_v6 = vor.u32 %v2499_v55, %v2496_v58  ;;  %v10638_v55 = vld [vmem:[#allocation11_spill] sm:$0xff] }
 0x25a   : > { %v2689_v14 = vadd.f32 %v7895_v12, %v2688_v62  ;;  %v1665_v53 = vpop.permute.xlu0 %1664  ;;  %v3381_v62 = vrot.slane %v3168_v24, 1  ;;  %v5802_v24 = vld [vmem:[%s10423_s6 + $0x40] sm:$0xff] }
 0x25b   : > { %v1752_v18 = vpop.permute.xlu1 %1751  ;;  %v2210_v11 = vsel %vm2186_vm6, %v2167_v48, %v1665_v53  ;;  %v2501_v60 = vsel %vm2414_vm2, %v2492_v17, %v7928_v6  ;;  %v6293_v17 = vld [vmem:[#allocation2 + $0x64] sm:$0xff]   ;;  %v3175_v53 = vor.u32 %v3174_v30, %v3170_v36  ;;  %v3468_v48 = vunpack.c.l.b16 %v3051_v47  ;;  %5034 = vmatpush.bf16.msra.mxu2 %v5802_v24  ;;  %v6294_v30 = vld [vmem:[#allocation2 + $0x6c] sm:$0xff]  }
 0x25c   : > { %v2791_v26 = vmax.f32 %v2689_v14, 0.0  ;;  %v2253_v19 = vsel %vm2229_vm11, %v2210_v11, %v1752_v18  ;;  %v2083_v5 = vsel %vm2056_vm12, %v6293_v17, %v10636_v57  ;;  %v10642_v17 = vld [vmem:[#allocation4_spill] sm:$0xff] }
 0x25d   : > { %v2296_v22 = vsel %vm2272_vm7, %v2253_v19, %v1806_v54  ;;  %v5891_v54 = vunpack.c.h.b16 %v7921_v50  ;;  %v2126_v13 = vsel %vm2100_vm13, %v2083_v5, %v10637_v10  ;;  %v10645_v10 = vld [vmem:[#allocation58_spill] sm:$0xff] }
 0x25e   : > { %v2832_v52 = vsel %vm739_vm3, %v2791_v26, 0.0  ;;  %v2169_v16 = vsel %vm2143_vm5, %v2126_v13, %v1415_v29  ;;  %vm10639_vm3 = vcmp.eq.s32.totalorder %v10638_v55, 1  ;;  %v1417_v26 = vpop.permute.xlu2 %1416  ;;  %v2085_v13 = vsel %vm2056_vm12, %v6294_v30, %v10645_v10  ;;  %v10654_v30 = vld [vmem:[#allocation72_spill] sm:$0xff] }
 0x25f   : > { %2873 = vst.msk [vmem:[%s7907_s29 + $0x8] sm:$0xff] %vm2100_vm13, %v2832_v52  ;;  %v2926_v34 = vpack.c.bf16 %v2832_v52, %v2832_v52 }
 0x261   : > { %2967 = vst.msk [vmem:[#allocation3 + $0x14] sm:$0xf] %vm2912_vm14, %v2926_v34  ;;  %v2691_v2 = vpop.f32.mrf.mxu0 }
 0x262   : > { %v2692_v3 = vadd.f32 %v7895_v12, %v2691_v2  ;;  %v1950_v44 = vpop.permute.xlu0 %1949 }
 0x263   : > { %v2339_v15 = vsel %vm2315_vm4, %v2296_v22, %v1950_v44  ;;  %v2037_v21 = vpop.permute.xlu1 %2036 }
 0x264   : > { %v2792_v27 = vmax.f32 %v2692_v3, 0.0  ;;  %v2382_v32 = vsel %vm2358_vm8, %v2339_v15, %v2037_v21  ;;  %5688 = vmatmul.msk.bf16.gmra.mxu0 %vm10528_vm15, %v2501_v60 }
 0x265   : > { %v2502_v61 = vshrl.u32 %v2382_v32, 16  ;;  %v2505_v31 = vshll.u32 %v2382_v32, 16 }
 0x266   : > { %v2833_v39 = vsel %vm10635_vm0, %v2792_v27, 0.0  ;;  %vm10640_vm0 = vcmask 1046528  }
 0x267   : > { %2874 = vst.msk [vmem:[%s7907_s29 + $0x10] sm:$0xff] %vm2100_vm13, %v2833_v39  ;;  %v2927_v63 = vpack.c.bf16 %v2833_v39, %v2833_v39  ;;  %v2504_v56 = vrot.slane %v2502_v61, 2  ;;  %v2507_v28 = vrot.slane %v2505_v31, 3 }
 0x268   : > { %v7948_v51 = vld [vmem:[#allocation3 + $0x10] sm:$0xff]  }
 0x269   : > { %2968 = vst.msk [vmem:[#allocation3 + $0x18] sm:$0xf] %vm2912_vm14, %v2927_v63  ;;  %v2693_v9 = vpop.f32.mrf.mxu0  ;;  %v5894_v23 = vunpack.c.l.b16 %v7948_v51  ;;  %v7963_v58 = vor.u32 %v2507_v28, %v2504_v56  ;;  %v3545_v63 = vshrl.u32 %v7948_v51, 16  ;;  %v10646_v28 = vld [vmem:[#allocation71_spill] sm:$0xff] }
 0x26a   : > { %v2694_v4 = vadd.f32 %v7895_v12, %v2693_v9  ;;  %v1667_v33 = vpop.permute.xlu0 %1666 }
 0x26b   : > { %v1754_v49 = vpop.permute.xlu1 %1753  ;;  %v7958_v45 = vpack.c.b16 %v5894_v23, %v5891_v54  ;;  %v2212_v59 = vsel %vm2186_vm6, %v2169_v16, %v1667_v33  ;;  %v3472_v2 = vpack.c.b16 %v5894_v23, %v3468_v48  ;;  %v2509_v32 = vsel %vm2414_vm2, %v7928_v6, %v7963_v58  ;;  %v1810_v33 = vpop.permute.xlu2 %1809 }
 0x26c   : > { %v2793_v7 = vmax.f32 %v2694_v4, 0.0  ;;  %v2255_v11 = vsel %vm2229_vm11, %v2212_v59, %v1754_v49  ;;  %v3548_v54 = vshll.u32 %v7948_v51, 16  ;;  %v2128_v4 = vsel %vm2100_vm13, %v2085_v13, %v10646_v28  ;;  %v10655_v13 = vld [vmem:[#allocation47_spill] sm:$0xff] }
 0x26d   : > { %v3382_v14 = vrot.slane %v7958_v45, 1  ;;  %v3177_v25 = vshll.u32 %v7958_v45, 16  ;;  %v2298_v22 = vsel %vm2272_vm7, %v2255_v11, %v1808_v0  ;;  %v3181_v15 = vshrl.u32 %v7958_v45, 16 }
 0x26e   : > { %v2834_v18 = vsel %vm10639_vm3, %v2793_v7, 0.0  ;;  %v3475_v31 = vrot.slane %v3472_v2, 1  ;;  %vm10644_vm3 = vsmask.f32 7424  ;;  %v3547_v49 = vrot.slane %v3545_v63, 5 }
 0x26f   : > { %2875 = vst.msk [vmem:[%s7907_s29 + $0x18] sm:$0xff] %vm2100_vm13, %v2834_v18  ;;  %v2928_v29 = vpack.c.bf16 %v2834_v18, %v2834_v18  ;;  %v3383_v37 = vsel %vm10640_vm0, %v3381_v62, %v3382_v14  ;;  %v3179_v20 = vrot.slane %v3177_v25, 1  ;;  %v3550_v25 = vrot.slane %v3548_v54, 6  ;;  %v6295_v54 = vld [vmem:[#allocation2 + $0x74] sm:$0xff]  }
 0x270   : > { %3422 = vrot.lane.b32.xlu1 %v3383_v37, %s6330_s19  ;;  %v7972_v52 = vld [vmem:[#allocation3 + $0x14] sm:$0xff]   ;;  %v2171_v55 = vsel %vm2143_vm5, %v2128_v4, %v1417_v26 }
 0x271   : > { %2969 = vst.msk [vmem:[#allocation3 + $0x1c] sm:$0xf] %vm2912_vm14, %v2928_v29  ;;  %v2696_v34 = vpop.f32.mrf.mxu0  ;;  %v3180_v19 = vsel %vm10641_vm9, %v3175_v53, %v3179_v20  ;;  %v3185_v21 = vshll.u32 %v7972_v52, 16  ;;  %v7989_v43 = vrot.slane %v7972_v52, 1  ;;  %v3183_v39 = vor.u32 %v3181_v15, %v3179_v20  ;;  %v3059_v48 = vld [vmem:[#allocation3 + $0x18] sm:$0xe] }
 0x272   : > { %v2697_v3 = vadd.f32 %v7895_v12, %v2696_v34  ;;  %v1952_v44 = vpop.permute.xlu0 %1951  ;;  %3336 = vrot.lane.b32.xlu2 %v3180_v19, %s6328_s30  ;;  %vm10643_vm9 = vcmp.eq.s32.totalorder %v10642_v17, 1  ;;  %v10648_v34 = vld [vmem:[#allocation5_spill] sm:$0xff]  ;;  %v8025_v2 = vor.u32 %v3550_v25, %v3547_v49  ;;  %v10650_v26 = vld [vmem:[#allocation50_spill] sm:$0xff]  ;;  %v10651_v17 = vld [vmem:[#allocation59_spill] sm:$0xff] }
 0x273   : > { %v2341_v60 = vsel %vm2315_vm4, %v2298_v22, %v1952_v44  ;;  %v2039_v27 = vpop.permute.xlu1 %2038  ;;  %v7993_v61 = vrot.slane %v3185_v21, 1  ;;  %v3476_v36 = vsel %vm10640_vm0, %v3475_v31, %v7989_v43 }
 0x274   : > { %v2794_v35 = vmax.f32 %v2697_v3, 0.0  ;;  %v2384_v0 = vsel %vm2358_vm8, %v2341_v60, %v2039_v27  ;;  %5689 = vmatmul.msk.bf16.gmra.mxu0 %vm10528_vm15, %v2509_v32  ;;  %v1419_v27 = vpop.permute.xlu2 %1418 }
 0x275   : > { %v2510_v57 = vshrl.u32 %v2384_v0, 16  ;;  %v2513_v5 = vshll.u32 %v2384_v0, 16  ;;  %v3188_v9 = vsel %vm10644_vm3, %v3183_v39, %v7993_v61  ;;  %vm10649_vm3 = vcmp.eq.s32.totalorder %v10648_v34, 1 }
 0x276   : > { %v2835_v6 = vsel %vm10643_vm9, %v2794_v35, 0.0  ;;  %3338 = vrot.lane.b32.xlu0 %v3188_v9, %s6328_s30  ;;  %vm10647_vm9 = vmmov %vm10640_vm0 }
 0x277   : > { %2876 = vst.msk [vmem:[%s7907_s29 + $0x20] sm:$0xff] %vm2100_vm13, %v2835_v6  ;;  %v2929_v23 = vpack.c.bf16 %v2835_v6, %v2835_v6  ;;  %v3385_v16 = vsel %vm10647_vm9, %v3382_v14, %v7989_v43  ;;  %v2512_v62 = vrot.slane %v2510_v57, 2  ;;  %v2515_v7 = vrot.slane %v2513_v5, 3  ;;  %v10652_v57 = vld [vmem:[#allocation15_spill] sm:$0xff] }
 0x278   : > { %3481 = vrot.lane.b32.xlu1 %v3476_v36, %s6332_s21  ;;  %v8009_v56 = vld [vmem:[#allocation3 + $0x18] sm:$0xff]   ;;  %v3915_v14 = vunpack.c.l.b16 %v3059_v48  ;;  %v2087_v6 = vsel %vm2056_vm12, %v6295_v54, %v10651_v17  ;;  %vm10653_vm0 = vcmp.eq.s32.totalorder %v10652_v57, 1  ;;  %v3777_v36 = vrot.slane %v7948_v51, 6 }
 0x279   : > { %2970 = vst.msk [vmem:[#allocation3 + $0x20] sm:$0xf] %vm2912_vm14, %v2929_v23  ;;  %v2698_v47 = vpop.f32.mrf.mxu0  ;;  %v5899_v29 = vunpack.c.h.b16 %v8009_v56  ;;  %v8021_v20 = vor.u32 %v2515_v7, %v2512_v62  ;;  %v8065_v49 = vrot.slane %v8009_v56, 6 }
 0x27a   : > { %v2699_v59 = vadd.f32 %v7895_v12, %v2698_v47  ;;  %v1669_v53 = vpop.permute.xlu0 %1668  ;;  %3424 = vrot.lane.b32.xlu2 %v3385_v16, %s6330_s19 }
 0x27b   : > { %v1756_v18 = vpop.permute.xlu1 %1755  ;;  %v2214_v37 = vsel %vm2186_vm6, %v2171_v55, %v1669_v53  ;;  %v8032_v44 = vpack.c.b16 %v5899_v29, %v3915_v14  ;;  %v2517_v0 = vsel %vm2414_vm2, %v7963_v58, %v8021_v20  ;;  %v2130_v58 = vsel %vm2100_vm13, %v2087_v6, %v10654_v30 }
 0x27c   : > { %v2795_v11 = vmax.f32 %v2699_v59, 0.0  ;;  %v2257_v3 = vsel %vm2229_vm11, %v2214_v37, %v1756_v18  ;;  %v3553_v59 = vshrl.u32 %v8009_v56, 16  ;;  %v3556_v18 = vshll.u32 %v8009_v56, 16 }
 0x27d   : > { %v2300_v60 = vsel %vm2272_vm7, %v2257_v3, %v1810_v33  ;;  %v4060_v39 = vrot.slane %v8032_v44, 7  ;;  %v2173_v33 = vsel %vm2143_vm5, %v2130_v58, %v1419_v27  ;;  %v3918_v56 = vshrl.u32 %v8032_v44, 16 }
 0x27e   : > { %v2836_v19 = vsel %vm10649_vm3, %v2795_v11, 0.0  ;;  %1422 = vrot.lane.b32.xlu0 %v10650_v26, %s6329_s18  ;;  %vm10659_vm3 = vcmask 1046528   ;;  %v3558_v17 = vrot.slane %v3556_v18, 6 }
 0x27f   : > { %2877 = vst.msk [vmem:[%s7907_s29 + $0x28] sm:$0xff] %vm2100_vm13, %v2836_v19  ;;  %v2930_v24 = vpack.c.bf16 %v2836_v19, %v2836_v19  ;;  %v4437_v28 = vshrl.u32 %v4060_v39, 16  ;;  %v4440_v4 = vshll.u32 %v4060_v39, 16 }
 0x280   : > { %3732 = vrot.lane.b32.xlu1 %v8025_v2, %s6334_s23 }
 0x281   : > { %2971 = vst.msk [vmem:[#allocation3 + $0x24] sm:$0xf] %vm2912_vm14, %v2930_v24  ;;  %v2701_v22 = vpop.f32.mrf.mxu0  ;;  %v4439_v34 = vrot.slane %v4437_v28, 2  ;;  %v4442_v19 = vrot.slane %v4440_v4, 3 }
 0x282   : > { %v2702_v15 = vadd.f32 %v7895_v12, %v2701_v22  ;;  %v1954_v21 = vpop.permute.xlu0 %1953 }
 0x283   : > { %v2343_v32 = vsel %vm2315_vm4, %v2300_v60, %v1954_v21  ;;  %v2041_v35 = vpop.permute.xlu1 %2040  ;;  %v3555_v60 = vrot.slane %v3553_v59, 5  ;;  %v4443_v6 = vor.u32 %v4442_v19, %v4439_v34 }
 0x284   : > { %v2796_v31 = vmax.f32 %v2702_v15, 0.0  ;;  %v2386_v63 = vsel %vm2358_vm8, %v2343_v32, %v2041_v35  ;;  %5690 = vmatmul.msk.bf16.gmra.mxu0 %vm10528_vm15, %v2517_v0  ;;  %v1812_v15 = vpop.permute.xlu2 %1811  ;;  %v10657_v32 = vld [vmem:[#allocation14_spill] sm:$0xff] }
 0x285   : > { %v2518_v9 = vshrl.u32 %v2386_v63, 16  ;;  %v2521_v23 = vshll.u32 %v2386_v63, 16  ;;  %vm10658_vm9 = vcmp.eq.s32.totalorder %v10657_v32, 1 }
 0x286   : > { %v2837_v5 = vsel %vm10653_vm0, %v2796_v31, 0.0  ;;  %1674 = vrot.lane.b32.xlu0 %v10655_v13, %s6330_s19  ;;  %v8085_v31 = vld [vmem:[#allocation2 + $0x98] sm:$0xff]  }
 0x287   : > { %2878 = vst.msk [vmem:[%s7907_s29 + $0x30] sm:$0xff] %vm2100_vm13, %v2837_v5  ;;  %v2931_v10 = vpack.c.bf16 %v2837_v5, %v2837_v5  ;;  %v2520_v53 = vrot.slane %v2518_v9, 2  ;;  %v2523_v25 = vrot.slane %v2521_v23, 3  ;;  %v1721_v5 = vrot.slane %v8085_v31, 6 }
 0x288   : > { %3818 = vrot.lane.b32.xlu1 %v3777_v36, %s6335_s11  ;;  %v8061_v47 = vld [vmem:[#allocation3 + $0x20] sm:$0xff]   ;;  %v3920_v9 = vrot.slane %v3918_v56, 6  ;;  %v1610_v23 = vshll.u32 %v8085_v31, 16 }
 0x289   : > { %2972 = vst.msk [vmem:[#allocation3 + $0x28] sm:$0xf] %vm2912_vm14, %v2931_v10  ;;  %v2703_v16 = vpop.f32.mrf.mxu0  ;;  %v5902_v62 = vunpack.c.l.b16 %v8061_v47  ;;  %v4061_v7 = vrot.slane %v8061_v47, 7  ;;  %v8081_v27 = vor.u32 %v2523_v25, %v2520_v53 }
 0x28a   : > { %v2704_v48 = vadd.f32 %v7895_v12, %v2703_v16  ;;  %v1671_v55 = vpop.permute.xlu0 %1670 }
 0x28b   : > { %v1758_v11 = vpop.permute.xlu1 %1757  ;;  %v8072_v37 = vpack.c.b16 %v5902_v62, %v5899_v29  ;;  %v4062_v14 = vsel %vm10541_vm10, %v4060_v39, %v4061_v7  ;;  %v2216_v3 = vsel %vm2186_vm6, %v2173_v33, %v1671_v55  ;;  %v3921_v29 = vshll.u32 %v8032_v44, 16  ;;  %v10660_v55 = vld [vmem:[#allocation6_spill] sm:$0xff] }
 0x28c   : > { %v2797_v24 = vmax.f32 %v2704_v48, 0.0  ;;  %v4445_v26 = vshrl.u32 %v4062_v14, 16  ;;  %v4448_v22 = vshll.u32 %v4062_v14, 16  ;;  %v2259_v54 = vsel %vm2229_vm11, %v2216_v3, %v1758_v11  ;;  %v1421_v34 = vpop.permute.xlu2 %1420 }
 0x28d   : > { %10656 = vst [vmem:[#allocation67_spill] sm:$0xff] %v8072_v37  ;;  %v3386_v21 = vrot.slane %v8072_v37, 1  ;;  %v2302_v10 = vsel %vm2272_vm7, %v2259_v54, %v1812_v15  ;;  %v3923_v28 = vrot.slane %v3921_v29, 7  ;;  %v2525_v16 = vsel %vm2414_vm2, %v8021_v20, %v8081_v27  ;;  %v10664_v29 = vld [vmem:[#allocation66_spill] sm:$0xff] }
 0x28e   : > { %v2838_v35 = vsel %vm10658_vm9, %v2797_v24, 0.0  ;;  %v4447_v0 = vrot.slane %v4445_v26, 2  ;;  %v4450_v39 = vrot.slane %v4448_v22, 3  ;;  %1761 = vrot.lane.b32.xlu0 %v7845_v41, %s6331_s20  ;;  %v8117_v62 = vor.u32 %v3558_v17, %v3555_v60  ;;  %v6296_v22 = vld [vmem:[#allocation2 + $0x7c] sm:$0xff]  }
 0x28f   : > { %2879 = vst.msk [vmem:[%s7907_s29 + $0x38] sm:$0xff] %vm2100_vm13, %v2838_v35  ;;  %v2932_v63 = vpack.c.bf16 %v2838_v35, %v2838_v35  ;;  %v8096_v44 = vsel %vm10659_vm3, %v7989_v43, %v3386_v21  ;;  %v1607_v43 = vshrl.u32 %v8085_v31, 16  ;;  %v1898_v48 = vrot.slane %v1610_v23, 7 }
 0x290   : > { %3872 = vrot.lane.b32.xlu1 %v8065_v49, %s6336_s12  ;;  %3483 = vrot.lane.b32.xlu2 %v8096_v44, %s6332_s21  ;;  %v8102_v57 = vor.u32 %v4450_v39, %v4447_v0  ;;  %vm10661_vm0 = vcmp.eq.s32.totalorder %v10660_v55, 1  ;;  %v8132_v20 = vsel %vm1687_vm1, %v1719_v40, %v1721_v5  ;;  %v8134_v11 = vor.u32 %v3923_v28, %v3920_v9  ;;  %v10663_v40 = vld [vmem:[#allocation55_spill] sm:$0xff]  ;;  %v8186_v51 = vld [vmem:[#allocation3 + $0x24] sm:$0xff]  }
 0x291   : > { %2973 = vst.msk [vmem:[#allocation3 + $0x2c] sm:$0xf] %vm2912_vm14, %v2932_v63  ;;  %v2706_v41 = vpop.f32.mrf.mxu0  ;;  %v1897_v25 = vrot.slane %v1607_v43, 6  ;;  %v3193_v14 = vshll.u32 %v8072_v37, 16  ;;  %vm10662_vm9 = vsmask.f32 2304  ;;  %v2089_v15 = vsel %vm2056_vm12, %v6296_v22, %v10663_v40 }
 0x292   : > { %v2707_v30 = vadd.f32 %v7895_v12, %v2706_v41  ;;  %v1956_v58 = vpop.permute.xlu0 %1955  ;;  %v4452_v13 = vsel %vm2414_vm2, %v4443_v6, %v8102_v57  ;;  %v3560_v26 = vsel %vm10662_vm9, %v8025_v2, %v8117_v62  ;;  %v2132_v60 = vsel %vm2100_vm13, %v2089_v15, %v10664_v29 }
 0x293   : > { %v2345_v4 = vsel %vm2315_vm4, %v2302_v10, %v1956_v58  ;;  %v2043_v33 = vpop.permute.xlu1 %2042  ;;  %5740 = vmatmul.msk.bf16.vlgmr.msra.gmra.mxu2 %vm2100_vm13, %v4452_v13  ;;  %v8154_v35 = vor.u32 %v1898_v48, %v1897_v25  ;;  %v3189_v2 = vshrl.u32 %v7972_v52, 16  ;;  %v2175_v39 = vsel %vm2143_vm5, %v2132_v60, %v1421_v34 }
 0x294   : > { %v2798_v59 = vmax.f32 %v2707_v30, 0.0  ;;  %v2388_v53 = vsel %vm2358_vm8, %v2345_v4, %v2043_v33  ;;  %5691 = vmatmul.msk.bf16.gmra.mxu0 %vm10528_vm15, %v2525_v16  ;;  %v8160_v17 = vrot.slane %v3193_v14, 1  ;;  %vm10665_vm3 = vsmask.f32 1280  ;;  %v10666_v33 = vld [vmem:[#allocation18_spill] sm:$0xff]  ;;  %v1814_v55 = vpop.permute.xlu2 %1813 }
 0x295   : > { %v2526_v24 = vshrl.u32 %v2388_v53, 16  ;;  %v2529_v3 = vshll.u32 %v2388_v53, 16  ;;  %v3191_v30 = vor.u32 %v3189_v2, %v7993_v61  ;;  %v1900_v4 = vsel %vm10665_vm3, %v7839_v42, %v8154_v35 }
 0x296   : > { %v2839_v18 = vsel %vm10661_vm0, %v2798_v59, 0.0  ;;  %1815 = vrot.lane.b32.xlu0 %v8132_v20, %s6332_s21  ;;  %v3779_v61 = vsel %vm1687_vm1, %v3777_v36, %v8065_v49  ;;  %vm10667_vm0 = vcmp.eq.s32.totalorder %v10666_v33, 1  ;;  %vm10668_vm9 = vsmask.f32 7424 }
 0x297   : > { %2880 = vst.msk [vmem:[%s7907_s29 + $0x40] sm:$0xff] %vm2100_vm13, %v2839_v18  ;;  %v2933_v19 = vpack.c.bf16 %v2839_v18, %v2839_v18  ;;  %v2528_v6 = vrot.slane %v2526_v24, 2  ;;  %v2531_v41 = vrot.slane %v2529_v3, 3  ;;  %v2004_v14 = vrot.slane %v8085_v31, 7 }
 0x298   : > { %4015 = vrot.lane.b32.xlu1 %v8134_v11, %s6337_s15  ;;  %3734 = vrot.lane.b32.xlu2 %v3560_v26, %s6334_s23  ;;  %v8149_v56 = vld [vmem:[#allocation3 + $0x28] sm:$0xff]   ;;  %v3780_v34 = vrot.slane %v8061_v47, 6  ;;  %v3565_v40 = vshll.u32 %v8061_v47, 16 }
 0x299   : > { %2974 = vst.msk [vmem:[#allocation3 + $0x30] sm:$0xf] %vm2912_vm14, %v2933_v19  ;;  %v2708_v32 = vpop.f32.mrf.mxu0  ;;  %v4063_v0 = vrot.slane %v8149_v56, 7  ;;  %v8180_v25 = vor.u32 %v2531_v41, %v2528_v6  ;;  %v3562_v19 = vshrl.u32 %v8061_v47, 16 }
 0x29a   : > { %v2709_v63 = vadd.f32 %v7895_v12, %v2708_v32  ;;  %v1673_v54 = vpop.permute.xlu0 %1672  ;;  %v3388_v32 = vrot.slane %v8186_v51, 1  ;;  %v3926_v41 = vrot.slane %v3565_v40, 7 }
 0x29b   : > { %v1760_v9 = vpop.permute.xlu1 %1759  ;;  %v4064_v52 = vsel %vm10541_vm10, %v4061_v7, %v4063_v0  ;;  %v2218_v10 = vsel %vm2186_vm6, %v2175_v39, %v1673_v54  ;;  %v3196_v7 = vsel %vm10668_vm9, %v3191_v30, %v8160_v17  ;;  %v2533_v60 = vsel %vm2414_vm2, %v8081_v27, %v8180_v25 }
 0x29c   : > { %v2799_v58 = vmax.f32 %v2709_v63, 0.0  ;;  %v4462_v13 = vshrl.u32 %v4064_v52, 16  ;;  %v4465_v28 = vshll.u32 %v4064_v52, 16  ;;  %v2261_v42 = vsel %vm2229_vm11, %v2218_v10, %v1760_v9  ;;  %v10669_v63 = vld [vmem:[#allocation17_spill] sm:$0xff] }
 0x29d   : > { %v2304_v26 = vsel %vm2272_vm7, %v2261_v42, %v1814_v55  ;;  %vm10670_vm3 = vcmp.eq.s32.totalorder %v10669_v63, 1  ;;  %v8218_v27 = vsel %vm1687_vm1, %v8065_v49, %v3780_v34  ;;  %v3925_v6 = vrot.slane %v3562_v19, 6 }
 0x29e   : > { %v2840_v16 = vsel %vm10667_vm0, %v2799_v58, 0.0  ;;  %v4464_v59 = vrot.slane %v4462_v13, 2  ;;  %v4467_v53 = vrot.slane %v4465_v28, 3  ;;  %1959 = vrot.lane.b32.xlu0 %v1900_v4, %s6333_s22  ;;  %vm10671_vm0 = vcmask 1046528  }
 0x29f   : > { %2881 = vst.msk [vmem:[%s7907_s29 + $0x48] sm:$0xff] %vm2100_vm13, %v2840_v16  ;;  %v2934_v48 = vpack.c.bf16 %v2840_v16, %v2840_v16  ;;  %v8228_v38 = vsel %vm10671_vm0, %v3386_v21, %v3388_v32  ;;  %v8239_v21 = vor.u32 %v3926_v41, %v3925_v6  ;;  %v3567_v55 = vrot.slane %v3565_v40, 6 }
 0x2a0   : > { %3820 = vrot.lane.b32.xlu2 %v3779_v61, %s6335_s11  ;;  %3340 = vrot.lane.b32.xlu1 %v3196_v7, %s6328_s30  ;;  %v4468_v36 = vor.u32 %v4467_v53, %v4464_v59  ;;  %v3564_v7 = vrot.slane %v3562_v19, 5  ;;  %v10672_v59 = vld [vmem:[#allocation7_spill] sm:$0xff]  ;;  %v1612_v63 = vrot.slane %v1610_v23, 6  ;;  %v3571_v23 = vshrl.u32 %v8149_v56, 16 }
 0x2a1   : > { %2975 = vst.msk [vmem:[#allocation3 + $0x34] sm:$0xf] %vm2912_vm14, %v2934_v48  ;;  %v2711_v18 = vpop.f32.mrf.mxu0  ;;  %vm10673_vm9 = vcmp.eq.s32.totalorder %v10672_v59, 1  ;;  %v10681_v59 = vld [vmem:[#allocation46_spill] sm:$0xff] }
 0x2a2   : > { %v2712_v24 = vadd.f32 %v7895_v12, %v2711_v18  ;;  %v1958_v3 = vpop.permute.xlu0 %1957  ;;  %v4469_v22 = vsel %vm2414_vm2, %v8102_v57, %v4468_v36  ;;  %v2005_v57 = vsel %vm10541_vm10, %v2002_v1, %v2004_v14 }
 0x2a3   : > { %v2347_v15 = vsel %vm2315_vm4, %v2304_v26, %v1958_v3  ;;  %v2045_v29 = vpop.permute.xlu1 %2044  ;;  %5741 = vmatmul.msk.bf16.gmra.mxu2 %vm2100_vm13, %v4469_v22  ;;  %v10674_v3 = vld [vmem:[#allocation52_spill] sm:$0xff] }
 0x2a4   : > { %v2800_v2 = vmax.f32 %v2712_v24, 0.0  ;;  %v2390_v39 = vsel %vm2358_vm8, %v2347_v15, %v2045_v29  ;;  %5692 = vmatmul.msk.bf16.gmra.mxu0 %vm10528_vm15, %v2533_v60  ;;  %v8261_v15 = vor.u32 %v3567_v55, %v3564_v7  ;;  %v3782_v29 = vrot.slane %v8149_v56, 6 }
 0x2a5   : > { %v2534_v30 = vshrl.u32 %v2390_v39, 16  ;;  %v2537_v52 = vshll.u32 %v2390_v39, 16 }
 0x2a6   : > { %v2841_v54 = vsel %vm10670_vm3, %v2800_v2, 0.0  ;;  %2046 = vrot.lane.b32.xlu0 %v2005_v57, %s6334_s23  ;;  %vm10675_vm3 = vsmask.f32 1280  ;;  %v1609_v57 = vrot.slane %v1607_v43, 5 }
 0x2a7   : > { %2882 = vst.msk [vmem:[%s7907_s29 + $0x50] sm:$0xff] %vm2100_vm13, %v2841_v54  ;;  %v2935_v9 = vpack.c.bf16 %v2841_v54, %v2841_v54  ;;  %v2536_v13 = vrot.slane %v2534_v30, 2  ;;  %v2539_v28 = vrot.slane %v2537_v52, 3  ;;  %v8295_v54 = vld [vmem:[#allocation2 + $0xa0] sm:$0xff]  }
 0x2a8   : > { %3874 = vrot.lane.b32.xlu2 %v8218_v27, %s6336_s12  ;;  %3485 = vrot.lane.b32.xlu1 %v8228_v38, %s6332_s21  ;;  %v8234_v1 = vld [vmem:[#allocation3 + $0x30] sm:$0xff]   ;;  %v8302_v41 = vor.u32 %v1612_v63, %v1609_v57  ;;  %v1619_v31 = vshll.u32 %v8295_v54, 16 }
 0x2a9   : > { %2976 = vst.msk [vmem:[#allocation3 + $0x38] sm:$0xf] %vm2912_vm14, %v2935_v9  ;;  %v2713_v49 = vpop.f32.mrf.mxu0  ;;  %v4065_v58 = vrot.slane %v8234_v1, 7  ;;  %v8246_v18 = vor.u32 %v2539_v28, %v2536_v13  ;;  %v2006_v9 = vrot.slane %v8295_v54, 7  ;;  %v3929_v28 = vrot.slane %v3571_v23, 6 }
 0x2aa   : > { %v2714_v10 = vadd.f32 %v7895_v12, %v2713_v49 }
 0x2ab   : > { %v4066_v4 = vsel %vm10541_vm10, %v4063_v0, %v4065_v58  ;;  %v3928_v0 = vsel %vm10675_vm3, %v8134_v11, %v8239_v21  ;;  %v2541_v11 = vsel %vm2414_vm2, %v8180_v25, %v8246_v18  ;;  %v8282_v25 = vsel %vm1687_vm1, %v3780_v34, %v3782_v29 }
 0x2ac   : > { %v2801_v61 = vmax.f32 %v2714_v10, 0.0  ;;  %v4479_v33 = vshrl.u32 %v4066_v4, 16  ;;  %v4482_v16 = vshll.u32 %v4066_v4, 16  ;;  %v1723_v34 = vrot.slane %v8295_v54, 6  ;;  %v10679_v4 = vld [vmem:[#allocation20_spill] sm:$0xff] }
 0x2ad   : > { %vm10680_vm3 = vcmp.eq.s32.totalorder %v10679_v4, 1 }
 0x2ae   : > { %v2842_v53 = vsel %vm10673_vm9, %v2801_v61, 0.0  ;;  %v4481_v48 = vrot.slane %v4479_v33, 2  ;;  %v4484_v42 = vrot.slane %v4482_v16, 3  ;;  %1424 = vrot.lane.b32.xlu0 %v10674_v3, %s6329_s18  ;;  %vm10678_vm9 = vsmask.f32 2304 }
 0x2af   : > { %2883 = vst.msk [vmem:[%s7907_s29 + $0x58] sm:$0xff] %vm2100_vm13, %v2842_v53  ;;  %v2936_v24 = vpack.c.bf16 %v2842_v53, %v2842_v53  ;;  %v8311_v13 = vsel %vm1687_vm1, %v1721_v5, %v1723_v34  ;;  %v2007_v5 = vsel %vm10541_vm10, %v2004_v14, %v2006_v9 }
 0x2b0   : > { %4017 = vrot.lane.b32.xlu2 %v3928_v0, %s6337_s15  ;;  %1763 = vrot.lane.b32.xlu1 %v8132_v20, %s6331_s20  ;;  %v4485_v19 = vor.u32 %v4484_v42, %v4481_v48  ;;  %v10676_v20 = vld [vmem:[#allocation21_spill] sm:$0xff]  ;;  %v1616_v0 = vshrl.u32 %v8295_v54, 16 }
 0x2b1   : > { %2977 = vst.msk [vmem:[#allocation3 + $0x3c] sm:$0xf] %vm2912_vm14, %v2936_v24  ;;  %v2716_v26 = vpop.f32.mrf.mxu0  ;;  %vm10677_vm0 = vcmp.eq.s32.totalorder %v10676_v20, 1  ;;  %v3573_v20 = vrot.slane %v3571_v23, 5 }
 0x2b2   : > { %v2717_v22 = vadd.f32 %v7895_v12, %v2716_v26  ;;  %v4486_v40 = vsel %vm2414_vm2, %v4468_v36, %v4485_v19  ;;  %v3569_v36 = vsel %vm10678_vm9, %v8117_v62, %v8261_v15  ;;  %v10683_v26 = vld [vmem:[#allocation10_spill] sm:$0xff] }
 0x2b3   : > { %5742 = vmatmul.msk.bf16.gmra.mxu2 %vm2100_vm13, %v4486_v40 }
 0x2b4   : > { %v2802_v60 = vmax.f32 %v2717_v22, 0.0  ;;  %5693 = vmatmul.msk.bf16.gmra.mxu0 %vm10528_vm15, %v2541_v11  ;;  %v1901_v11 = vrot.slane %v1616_v0, 6  ;;  %vm10710_vm15 = vcmask 1046528  }
 0x2b6   : > { %v2843_v2 = vsel %vm10677_vm0, %v2802_v60, 0.0  ;;  %3736 = vrot.lane.b32.xlu0 %v3569_v36, %s6334_s23  ;;  %vm10682_vm0 = vmmov %vm10678_vm9  ;;  %vm10684_vm9 = vcmp.eq.s32.totalorder %v10683_v26, 1  ;;  %v1902_v60 = vrot.slane %v1619_v31, 7  ;;  %v10686_v36 = vld [vmem:[#allocation49_spill] sm:$0xff] }
 0x2b7   : > { %2884 = vst.msk [vmem:[%s7907_s29 + $0x60] sm:$0xff] %vm2100_vm13, %v2843_v2  ;;  %v2937_v39 = vpack.c.bf16 %v2843_v2, %v2843_v2  ;;  %v1614_v53 = vsel %vm10682_vm0, %v10681_v59, %v8302_v41 }
 0x2b8   : > { %3426 = vrot.lane.b32.xlu2 %v8096_v44, %s6330_s19  ;;  %3876 = vrot.lane.b32.xlu1 %v8282_v25, %s6336_s12  ;;  %v8292_v62 = vld [vmem:[#allocation3 + $0x38] sm:$0xff]   ;;  %v3574_v44 = vshll.u32 %v8149_v56, 16 }
 0x2b9   : > { %2978 = vst.msk [vmem:[#allocation3 + $0x40] sm:$0xf] %vm2912_vm14, %v2937_v39  ;;  %v2718_v47 = vpop.f32.mrf.mxu0  ;;  %v4067_v43 = vrot.slane %v8292_v62, 7 }
 0x2ba   : > { %v2719_v6 = vadd.f32 %v7895_v12, %v2718_v47  ;;  %v3930_v7 = vrot.slane %v3574_v44, 7  ;;  %v3576_v2 = vrot.slane %v3574_v44, 6  ;;  %v8354_v47 = vor.u32 %v1902_v60, %v1901_v11  ;;  %v8405_v11 = vld [vmem:[#allocation3 + $0x2c] sm:$0xff]  }
 0x2bb   : > { %v4068_v30 = vsel %vm10541_vm10, %v4065_v58, %v4067_v43 }
 0x2bc   : > { %v2803_v52 = vmax.f32 %v2719_v6, 0.0  ;;  %v4496_v49 = vshrl.u32 %v4068_v30, 16  ;;  %v4499_v10 = vshll.u32 %v4068_v30, 16  ;;  %v8332_v3 = vor.u32 %v3930_v7, %v3929_v28 }
 0x2bd   : > { %v8356_v23 = vor.u32 %v3576_v2, %v3573_v20  ;;  %v3201_v7 = vshll.u32 %v8186_v51, 16 }
 0x2be   : > { %v2844_v61 = vsel %vm10680_vm3, %v2803_v52, 0.0  ;;  %v4498_v33 = vrot.slane %v4496_v49, 2  ;;  %v4501_v16 = vrot.slane %v4499_v10, 3  ;;  %1817 = vrot.lane.b32.xlu0 %v8311_v13, %s6332_s21  ;;  %vm10685_vm3 = vsmask.f32 1280  ;;  %v10687_v49 = vld [vmem:[#allocation24_spill] sm:$0xff] }
 0x2bf   : > { %2885 = vst.msk [vmem:[%s7907_s29 + $0x68] sm:$0xff] %vm2100_vm13, %v2844_v61  ;;  %v2938_v58 = vpack.c.bf16 %v2844_v61, %v2844_v61  ;;  %v3932_v40 = vsel %vm10685_vm3, %v8239_v21, %v8332_v3  ;;  %v1618_v52 = vrot.slane %v1616_v0, 5  ;;  %vm10688_vm0 = vcmp.eq.s32.totalorder %v10687_v49, 1 }
 0x2c0   : > { %1676 = vrot.lane.b32.xlu2 %v1614_v53, %s6330_s19  ;;  %2048 = vrot.lane.b32.xlu1 %v2007_v5, %s6334_s23  ;;  %v4502_v48 = vor.u32 %v4501_v16, %v4498_v33  ;;  %v1621_v61 = vrot.slane %v1619_v31, 6  ;;  %v3583_v0 = vshll.u32 %v8234_v1, 16  ;;  %v3784_v49 = vrot.slane %v8234_v1, 6 }
 0x2c1   : > { %2979 = vst.msk [vmem:[#allocation3 + $0x44] sm:$0xf] %vm2912_vm14, %v2938_v58  ;;  %v2721_v42 = vpop.f32.mrf.mxu0 }
 0x2c2   : > { %v2722_v55 = vadd.f32 %v7895_v12, %v2721_v42  ;;  %v4503_v24 = vsel %vm2414_vm2, %v4485_v19, %v4502_v48  ;;  %v8380_v53 = vor.u32 %v1621_v61, %v1618_v52  ;;  %v3197_v42 = vshrl.u32 %v8072_v37, 16 }
 0x2c3   : > { %5743 = vmatmul.msk.bf16.gmra.mxu2 %vm2100_vm13, %v4503_v24  ;;  %v3580_v24 = vshrl.u32 %v8234_v1, 16 }
 0x2c4   : > { %v2804_v14 = vmax.f32 %v2722_v55, 0.0  ;;  %v8389_v55 = vrot.slane %v3201_v7, 1 }
 0x2c5   : > { %v3933_v60 = vrot.slane %v3580_v24, 6 }
 0x2c6   : > { %v2845_v22 = vsel %vm10684_vm9, %v2804_v14, 0.0  ;;  %4019 = vrot.lane.b32.xlu0 %v3932_v40, %s6337_s15  ;;  %vm10689_vm9 = vmmov %vm10685_vm3  ;;  %vm10690_vm3 = vsmask.f32 2304  ;;  %v10691_v14 = vld [vmem:[#allocation23_spill] sm:$0xff] }
 0x2c7   : > { %2886 = vst.msk [vmem:[%s7907_s29 + $0x70] sm:$0xff] %vm2100_vm13, %v2845_v22  ;;  %v2939_v19 = vpack.c.bf16 %v2845_v22, %v2845_v22  ;;  %v1904_v16 = vsel %vm10689_vm9, %v8154_v35, %v8354_v47  ;;  %vm10693_vm9 = vmmov %vm10690_vm3 }
 0x2c8   : > { %3822 = vrot.lane.b32.xlu2 %v8218_v27, %s6335_s11  ;;  %1426 = vrot.lane.b32.xlu1 %v10686_v36, %s6329_s18  ;;  %v8349_v39 = vld [vmem:[#allocation3 + $0x40] sm:$0xff]   ;;  %v1623_v22 = vsel %vm10693_vm9, %v8302_v41, %v8380_v53  ;;  %v3934_v41 = vrot.slane %v3583_v0, 7  ;;  %vm10697_vm9 = vcmask 1046528  }
 0x2c9   : > { %2980 = vst.msk [vmem:[#allocation3 + $0x48] sm:$0xf] %vm2912_vm14, %v2939_v19  ;;  %v2723_v21 = vpop.f32.mrf.mxu0  ;;  %v4069_v57 = vrot.slane %v8349_v39, 7 }
 0x2ca   : > { %v2724_v63 = vadd.f32 %v7895_v12, %v2723_v21 }
 0x2cb   : > { %v4070_v6 = vsel %vm10541_vm10, %v4067_v43, %v4069_v57  ;;  %v3578_v43 = vsel %vm10690_vm3, %v8261_v15, %v8356_v23  ;;  %v8382_v15 = vld [vmem:[#allocation2 + $0xa8] sm:$0xff]   ;;  %vm10694_vm3 = vsmask.f32 7424 }
 0x2cc   : > { %v2805_v27 = vmax.f32 %v2724_v63, 0.0  ;;  %v4513_v44 = vshrl.u32 %v4070_v6, 16  ;;  %v4516_v30 = vshll.u32 %v4070_v6, 16  ;;  %v8385_v5 = vrot.slane %v8382_v15, 6  ;;  %v8416_v20 = vpop.permute.xlu2 %3336  ;;  %v5801_v63 = vld [vmem:[%s10423_s6 + $0x38] sm:$0xff] }
 0x2cd   : > { %v1625_v21 = vshrl.u32 %v8382_v15, 16  ;;  %4914 = vmatpush.bf16.msra.mxu1 %v5801_v63 }
 0x2ce   : > { %v2846_v10 = vsel %vm10688_vm0, %v2805_v27, 0.0  ;;  %v4515_v28 = vrot.slane %v4513_v44, 2  ;;  %v4518_v4 = vrot.slane %v4516_v30, 3  ;;  %3428 = vrot.lane.b32.xlu0 %v8228_v38, %s6330_s19  ;;  %vm10692_vm0 = vcmp.eq.s32.totalorder %v10691_v14, 1 }
 0x2cf   : > { %2887 = vst.msk [vmem:[%s7907_s29 + $0x78] sm:$0xff] %vm2100_vm13, %v2846_v10  ;;  %v2940_v33 = vpack.c.bf16 %v2846_v10, %v2846_v10  ;;  %v8403_v40 = vsel %vm1687_vm1, %v1723_v34, %v8385_v5  ;;  %v3390_v27 = vrot.slane %v8405_v11, 1  ;;  %v1628_v44 = vshll.u32 %v8382_v15, 16  ;;  %v5800_v10 = vld [vmem:[%s10423_s6 + $0x30] sm:$0xff] }
 0x2d0   : > { %1961 = vrot.lane.b32.xlu2 %v1904_v16, %s6333_s22  ;;  %3738 = vrot.lane.b32.xlu1 %v3578_v43, %s6334_s23  ;;  %v8374_v58 = vor.u32 %v4518_v4, %v4515_v28  ;;  %v8432_v30 = vor.u32 %v3934_v41, %v3933_v60  ;;  %v1627_v14 = vrot.slane %v1625_v21, 5 }
 0x2d1   : > { %2981 = vst.msk [vmem:[#allocation3 + $0x4c] sm:$0xf] %vm2912_vm14, %v2940_v33  ;;  %v2726_v59 = vpop.f32.mrf.mxu0  ;;  %v1905_v33 = vrot.slane %v1625_v21, 6  ;;  %4915 = vmatpush.bf16.msra.mxu1 %v5800_v10  ;;  %v5798_v21 = vld [vmem:[%s10423_s6 + $0x20] sm:$0xff]  ;;  %v3205_v10 = vshrl.u32 %v8186_v51, 16  ;;  %v3592_v51 = vshll.u32 %v8292_v62, 16 }
 0x2d2   : > { %v2727_v35 = vadd.f32 %v7895_v12, %v2726_v59  ;;  %v4520_v38 = vsel %vm2414_vm2, %v4502_v48, %v8374_v58  ;;  %v3199_v48 = vor.u32 %v3197_v42, %v8160_v17  ;;  %v3391_v42 = vsel %vm10697_vm9, %v3388_v32, %v3390_v27  ;;  %v5799_v32 = vld [vmem:[%s10423_s6 + $0x28] sm:$0xff] }
 0x2d3   : > { %5744 = vmatmul.msk.bf16.gmra.mxu2 %vm2100_vm13, %v4520_v38 }
 0x2d4   : > { %v2806_v31 = vmax.f32 %v2727_v35, 0.0  ;;  %v3204_v17 = vsel %vm10694_vm3, %v3199_v48, %v8389_v55  ;;  %v1906_v35 = vrot.slane %v1628_v44, 7  ;;  %vm10698_vm3 = vsmask.f32 1280 }
 0x2d5   : > { %4916 = vmatpush.bf16.msra.mxu1 %v5799_v32  ;;  %vm10701_vm9 = vmmov %vm10698_vm3 }
 0x2d6   : > { %v2847_v26 = vsel %vm10692_vm0, %v2806_v31, 0.0  ;;  %1678 = vrot.lane.b32.xlu0 %v1623_v22, %s6330_s19  ;;  %v3936_v31 = vsel %vm10698_vm3, %v8332_v3, %v8432_v30  ;;  %v8471_v22 = vpop.permute.xlu2 %3424  ;;  %v8476_v3 = vld [vmem:[%s10422_s5] ss:$0 sm:$0xff]  ;;  %v8484_v41 = vor.u32 %v1906_v35, %v1905_v33  ;;  %v3589_v33 = vshrl.u32 %v8292_v62, 16 }
 0x2d7   : > { %2888 = vst.msk [vmem:[%s7907_s29 + $0x80] sm:$0xff] %vm2100_vm13, %v2847_v26  ;;  %v2941_v19 = vpack.c.bf16 %v2847_v26, %v2847_v26  ;;  %v1630_v26 = vrot.slane %v1628_v44, 6  ;;  %v10699_v44 = vld [vmem:[#allocation27_spill] sm:$0xff]  ;;  %v5887_v35 = vunpack.c.h.b16 %v8382_v15  ;;  %vm10702_vm3 = vsmask.f32 7424 }
 0x2d8   : > { %3342 = vrot.lane.b32.xlu2 %v3204_v17, %s6328_s30  ;;  %1819 = vrot.lane.b32.xlu1 %v8403_v40, %s6332_s21  ;;  %v8421_v34 = vld [vmem:[#allocation3 + $0x48] sm:$0xff]  }
 0x2d9   : > { %2982 = vst.msk [vmem:[#allocation3 + $0x50] sm:$0xf] %vm2912_vm14, %v2941_v19  ;;  %v2728_v2 = vpop.f32.mrf.mxu0  ;;  %v4071_v36 = vrot.slane %v8421_v34, 7  ;;  %4917 = vmatpush.bf16.msra.mxu1 %v5798_v21 }
 0x2da   : > { %v2729_v6 = vadd.f32 %v7895_v12, %v2728_v2  ;;  %v3786_v12 = vrot.slane %v8292_v62, 6  ;;  %v3209_v2 = vshll.u32 %v8405_v11, 16 }
 0x2db   : > { %v4072_v52 = vsel %vm10541_vm10, %v4069_v57, %v4071_v36  ;;  %v10695_v57 = vld [vmem:[#allocation13_spill] sm:$0xff] }
 0x2dc   : > { %v2807_v28 = vmax.f32 %v2729_v6, 0.0  ;;  %v4530_v4 = vshrl.u32 %v4072_v52, 16  ;;  %v4533_v61 = vshll.u32 %v4072_v52, 16  ;;  %v8447_v16 = vsel %vm1687_vm1, %v3784_v49, %v3786_v12 }
 0x2dd   : > { %vm10696_vm0 = vcmp.eq.s32.totalorder %v10695_v57, 1  ;;  %v8491_v6 = vor.u32 %v1630_v26, %v1627_v14  ;;  %v8537_v26 = vsel %vm1687_vm1, %v3782_v29, %v3784_v49  ;;  %v8548_v29 = vld [vmem:[#allocation2 + $0xb0] sm:$0xff]  ;;  %v3938_v49 = vrot.slane %v3592_v51, 7 }
 0x2de   : > { %v2848_v43 = vsel %vm10696_vm0, %v2807_v28, 0.0  ;;  %v4532_v7 = vrot.slane %v4530_v4, 2  ;;  %v4535_v59 = vrot.slane %v4533_v61, 3  ;;  %3824 = vrot.lane.b32.xlu0 %v8282_v25, %s6335_s11  ;;  %vm10700_vm0 = vcmp.eq.s32.totalorder %v10699_v44, 1  ;;  %v961_v61 = vld [vmem:[#allocation2 + $0xb0] sm:$0x3] }
 0x2df   : > { %2889 = vst.msk [vmem:[%s7907_s29 + $0x88] sm:$0xff] %vm2100_vm13, %v2848_v43  ;;  %v2942_v38 = vpack.c.bf16 %v2848_v43, %v2848_v43  ;;  %v8499_v28 = vrot.slane %v3209_v2, 1  ;;  %v8530_v14 = vunpack.c.l.b16 %v961_v61  ;;  %v3591_v44 = vrot.slane %v3589_v33, 5 }
 0x2e0   : > { %3487 = vrot.lane.b32.xlu2 %v3391_v42, %s6332_s21  ;;  %4021 = vrot.lane.b32.xlu1 %v3936_v31, %s6337_s15  ;;  %v8465_v48 = vor.u32 %v4535_v59, %v4532_v7 }
 0x2e1   : > { %2983 = vst.msk [vmem:[#allocation3 + $0x54] sm:$0xf] %vm2912_vm14, %v2942_v38  ;;  %v2731_v25 = vpop.f32.mrf.mxu0 }
 0x2e2   : > { %v2732_v19 = vadd.f32 %v8476_v3, %v2731_v25  ;;  %v8479_v17 = vpop.permute.xlu1 %3422  ;;  %v4537_v60 = vsel %vm2414_vm2, %v8374_v58, %v8465_v48  ;;  %v1908_v58 = vsel %vm10701_vm9, %v8354_v47, %v8484_v41  ;;  %v3207_v47 = vor.u32 %v3205_v10, %v8389_v55  ;;  %v10704_v10 = vld [vmem:[#allocation26_spill] sm:$0xff] }
 0x2e3   : > { %5745 = vmatmul.msk.bf16.gmra.mxu2 %vm2100_vm13, %v4537_v60  ;;  %v10532_v60 = vrot.slane %v8349_v39, 6  ;;  %vm10705_vm9 = vcmp.eq.s32.totalorder %v10704_v10, 1 }
 0x2e4   : > { %v2808_v63 = vmax.f32 %v2732_v19, 0.0  ;;  %v3212_v31 = vsel %vm10702_vm3, %v3207_v47, %v8499_v28  ;;  %v3937_v19 = vrot.slane %v3589_v33, 6  ;;  %vm10706_vm3 = vsmask.f32 1280 }
 0x2e6   : > { %v2849_v52 = vsel %vm10700_vm0, %v2808_v63, 0.0  ;;  %1963 = vrot.lane.b32.xlu0 %v1908_v58, %s6333_s22  ;;  %vm10703_vm0 = vsmask.f32 2304  ;;  %v8550_v63 = vld [vmem:[#allocation3 + $0x34] sm:$0xff]   ;;  %v3601_v58 = vshll.u32 %v8349_v39, 16 }
 0x2e7   : > { %2890 = vst.msk [vmem:[%s7907_s29 + $0x90] sm:$0xff] %vm2100_vm13, %v2849_v52  ;;  %v2943_v4 = vpack.c.bf16 %v2849_v52, %v2849_v52  ;;  %v1632_v25 = vsel %vm10703_vm0, %v8380_v53, %v8491_v6  ;;  %v5796_v53 = vld [vmem:[%s10423_s6 + $0x10] sm:$0xff]  ;;  %v3598_v52 = vshrl.u32 %v8349_v39, 16 }
 0x2e8   : > { %1765 = vrot.lane.b32.xlu2 %v8311_v13, %s6331_s20  ;;  %3430 = vrot.lane.b32.xlu1 %v3391_v42, %s6330_s19  ;;  %v8509_v57 = vld [vmem:[#allocation3 + $0x50] sm:$0xff]   ;;  %v8513_v7 = vpop.permute.xlu0 %3338 }
 0x2e9   : > { %2984 = vst.msk [vmem:[#allocation3 + $0x58] sm:$0xf] %vm2912_vm14, %v2943_v4  ;;  %v2733_v43 = vpop.f32.mrf.mxu0  ;;  %v4073_v59 = vrot.slane %v8509_v57, 7  ;;  %v5797_v13 = vld [vmem:[%s10423_s6 + $0x18] sm:$0xff]  ;;  %v3941_v62 = vrot.slane %v3598_v52, 6 }
 0x2ea   : > { %v2734_v38 = vadd.f32 %v8476_v3, %v2733_v43  ;;  %v8521_v55 = vpop.permute.xlu1 %3481  ;;  %v8523_v42 = vpop.permute.xlu2 %3483  ;;  %4918 = vmatpush.bf16.msra.mxu1 %v5797_v13  ;;  %v3594_v43 = vrot.slane %v3592_v51, 6  ;;  %v3942_v13 = vrot.slane %v3601_v58, 7  ;;  %v1910_v51 = vshrl.u32 %v8548_v29, 16 }
 0x2eb   : > { %v4074_v32 = vsel %vm10541_vm10, %v4071_v36, %v4073_v59  ;;  %v8557_v36 = vsel %vm1687_vm1, %v3786_v12, %v10532_v60  ;;  %v3600_v12 = vrot.slane %v3598_v52, 5  ;;  %v8583_v52 = vor.u32 %v3938_v49, %v3937_v19  ;;  %v5794_v49 = vld [vmem:[%s10423_s6] sm:$0xff] }
 0x2ec   : > { %v2809_v2 = vmax.f32 %v2734_v38, 0.0  ;;  %v4547_v56 = vshrl.u32 %v4074_v32, 16  ;;  %v4550_v21 = vshll.u32 %v4074_v32, 16  ;;  %v8572_v32 = vpack.c.b16 %v8530_v14, %v5887_v35 }
 0x2ed   : > { %v8585_v35 = vor.u32 %v3942_v13, %v3941_v62  ;;  %v10530_v19 = vrot.slane %v8382_v15, 7 }
 0x2ee   : > { %v2850_v4 = vsel %vm10705_vm9, %v2809_v2, 0.0  ;;  %v4549_v61 = vrot.slane %v4547_v56, 2  ;;  %v4552_v47 = vrot.slane %v4550_v21, 3  ;;  %3344 = vrot.lane.b32.xlu0 %v3212_v31, %s6328_s30  ;;  %4919 = vmatpush.bf16.msra.mxu1 %v5796_v53  ;;  %v3603_v2 = vrot.slane %v3601_v58, 6 }
 0x2ef   : > { %2891 = vst.msk [vmem:[%s7907_s29 + $0x98] sm:$0xff] %vm2100_vm13, %v2850_v4  ;;  %v2944_v33 = vpack.c.bf16 %v2850_v4, %v2850_v4  ;;  %v10529_v56 = vrot.slane %v8550_v63, 1  ;;  %v1913_v21 = vshll.u32 %v8548_v29, 16  ;;  %v8607_v62 = vsel %vm10706_vm3, %v8583_v52, %v8585_v35 }
 0x2f0   : > { %3878 = vrot.lane.b32.xlu2 %v8537_v26, %s6336_s12  ;;  %1680 = vrot.lane.b32.xlu1 %v1632_v25, %s6330_s19  ;;  %v8569_v38 = vor.u32 %v4552_v47, %v4549_v61  ;;  %v8576_v53 = vpop.permute.xlu0 %1422  ;;  %v5795_v25 = vld [vmem:[%s10423_s6 + $0x8] sm:$0xff]  ;;  %v8595_v47 = vor.u32 %v3594_v43, %v3591_v44  ;;  %v1912_v43 = vrot.slane %v1910_v51, 6  ;;  %v2009_v51 = vsel %vm10541_vm10, %v2006_v9, %v10530_v19 }
 0x2f1   : > { %2985 = vst.msk [vmem:[#allocation3 + $0x5c] sm:$0xf] %vm2912_vm14, %v2944_v33  ;;  %v2736_v31 = vpop.f32.mrf.mxu0  ;;  %v8597_v33 = vor.u32 %v3603_v2, %v3600_v12  ;;  %v1915_v13 = vrot.slane %v1913_v21, 7  ;;  %v10708_v12 = vld [vmem:[#allocation16_spill] sm:$0xff]  ;;  %v8633_v21 = vld [vmem:[#allocation2 + $0xb0] sm:$0x7] }
 0x2f2   : > { %v2737_v10 = vadd.f32 %v8476_v3, %v2736_v31  ;;  %v8588_v58 = vpop.permute.xlu1 %3732  ;;  %v8590_v4 = vpop.permute.xlu2 %3734  ;;  %v4554_v61 = vsel %vm2414_vm2, %v8465_v48, %v8569_v38  ;;  %4920 = vmatpush.bf16.msra.mxu1 %v5795_v25  ;;  %vm10709_vm9 = vcmp.eq.s32.totalorder %v10708_v12, 1  ;;  %v8621_v31 = vsel %vm10710_vm15, %v3390_v27, %v10529_v56 }
 0x2f3   : > { %5746 = vmatmul.msk.bf16.gmra.mxu2 %vm2100_vm13, %v4554_v61  ;;  %v8612_v44 = vsel %vm10703_vm0, %v8595_v47, %v8597_v33  ;;  %v10533_v25 = vrot.slane %v8572_v32, 1  ;;  %v8643_v54 = vor.u32 %v1915_v13, %v1912_v43  ;;  %v1685_v46 = vunpack.c.l.b16 %v8633_v21 }
 0x2f4   : > { %v2810_v48 = vmax.f32 %v2737_v10, 0.0  ;;  %10707 = vst [vmem:[#allocation51_spill] sm:$0xff] %v8612_v44  ;;  %v3007_v10 = vld [vmem:[#allocation3 + $0x4] sm:$0xc]  ;;  %v3582_v13 = vrot.slane %v3580_v24, 5  ;;  %v3607_v21 = vshrl.u32 %v8421_v34, 16 }
 0x2f5   : > { %10711 = vst [vmem:[#allocation64_spill] sm:$0xff] %v8643_v54  ;;  %v10714_v24 = vrot.slane %v8349_v39, 6 }
 0x2f6   : > { %v2851_v2 = vsel %vm10709_vm9, %v2810_v48, 0.0  ;;  %3489 = vrot.lane.b32.xlu0 %v8621_v31, %s6332_s21  ;;  %4921 = vmatpush.bf16.msra.mxu1 %v5794_v49  ;;  %v3945_v37 = vrot.slane %v3607_v21, 6  ;;  %vm10718_vm9 = vmmov %vm10706_vm3 }
 0x2f7   : > { %2892 = vst.msk [vmem:[%s7907_s29 + $0xa0] sm:$0xff] %vm2100_vm13, %v2851_v2  ;;  %v2945_v61 = vpack.c.bf16 %v2851_v2, %v2851_v2  ;;  %v3103_v2 = vunpack.c.l.b16 %v3007_v10  ;;  %v3585_v10 = vrot.slane %v3583_v0, 6  ;;  %v3610_v0 = vshll.u32 %v8421_v34, 16 }
 0x2f8   : > { %2050 = vrot.lane.b32.xlu2 %v2009_v51, %s6334_s23  ;;  %3826 = vrot.lane.b32.xlu1 %v8537_v26, %s6335_s11  ;;  %v8638_v27 = vld [vmem:[#allocation3 + $0x58] sm:$0xff]   ;;  %v8641_v12 = vpop.permute.xlu0 %1674  ;;  %v10712_v26 = vld [vmem:[#allocation48_spill] sm:$0xff] }
 0x2f9   : > { %2986 = vst.msk [vmem:[#allocation3 + $0x60] sm:$0xf] %vm2912_vm14, %v2945_v61  ;;  %v2738_v48 = vpop.f32.mrf.mxu0  ;;  %v10534_v9 = vrot.slane %v8638_v27, 7  ;;  %v10713_v19 = vrot.slane %v10712_v26, 1  ;;  %v3946_v44 = vrot.slane %v3610_v0, 7  ;;  %v3612_v39 = vrot.slane %v3610_v0, 6 }
 0x2fa   : > { %v2739_v49 = vadd.f32 %v8476_v3, %v2738_v48  ;;  %v8647_v56 = vpop.permute.xlu1 %3818  ;;  %v8649_v51 = vpop.permute.xlu2 %3820  ;;  %v10538_v48 = vrot.slane %v8421_v34, 6 }
 0x2fb   : > { %v1389_v61 = vsel %vm10710_vm15, %v10713_v19, %v10533_v25  ;;  %v4076_v43 = vsel %vm10541_vm10, %v4073_v59, %v10534_v9  ;;  %v1917_v25 = vsel %vm10706_vm3, %v8484_v41, %v8643_v54  ;;  %v3217_v59 = vshll.u32 %v8550_v63, 16 }
 0x2fc   : > { %v2811_v26 = vmax.f32 %v2739_v49, 0.0  ;;  %v4564_v60 = vshrl.u32 %v4076_v43, 16  ;;  %v4567_v19 = vshll.u32 %v4076_v43, 16  ;;  %v8677_v1 = vsel %vm1687_vm1, %v10714_v24, %v10538_v48  ;;  %v10715_v49 = vld [vmem:[#allocation30_spill] sm:$0xff] }
 0x2fd   : > { %vm10716_vm0 = vcmp.eq.s32.totalorder %v10715_v49, 1  ;;  %v3609_v54 = vrot.slane %v3607_v21, 5  ;;  %v10717_v24 = vunpack.c.l.b16 %v7921_v50  ;;  %v8701_v50 = vrot.slane %v3217_v59, 1  ;;  %v10722_v49 = vld [vmem:[#allocation29_spill] sm:$0xff] }
 0x2fe   : > { %v2852_v43 = vsel %vm10716_vm0, %v2811_v26, 0.0  ;;  %v4566_v9 = vrot.slane %v4564_v60, 2  ;;  %v4569_v8 = vrot.slane %v4567_v19, 3  ;;  %1767 = vrot.lane.b32.xlu0 %v8403_v40, %s6331_s20  ;;  %v8692_v60 = vor.u32 %v3585_v10, %v3582_v13 }
 0x2ff   : > { %2893 = vst.msk [vmem:[%s7907_s29 + $0xa8] sm:$0xff] %vm2100_vm13, %v2852_v43  ;;  %v2946_v41 = vpack.c.bf16 %v2852_v43, %v2852_v43  ;;  %v3145_v48 = vpack.c.b16 %v10717_v24, %v3103_v2  ;;  %v3213_v19 = vshrl.u32 %v8405_v11, 16  ;;  %v4105_v40 = vsel %vm2100_vm13, %v7958_v45, %v8513_v7  ;;  %v8711_v45 = vld [vmem:[#allocation3 + $0x3c] sm:$0xff]  }
 0x300   : > { %1428 = vrot.lane.b32.xlu2 %v1389_v61, %s6329_s18  ;;  %1965 = vrot.lane.b32.xlu1 %v1917_v25, %s6333_s22  ;;  %v8690_v26 = vor.u32 %v4569_v8, %v4566_v9  ;;  %v8699_v0 = vpop.permute.xlu0 %1761  ;;  %v8703_v2 = vor.u32 %v3946_v44, %v3945_v37  ;;  %v8705_v25 = vor.u32 %v3612_v39, %v3609_v54  ;;  %vm10719_vm15 = vsmask.f32 2304 }
 0x301   : > { %2987 = vst.msk [vmem:[#allocation3 + $0x64] sm:$0xf] %vm2912_vm14, %v2946_v41  ;;  %v2741_v21 = vpop.f32.mrf.mxu0  ;;  %v3215_v7 = vor.u32 %v3213_v19, %v8499_v28  ;;  %v8717_v37 = vpack.c.b16 %v8530_v14, %v8530_v14  ;;  %v4147_v54 = vsel %vm2186_vm6, %v4105_v40, %v8471_v22  ;;  %v1779_v28 = vrot.slane %v8548_v29, 6  ;;  %vm10720_vm3 = vmmov %vm10719_vm15 }
 0x302   : > { %v2742_v8 = vadd.f32 %v8476_v3, %v2741_v21  ;;  %v3873_v9 = vpop.permute.xlu1 %3872  ;;  %v3875_v61 = vpop.permute.xlu2 %3874  ;;  %v4571_v11 = vsel %vm2414_vm2, %v8569_v38, %v8690_v26  ;;  %v8722_v44 = vsel %vm10718_vm9, %v8585_v35, %v8703_v2  ;;  %v8727_v38 = vsel %vm10719_vm15, %v8597_v33, %v8705_v25 }
 0x303   : > { %5747 = vmatmul.msk.bf16.gmra.mxu2 %vm2100_vm13, %v4571_v11  ;;  %v2010_v14 = vrot.slane %v8548_v29, 7  ;;  %v4103_v10 = vsel %vm2100_vm13, %v3145_v48, %v8416_v20  ;;  %v3587_v35 = vsel %vm10720_vm3, %v8356_v23, %v8692_v60  ;;  %vm10721_vm0 = vsmask.f32 7424  ;;  %v10749_v29 = vld [vmem:[#allocation74_spill] sm:$0xff] }
 0x304   : > { %v2812_v13 = vmax.f32 %v2742_v8, 0.0  ;;  %v3220_v59 = vsel %vm10721_vm0, %v3215_v7, %v8701_v50  ;;  %v8740_v33 = vpack.c.b16 %v1685_v46, %v1685_v46  ;;  %v4145_v22 = vsel %vm2186_vm6, %v4103_v10, %v8479_v17 }
 0x305   : > { %vm4270_vm9 = vcmask 654336   ;;  %vm10723_vm15 = vcmp.eq.s32.totalorder %v10722_v49, 1  ;;  %v3394_v41 = vrot.slane %v8711_v45, 1  ;;  %v4187_v20 = vsel %vm2272_vm7, %v4145_v22, %v8521_v55 }
 0x306   : > { %v2853_v43 = vsel %vm10723_vm15, %v2812_v13, 0.0  ;;  %v4189_v23 = vsel %vm2272_vm7, %v4147_v54, %v8523_v42  ;;  %vm10540_vm3 = vcmask 785408   ;;  %3880 = vrot.lane.b32.xlu0 %v8447_v16, %s6336_s12  ;;  %v4229_v46 = vsel %vm2358_vm8, %v4187_v20, %v8588_v58 }
 0x307   : > { %2894 = vst.msk [vmem:[%s7907_s29 + $0xb0] sm:$0xff] %vm2100_vm13, %v2853_v43  ;;  %v2947_v48 = vpack.c.bf16 %v2853_v43, %v2853_v43  ;;  %v4231_v17 = vsel %vm2358_vm8, %v4189_v23, %v8590_v4  ;;  %vm10539_vm0 = vcmask 916480   ;;  %v1780_v55 = vsel %vm1687_vm1, %v8385_v5, %v1779_v28 }
 0x308   : > { %3740 = vrot.lane.b32.xlu2 %v3587_v35, %s6334_s23  ;;  %3346 = vrot.lane.b32.xlu1 %v3220_v59, %s6328_s30  ;;  %v8765_v42 = vld [vmem:[#allocation3 + $0x60] sm:$0xff]   ;;  %v4272_v39 = vsel %vm4270_vm9, %v4229_v46, %v8647_v56  ;;  %v4274_v58 = vsel %vm4270_vm9, %v4231_v17, %v8649_v51  ;;  %v8772_v24 = vpop.permute.xlu0 %1815  ;;  %v10724_v19 = vrot.slane %v8382_v15, 7  ;;  %v10725_v54 = vrot.slane %v8550_v63, 1 }
 0x309   : > { %2988 = vst.msk [vmem:[#allocation3 + $0x68] sm:$0xf] %vm2912_vm14, %v2947_v48  ;;  %v2743_v4 = vpop.f32.mrf.mxu0  ;;  %v4077_v21 = vrot.slane %v8765_v42, 7  ;;  %v4315_v8 = vsel %vm10540_vm3, %v4272_v39, %v3873_v9  ;;  %v4317_v56 = vsel %vm10540_vm3, %v4274_v58, %v3875_v61  ;;  %vm10726_vm15 = vcmask 1046528   ;;  %v10728_v17 = vld [vmem:[#allocation19_spill] sm:$0xff] }
 0x30a   : > { %v2011_v40 = vsel %vm10541_vm10, %v10724_v19, %v2010_v14  ;;  %v2744_v11 = vadd.f32 %v8476_v3, %v2743_v4  ;;  %v4016_v51 = vpop.permute.xlu1 %4015  ;;  %v4018_v7 = vpop.permute.xlu2 %4017  ;;  %v8788_v13 = vsel %vm10726_vm15, %v10725_v54, %v3394_v41  ;;  %v10727_v9 = vrot.slane %v8638_v27, 7 }
 0x30b   : > { %v4358_v15 = vsel %vm10539_vm0, %v4315_v8, %v4016_v51  ;;  %v4360_v10 = vsel %vm10539_vm0, %v4317_v56, %v4018_v7  ;;  %v3616_v35 = vshrl.u32 %v8509_v57, 16  ;;  %v3619_v46 = vshll.u32 %v8509_v57, 16  ;;  %v965_v7 = vld [vmem:[#allocation2 + $0xb8] sm:$0x7] }
 0x30c   : > { %v4078_v61 = vsel %vm10541_vm10, %v10727_v9, %v4077_v21  ;;  %v2813_v59 = vmax.f32 %v2744_v11, 0.0  ;;  %v4421_v22 = vshrl.u32 %v4358_v15, 16  ;;  %v4424_v49 = vshll.u32 %v4358_v15, 16 }
 0x30d   : > { %v4428_v43 = vshrl.u32 %v4360_v10, 16  ;;  %v4431_v20 = vshll.u32 %v4360_v10, 16  ;;  %v4581_v23 = vshrl.u32 %v4078_v61, 16  ;;  %v4584_v48 = vshll.u32 %v4078_v61, 16 }
 0x30e   : > { %vm10729_vm15 = vcmp.eq.s32.totalorder %v10728_v17, 1  ;;  %v4423_v58 = vrot.slane %v4421_v22, 2  ;;  %v4426_v4 = vrot.slane %v4424_v49, 3  ;;  %2052 = vrot.lane.b32.xlu0 %v2011_v40, %s6334_s23  ;;  %v3949_v15 = vrot.slane %v3616_v35, 6  ;;  %v967_v17 = vld [vmem:[#allocation2 + $0xb8] sm:$0xf] }
 0x30f   : > { %v2854_v39 = vsel %vm10729_vm15, %v2813_v59, 0.0  ;;  %v4430_v19 = vrot.slane %v4428_v43, 2  ;;  %v4433_v56 = vrot.slane %v4431_v20, 3  ;;  %v4583_v11 = vrot.slane %v4581_v23, 2 }
 0x310   : > { %2895 = vst.msk [vmem:[%s7907_s29 + $0xb8] sm:$0xff] %vm2100_vm13, %v2854_v39  ;;  %v2948_v8 = vpack.c.bf16 %v2854_v39, %v2854_v39  ;;  %v4586_v51 = vrot.slane %v4584_v48, 3  ;;  %1821 = vrot.lane.b32.xlu2 %v1780_v55, %s6332_s21  ;;  %3491 = vrot.lane.b32.xlu1 %v8788_v13, %s6332_s21  ;;  %v4427_v54 = vor.u32 %v4426_v4, %v4423_v58  ;;  %v3950_v10 = vrot.slane %v3619_v46, 7  ;;  %v1960_v59 = vpop.permute.xlu0 %1959  ;;  %v6300_v58 = vld [vmem:[#allocation2 + $0x84] sm:$0xff]  }
 0x311   : > { %v3618_v9 = vrot.slane %v3616_v35, 5  ;;  %v2746_v61 = vpop.f32.mrf.mxu0  ;;  %v8808_v22 = vor.u32 %v4433_v56, %v4430_v19  ;;  %v3621_v40 = vrot.slane %v3619_v46, 6  ;;  %v3792_v43 = vrot.slane %v8509_v57, 6  ;;  %v10730_v4 = vld [vmem:[#allocation60_spill] sm:$0xff] }
 0x312   : > { %2989 = vst.msk [vmem:[#allocation3 + $0x6c] sm:$0xf] %vm2912_vm14, %v2948_v8  ;;  %v8810_v49 = vor.u32 %v4586_v51, %v4583_v11  ;;  %v2747_v55 = vadd.f32 %v8476_v3, %v2746_v61  ;;  %v8814_v20 = vpop.permute.xlu1 %3340  ;;  %v8816_v23 = vpop.permute.xlu2 %3426  ;;  %v1727_v48 = vrot.slane %v8740_v33, 6  ;;  %v1776_v35 = vunpack.c.l.b16 %v965_v7  ;;  %v10731_v11 = vld [vmem:[#allocation73_spill] sm:$0xff] }
 0x313   : > { %v8819_v39 = vor.u32 %v3950_v10, %v3949_v15  ;;  %v2091_v19 = vsel %vm2056_vm12, %v6300_v58, %v10730_v4  ;;  %v4435_v46 = vsel %vm2414_vm2, %v4427_v54, %v8808_v22  ;;  %v8828_v56 = vor.u32 %v3621_v40, %v3618_v9  ;;  %v10735_v40 = vld [vmem:[#allocation33_spill] sm:$0xff] }
 0x314   : > { %v4588_v8 = vsel %vm2414_vm2, %v8690_v26, %v8810_v49  ;;  %v2134_v33 = vsel %vm2100_vm13, %v2091_v19, %v10731_v11  ;;  %v2814_v51 = vmax.f32 %v2747_v55, 0.0  ;;  %4922 = vmatmul.bf16.vlgmr.msra.gmra.mxu1 %v4435_v46  ;;  %vm10732_vm15 = vsmask.f32 1280 }
 0x315   : > { %5748 = vmatmul.msk.bf16.gmra.mxu2 %vm2100_vm13, %v4588_v8  ;;  %v8836_v7 = vsel %vm10732_vm15, %v8703_v2, %v8819_v39  ;;  %v10733_v54 = vrot.slane %v8421_v34, 6  ;;  %v2177_v15 = vsel %vm2143_vm5, %v2134_v33, %v8576_v53  ;;  %v1634_v10 = vshrl.u32 %v8717_v37, 16 }
 0x316   : > { %v1970_v9 = vunpack.c.l.b16 %v967_v17  ;;  %vm10734_vm0 = vsmask.f32 2304  ;;  %v2220_v2 = vsel %vm2186_vm6, %v2177_v15, %v8641_v12  ;;  %vm10736_vm15 = vcmp.eq.s32.totalorder %v10735_v40, 1 }
 0x317   : > { %v8843_v26 = vsel %vm1687_vm1, %v10733_v54, %v3792_v43  ;;  %v8851_v61 = vsel %vm10734_vm0, %v8705_v25, %v8828_v56  ;;  %v2855_v34 = vsel %vm10736_vm15, %v2814_v51, 0.0  ;;  %v1728_v55 = vsel %vm1687_vm1, %v8385_v5, %v1727_v48 }
 0x318   : > { %v1637_v58 = vshll.u32 %v8717_v37, 16  ;;  %v2263_v53 = vsel %vm2229_vm11, %v2220_v2, %v8699_v0  ;;  %2896 = vst.msk [vmem:[%s7907_s29 + $0xc0] sm:$0xff] %vm2100_vm13, %v2855_v34  ;;  %v2949_v17 = vpack.c.bf16 %v2855_v34, %v2855_v34  ;;  %v10737_v25 = vrot.slane %v8572_v32, 1  ;;  %1769 = vrot.lane.b32.xlu1 %v1728_v55, %s6331_s20  ;;  %v2047_v32 = vpop.permute.xlu0 %2046 }
 0x319   : > { %vm10738_vm0 = vsmask.f32 1280  ;;  %v2306_v4 = vsel %vm2272_vm7, %v2263_v53, %v8772_v24  ;;  %v8874_v5 = vld [vmem:[#allocation3 + $0x68] sm:$0xff]   ;;  %v2748_v37 = vpop.f32.mrf.mxu0  ;;  %v8879_v19 = vpack.c.b16 %v1776_v35, %v1776_v35  ;;  %v1636_v11 = vrot.slane %v1634_v10, 5 }
 0x31a   : > { %1430 = vrot.lane.b32.xlu0 %v10737_v25, %s6329_s18  ;;  %v3940_v12 = vsel %vm10738_vm0, %v8432_v30, %v8583_v52  ;;  %2990 = vst.msk [vmem:[#allocation3 + $0x70] sm:$0xf] %vm2912_vm14, %v2949_v17  ;;  %v2349_v0 = vsel %vm2315_vm4, %v2306_v4, %v1960_v59  ;;  %v4079_v48 = vrot.slane %v8874_v5, 7  ;;  %v8881_v30 = vpack.c.b16 %v1970_v9, %v1970_v9  ;;  %v8885_v46 = vpop.permute.xlu1 %3485  ;;  %v8887_v8 = vpop.permute.xlu2 %1676  ;;  %v10740_v53 = vld [vmem:[#allocation32_spill] sm:$0xff] }
 0x31b   : > { %4023 = vrot.lane.b32.xlu2 %v3940_v12, %s6337_s15  ;;  %v2749_v52 = vadd.f32 %v8476_v3, %v2748_v37  ;;  %v2392_v24 = vsel %vm2358_vm8, %v2349_v0, %v2047_v32  ;;  %v1639_v33 = vrot.slane %v1637_v58, 6  ;;  %vm10739_vm15 = vsmask.f32 2304 }
 0x31c   : > { %v2542_v51 = vshrl.u32 %v2392_v24, 16  ;;  %v2545_v59 = vshll.u32 %v2392_v24, 16  ;;  %v3596_v35 = vsel %vm10739_vm15, %v8692_v60, %v8595_v47  ;;  %v4080_v54 = vsel %vm10541_vm10, %v4077_v21, %v4079_v48 }
 0x31d   : > { %v2815_v15 = vmax.f32 %v2749_v52, 0.0  ;;  %v4598_v9 = vshrl.u32 %v4080_v54, 16  ;;  %v4601_v2 = vshll.u32 %v4080_v54, 16  ;;  %v3625_v40 = vshrl.u32 %v8638_v27, 16 }
 0x31e   : > { %v2544_v10 = vrot.slane %v2542_v51, 2  ;;  %v2547_v34 = vrot.slane %v2545_v59, 3  ;;  %v3628_v55 = vshll.u32 %v8638_v27, 16  ;;  %v3794_v58 = vrot.slane %v8638_v27, 6 }
 0x31f   : > { %vm10741_vm0 = vcmp.eq.s32.totalorder %v10740_v53, 1  ;;  %v4600_v60 = vrot.slane %v4598_v9, 2  ;;  %v4603_v17 = vrot.slane %v4601_v2, 3  ;;  %v3953_v25 = vrot.slane %v3625_v40, 6 }
 0x320   : > { %v2856_v47 = vsel %vm10741_vm0, %v2815_v15, 0.0  ;;  %v8904_v12 = vor.u32 %v2547_v34, %v2544_v10  ;;  %v3954_v4 = vrot.slane %v3628_v55, 7  ;;  %v8912_v0 = vsel %vm1687_vm1, %v3792_v43, %v3794_v58  ;;  %3882 = vrot.lane.b32.xlu1 %v8557_v36, %s6336_s12  ;;  %v1425_v51 = vpop.permute.xlu0 %1424 }
 0x321   : > { %2897 = vst.msk [vmem:[%s7907_s29 + $0xc8] sm:$0xff] %vm2100_vm13, %v2856_v47  ;;  %v2950_v21 = vpack.c.bf16 %v2856_v47, %v2856_v47  ;;  %v8918_v37 = vor.u32 %v4603_v17, %v4600_v60  ;;  %v3627_v32 = vrot.slane %v3625_v40, 5  ;;  %v3630_v52 = vrot.slane %v3628_v55, 6  ;;  %v2751_v24 = vpop.f32.mrf.mxu0  ;;  %v10745_v55 = vld [vmem:[#allocation22_spill] sm:$0xff]  ;;  %v6301_v60 = vld [vmem:[#allocation2 + $0x8c] sm:$0xff]  }
 0x322   : > { %3742 = vrot.lane.b32.xlu0 %v3596_v35, %s6334_s23  ;;  %v2549_v57 = vsel %vm2414_vm2, %v8246_v18, %v8904_v12  ;;  %v8924_v43 = vor.u32 %v3954_v4, %v3953_v25  ;;  %v2752_v59 = vadd.f32 %v8476_v3, %v2751_v24  ;;  %v8929_v35 = vpop.permute.xlu2 %3822  ;;  %vm10742_vm15 = vcmask 588800  }
 0x323   : > { %3432 = vrot.lane.b32.xlu2 %v8621_v31, %s6330_s19  ;;  %2991 = vst.msk [vmem:[#allocation3 + $0x74] sm:$0xf] %vm2912_vm14, %v2950_v21  ;;  %v8927_v31 = vpop.permute.xlu1 %1763  ;;  %5694 = vmatmul.msk.bf16.gmra.mxu0 %vm10742_vm15, %v2549_v57  ;;  %v4605_v54 = vsel %vm2414_vm2, %v8810_v49, %v8918_v37  ;;  %v1781_v15 = vrot.slane %v8879_v19, 6  ;;  %v8936_v9 = vor.u32 %v3630_v52, %v3627_v32  ;;  %v2012_v2 = vrot.slane %v8881_v30, 7 }
 0x324   : > { %v1640_v18 = vor.u32 %v1639_v33, %v1636_v11  ;;  %vm10743_vm0 = vsmask.f32 1280  ;;  %v2816_v10 = vmax.f32 %v2752_v59, 0.0  ;;  %vm10744_vm15 = vsmask.f32 2304  ;;  %v8956_v33 = vld [vmem:[#allocation3 + $0x44] sm:$0xff]  }
 0x325   : > { %v8942_v40 = vsel %vm10743_vm0, %v8819_v39, %v8924_v43  ;;  %5749 = vmatmul.msk.bf16.gmra.mxu2 %vm2100_vm13, %v4605_v54  ;;  %v8948_v34 = vsel %vm10744_vm15, %v8828_v56, %v8936_v9  ;;  %v1919_v49 = vshrl.u32 %v8879_v19, 16  ;;  %vm10746_vm3 = vcmp.eq.s32.totalorder %v10745_v55, 1  ;;  %vm10747_vm0 = vmmov %vm10744_vm15 }
 0x326   : > { %v2857_v11 = vsel %vm10746_vm3, %v2816_v10, 0.0  ;;  %v1782_v30 = vsel %vm1687_vm1, %v1779_v28, %v1781_v15  ;;  %v1922_v39 = vshll.u32 %v8879_v19, 16  ;;  %v1641_v56 = vsel %vm10747_vm0, %v8491_v6, %v1640_v18  ;;  %v10748_v19 = vld [vmem:[#allocation61_spill] sm:$0xff]  ;;  %v6302_v10 = vld [vmem:[#allocation3 + $0x14] sm:$0xff]  }
 0x327   : > { %2898 = vst.msk [vmem:[%s7907_s29 + $0xd0] sm:$0xff] %vm2100_vm13, %v2857_v11  ;;  %v2951_v53 = vpack.c.bf16 %v2857_v11, %v2857_v11  ;;  %v2013_v47 = vsel %vm10541_vm10, %v2010_v14, %v2012_v2  ;;  %v2093_v17 = vsel %vm2056_vm12, %v6301_v60, %v10748_v19  ;;  %v8975_v4 = vrot.slane %v1919_v49, 6 }
 0x328   : > { %2054 = vrot.lane.b32.xlu1 %v2013_v47, %s6334_s23  ;;  %v3737_v6 = vpop.permute.xlu0 %3736  ;;  %v2136_v14 = vsel %vm2100_vm13, %v2093_v17, %v10749_v29  ;;  %v3396_v57 = vrot.slane %v8956_v33, 1  ;;  %v1924_v59 = vrot.slane %v1922_v39, 7  ;;  %v3796_v18 = vrot.slane %v8765_v42, 6  ;;  %v10750_v47 = vld [vmem:[#allocation36_spill] sm:$0xff] }
 0x329   : > { %2992 = vst.msk [vmem:[#allocation3 + $0x78] sm:$0xf] %vm2912_vm14, %v2951_v53  ;;  %v2753_v25 = vpop.f32.mrf.mxu0  ;;  %v2179_v54 = vsel %vm2143_vm5, %v2136_v14, %v1425_v51  ;;  %v3634_v2 = vshrl.u32 %v8765_v42, 16  ;;  %v4107_v49 = vsel %vm2100_vm13, %v6302_v10, %v8814_v20  ;;  %vm10751_vm3 = vcmp.eq.s32.totalorder %v10750_v47, 1 }
 0x32a   : > { %1823 = vrot.lane.b32.xlu0 %v1782_v30, %s6332_s21  ;;  %v8969_v28 = vld [vmem:[#allocation3 + $0x70] sm:$0xff]   ;;  %v2754_v32 = vadd.f32 %v8476_v3, %v2753_v25  ;;  %v1962_v24 = vpop.permute.xlu2 %1961  ;;  %v8998_v51 = vsel %vm1687_vm1, %v3794_v58, %v3796_v18  ;;  %vm10752_vm15 = vcmask 1046528   ;;  %v1925_v29 = vor.u32 %v1924_v59, %v8975_v4 }
 0x32b   : > { %1682 = vrot.lane.b32.xlu2 %v1641_v56, %s6330_s19  ;;  %v4081_v21 = vrot.slane %v8969_v28, 7  ;;  %v8980_v52 = vpop.permute.xlu1 %3876  ;;  %v3957_v39 = vrot.slane %v3634_v2, 6  ;;  %v3636_v53 = vrot.slane %v3634_v2, 5  ;;  %v2222_v56 = vsel %vm2186_vm6, %v2179_v54, %v8887_v8 }
 0x32c   : > { %v2817_v55 = vmax.f32 %v2754_v32, 0.0  ;;  %v9014_v27 = vsel %vm10752_vm15, %v3394_v41, %v3396_v57  ;;  %v4149_v14 = vsel %vm2186_vm6, %v4107_v49, %v8816_v23  ;;  %v2265_v41 = vsel %vm2229_vm11, %v2222_v56, %v8927_v31 }
 0x32d   : > { %v4082_v15 = vsel %vm10541_vm10, %v4079_v48, %v4081_v21  ;;  %v3637_v48 = vshll.u32 %v8765_v42, 16  ;;  %v4191_v2 = vsel %vm2272_vm7, %v4149_v14, %v8885_v46  ;;  %vm10753_vm0 = vsmask.f32 1280  ;;  %v10767_v42 = vld [vmem:[#allocation51_spill] sm:$0xff] }
 0x32e   : > { %v4615_v11 = vshrl.u32 %v4082_v15, 16  ;;  %v4618_v30 = vshll.u32 %v4082_v15, 16  ;;  %v2858_v20 = vsel %vm10751_vm3, %v2817_v55, 0.0  ;;  %v4233_v49 = vsel %vm2358_vm8, %v4191_v2, %v3737_v6 }
 0x32f   : > { %2899 = vst.msk [vmem:[%s7907_s29 + $0xd8] sm:$0xff] %vm2100_vm13, %v2858_v20  ;;  %v2952_v17 = vpack.c.bf16 %v2858_v20, %v2858_v20  ;;  %v3958_v58 = vrot.slane %v3637_v48, 7  ;;  %v3639_v8 = vrot.slane %v3637_v48, 6  ;;  %vm10754_vm3 = vsmask.f32 2304 }
 0x330   : > { %v4617_v60 = vrot.slane %v4615_v11, 2  ;;  %v4620_v19 = vrot.slane %v4618_v30, 3  ;;  %3493 = vrot.lane.b32.xlu1 %v9014_v27, %s6332_s21  ;;  %v1818_v54 = vpop.permute.xlu0 %1817  ;;  %v4276_v6 = vsel %vm4270_vm9, %v4233_v49, %v8929_v35 }
 0x331   : > { %2993 = vst.msk [vmem:[#allocation3 + $0x7c] sm:$0xf] %vm2912_vm14, %v2952_v17  ;;  %v2756_v32 = vpop.f32.mrf.mxu0  ;;  %v9031_v15 = vor.u32 %v3639_v8, %v3636_v53  ;;  %v2308_v59 = vsel %vm2272_vm7, %v2265_v41, %v1818_v54 }
 0x332   : > { %4025 = vrot.lane.b32.xlu0 %v8607_v62, %s6337_s15  ;;  %v9020_v25 = vor.u32 %v4620_v19, %v4617_v60  ;;  %v3225_v62 = vshll.u32 %v8711_v45, 16  ;;  %v2757_v4 = vadd.f32 %v8476_v3, %v2756_v32  ;;  %v9037_v23 = vpop.permute.xlu2 %3342  ;;  %v2351_v55 = vsel %vm2315_vm4, %v2308_v59, %v1962_v24  ;;  %v10755_v24 = vld [vmem:[#allocation35_spill] sm:$0xff]  ;;  %v10757_v60 = vld [vmem:[#allocation64_spill] sm:$0xff] }
 0x333   : > { %3828 = vrot.lane.b32.xlu2 %v8447_v16, %s6335_s11  ;;  %v9029_v16 = vor.u32 %v3958_v58, %v3957_v39  ;;  %v2049_v10 = vpop.permute.xlu1 %2048  ;;  %v9052_v11 = vsel %vm10754_vm3, %v8936_v9, %v9031_v15  ;;  %vm10756_vm15 = vcmp.eq.s32.totalorder %v10755_v24, 1  ;;  %v1926_v19 = vsel %vm10753_vm0, %v10757_v60, %v1925_v29 }
 0x334   : > { %v4622_v31 = vsel %vm2414_vm2, %v8918_v37, %v9020_v25  ;;  %v2818_v30 = vmax.f32 %v2757_v4, 0.0  ;;  %v2394_v48 = vsel %vm2358_vm8, %v2351_v55, %v2049_v10  ;;  %v9061_v56 = vrot.slane %v3225_v62, 1 }
 0x335   : > { %v9047_v46 = vsel %vm10753_vm0, %v8924_v43, %v9029_v16  ;;  %5750 = vmatmul.msk.bf16.gmra.mxu2 %vm2100_vm13, %v4622_v31  ;;  %v2550_v37 = vshrl.u32 %v2394_v48, 16  ;;  %v2553_v39 = vshll.u32 %v2394_v48, 16  ;;  %v3221_v43 = vshrl.u32 %v8550_v63, 16 }
 0x336   : > { %v2859_v53 = vsel %vm10756_vm15, %v2818_v30, 0.0  ;;  %vm10758_vm3 = vcmask 785408   ;;  %vm10759_vm15 = vcmask 916480   ;;  %vm10760_vm0 = vsmask.f32 7424 }
 0x337   : > { %2900 = vst.msk [vmem:[%s7907_s29 + $0xe0] sm:$0xff] %vm2100_vm13, %v2859_v53  ;;  %v2953_v9 = vpack.c.bf16 %v2859_v53, %v2859_v53  ;;  %v2552_v47 = vrot.slane %v2550_v37, 2  ;;  %v2555_v20 = vrot.slane %v2553_v39, 3  ;;  %v3223_v63 = vor.u32 %v3221_v43, %v8701_v50 }
 0x338   : > { %3884 = vrot.lane.b32.xlu1 %v8677_v1, %s6336_s12  ;;  %v9073_v35 = vld [vmem:[#allocation3 + $0x78] sm:$0xff]   ;;  %v4319_v17 = vsel %vm10758_vm3, %v4276_v6, %v8980_v52  ;;  %v4020_v29 = vpop.permute.xlu0 %4019  ;;  %v3233_v4 = vshll.u32 %v8956_v33, 16  ;;  %vm10761_vm3 = vcmask 588800   ;;  %v3643_v10 = vshrl.u32 %v8874_v5, 16 }
 0x339   : > { %2994 = vst.msk [vmem:[#allocation3 + $0x80] sm:$0xf] %vm2912_vm14, %v2953_v9  ;;  %v9078_v58 = vor.u32 %v2555_v20, %v2552_v47  ;;  %v2758_v8 = vpop.f32.mrf.mxu0  ;;  %v4362_v41 = vsel %vm10759_vm15, %v4319_v17, %v4020_v29  ;;  %v3228_v32 = vsel %vm10760_vm0, %v3223_v63, %v9061_v56  ;;  %v3646_v31 = vshll.u32 %v8874_v5, 16 }
 0x33a   : > { %3434 = vrot.lane.b32.xlu0 %v8788_v13, %s6330_s19  ;;  %v4083_v13 = vrot.slane %v9073_v35, 7  ;;  %v2759_v62 = vadd.f32 %v8476_v3, %v2758_v8  ;;  %v9085_v50 = vpop.permute.xlu2 %3487  ;;  %v4453_v52 = vshrl.u32 %v4362_v41, 16  ;;  %v4456_v54 = vshll.u32 %v4362_v41, 16 }
 0x33b   : > { %1967 = vrot.lane.b32.xlu2 %v1926_v19, %s6333_s22  ;;  %v9082_v14 = vpop.permute.xlu1 %1426  ;;  %v2557_v2 = vsel %vm2414_vm2, %v8904_v12, %v9078_v58  ;;  %v10762_v12 = vld [vmem:[#allocation25_spill] sm:$0xff]  ;;  %v3961_v39 = vrot.slane %v3643_v10, 6  ;;  %v3962_v6 = vrot.slane %v3646_v31, 7  ;;  %v3645_v24 = vrot.slane %v3643_v10, 5 }
 0x33c   : > { %v2819_v59 = vmax.f32 %v2759_v62, 0.0  ;;  %5695 = vmatmul.msk.bf16.gmra.mxu0 %vm10761_vm3, %v2557_v2  ;;  %v4084_v3 = vsel %vm10541_vm10, %v4081_v21, %v4083_v13  ;;  %v4455_v49 = vrot.slane %v4453_v52, 2  ;;  %v4458_v55 = vrot.slane %v4456_v54, 3  ;;  %v9124_v62 = vld [vmem:[#allocation3 + $0x4c] sm:$0xff]   ;;  %v10768_v2 = vld [vmem:[#allocation67_spill] sm:$0xff] }
 0x33d   : > { %v4632_v30 = vshrl.u32 %v4084_v3, 16  ;;  %v4635_v48 = vshll.u32 %v4084_v3, 16  ;;  %vm10763_vm15 = vcmp.eq.s32.totalorder %v10762_v12, 1  ;;  %v9112_v47 = vor.u32 %v3962_v6, %v3961_v39 }
 0x33e   : > { %v2860_v37 = vsel %vm10763_vm15, %v2819_v59, 0.0  ;;  %v9107_v21 = vor.u32 %v4458_v55, %v4455_v49  ;;  %v3648_v20 = vrot.slane %v3646_v31, 6  ;;  %v3798_v60 = vrot.slane %v8874_v5, 6 }
 0x33f   : > { %2901 = vst.msk [vmem:[%s7907_s29 + $0xe8] sm:$0xff] %vm2100_vm13, %v2860_v37  ;;  %v2954_v53 = vpack.c.bf16 %v2860_v37, %v2860_v37  ;;  %v4634_v43 = vrot.slane %v4632_v30, 2  ;;  %v4637_v9 = vrot.slane %v4635_v48, 3  ;;  %v3229_v17 = vshrl.u32 %v8711_v45, 16 }
 0x340   : > { %3436 = vrot.lane.b32.xlu1 %v9014_v27, %s6330_s19  ;;  %v3429_v19 = vpop.permute.xlu0 %3428  ;;  %v3235_v27 = vrot.slane %v3233_v4, 1  ;;  %vm10764_vm0 = vsmask.f32 1280  ;;  %v3649_v41 = vor.u32 %v3648_v20, %v3645_v24  ;;  %vm10765_vm3 = vsmask.f32 2304 }
 0x341   : > { %2995 = vst.msk [vmem:[#allocation3 + $0x84] sm:$0xf] %vm2912_vm14, %v2954_v53  ;;  %v9119_v63 = vor.u32 %v4637_v9, %v4634_v43  ;;  %v9129_v5 = vsel %vm10764_vm0, %v9029_v16, %v9112_v47  ;;  %vm10766_vm15 = vsmask.f32 7424  ;;  %v3241_v54 = vshll.u32 %v9124_v62, 16 }
 0x342   : > { %3830 = vrot.lane.b32.xlu0 %v8557_v36, %s6335_s11  ;;  %v4460_v36 = vsel %vm2414_vm2, %v8808_v22, %v9107_v21  ;;  %v9122_v29 = vpop.permute.xlu2 %1765  ;;  %v9134_v22 = vsel %vm1687_vm1, %v3796_v18, %v3798_v60  ;;  %v9143_v52 = vsel %vm10765_vm3, %v9031_v15, %v3649_v41  ;;  %v4109_v4 = vsel %vm2100_vm13, %v10768_v2, %v9037_v23  ;;  %vm10769_vm0 = vmmov %vm10766_vm15 }
 0x343   : > { %3348 = vrot.lane.b32.xlu2 %v3228_v32, %s6328_s30  ;;  %v3739_v8 = vpop.permute.xlu1 %3738  ;;  %4927 = vmatmul.bf16.gmra.mxu1 %v4460_v36  ;;  %v4639_v45 = vsel %vm2414_vm2, %v9020_v25, %v9119_v63  ;;  %v3231_v32 = vor.u32 %v3229_v17, %v9061_v56  ;;  %v9154_v25 = vpop.f32.mrf.mxu2  ;;  %v3237_v10 = vshrl.u32 %v8956_v33, 16  ;;  %v9161_v31 = vrot.slane %v3241_v54, 1  ;;  %v6303_v17 = vld [vmem:[#allocation2 + $0x94] sm:$0xff]  }
 0x344   : > { %v4151_v49 = vsel %vm2186_vm6, %v4109_v4, %v3429_v19  ;;  %v3652_v55 = vshrl.u32 %v8969_v28, 16  ;;  %v3655_v30 = vshll.u32 %v8969_v28, 16  ;;  %v3800_v37 = vrot.slane %v8969_v28, 6 }
 0x345   : > { %5751 = vmatmul.msk.bf16.gmra.mxu2 %vm2100_vm13, %v4639_v45  ;;  %v3236_v16 = vsel %vm10766_vm15, %v3231_v32, %v3235_v27  ;;  %v3239_v48 = vor.u32 %v3237_v10, %v3235_v27  ;;  %v4193_v43 = vsel %vm2272_vm7, %v4151_v49, %v9085_v50  ;;  %v10770_v27 = vld [vmem:[#allocation56_spill] sm:$0xff]  ;;  %vm10772_vm3 = vsmask.f32 1280 }
 0x346   : > { %v3965_v39 = vrot.slane %v3652_v55, 6  ;;  %v3966_v6 = vrot.slane %v3655_v30, 7  ;;  %v3654_v24 = vrot.slane %v3652_v55, 5  ;;  %v3657_v53 = vrot.slane %v3655_v30, 6 }
 0x347   : > { %v3244_v19 = vsel %vm10769_vm0, %v3239_v48, %v9161_v31  ;;  %v2095_v45 = vsel %vm2056_vm12, %v6303_v17, %v10770_v27  ;;  %v4235_v32 = vsel %vm2358_vm8, %v4193_v43, %v3739_v8  ;;  %vm10773_vm15 = vsmask.f32 2304  ;;  %v9217_v48 = vld [vmem:[#allocation3 + $0x54] sm:$0xff]  }
 0x348   : > { %3832 = vrot.lane.b32.xlu1 %v8677_v1, %s6335_s11  ;;  %v9152_v18 = vld [vmem:[#allocation3 + $0x80] sm:$0xff]   ;;  %v1679_v56 = vpop.permute.xlu0 %1678  ;;  %v9181_v36 = vor.u32 %v3966_v6, %v3965_v39  ;;  %v9183_v28 = vor.u32 %v3657_v53, %v3654_v24  ;;  %vm10774_vm0 = vcmask 785408  }
 0x349   : > { %v4085_v15 = vrot.slane %v9152_v18, 7 }
 0x34a   : > { %3350 = vrot.lane.b32.xlu0 %v3236_v16, %s6328_s30  ;;  %v3879_v3 = vpop.permute.xlu2 %3878  ;;  %v9198_v54 = vsel %vm10772_vm3, %v9112_v47, %v9181_v36  ;;  %vm10775_vm3 = vcmask 916480  }
 0x34b   : > { %3744 = vrot.lane.b32.xlu2 %v10767_v42, %s6334_s23  ;;  %v1820_v59 = vpop.permute.xlu1 %1819  ;;  %v4086_v1 = vsel %vm10541_vm10, %v4083_v13, %v4085_v15  ;;  %v9175_v13 = vsel %vm1687_vm1, %v3798_v60, %v3800_v37  ;;  %v10771_v60 = vld [vmem:[#allocation68_spill] sm:$0xff]  ;;  %v9202_v42 = vsel %vm10773_vm15, %v3649_v41, %v9183_v28  ;;  %v9213_v55 = vpop.f32.mrf.mxu2  ;;  %vm10776_vm15 = vcmask 1046528  }
 0x34c   : > { %v4649_v23 = vshrl.u32 %v4086_v1, 16  ;;  %v4652_v12 = vshll.u32 %v4086_v1, 16  ;;  %v3398_v1 = vrot.slane %v9124_v62, 1  ;;  %vm10781_vm10 = vcmask 1046528  }
 0x34e   : > { %v4651_v9 = vrot.slane %v4649_v23, 2  ;;  %v4654_v20 = vrot.slane %v4652_v12, 3 }
 0x350   : > { %3352 = vrot.lane.b32.xlu1 %v3244_v19, %s6328_s30  ;;  %v9190_v50 = vor.u32 %v4654_v20, %v4651_v9  ;;  %v3825_v16 = vpop.permute.xlu0 %3824  ;;  %v3661_v9 = vshrl.u32 %v9073_v35, 16  ;;  %v3664_v20 = vshll.u32 %v9073_v35, 16 }
 0x351   : > { %v4278_v2 = vsel %vm4270_vm9, %v4235_v32, %v3825_v16 }
 0x352   : > { %3746 = vrot.lane.b32.xlu0 %v8727_v38, %s6334_s23  ;;  %v2138_v38 = vsel %vm2100_vm13, %v2095_v45, %v10771_v60  ;;  %v2051_v10 = vpop.permute.xlu2 %2050  ;;  %v4656_v8 = vsel %vm2414_vm2, %v9119_v63, %v9190_v50  ;;  %v4321_v47 = vsel %vm10774_vm0, %v4278_v2, %v3879_v3  ;;  %vm10777_vm0 = vmmov %vm10776_vm15  ;;  %v3969_v60 = vrot.slane %v3661_v9, 6 }
 0x353   : > { %4027 = vrot.lane.b32.xlu2 %v8722_v44, %s6337_s15  ;;  %v2181_v44 = vsel %vm2143_vm5, %v2138_v38, %v9082_v14  ;;  %v4022_v4 = vpop.permute.xlu1 %4021  ;;  %v3970_v38 = vrot.slane %v3664_v20, 7  ;;  %v3663_v32 = vrot.slane %v3661_v9, 5  ;;  %v3666_v16 = vrot.slane %v3664_v20, 6 }
 0x354   : > { %v2224_v49 = vsel %vm2186_vm6, %v2181_v44, %v1679_v56  ;;  %v4364_v41 = vsel %vm10775_vm3, %v4321_v47, %v4022_v4  ;;  %v3399_v56 = vsel %vm10776_vm15, %v3396_v57, %v3398_v1  ;;  %vm10778_vm3 = vsmask.f32 1280 }
 0x355   : > { %5752 = vmatmul.msk.bf16.gmra.mxu2 %vm2100_vm13, %v4656_v8  ;;  %v4470_v14 = vshrl.u32 %v4364_v41, 16  ;;  %v4473_v30 = vshll.u32 %v4364_v41, 16  ;;  %v2267_v23 = vsel %vm2229_vm11, %v2224_v49, %v9122_v29  ;;  %v3400_v29 = vrot.slane %v9217_v48, 1 }
 0x356   : > { %v2310_v3 = vsel %vm2272_vm7, %v2267_v23, %v1820_v59  ;;  %v3667_v2 = vor.u32 %v3666_v16, %v3663_v32  ;;  %vm10779_vm15 = vcmask 588800   ;;  %v6305_v16 = vld [vmem:[#allocation2 + $0x9c] sm:$0xff]  }
 0x357   : > { %v4472_v63 = vrot.slane %v4470_v14, 2  ;;  %v4475_v12 = vrot.slane %v4473_v30, 3  ;;  %v3401_v19 = vsel %vm10777_vm0, %v3398_v1, %v3400_v29  ;;  %vm10780_vm0 = vsmask.f32 2304 }
 0x358   : > { %3748 = vrot.lane.b32.xlu1 %v8851_v61, %s6334_s23  ;;  %v1964_v39 = vpop.permute.xlu0 %1963  ;;  %v3802_v61 = vrot.slane %v9073_v35, 6  ;;  %v3971_v35 = vor.u32 %v3970_v38, %v3969_v60  ;;  %v3670_v14 = vshrl.u32 %v9152_v18, 16  ;;  %v3673_v30 = vshll.u32 %v9152_v18, 16 }
 0x359   : > { %v9230_v6 = vor.u32 %v4475_v12, %v4472_v63  ;;  %v2353_v24 = vsel %vm2315_vm4, %v2310_v3, %v1964_v39 }
 0x35a   : > { %4029 = vrot.lane.b32.xlu0 %v8836_v7, %s6337_s15  ;;  %v9234_v53 = vpop.permute.xlu2 %1428  ;;  %v2396_v57 = vsel %vm2358_vm8, %v2353_v24, %v2051_v10  ;;  %v9245_v17 = vsel %vm1687_vm1, %v3800_v37, %v3802_v61  ;;  %v9261_v49 = vsel %vm10778_vm3, %v9181_v36, %v3971_v35  ;;  %v3973_v23 = vrot.slane %v3670_v14, 6 }
 0x35b   : > { %3495 = vrot.lane.b32.xlu2 %v3399_v56, %s6332_s21  ;;  %v3431_v33 = vpop.permute.xlu1 %3430  ;;  %v4477_v7 = vsel %vm2414_vm2, %v9107_v21, %v9230_v6  ;;  %v2558_v43 = vshrl.u32 %v2396_v57, 16  ;;  %v2561_v59 = vshll.u32 %v2396_v57, 16  ;;  %v9248_v21 = vld [vmem:[#allocation3 + $0x5c] sm:$0xff]   ;;  %v3974_v63 = vrot.slane %v3673_v30, 7 }
 0x35c   : > { %4932 = vmatmul.bf16.gmra.mxu1 %v4477_v7  ;;  %v3402_v47 = vrot.slane %v9248_v21, 1  ;;  %v3672_v12 = vrot.slane %v3670_v14, 5  ;;  %v3675_v3 = vrot.slane %v3673_v30, 6  ;;  %v3249_v24 = vshll.u32 %v9217_v48, 16 }
 0x35d   : > { %v2560_v27 = vrot.slane %v2558_v43, 2  ;;  %v2563_v45 = vrot.slane %v2561_v59, 3  ;;  %v9287_v57 = vor.u32 %v3974_v63, %v3973_v23  ;;  %v3257_v32 = vshll.u32 %v9248_v21, 16 }
 0x35e   : > { %v3403_v1 = vsel %vm10781_vm10, %v3400_v29, %v3402_v47  ;;  %v9289_v7 = vor.u32 %v3675_v3, %v3672_v12  ;;  %vm10782_vm10 = vmmov %vm10778_vm3  ;;  %v3253_v63 = vshrl.u32 %v9217_v48, 16 }
 0x35f   : > { %v9250_v44 = vor.u32 %v2563_v45, %v2560_v27  ;;  %vm10783_vm3 = vmmov %vm10780_vm0  ;;  %v3251_v45 = vrot.slane %v3249_v24, 1  ;;  %v3259_v12 = vrot.slane %v3257_v32, 1 }
 0x360   : > { %4031 = vrot.lane.b32.xlu1 %v8942_v40, %s6337_s15  ;;  %v3345_v37 = vpop.permute.xlu0 %3344  ;;  %v9267_v40 = vsel %vm10780_vm0, %v9183_v28, %v3667_v2  ;;  %v3804_v28 = vrot.slane %v9152_v18, 6  ;;  %v9301_v59 = vsel %vm10783_vm3, %v3667_v2, %v9289_v7  ;;  %vm10787_vm0 = vcmask 785408  }
 0x361   : > { %v2565_v8 = vsel %vm2414_vm2, %v9078_v58, %v9250_v44 }
 0x362   : > { %3497 = vrot.lane.b32.xlu0 %v3401_v19, %s6332_s21  ;;  %v3741_v10 = vpop.permute.xlu2 %3740  ;;  %5696 = vmatmul.msk.bf16.gmra.mxu0 %vm10779_vm15, %v2565_v8  ;;  %v9282_v39 = vsel %vm1687_vm1, %v3802_v61, %v3804_v28  ;;  %v9297_v61 = vsel %vm10782_vm10, %v3971_v35, %v9287_v57  ;;  %v10784_v35 = vld [vmem:[#allocation62_spill] sm:$0xff]  ;;  %vm10785_vm15 = vsmask.f32 7424  ;;  %vm10788_vm10 = vcmask 916480  }
 0x363   : > { %3886 = vrot.lane.b32.xlu2 %v8843_v26, %s6336_s12  ;;  %v1681_v4 = vpop.permute.xlu1 %1680  ;;  %vm10789_vm3 = vmmov %vm10785_vm15 }
 0x368   : > { %3499 = vrot.lane.b32.xlu1 %v3403_v1, %s6332_s21  ;;  %v3490_v58 = vpop.permute.xlu0 %3489 }
 0x36a   : > { %3888 = vrot.lane.b32.xlu0 %v8912_v0, %s6336_s12  ;;  %v1822_v41 = vpop.permute.xlu2 %1821 }
 0x36b   : > { %3438 = vrot.lane.b32.xlu2 %v3399_v56, %s6330_s19  ;;  %v3827_v36 = vpop.permute.xlu1 %3826  ;;  %v6304_v56 = vld [vmem:[#allocation3 + $0x24] sm:$0xff]  }
 0x36c   : > { %v4111_v29 = vsel %vm2100_vm13, %v6304_v56, %v3345_v37  ;;  %v2097_v37 = vsel %vm2056_vm12, %v6305_v16, %v10784_v35  ;;  %v9330_v56 = vld [vmem:[#allocation3 + $0x64] sm:$0xff]  }
 0x36d   : > { %v4153_v9 = vsel %vm2186_vm6, %v4111_v29, %v3431_v33  ;;  %v10786_v33 = vld [vmem:[#allocation75_spill] sm:$0xff] }
 0x36e   : > { %v4195_v27 = vsel %vm2272_vm7, %v4153_v9, %v3490_v58  ;;  %v2140_v8 = vsel %vm2100_vm13, %v2097_v37, %v10786_v33 }
 0x36f   : > { %v4237_v38 = vsel %vm2358_vm8, %v4195_v27, %v3741_v10 }
 0x370   : > { %3890 = vrot.lane.b32.xlu1 %v8998_v51, %s6336_s12  ;;  %v1768_v43 = vpop.permute.xlu0 %1767  ;;  %v4280_v58 = vsel %vm4270_vm9, %v4237_v38, %v3827_v36  ;;  %v3255_v36 = vor.u32 %v3253_v63, %v3251_v45  ;;  %v9369_v63 = vld [vmem:[#allocation3 + $0x6c] sm:$0xff]  }
 0x372   : > { %3440 = vrot.lane.b32.xlu0 %v3401_v19, %s6330_s19  ;;  %v3260_v27 = vsel %vm10789_vm3, %v3255_v36, %v3259_v12 }
 0x373   : > { %3834 = vrot.lane.b32.xlu2 %v8843_v26, %s6335_s11  ;;  %v1966_v20 = vpop.permute.xlu1 %1965  ;;  %v3245_v26 = vshrl.u32 %v9124_v62, 16 }
 0x375   : > { %v4024_v19 = vpop.permute.xlu2 %4023  ;;  %v3247_v60 = vor.u32 %v3245_v26, %v9161_v31  ;;  %v2183_v31 = vsel %vm2143_vm5, %v2140_v8, %v9234_v53  ;;  %v3265_v26 = vshll.u32 %v9330_v56, 16 }
 0x376   : > { %v2226_v14 = vsel %vm2186_vm6, %v2183_v31, %v1681_v4 }
 0x377   : > { %v3252_v2 = vsel %vm10785_vm15, %v3247_v60, %v3251_v45  ;;  %v2269_v3 = vsel %vm2229_vm11, %v2226_v14, %v1768_v43  ;;  %v9351_v37 = vrot.slane %v3265_v26, 1  ;;  %vm10790_vm15 = vmmov %vm10789_vm3 }
 0x378   : > { %3442 = vrot.lane.b32.xlu1 %v3403_v1, %s6330_s19  ;;  %v3881_v10 = vpop.permute.xlu0 %3880  ;;  %v2312_v4 = vsel %vm2272_vm7, %v2269_v3, %v1822_v41  ;;  %v5803_v41 = vld [vmem:[%s10425_s8] sm:$0xff] }
 0x379   : > { %v4323_v23 = vsel %vm10787_vm0, %v4280_v58, %v3881_v10  ;;  %v2355_v45 = vsel %vm2315_vm4, %v2312_v4, %v1966_v20  ;;  %5284 = vmatpush.bf16.msra.mxu3 %v5803_v41  ;;  %vm10791_vm0 = vcmask 588800  }
 0x37a   : > { %3836 = vrot.lane.b32.xlu0 %v8912_v0, %s6335_s11  ;;  %v4366_v1 = vsel %vm10788_vm10, %v4323_v23, %v4024_v19  ;;  %v3404_v23 = vrot.slane %v9330_v56, 1  ;;  %vm10792_vm10 = vcmask 1046528  }
 0x37b   : > { %3354 = vrot.lane.b32.xlu2 %v3252_v2, %s6328_s30  ;;  %v9322_v30 = vpop.permute.xlu1 %3346  ;;  %v4487_v53 = vshrl.u32 %v4366_v1, 16  ;;  %v4490_v29 = vshll.u32 %v4366_v1, 16 }
 0x37d   : > { %v9325_v0 = vpop.permute.xlu2 %3432  ;;  %v4489_v24 = vrot.slane %v4487_v53, 2  ;;  %v4492_v9 = vrot.slane %v4490_v29, 3  ;;  %v10795_v29 = vld [vmem:[#allocation76_spill] sm:$0xff] }
 0x37f   : > { %v9340_v43 = vor.u32 %v4492_v9, %v4489_v24  ;;  %v3406_v24 = vrot.slane %v9369_v63, 1  ;;  %v6306_v9 = vld [vmem:[#allocation3 + $0x2c] sm:$0xff]  }
 0x380   : > { %3838 = vrot.lane.b32.xlu1 %v8998_v51, %s6335_s11  ;;  %v2053_v19 = vpop.permute.xlu0 %2052  ;;  %v3261_v51 = vshrl.u32 %v9248_v21, 16 }
 0x381   : > { %v2398_v60 = vsel %vm2358_vm8, %v2355_v45, %v2053_v19 }
 0x382   : > { %3356 = vrot.lane.b32.xlu0 %v3260_v27, %s6328_s30  ;;  %v2566_v16 = vshrl.u32 %v2398_v60, 16  ;;  %v2569_v35 = vshll.u32 %v2398_v60, 16  ;;  %v3263_v33 = vor.u32 %v3261_v51, %v3259_v12  ;;  %v10794_v12 = vld [vmem:[#allocation45_spill] sm:$0xff]  ;;  %v4113_v27 = vsel %vm2100_vm13, %v6306_v9, %v9322_v30  ;;  %v9399_v60 = vld [vmem:[#allocation3 + $0x74] sm:$0xff]  }
 0x383   : > { %3750 = vrot.lane.b32.xlu2 %v8948_v34, %s6334_s23  ;;  %v3492_v38 = vpop.permute.xlu1 %3491  ;;  %v4494_v34 = vsel %vm2414_vm2, %v9230_v6, %v9340_v43  ;;  %v4155_v30 = vsel %vm2186_vm6, %v4113_v27, %v9325_v0  ;;  %v3408_v0 = vrot.slane %v9399_v60, 1 }
 0x384   : > { %4937 = vmatmul.bf16.gmra.mxu1 %v4494_v34  ;;  %v2568_v20 = vrot.slane %v2566_v16, 2  ;;  %v2571_v2 = vrot.slane %v2569_v35, 3  ;;  %v3268_v31 = vsel %vm10790_vm15, %v3263_v33, %v9351_v37  ;;  %v4197_v35 = vsel %vm2272_vm7, %v4155_v30, %v3492_v38  ;;  %vm10802_vm15 = vmmov %vm10791_vm0 }
 0x385   : > { %v1683_v32 = vpop.permute.xlu2 %1682 }
 0x386   : > { %v9353_v8 = vor.u32 %v2571_v2, %v2568_v20 }
 0x388   : > { %3358 = vrot.lane.b32.xlu1 %v3268_v31, %s6328_s30  ;;  %v2573_v10 = vsel %vm2414_vm2, %v9250_v44, %v9353_v8  ;;  %v10793_v44 = vld [vmem:[#allocation63_spill] sm:$0xff] }
 0x389   : > { %5697 = vmatmul.msk.bf16.gmra.mxu0 %vm10791_vm0, %v2573_v10  ;;  %v2099_v3 = vsel %vm2056_vm12, %v10794_v12, %v10793_v44  ;;  %vm10796_vm12 = vmmov %vm10792_vm10 }
 0x38a   : > { %3752 = vrot.lane.b32.xlu0 %v9052_v11, %s6334_s23  ;;  %v9367_v11 = vpop.f32.mrf.mxu2  ;;  %v2142_v36 = vsel %vm2100_vm13, %v2099_v3, %v10795_v29  ;;  %v3407_v45 = vsel %vm10796_vm12, %v3404_v23, %v3406_v24 }
 0x38b   : > { %4033 = vrot.lane.b32.xlu2 %v9047_v46, %s6337_s15  ;;  %v1770_v58 = vpop.permute.xlu1 %1769  ;;  %v3405_v46 = vsel %vm10792_vm10, %v3402_v47, %v3404_v23  ;;  %v9387_v47 = vld [vmem:[%s10424_s7] ss:$0 sm:$0xff] }
 0x38c   : > { %v1431_v6 = vpop.permute.xlu0 %1430 }
 0x38d   : > { %v3829_v14 = vpop.permute.xlu2 %3828 }
 0x390   : > { %3754 = vrot.lane.b32.xlu1 %v9143_v52, %s6334_s23  ;;  %v2185_v52 = vsel %vm2143_vm5, %v2142_v36, %v1431_v6  ;;  %vm10799_vm5 = vcmask 916480  }
 0x391   : > { %v4923_v1 = vpop.f32.mrf.mxu1  ;;  %v2228_v26 = vsel %vm2186_vm6, %v2185_v52, %v1683_v32 }
 0x392   : > { %4035 = vrot.lane.b32.xlu0 %v9129_v5, %s6337_s15  ;;  %v4924_v19 = vadd.f32 %v9387_v47, %v4923_v1  ;;  %v9396_v41 = vpop.f32.mrf.mxu2  ;;  %v2271_v32 = vsel %vm2229_vm11, %v2228_v26, %v1770_v58  ;;  %vm10797_vm11 = vmmov %vm10792_vm10  ;;  %vm10805_vm10 = vsmask.f32 7424 }
 0x393   : > { %3501 = vrot.lane.b32.xlu2 %v3405_v46, %s6332_s21  ;;  %v3883_v5 = vpop.permute.xlu1 %3882 }
 0x394   : > { %v3743_v53 = vpop.permute.xlu0 %3742  ;;  %v5037_v51 = vadd.f32 %v9154_v25, %v4924_v19 }
 0x395   : > { %v1968_v4 = vpop.permute.xlu2 %1967  ;;  %v4239_v6 = vsel %vm2358_vm8, %v4197_v35, %v3743_v53  ;;  %v3409_v53 = vsel %vm10797_vm11, %v3406_v24, %v3408_v0  ;;  %vm10807_vm11 = vmmov %vm10799_vm5 }
 0x396   : > { %v5140_v44 = vmax.f32 %v5037_v51, 0.0  ;;  %v4282_v25 = vsel %vm4270_vm9, %v4239_v6, %v3829_v14  ;;  %v3273_v6 = vshll.u32 %v9369_v63, 16 }
 0x398   : > { %4037 = vrot.lane.b32.xlu1 %v9198_v54, %s6337_s15 }
 0x399   : > { %v4925_v34 = vpop.f32.mrf.mxu1 }
 0x39a   : > { %3503 = vrot.lane.b32.xlu0 %v3407_v45, %s6332_s21  ;;  %v4926_v20 = vadd.f32 %v9387_v47, %v4925_v34 }
 0x39b   : > { %3892 = vrot.lane.b32.xlu2 %v9134_v22, %s6336_s12  ;;  %v2055_v33 = vpop.permute.xlu1 %2054 }
 0x39c   : > { %v1824_v16 = vpop.permute.xlu0 %1823  ;;  %v5039_v10 = vadd.f32 %v9213_v55, %v4926_v20  ;;  %v9428_v55 = vld [vmem:[%s10422_s5] ss:$0 sm:$0xff] }
 0x39d   : > { %v2314_v2 = vsel %vm2272_vm7, %v2271_v32, %v1824_v16  ;;  %v3349_v31 = vpop.permute.xlu2 %3348  ;;  %v10800_v16 = vld [vmem:[#allocation38_spill] sm:$0xff] }
 0x39e   : > { %v2357_v54 = vsel %vm2315_vm4, %v2314_v2, %v1968_v4  ;;  %v5141_v12 = vmax.f32 %v5039_v10, 0.0  ;;  %v9431_v4 = vpop.f32.mrf.mxu2  ;;  %vm10798_vm4 = vcmask 785408   ;;  %vm10801_vm3 = vcmp.eq.s32.totalorder %v10800_v16, 1  ;;  %v9475_v16 = vld [vmem:[#allocation3 + $0x7c] sm:$0xff]  }
 0x39f   : > { %v2400_v58 = vsel %vm2358_vm8, %v2357_v54, %v2055_v33  ;;  %v4325_v52 = vsel %vm10798_vm4, %v4282_v25, %v3883_v5  ;;  %vm10806_vm12 = vmmov %vm10798_vm4 }
 0x3a0   : > { %v2574_v23 = vshrl.u32 %v2400_v58, 16  ;;  %v2577_v38 = vshll.u32 %v2400_v58, 16  ;;  %v2761_v29 = vpop.f32.mrf.mxu0  ;;  %3505 = vrot.lane.b32.xlu1 %v3409_v53, %s6332_s21  ;;  %v5181_v36 = vpack.c.bf16 %v5141_v12, %v5140_v44  ;;  %v6308_v58 = vld [vmem:[#allocation3 + $0x34] sm:$0xff]   ;;  %v3275_v12 = vrot.slane %v3273_v6, 1  ;;  %vm10808_vm4 = vmmov %vm10802_vm15 }
 0x3a1   : > { %v2762_v14 = vadd.f32 %v9428_v55, %v2761_v29 }
 0x3a2   : > { %v2576_v3 = vrot.slane %v2574_v23, 2  ;;  %v2579_v1 = vrot.slane %v2577_v38, 3  ;;  %3894 = vrot.lane.b32.xlu0 %v9175_v13, %s6336_s12  ;;  %5765 = vmatmul.msk.bf16.vlgmr.msra.gmra.mxu3 %vm2100_vm13, %v5181_v36  ;;  %v3281_v36 = vshll.u32 %v9399_v60, 16 }
 0x3a3   : > { %3444 = vrot.lane.b32.xlu2 %v3405_v46, %s6330_s19  ;;  %v2820_v27 = vmax.f32 %v2762_v14, 0.0  ;;  %v3494_v26 = vpop.permute.xlu1 %3493 }
 0x3a4   : > { %v2580_v9 = vor.u32 %v2579_v1, %v2576_v3  ;;  %v4026_v24 = vpop.permute.xlu0 %4025  ;;  %v10803_v1 = vld [vmem:[#allocation37_spill] sm:$0xff] }
 0x3a5   : > { %v4368_v46 = vsel %vm10799_vm5, %v4325_v52, %v4026_v24  ;;  %v3745_v19 = vpop.permute.xlu2 %3744  ;;  %v2861_v35 = vsel %vm10801_vm3, %v2820_v27, 0.0  ;;  %vm10804_vm0 = vcmp.eq.s32.totalorder %v10803_v1, 1  ;;  %vm10809_vm5 = vmmov %vm10805_vm10  ;;  %vm10810_vm3 = vcmask 1040384   ;;  %v6309_v1 = vld [vmem:[#allocation3 + $0x3c] sm:$0xff]  }
 0x3a6   : > { %v4504_v30 = vshrl.u32 %v4368_v46, 16  ;;  %v4507_v32 = vshll.u32 %v4368_v46, 16  ;;  %v2581_v34 = vsel %vm2414_vm2, %v9353_v8, %v2580_v9  ;;  %2902 = vst.msk [vmem:[%s7907_s29 + $0xf0] sm:$0xff] %vm2100_vm13, %v2861_v35  ;;  %v2955_v5 = vpack.c.bf16 %v2861_v35, %v2861_v35  ;;  %v9456_v3 = vpop.f32.mrf.mxu2 }
 0x3a7   : > { %5698 = vmatmul.msk.bf16.gmra.mxu0 %vm10802_vm15, %v2581_v34 }
 0x3a8   : > { %v4506_v51 = vrot.slane %v4504_v30, 2  ;;  %v4509_v20 = vrot.slane %v4507_v32, 3  ;;  %2996 = vst.msk [vmem:[#allocation3 + $0x88] sm:$0xf] %vm2912_vm14, %v2955_v5  ;;  %v2763_v2 = vpop.f32.mrf.mxu0  ;;  %3896 = vrot.lane.b32.xlu1 %v9245_v17, %s6336_s12  ;;  %v3277_v30 = vshrl.u32 %v9369_v63, 16  ;;  %v3283_v32 = vrot.slane %v3281_v36, 1 }
 0x3a9   : > { %v2764_v8 = vadd.f32 %v9428_v55, %v2763_v2  ;;  %v10811_v36 = vld [vmem:[#allocation28_spill] sm:$0xff] }
 0x3aa   : > { %3446 = vrot.lane.b32.xlu0 %v3407_v45, %s6330_s19  ;;  %v4510_v33 = vor.u32 %v4509_v20, %v4506_v51  ;;  %v4115_v45 = vsel %vm2100_vm13, %v6308_v58, %v3349_v31  ;;  %v3279_v35 = vor.u32 %v3277_v30, %v3275_v12  ;;  %vm10812_vm15 = vcmp.eq.s32.totalorder %v10811_v36, 1 }
 0x3ab   : > { %3840 = vrot.lane.b32.xlu2 %v9134_v22, %s6335_s11  ;;  %v2821_v23 = vmax.f32 %v2764_v8, 0.0  ;;  %v3885_v38 = vpop.permute.xlu1 %3884  ;;  %v3269_v22 = vshrl.u32 %v9330_v56, 16  ;;  %v3289_v8 = vshll.u32 %v9475_v16, 16 }
 0x3ac   : > { %v3435_v54 = vpop.permute.xlu0 %3434  ;;  %v4511_v10 = vsel %vm2414_vm2, %v9340_v43, %v4510_v33 }
 0x3ad   : > { %v4028_v44 = vpop.permute.xlu2 %4027  ;;  %4942 = vmatmul.bf16.gmra.mxu1 %v4511_v10  ;;  %v4157_v25 = vsel %vm2186_vm6, %v4115_v45, %v3435_v54  ;;  %v2862_v29 = vsel %vm10804_vm0, %v2821_v23, 0.0  ;;  %v3271_v14 = vor.u32 %v3269_v22, %v9351_v37  ;;  %v3285_v22 = vshrl.u32 %v9399_v60, 16  ;;  %vm10813_vm0 = vmmov %vm10809_vm5 }
 0x3ae   : > { %2903 = vst.msk [vmem:[%s7907_s29 + $0xf8] sm:$0xff] %vm2100_vm13, %v2862_v29  ;;  %v2956_v43 = vpack.c.bf16 %v2862_v29, %v2862_v29  ;;  %v4199_v31 = vsel %vm2272_vm7, %v4157_v25, %v3494_v26  ;;  %v9479_v51 = vpop.f32.mrf.mxu2 }
 0x3af   : > { %v3276_v52 = vsel %vm10805_vm10, %v3271_v14, %v3275_v12  ;;  %v4241_v27 = vsel %vm2358_vm8, %v4199_v31, %v3745_v19  ;;  %v3284_v19 = vsel %vm10809_vm5, %v3279_v35, %v3283_v32  ;;  %v9502_v12 = vrot.slane %v3289_v8, 1 }
 0x3b0   : > { %2997 = vst.msk [vmem:[#allocation3 + $0x8c] sm:$0xf] %vm2912_vm14, %v2956_v43  ;;  %3448 = vrot.lane.b32.xlu1 %v3409_v53, %s6330_s19  ;;  %v3287_v31 = vor.u32 %v3285_v22, %v3283_v32 }
 0x3b2   : > { %3842 = vrot.lane.b32.xlu0 %v9175_v13, %s6335_s11 }
 0x3b3   : > { %3360 = vrot.lane.b32.xlu2 %v3276_v52, %s6328_s30  ;;  %v3437_v46 = vpop.permute.xlu1 %3436 }
 0x3b4   : > { %v3831_v24 = vpop.permute.xlu0 %3830 }
 0x3b5   : > { %v4284_v37 = vsel %vm4270_vm9, %v4241_v27, %v3831_v24  ;;  %v3496_v26 = vpop.permute.xlu2 %3495 }
 0x3b6   : > { %v4327_v34 = vsel %vm10806_vm12, %v4284_v37, %v3885_v38  ;;  %v3292_v37 = vsel %vm10813_vm0, %v3287_v31, %v9502_v12  ;;  %vm10816_vm12 = vcmask 1046528  }
 0x3b7   : > { %v4370_v13 = vsel %vm10807_vm11, %v4327_v34, %v4028_v44  ;;  %5699 = vmatmul.msk.bf16.gmra.mxu0 %vm10808_vm4, %v2580_v9  ;;  %v9482_v20 = vld [vmem:[#allocation3 + $0x88] sm:$0xff]   ;;  %v9516_v34 = vpop.f32.mrf.mxu2  ;;  %vm10817_vm11 = vcmask 785408   ;;  %vm10818_vm4 = vcmask 916480   ;;  %vm10819_vm5 = vmmov %vm10816_vm12 }
 0x3b8   : > { %v4521_v53 = vshrl.u32 %v4370_v13, 16  ;;  %v4524_v5 = vshll.u32 %v4370_v13, 16  ;;  %v4087_v54 = vrot.slane %v9482_v20, 7  ;;  %3844 = vrot.lane.b32.xlu1 %v9245_v17, %s6335_s11  ;;  %vm10822_vm0 = vmmov %vm10819_vm5 }
 0x3b9   : > { %v2766_v10 = vpop.f32.mrf.mxu0 }
 0x3ba   : > { %3362 = vrot.lane.b32.xlu0 %v3284_v19, %s6328_s30  ;;  %v4523_v2 = vrot.slane %v4521_v53, 2  ;;  %v4526_v6 = vrot.slane %v4524_v5, 3  ;;  %v4088_v45 = vsel %vm10810_vm3, %v4085_v15, %v4087_v54  ;;  %v2767_v38 = vadd.f32 %v9428_v55, %v2766_v10  ;;  %v10814_v10 = vld [vmem:[#allocation40_spill] sm:$0xff] }
 0x3bb   : > { %3756 = vrot.lane.b32.xlu2 %v9202_v42, %s6334_s23  ;;  %v3833_v23 = vpop.permute.xlu1 %3832  ;;  %v4666_v25 = vshrl.u32 %v4088_v45, 16  ;;  %v4669_v42 = vshll.u32 %v4088_v45, 16  ;;  %v3410_v19 = vrot.slane %v9475_v16, 1  ;;  %vm10815_vm10 = vcmp.eq.s32.totalorder %v10814_v10, 1  ;;  %v9536_v45 = vld [vmem:[#allocation3 + $0x84] sm:$0xff]  }
 0x3bc   : > { %v3351_v9 = vpop.permute.xlu0 %3350  ;;  %v9491_v58 = vor.u32 %v4526_v6, %v4523_v2  ;;  %v2822_v43 = vmax.f32 %v2767_v38, 0.0  ;;  %v3679_v2 = vshrl.u32 %v9482_v20, 16  ;;  %vm10820_vm3 = vsmask.f32 1280 }
 0x3bd   : > { %v3887_v44 = vpop.permute.xlu2 %3886  ;;  %v4117_v29 = vsel %vm2100_vm13, %v6309_v1, %v3351_v9  ;;  %v4668_v15 = vrot.slane %v4666_v25, 2  ;;  %v4671_v14 = vrot.slane %v4669_v42, 3  ;;  %v3411_v25 = vsel %vm10816_vm12, %v3408_v0, %v3410_v19  ;;  %vm10824_vm12 = vmmov %vm10818_vm4 }
 0x3be   : > { %v4528_v17 = vsel %vm2414_vm2, %v4510_v33, %v9491_v58  ;;  %v2863_v52 = vsel %vm10812_vm15, %v2822_v43, 0.0  ;;  %v4159_v27 = vsel %vm2186_vm6, %v4117_v29, %v3437_v46  ;;  %vm10821_vm15 = vcmask 1040384  }
 0x3bf   : > { %4947 = vmatmul.bf16.gmra.mxu1 %v4528_v17  ;;  %v9507_v24 = vor.u32 %v4671_v14, %v4668_v15  ;;  %2904 = vst.msk [vmem:[%s7907_s29 + $0x100] sm:$0xff] %vm2100_vm13, %v2863_v52  ;;  %v2957_v33 = vpack.c.bf16 %v2863_v52, %v2863_v52  ;;  %v4201_v13 = vsel %vm2272_vm7, %v4159_v27, %v3496_v26  ;;  %v3977_v17 = vrot.slane %v3679_v2, 6  ;;  %v9559_v14 = vpop.f32.mrf.mxu2 }
 0x3c0   : > { %v4928_v30 = vpop.f32.mrf.mxu1  ;;  %3364 = vrot.lane.b32.xlu1 %v3292_v37, %s6328_s30 }
 0x3c1   : > { %v4673_v46 = vsel %vm2414_vm2, %v9190_v50, %v9507_v24  ;;  %2998 = vst.msk [vmem:[#allocation3 + $0x90] sm:$0xf] %vm2912_vm14, %v2957_v33  ;;  %v3682_v50 = vshll.u32 %v9482_v20, 16  ;;  %v4929_v6 = vadd.f32 %v9387_v47, %v4928_v30 }
 0x3c2   : > { %3758 = vrot.lane.b32.xlu0 %v9267_v40, %s6334_s23  ;;  %v2768_v40 = vpop.f32.mrf.mxu0  ;;  %5753 = vmatmul.msk.bf16.gmra.mxu2 %vm2100_vm13, %v4673_v46 }
 0x3c3   : > { %4039 = vrot.lane.b32.xlu2 %v9261_v49, %s6337_s15  ;;  %v3353_v35 = vpop.permute.xlu1 %3352  ;;  %v2769_v53 = vadd.f32 %v9428_v55, %v2768_v40  ;;  %v5042_v22 = vadd.f32 %v9367_v11, %v4929_v6  ;;  %v3412_v11 = vrot.slane %v9536_v45, 1 }
 0x3c4   : > { %v3747_v32 = vpop.permute.xlu0 %3746 }
 0x3c5   : > { %v3439_v5 = vpop.permute.xlu2 %3438  ;;  %v4243_v49 = vsel %vm2358_vm8, %v4201_v13, %v3747_v32  ;;  %v2823_v8 = vmax.f32 %v2769_v53, 0.0  ;;  %v5142_v52 = vmax.f32 %v5042_v22, 0.0 }
 0x3c6   : > { %v4286_v9 = vsel %vm4270_vm9, %v4243_v49, %v3833_v23  ;;  %v3978_v23 = vrot.slane %v3682_v50, 7 }
 0x3c7   : > { %v2864_v26 = vsel %vm10815_vm10, %v2823_v8, 0.0  ;;  %vm10823_vm10 = vmmov %vm10817_vm11 }
 0x3c8   : > { %2905 = vst.msk [vmem:[%s7907_s29 + $0x108] sm:$0xff] %vm2100_vm13, %v2864_v26  ;;  %v2958_v38 = vpack.c.bf16 %v2864_v26, %v2864_v26  ;;  %v4930_v42 = vpop.f32.mrf.mxu1  ;;  %3760 = vrot.lane.b32.xlu1 %v9301_v59, %s6334_s23  ;;  %v9561_v59 = vor.u32 %v3978_v23, %v3977_v17  ;;  %v9569_v13 = vld [vmem:[#allocation3 + $0x8c] sm:$0xff]   ;;  %v9589_v17 = vpop.f32.mrf.mxu2 }
 0x3c9   : > { %v4931_v60 = vadd.f32 %v9387_v47, %v4930_v42  ;;  %v3414_v26 = vrot.slane %v9569_v13, 1 }
 0x3ca   : > { %4041 = vrot.lane.b32.xlu0 %v9297_v61, %s6337_s15  ;;  %2999 = vst.msk [vmem:[#allocation3 + $0x94] sm:$0xf] %vm2912_vm14, %v2958_v38  ;;  %v4329_v61 = vsel %vm10817_vm11, %v4286_v9, %v3887_v44  ;;  %v3413_v44 = vsel %vm10819_vm5, %v3410_v19, %v3412_v11  ;;  %v3980_v32 = vsel %vm10820_vm3, %v9287_v57, %v9561_v59  ;;  %v3806_v9 = vrot.slane %v9482_v20, 6  ;;  %vm10828_vm5 = vmmov %vm10823_vm10 }
 0x3cb   : > { %3507 = vrot.lane.b32.xlu2 %v3411_v25, %s6332_s21  ;;  %v5044_v1 = vadd.f32 %v9396_v41, %v4931_v60  ;;  %v3749_v43 = vpop.permute.xlu1 %3748  ;;  %v6310_v41 = vld [vmem:[#allocation3 + $0x44] sm:$0xff]   ;;  %vm10829_vm3 = vmmov %vm10824_vm12 }
 0x3cc   : > { %v4030_v0 = vpop.permute.xlu0 %4029  ;;  %v4119_v46 = vsel %vm2100_vm13, %v6310_v41, %v3353_v35  ;;  %v3807_v23 = vsel %vm1687_vm1, %v3804_v28, %v3806_v9 }
 0x3cd   : > { %v4372_v29 = vsel %vm10818_vm4, %v4329_v61, %v4030_v0  ;;  %v3835_v15 = vpop.permute.xlu2 %3834  ;;  %v5143_v27 = vmax.f32 %v5044_v1, 0.0  ;;  %v4161_v57 = vsel %vm2186_vm6, %v4119_v46, %v3439_v5  ;;  %v3415_v0 = vsel %vm10822_vm0, %v3412_v11, %v3414_v26 }
 0x3ce   : > { %v4538_v31 = vshrl.u32 %v4372_v29, 16  ;;  %v4541_v36 = vshll.u32 %v4372_v29, 16  ;;  %vm10827_vm4 = vsmask.f32 7424  ;;  %vm10832_vm0 = vsmask.f32 2304 }
 0x3cf   : > { %v5182_v30 = vpack.c.bf16 %v5143_v27, %v5142_v52 }
 0x3d0   : > { %v4540_v33 = vrot.slane %v4538_v31, 2  ;;  %v4543_v37 = vrot.slane %v4541_v36, 3  ;;  %4043 = vrot.lane.b32.xlu1 %v3980_v32, %s6337_s15 }
 0x3d1   : > { %v9574_v53 = vld [vmem:[#allocation3 + $0x90] sm:$0xff]   ;;  %5766 = vmatmul.msk.bf16.gmra.mxu3 %vm2100_vm13, %v5182_v30  ;;  %v3297_v30 = vshll.u32 %v9536_v45, 16 }
 0x3d2   : > { %3509 = vrot.lane.b32.xlu0 %v3413_v44, %s6332_s21  ;;  %v4544_v40 = vor.u32 %v4543_v37, %v4540_v33  ;;  %v4089_v19 = vrot.slane %v9574_v53, 7  ;;  %v9612_v37 = vpop.f32.mrf.mxu2 }
 0x3d3   : > { %3898 = vrot.lane.b32.xlu2 %v9282_v39, %s6336_s12  ;;  %v4032_v6 = vpop.permute.xlu1 %4031 }
 0x3d4   : > { %v3498_v49 = vpop.permute.xlu0 %3497  ;;  %v4545_v35 = vsel %vm2414_vm2, %v9491_v58, %v4544_v40  ;;  %v4090_v38 = vsel %vm10821_vm15, %v4087_v54, %v4089_v19 }
 0x3d5   : > { %v3355_v8 = vpop.permute.xlu2 %3354  ;;  %4952 = vmatmul.bf16.gmra.mxu1 %v4545_v35  ;;  %v4203_v10 = vsel %vm2272_vm7, %v4161_v57, %v3498_v49  ;;  %v4683_v58 = vshrl.u32 %v4090_v38, 16  ;;  %v4686_v42 = vshll.u32 %v4090_v38, 16  ;;  %v3293_v35 = vshrl.u32 %v9475_v16, 16 }
 0x3d6   : > { %v4245_v5 = vsel %vm2358_vm8, %v4203_v10, %v3749_v43  ;;  %v4121_v57 = vsel %vm2100_vm13, %v9124_v62, %v3355_v8  ;;  %v10825_v62 = vld [vmem:[#allocation39_spill] sm:$0xff]  ;;  %v3681_v8 = vrot.slane %v3679_v2, 5 }
 0x3d7   : > { %v4685_v22 = vrot.slane %v4683_v58, 2  ;;  %v4688_v60 = vrot.slane %v4686_v42, 3  ;;  %v4288_v1 = vsel %vm4270_vm9, %v4245_v5, %v3835_v15  ;;  %v3299_v5 = vrot.slane %v3297_v30, 1 }
 0x3d8   : > { %3511 = vrot.lane.b32.xlu1 %v3415_v0, %s6332_s21  ;;  %vm10826_vm11 = vcmp.eq.s32.totalorder %v10825_v62, 1 }
 0x3d9   : > { %v9601_v54 = vor.u32 %v4688_v60, %v4685_v22  ;;  %v4933_v18 = vpop.f32.mrf.mxu1  ;;  %v3295_v22 = vor.u32 %v3293_v35, %v9502_v12  ;;  %v3684_v60 = vrot.slane %v3682_v50, 6 }
 0x3da   : > { %3900 = vrot.lane.b32.xlu0 %v3807_v23, %s6336_s12  ;;  %v4934_v15 = vadd.f32 %v9387_v47, %v4933_v18  ;;  %v9653_v50 = vpop.f32.mrf.mxu2 }
 0x3db   : > { %3450 = vrot.lane.b32.xlu2 %v3411_v25, %s6330_s19  ;;  %v3500_v29 = vpop.permute.xlu1 %3499  ;;  %v4690_v31 = vsel %vm2414_vm2, %v9507_v24, %v9601_v54  ;;  %v3808_v25 = vrot.slane %v9574_v53, 6  ;;  %v3300_v12 = vsel %vm10827_vm4, %v3295_v22, %v3299_v5 }
 0x3dc   : > { %v3889_v61 = vpop.permute.xlu0 %3888  ;;  %5754 = vmatmul.msk.bf16.gmra.mxu2 %vm2100_vm13, %v4690_v31 }
 0x3dd   : > { %v4331_v28 = vsel %vm10823_vm10, %v4288_v1, %v3889_v61  ;;  %v3751_v43 = vpop.permute.xlu2 %3750  ;;  %v9618_v24 = vsel %vm1687_vm1, %v3806_v9, %v3808_v25  ;;  %vm10833_vm10 = vmmov %vm10827_vm4 }
 0x3de   : > { %v4374_v11 = vsel %vm10824_vm12, %v4331_v28, %v4032_v6  ;;  %v5047_v6 = vadd.f32 %v9431_v4, %v4934_v15  ;;  %v3691_v15 = vshll.u32 %v9574_v53, 16  ;;  %vm10834_vm12 = vmmov %vm10832_vm0 }
 0x3df   : > { %v4555_v36 = vshrl.u32 %v4374_v11, 16  ;;  %v4558_v52 = vshll.u32 %v4374_v11, 16  ;;  %v2771_v41 = vpop.f32.mrf.mxu0  ;;  %v3685_v11 = vor.u32 %v3684_v60, %v3681_v8 }
 0x3e0   : > { %3902 = vrot.lane.b32.xlu1 %v9618_v24, %s6336_s12  ;;  %v2772_v32 = vadd.f32 %v9428_v55, %v2771_v41  ;;  %v5144_v61 = vmax.f32 %v5047_v6, 0.0 }
 0x3e1   : > { %v4557_v27 = vrot.slane %v4555_v36, 2  ;;  %v4560_v33 = vrot.slane %v4558_v52, 3  ;;  %v3301_v36 = vshrl.u32 %v9536_v45, 16 }
 0x3e2   : > { %3452 = vrot.lane.b32.xlu0 %v3413_v44, %s6330_s19  ;;  %v4935_v44 = vpop.f32.mrf.mxu1  ;;  %v2824_v58 = vmax.f32 %v2772_v32, 0.0 }
 0x3e3   : > { %3846 = vrot.lane.b32.xlu2 %v9282_v39, %s6335_s11  ;;  %v9625_v46 = vor.u32 %v4560_v33, %v4557_v27  ;;  %v3891_v9 = vpop.permute.xlu1 %3890  ;;  %v4936_v39 = vadd.f32 %v9387_v47, %v4935_v44  ;;  %v3688_v33 = vshrl.u32 %v9574_v53, 16  ;;  %v3303_v32 = vor.u32 %v3301_v36, %v3299_v5 }
 0x3e4   : > { %v3441_v49 = vpop.permute.xlu0 %3440  ;;  %v2865_v4 = vsel %vm10826_vm11, %v2824_v58, 0.0  ;;  %v3693_v58 = vrot.slane %v3691_v15, 6  ;;  %v3982_v5 = vrot.slane %v3691_v15, 7  ;;  %vm10835_vm11 = vsmask.f32 1280 }
 0x3e5   : > { %v4034_v10 = vpop.permute.xlu2 %4033  ;;  %v4562_v38 = vsel %vm2414_vm2, %v4544_v40, %v9625_v46  ;;  %v4163_v42 = vsel %vm2186_vm6, %v4121_v57, %v3441_v49  ;;  %v5049_v16 = vadd.f32 %v9456_v3, %v4936_v39  ;;  %v3305_v40 = vshll.u32 %v9569_v13, 16  ;;  %2906 = vst.msk [vmem:[%s7907_s29 + $0x110] sm:$0xff] %vm2100_vm13, %v2865_v4  ;;  %v10830_v49 = vld [vmem:[#allocation31_spill] sm:$0xff] }
 0x3e6   : > { %4957 = vmatmul.bf16.gmra.mxu1 %v4562_v38  ;;  %v2959_v1 = vpack.c.bf16 %v2865_v4, %v2865_v4  ;;  %v4205_v18 = vsel %vm2272_vm7, %v4163_v42, %v3500_v29  ;;  %vm10831_vm15 = vcmp.eq.s32.totalorder %v10830_v49, 1  ;;  %v3686_v57 = vsel %vm10832_vm0, %v9289_v7, %v3685_v11 }
 0x3e7   : > { %v5145_v3 = vmax.f32 %v5049_v16, 0.0  ;;  %v2773_v20 = vpop.f32.mrf.mxu0  ;;  %v4247_v29 = vsel %vm2358_vm8, %v4205_v18, %v3751_v43  ;;  %v3690_v38 = vrot.slane %v3688_v33, 5  ;;  %v3981_v42 = vrot.slane %v3688_v33, 6 }
 0x3e8   : > { %3000 = vst.msk [vmem:[#allocation3 + $0x98] sm:$0xf] %vm2912_vm14, %v2959_v1  ;;  %3454 = vrot.lane.b32.xlu1 %v3415_v0, %s6330_s19  ;;  %v2774_v28 = vadd.f32 %v9428_v55, %v2773_v20  ;;  %v3307_v0 = vrot.slane %v3305_v40, 1  ;;  %v9681_v40 = vpop.f32.mrf.mxu2  ;;  %v3309_v18 = vshrl.u32 %v9569_v13, 16 }
 0x3e9   : > { %v5183_v2 = vpack.c.bf16 %v5145_v3, %v5144_v61  ;;  %v3694_v60 = vor.u32 %v3693_v58, %v3690_v38  ;;  %v3983_v1 = vor.u32 %v3982_v5, %v3981_v42 }
 0x3ea   : > { %3848 = vrot.lane.b32.xlu0 %v3807_v23, %s6335_s11  ;;  %v2825_v30 = vmax.f32 %v2774_v28, 0.0  ;;  %v3308_v39 = vsel %vm10833_vm10, %v3303_v32, %v3307_v0  ;;  %vm10839_vm10 = vcmask 785408  }
 0x3eb   : > { %3366 = vrot.lane.b32.xlu2 %v3300_v12, %s6328_s30  ;;  %v3443_v52 = vpop.permute.xlu1 %3442  ;;  %5767 = vmatmul.msk.bf16.gmra.mxu3 %vm2100_vm13, %v5183_v2  ;;  %v3311_v12 = vor.u32 %v3309_v18, %v3307_v0  ;;  %v3695_v20 = vsel %vm10834_vm12, %v3685_v11, %v3694_v60  ;;  %v3984_v28 = vsel %vm10835_vm11, %v9561_v59, %v3983_v1  ;;  %vm10840_vm12 = vcmask 916480  }
 0x3ec   : > { %v3837_v31 = vpop.permute.xlu0 %3836  ;;  %v2866_v45 = vsel %vm10831_vm15, %v2825_v30, 0.0  ;;  %vm10838_vm15 = vcmask 1046528  }
 0x3ed   : > { %v4290_v23 = vsel %vm4270_vm9, %v4247_v29, %v3837_v31  ;;  %v3502_v27 = vpop.permute.xlu2 %3501  ;;  %2907 = vst.msk [vmem:[%s7907_s29 + $0x118] sm:$0xff] %vm2100_vm13, %v2866_v45  ;;  %v2960_v6 = vpack.c.bf16 %v2866_v45, %v2866_v45 }
 0x3ee   : > { %v4333_v41 = vsel %vm10828_vm5, %v4290_v23, %v3891_v9  ;;  %vm10836_vm5 = vcmask 1040384  }
 0x3ef   : > { %v4376_v43 = vsel %vm10829_vm3, %v4333_v41, %v4034_v10  ;;  %v9672_v16 = vld [vmem:[#allocation3 + $0x94] sm:$0xff]   ;;  %3001 = vst.msk [vmem:[#allocation3 + $0x9c] sm:$0xf] %vm2912_vm14, %v2960_v6  ;;  %vm10837_vm3 = vmmov %vm10835_vm11 }
 0x3f0   : > { %v4572_v44 = vshrl.u32 %v4376_v43, 16  ;;  %v4575_v35 = vshll.u32 %v4376_v43, 16  ;;  %3850 = vrot.lane.b32.xlu1 %v9618_v24, %s6335_s11  ;;  %v3313_v62 = vshll.u32 %v9672_v16, 16  ;;  %v3416_v41 = vrot.slane %v9672_v16, 1 }
 0x3f2   : > { %3368 = vrot.lane.b32.xlu0 %v3308_v39, %s6328_s30  ;;  %v4574_v9 = vrot.slane %v4572_v44, 2  ;;  %v4577_v10 = vrot.slane %v4575_v35, 3  ;;  %v9687_v3 = vrot.slane %v3313_v62, 1 }
 0x3f3   : > { %3762 = vrot.lane.b32.xlu2 %v3686_v57, %s6334_s23  ;;  %v3839_v4 = vpop.permute.xlu1 %3838 }
 0x3f4   : > { %v3357_v7 = vpop.permute.xlu0 %3356  ;;  %v9678_v22 = vor.u32 %v4577_v10, %v4574_v9 }
 0x3f5   : > { %v3893_v8 = vpop.permute.xlu2 %3892  ;;  %v4123_v24 = vsel %vm2100_vm13, %v9217_v48, %v3357_v7 }
 0x3f6   : > { %v4579_v61 = vsel %vm2414_vm2, %v9625_v46, %v9678_v22  ;;  %v4165_v2 = vsel %vm2186_vm6, %v4123_v24, %v3443_v52  ;;  %v3316_v46 = vsel %vm10827_vm4, %v3311_v12, %v9687_v3  ;;  %v9698_v31 = vld [vmem:[#allocation3 + $0x98] sm:$0xff]   ;;  %vm10843_vm4 = vmmov %vm10839_vm10 }
 0x3f7   : > { %4962 = vmatmul.bf16.gmra.mxu1 %v4579_v61  ;;  %v3697_v48 = vshrl.u32 %v9698_v31, 16  ;;  %v3700_v29 = vshll.u32 %v9698_v31, 16  ;;  %v4091_v11 = vrot.slane %v9698_v31, 7  ;;  %v4207_v59 = vsel %vm2272_vm7, %v4165_v2, %v3502_v27  ;;  %v9715_v27 = vpop.f32.mrf.mxu2 }
 0x3f8   : > { %3370 = vrot.lane.b32.xlu1 %v3316_v46, %s6328_s30  ;;  %v3810_v61 = vrot.slane %v9698_v31, 6 }
 0x3f9   : > { %v3985_v0 = vrot.slane %v3697_v48, 6  ;;  %v3986_v33 = vrot.slane %v3700_v29, 7  ;;  %v3699_v15 = vrot.slane %v3697_v48, 5  ;;  %v3702_v43 = vrot.slane %v3700_v29, 6 }
 0x3fa   : > { %3764 = vrot.lane.b32.xlu0 %v3695_v20, %s6334_s23  ;;  %v4092_v32 = vsel %vm10836_vm5, %v4089_v19, %v4091_v11  ;;  %v3417_v19 = vsel %vm10838_vm15, %v3414_v26, %v3416_v41  ;;  %v3811_v20 = vsel %vm1687_vm1, %v3808_v25, %v3810_v61  ;;  %vm10844_vm5 = vmmov %vm10840_vm12  ;;  %vm2923_vm15 = vcmask 123904  }
 0x3fb   : > { %4045 = vrot.lane.b32.xlu2 %v3984_v28, %s6337_s15  ;;  %v3359_v23 = vpop.permute.xlu1 %3358  ;;  %v9713_v49 = vor.u32 %v3986_v33, %v3985_v0  ;;  %v4700_v45 = vshrl.u32 %v4092_v32, 16  ;;  %v9717_v44 = vor.u32 %v3702_v43, %v3699_v15  ;;  %v4703_v35 = vshll.u32 %v4092_v32, 16  ;;  %v10841_v15 = vld [vmem:[#allocation42_spill] sm:$0xff] }
 0x3fc   : > { %v3753_v36 = vpop.permute.xlu0 %3752  ;;  %v4125_v12 = vsel %vm2100_vm13, %v9248_v21, %v3359_v23  ;;  %vm10842_vm11 = vcmp.eq.s32.totalorder %v10841_v15, 1 }
 0x3fd   : > { %v3445_v52 = vpop.permute.xlu2 %3444  ;;  %v4249_v30 = vsel %vm2358_vm8, %v4207_v59, %v3753_v36  ;;  %v3988_v6 = vsel %vm10837_vm3, %v3983_v1, %v9713_v49  ;;  %v4702_v39 = vrot.slane %v4700_v45, 2  ;;  %v3704_v38 = vsel %vm10832_vm0, %v3694_v60, %v9717_v44 }
 0x3fe   : > { %v4292_v57 = vsel %vm4270_vm9, %v4249_v30, %v3839_v4  ;;  %v4705_v58 = vrot.slane %v4703_v35, 3  ;;  %v4167_v53 = vsel %vm2186_vm6, %v4125_v12, %v3445_v52  ;;  %vm10847_vm0 = vcmask 1046528  }
 0x3ff   : > { %v4335_v42 = vsel %vm10839_vm10, %v4292_v57, %v3893_v8  ;;  %v9742_v24 = vpop.f32.mrf.mxu2  ;;  %vm10848_vm10 = vsmask.f32 7424 }
 0x400   : > { %3766 = vrot.lane.b32.xlu1 %v3704_v38, %s6334_s23  ;;  %v9733_v5 = vor.u32 %v4705_v58, %v4702_v39 }
 0x401   : > { %v4938_v9 = vpop.f32.mrf.mxu1 }
 0x402   : > { %4047 = vrot.lane.b32.xlu0 %v3988_v6, %s6337_s15  ;;  %v4707_v60 = vsel %vm2414_vm2, %v9601_v54, %v9733_v5  ;;  %v4939_v1 = vadd.f32 %v9387_v47, %v4938_v9 }
 0x403   : > { %3513 = vrot.lane.b32.xlu2 %v3417_v19, %s6332_s21  ;;  %v3755_v7 = vpop.permute.xlu1 %3754  ;;  %5755 = vmatmul.msk.bf16.gmra.mxu2 %vm2100_vm13, %v4707_v60 }
 0x404   : > { %v4036_v10 = vpop.permute.xlu0 %4035  ;;  %v5052_v48 = vadd.f32 %v9479_v51, %v4939_v1 }
 0x405   : > { %v4378_v13 = vsel %vm10840_vm12, %v4335_v42, %v4036_v10  ;;  %v3841_v26 = vpop.permute.xlu2 %3840  ;;  %v10845_v42 = vld [vmem:[#allocation41_spill] sm:$0xff]  ;;  %vm10849_vm12 = vcmask 1040384  }
 0x406   : > { %v4589_v62 = vshrl.u32 %v4378_v13, 16  ;;  %v4592_v4 = vshll.u32 %v4378_v13, 16  ;;  %v2776_v54 = vpop.f32.mrf.mxu0  ;;  %v5146_v51 = vmax.f32 %v5052_v48, 0.0  ;;  %vm10846_vm3 = vcmp.eq.s32.totalorder %v10845_v42, 1 }
 0x407   : > { %v2777_v28 = vadd.f32 %v9428_v55, %v2776_v54  ;;  %v9768_v35 = vpop.f32.mrf.mxu2 }
 0x408   : > { %v4591_v18 = vrot.slane %v4589_v62, 2  ;;  %v4594_v8 = vrot.slane %v4592_v4, 3 }
 0x409   : > { %v4940_v46 = vpop.f32.mrf.mxu1  ;;  %v2826_v59 = vmax.f32 %v2777_v28, 0.0  ;;  %v3317_v28 = vshrl.u32 %v9672_v16, 16 }
 0x40a   : > { %v4595_v2 = vor.u32 %v4594_v8, %v4591_v18  ;;  %v4941_v29 = vadd.f32 %v9387_v47, %v4940_v46 }
 0x40b   : > { %3904 = vrot.lane.b32.xlu2 %v3811_v20, %s6336_s12  ;;  %v4038_v25 = vpop.permute.xlu1 %4037  ;;  %v2867_v30 = vsel %vm10842_vm11, %v2826_v59, 0.0  ;;  %vm10850_vm11 = vmmov %vm10843_vm4 }
 0x40c   : > { %v3504_v36 = vpop.permute.xlu0 %3503  ;;  %v4596_v21 = vsel %vm2414_vm2, %v9678_v22, %v4595_v2  ;;  %v5054_v0 = vadd.f32 %v9516_v34, %v4941_v29  ;;  %2908 = vst.msk [vmem:[%s7907_s29 + $0x120] sm:$0xff] %vm2100_vm13, %v2867_v30  ;;  %v2961_v43 = vpack.c.bf16 %v2867_v30, %v2867_v30 }
 0x40d   : > { %v3361_v23 = vpop.permute.xlu2 %3360  ;;  %4967 = vmatmul.bf16.gmra.mxu1 %v4596_v21  ;;  %v4209_v33 = vsel %vm2272_vm7, %v4167_v53, %v3504_v36  ;;  %v3319_v53 = vor.u32 %v3317_v28, %v9687_v3 }
 0x40e   : > { %v5147_v32 = vmax.f32 %v5054_v0, 0.0  ;;  %v4251_v22 = vsel %vm2358_vm8, %v4209_v33, %v3755_v7  ;;  %3002 = vst.msk [vmem:[#allocation3 + $0xa0] sm:$0xf] %vm2912_vm14, %v2961_v43  ;;  %v2778_v52 = vpop.f32.mrf.mxu0  ;;  %v4127_v12 = vsel %vm2100_vm13, %v9330_v56, %v3361_v23 }
 0x40f   : > { %v2779_v34 = vadd.f32 %v9428_v55, %v2778_v52  ;;  %v4294_v6 = vsel %vm4270_vm9, %v4251_v22, %v3841_v26  ;;  %v9801_v56 = vpop.f32.mrf.mxu2 }
 0x410   : > { %v5184_v45 = vpack.c.bf16 %v5147_v32, %v5146_v51 }
 0x411   : > { %v2827_v39 = vmax.f32 %v2779_v34, 0.0 }
 0x412   : > { %5768 = vmatmul.msk.bf16.gmra.mxu3 %vm2100_vm13, %v5184_v45 }
 0x413   : > { %3456 = vrot.lane.b32.xlu2 %v3417_v19, %s6330_s19  ;;  %v3506_v58 = vpop.permute.xlu1 %3505  ;;  %v2868_v13 = vsel %vm10846_vm3, %v2827_v39, 0.0 }
 0x414   : > { %v3895_v57 = vpop.permute.xlu0 %3894  ;;  %2909 = vst.msk [vmem:[%s7907_s29 + $0x128] sm:$0xff] %vm2100_vm13, %v2868_v13  ;;  %v2962_v62 = vpack.c.bf16 %v2868_v13, %v2868_v13 }
 0x415   : > { %v4337_v38 = vsel %vm10843_vm4, %v4294_v6, %v3895_v57  ;;  %v3757_v9 = vpop.permute.xlu2 %3756  ;;  %v9778_v26 = vld [vmem:[#allocation3 + $0x9c] sm:$0xff]   ;;  %vm10851_vm4 = vmmov %vm10844_vm5 }
 0x416   : > { %v4380_v10 = vsel %vm10844_vm5, %v4337_v38, %v4038_v25  ;;  %3003 = vst.msk [vmem:[#allocation3 + $0xa4] sm:$0xf] %vm2912_vm14, %v2962_v62  ;;  %v9785_v18 = vrot.slane %v9778_v26, 1  ;;  %v3321_v8 = vshll.u32 %v9778_v26, 16  ;;  %vm10852_vm5 = vsmask.f32 1280 }
 0x417   : > { %v4606_v19 = vshrl.u32 %v4380_v10, 16  ;;  %v4609_v7 = vshll.u32 %v4380_v10, 16  ;;  %v10853_v62 = vld [vmem:[#allocation34_spill] sm:$0xff] }
 0x418   : > { %v3419_v36 = vsel %vm10847_vm0, %v3416_v41, %v9785_v18  ;;  %v9798_v21 = vrot.slane %v3321_v8, 1  ;;  %vm10854_vm3 = vcmp.eq.s32.totalorder %v10853_v62, 1  ;;  %vm10855_vm0 = vsmask.f32 2304 }
 0x419   : > { %v4608_v4 = vrot.slane %v4606_v19, 2  ;;  %v4611_v60 = vrot.slane %v4609_v7, 3  ;;  %3515 = vrot.lane.b32.xlu0 %v3419_v36, %s6332_s21  ;;  %v9840_v7 = vpop.f32.mrf.mxu2 }
 0x41a   : > { %v3324_v25 = vsel %vm10848_vm10, %v3319_v53, %v9798_v21 }
 0x41b   : > { %3852 = vrot.lane.b32.xlu2 %v3811_v20, %s6335_s11  ;;  %v9782_v1 = vor.u32 %v4611_v60, %v4608_v4  ;;  %v3897_v48 = vpop.permute.xlu1 %3896 }
 0x41c   : > { %v3447_v54 = vpop.permute.xlu0 %3446 }
 0x41d   : > { %v4169_v46 = vsel %vm2186_vm6, %v4127_v12, %v3447_v54  ;;  %v4040_v29 = vpop.permute.xlu2 %4039  ;;  %v4613_v20 = vsel %vm2414_vm2, %v4595_v2, %v9782_v1  ;;  %v9807_v2 = vld [vmem:[#allocation3 + $0xa0] sm:$0xff]  }
 0x41e   : > { %4972 = vmatmul.bf16.gmra.mxu1 %v4613_v20  ;;  %v4211_v59 = vsel %vm2272_vm7, %v4169_v46, %v3506_v58  ;;  %v3812_v16 = vrot.slane %v9807_v2, 6  ;;  %v3706_v41 = vshrl.u32 %v9807_v2, 16  ;;  %v3709_v23 = vshll.u32 %v9807_v2, 16 }
 0x41f   : > { %v4093_v0 = vrot.slane %v9807_v2, 7  ;;  %v4253_v33 = vsel %vm2358_vm8, %v4211_v59, %v3757_v9 }
 0x420   : > { %v9820_v30 = vsel %vm1687_vm1, %v3810_v61, %v3812_v16  ;;  %v3989_v51 = vrot.slane %v3706_v41, 6  ;;  %v3990_v43 = vrot.slane %v3709_v23, 7  ;;  %v3708_v32 = vrot.slane %v3706_v41, 5 }
 0x421   : > { %v3711_v57 = vrot.slane %v3709_v23, 6  ;;  %v4094_v6 = vsel %vm10849_vm12, %v4091_v11, %v4093_v0  ;;  %3906 = vrot.lane.b32.xlu0 %v9820_v30, %s6336_s12  ;;  %vm2918_vm12 = vcmask 125954  }
 0x422   : > { %v9832_v61 = vor.u32 %v3990_v43, %v3989_v51  ;;  %v4717_v38 = vshrl.u32 %v4094_v6, 16  ;;  %v4720_v58 = vshll.u32 %v4094_v6, 16  ;;  %v10856_v51 = vld [vmem:[#allocation44_spill] sm:$0xff] }
 0x423   : > { %3372 = vrot.lane.b32.xlu2 %v3324_v25, %s6328_s30  ;;  %v3449_v52 = vpop.permute.xlu1 %3448  ;;  %v9835_v42 = vor.u32 %v3711_v57, %v3708_v32  ;;  %vm10857_vm10 = vcmp.eq.s32.totalorder %v10856_v51, 1  ;;  %v9873_v32 = vpop.f32.mrf.mxu2 }
 0x424   : > { %v3843_v3 = vpop.permute.xlu0 %3842  ;;  %v2781_v15 = vpop.f32.mrf.mxu0  ;;  %v3992_v31 = vsel %vm10852_vm5, %v9713_v49, %v9832_v61  ;;  %v4719_v11 = vrot.slane %v4717_v38, 2  ;;  %v4722_v60 = vrot.slane %v4720_v58, 3  ;;  %vm10862_vm5 = vsmask.f32 7424 }
 0x425   : > { %v4296_v22 = vsel %vm4270_vm9, %v4253_v33, %v3843_v3  ;;  %v2782_v45 = vadd.f32 %v9428_v55, %v2781_v15  ;;  %v3508_v34 = vpop.permute.xlu2 %3507  ;;  %4049 = vrot.lane.b32.xlu1 %v3992_v31, %s6337_s15  ;;  %v3713_v12 = vsel %vm10855_vm0, %v9717_v44, %v9835_v42  ;;  %vm10866_vm0 = vcmask 1046528  }
 0x426   : > { %v4339_v39 = vsel %vm10850_vm11, %v4296_v22, %v3897_v48  ;;  %v9851_v49 = vor.u32 %v4722_v60, %v4719_v11  ;;  %v10859_v60 = vld [vmem:[#allocation43_spill] sm:$0xff] }
 0x427   : > { %v4382_v9 = vsel %vm10851_vm4, %v4339_v39, %v4040_v29  ;;  %v2828_v10 = vmax.f32 %v2782_v45, 0.0  ;;  %v9886_v39 = vunpack.c.h.b16 %v9807_v2  ;;  %vm10860_vm11 = vcmp.eq.s32.totalorder %v10859_v60, 1 }
 0x428   : > { %v4623_v13 = vshrl.u32 %v4382_v9, 16  ;;  %v4626_v19 = vshll.u32 %v4382_v9, 16  ;;  %v4724_v44 = vsel %vm2414_vm2, %v9733_v5, %v9851_v49  ;;  %vm10861_vm4 = vcmask 785408  }
 0x429   : > { %v2869_v4 = vsel %vm10854_vm3, %v2828_v10, 0.0  ;;  %5756 = vmatmul.msk.bf16.gmra.mxu2 %vm2100_vm13, %v4724_v44  ;;  %3458 = vrot.lane.b32.xlu0 %v3419_v36, %s6330_s19  ;;  %vm10865_vm3 = vsmask.f32 1280 }
 0x42a   : > { %2910 = vst.msk [vmem:[%s7907_s29 + $0x130] sm:$0xff] %vm2100_vm13, %v2869_v4  ;;  %v2963_v8 = vpack.c.bf16 %v2869_v4, %v2869_v4  ;;  %v4943_v54 = vpop.f32.mrf.mxu1  ;;  %v4625_v28 = vrot.slane %v4623_v13, 2  ;;  %v4628_v46 = vrot.slane %v4626_v19, 3  ;;  %v3325_v4 = vshrl.u32 %v9778_v26, 16 }
 0x42b   : > { %3768 = vrot.lane.b32.xlu2 %v3713_v12, %s6334_s23  ;;  %v3845_v53 = vpop.permute.xlu1 %3844  ;;  %v4944_v33 = vadd.f32 %v9387_v47, %v4943_v54  ;;  %v9879_v47 = vld [vmem:[%s10424_s7] ss:$0 sm:$0xff] }
 0x42c   : > { %3004 = vst.msk [vmem:[#allocation3 + $0xa8] sm:$0xf] %vm2912_vm14, %v2963_v8  ;;  %v3363_v48 = vpop.permute.xlu0 %3362  ;;  %v2783_v29 = vpop.f32.mrf.mxu0  ;;  %v9854_v20 = vor.u32 %v4628_v46, %v4625_v28 }
 0x42d   : > { %v2784_v59 = vadd.f32 %v9428_v55, %v2783_v29  ;;  %v3899_v25 = vpop.permute.xlu2 %3898  ;;  %v4129_v41 = vsel %vm2100_vm13, %v9369_v63, %v3363_v48  ;;  %v5057_v36 = vadd.f32 %v9559_v14, %v4944_v33  ;;  %v6312_v33 = vld [vmem:[#allocation3 + $0x74] sm:$0xff]  }
 0x42e   : > { %v4630_v23 = vsel %vm2414_vm2, %v9782_v1, %v9854_v20  ;;  %v4171_v15 = vsel %vm2186_vm6, %v4129_v41, %v3449_v52  ;;  %v10858_v52 = vmov 0  }
 0x42f   : > { %v2829_v3 = vmax.f32 %v2784_v59, 0.0  ;;  %4977 = vmatmul.bf16.gmra.mxu1 %v4630_v23  ;;  %2919 = vst.msk [vmem:[#allocation3 + $0xb0] sm:$0xc] %vm2918_vm12, %v10858_v52  ;;  %v4213_v57 = vsel %vm2272_vm7, %v4171_v15, %v3508_v34  ;;  %v5148_v34 = vmax.f32 %v5057_v36, 0.0  ;;  %v9922_v36 = vpop.f32.mrf.mxu2  ;;  %vm10868_vm12 = vmmov %vm10866_vm0 }
 0x431   : > { %v2870_v5 = vsel %vm10857_vm10, %v2829_v3, 0.0  ;;  %3854 = vrot.lane.b32.xlu0 %v9820_v30, %s6335_s11  ;;  %v3327_v30 = vor.u32 %v3325_v4, %v9798_v21  ;;  %vm10867_vm10 = vsmask.f32 2304 }
 0x432   : > { %2911 = vst.msk [vmem:[%s7907_s29 + $0x138] sm:$0xff] %vm2100_vm13, %v2870_v5  ;;  %v2964_v63 = vpack.c.bf16 %v2870_v5, %v2870_v5  ;;  %v4945_v43 = vpop.f32.mrf.mxu1 }
 0x433   : > { %v4946_v1 = vadd.f32 %v9879_v47, %v4945_v43  ;;  %v3048_v22 = vld [vmem:[#allocation3 + $0xa8] sm:$0x1]  ;;  %v3365_v9 = vpop.permute.xlu1 %3364 }
 0x434   : > { %3005 = vst.msk [vmem:[#allocation3 + $0xac] sm:$0xf] %vm2912_vm14, %v2964_v63  ;;  %v3759_v45 = vpop.permute.xlu0 %3758  ;;  %v2786_v6 = vpop.f32.mrf.mxu0  ;;  %v3144_v14 = vunpack.c.l.b16 %v3048_v22  ;;  %v4131_v3 = vsel %vm2100_vm13, %v6312_v33, %v3365_v9 }
 0x435   : > { %v5059_v38 = vadd.f32 %v9589_v17, %v4946_v1  ;;  %v4255_v58 = vsel %vm2358_vm8, %v4213_v57, %v3759_v45  ;;  %v2787_v10 = vadd.f32 %v9428_v55, %v2786_v6  ;;  %v3451_v13 = vpop.permute.xlu2 %3450 }
 0x436   : > { %v9894_v19 = vpack.c.b16 %v3144_v14, %v9886_v39  ;;  %v4298_v62 = vsel %vm4270_vm9, %v4255_v58, %v3845_v53 }
 0x437   : > { %v5149_v31 = vmax.f32 %v5059_v38, 0.0  ;;  %v2830_v11 = vmax.f32 %v2787_v10, 0.0  ;;  %v4341_v28 = vsel %vm10861_vm4, %v4298_v62, %v3899_v25 }
 0x438   : > { %v3329_v17 = vshll.u32 %v9894_v19, 16 }
 0x439   : > { %v2871_v8 = vsel %vm10860_vm11, %v2830_v11, 0.0  ;;  %v5185_v55 = vpack.c.bf16 %v5149_v31, %v5148_v34  ;;  %v3050_v31 = vld [vmem:[#allocation3 + $0xa8] sm:$0x3]  ;;  %v4173_v11 = vsel %vm2186_vm6, %v4131_v3, %v3451_v13 }
 0x43a   : > { %2913 = vst.msk [vmem:[%s7907_s29 + $0x140] sm:$0xf] %vm2912_vm14, %v2871_v8  ;;  %v2965_v12 = vpack.c.bf16 %v2871_v8, %v2871_v8  ;;  %v9904_v54 = vrot.slane %v3329_v17, 1  ;;  %vm10863_vm14 = vcmask 916480  }
 0x43b   : > { %5769 = vmatmul.msk.bf16.gmra.mxu3 %vm2100_vm13, %v5185_v55  ;;  %v9908_v46 = vld [vmem:[#allocation3 + $0xa8] sm:$0xff]   ;;  %v3761_v5 = vpop.permute.xlu1 %3760 }
 0x43c   : > { %3006 = vst.msk [vmem:[#allocation3 + $0xb0] sm:$0x3] %vm2923_vm15, %v2965_v12  ;;  %v4042_v48 = vpop.permute.xlu0 %4041  ;;  %v2788_v29 = vpop.f32.mrf.mxu0  ;;  %v3332_v53 = vsel %vm10862_vm5, %v3327_v30, %v9904_v54  ;;  %v3715_v59 = vshrl.u32 %v9908_v46, 16  ;;  %v3718_v44 = vshll.u32 %v9908_v46, 16  ;;  %v5970_v21 = vunpack.c.l.b16 %v9908_v46  ;;  %vm10870_vm5 = vmmov %vm10865_vm3 }
 0x43d   : > { %v4384_v41 = vsel %vm10863_vm14, %v4341_v28, %v4042_v48  ;;  %v4948_v23 = vpop.f32.mrf.mxu1  ;;  %v4095_v25 = vrot.slane %v9908_v46, 7  ;;  %v9919_v63 = vpop.permute.xlu2 %3846  ;;  %3374 = vrot.lane.b32.xlu0 %v3332_v53, %s6328_s30  ;;  %vm10864_vm15 = vcmask 1040384   ;;  %v3379_v48 = vunpack.c.l.b16 %v3050_v31 }
 0x43e   : > { %v4640_v15 = vshrl.u32 %v4384_v41, 16  ;;  %v4643_v51 = vshll.u32 %v4384_v41, 16  ;;  %v3993_v43 = vrot.slane %v3715_v59, 6  ;;  %v3994_v1 = vrot.slane %v3718_v44, 7  ;;  %vm10869_vm11 = vmmov %vm10864_vm15 }
 0x43f   : > { %v3473_v22 = vpack.c.b16 %v5970_v21, %v9886_v39  ;;  %v4096_v52 = vsel %vm10864_vm15, %v4093_v0, %v4095_v25  ;;  %v3717_v45 = vrot.slane %v3715_v59, 5  ;;  %v4949_v14 = vadd.f32 %v9879_v47, %v4948_v23  ;;  %vm10871_vm15 = vmmov %vm10866_vm0 }
 0x440   : > { %v4642_v57 = vrot.slane %v4640_v15, 2  ;;  %v4645_v6 = vrot.slane %v4643_v51, 3  ;;  %v4734_v38 = vshrl.u32 %v4096_v52, 16  ;;  %v3995_v58 = vor.u32 %v3994_v1, %v3993_v43 }
 0x441   : > { %v3477_v9 = vrot.slane %v3473_v22, 1  ;;  %v4737_v10 = vshll.u32 %v4096_v52, 16  ;;  %v3720_v34 = vrot.slane %v3718_v44, 6  ;;  %v5062_v29 = vadd.f32 %v9612_v37, %v4949_v14  ;;  %v9975_v52 = vpop.f32.mrf.mxu2 }
 0x442   : > { %v9932_v62 = vor.u32 %v4645_v6, %v4642_v57  ;;  %v4736_v4 = vrot.slane %v4734_v38, 2  ;;  %v3996_v17 = vsel %vm10865_vm3, %v9832_v61, %v3995_v58  ;;  %v5971_v61 = vunpack.c.h.b16 %v9908_v46  ;;  %vm10872_vm3 = vmmov %vm10869_vm11 }
 0x443   : > { %v3478_v0 = vsel %vm10866_vm0, %v9785_v18, %v3477_v9  ;;  %v4739_v60 = vrot.slane %v4737_v10, 3  ;;  %v9938_v8 = vor.u32 %v3720_v34, %v3717_v45  ;;  %v3054_v55 = vld [vmem:[#allocation3 + $0xb0] sm:$0x3]  ;;  %4051 = vrot.lane.b32.xlu2 %v3996_v17, %s6337_s15  ;;  %v4044_v51 = vpop.permute.xlu1 %4043  ;;  %v9979_v57 = vpack.c.b16 %v3379_v48, %v9886_v39  ;;  %v3060_v39 = vld [vmem:[#allocation3 + $0xb8] sm:$0xf]  ;;  %v9994_v34 = vpop.f32.mrf.mxu3  ;;  %vm10873_vm0 = vmmov %vm10861_vm4 }
 0x444   : > { %v9940_v12 = vld [vmem:[#allocation3 + $0xb0] sm:$0xff]  ;;  %3517 = vrot.lane.b32.xlu1 %v3478_v0, %s6332_s21  ;;  %v3510_v13 = vpop.permute.xlu0 %3509  ;;  %v4647_v30 = vsel %vm2414_vm2, %v9854_v20, %v9932_v62  ;;  %v9948_v28 = vunpack.c.l.b16 %v3054_v55  ;;  %v5150_v6 = vmax.f32 %v5062_v29, 0.0 }
 0x445   : > { %v4950_v53 = vpop.f32.mrf.mxu1  ;;  %4982 = vmatmul.bf16.gmra.mxu1 %v4647_v30  ;;  %v9951_v59 = vor.u32 %v4739_v60, %v4736_v4  ;;  %v3722_v44 = vsel %vm10867_vm10, %v9835_v42, %v9938_v8  ;;  %v3998_v21 = vshrl.u32 %v9940_v12, 16  ;;  %v4215_v41 = vsel %vm2272_vm7, %v4173_v11, %v3510_v13  ;;  %v9959_v23 = vpop.permute.xlu2 %3366  ;;  %v3058_v60 = vld [vmem:[#allocation3 + $0xb8] sm:$0x7]  ;;  %vm10874_vm10 = vmmov %vm10863_vm14 }
 0x446   : > { %v4951_v20 = vadd.f32 %v9879_v47, %v4950_v53  ;;  %3770 = vrot.lane.b32.xlu0 %v3722_v44, %s6334_s23  ;;  %v9963_v37 = vpack.c.b16 %v9948_v28, %v5971_v61  ;;  %v4001_v33 = vshll.u32 %v9940_v12, 16  ;;  %v9970_v42 = vrot.slane %v9908_v46, 6 }
 0x447   : > { %v4741_v3 = vsel %vm2414_vm2, %v9851_v49, %v9951_v59  ;;  %v4000_v15 = vrot.slane %v3998_v21, 6  ;;  %v4257_v45 = vsel %vm2358_vm8, %v4215_v41, %v3761_v5  ;;  %v4097_v49 = vrot.slane %v9940_v12, 7 }
 0x448   : > { %v5064_v43 = vadd.f32 %v9653_v50, %v4951_v20  ;;  %5757 = vmatmul.msk.bf16.gmra.mxu2 %vm2100_vm13, %v4741_v3  ;;  %v3479_v1 = vrot.slane %v9963_v37, 1  ;;  %v4003_v22 = vrot.slane %v4001_v33, 7  ;;  %v9989_v50 = vsel %vm1687_vm1, %v3812_v16, %v9970_v42  ;;  %v3055_v20 = vld [vmem:[#allocation3 + $0xb0] sm:$0x7] }
 0x449   : > { %v4098_v5 = vsel %vm10869_vm11, %v4095_v25, %v4097_v49  ;;  %v4300_v31 = vsel %vm4270_vm9, %v4257_v45, %v9919_v63  ;;  %v3868_v17 = vrot.slane %v9940_v12, 6  ;;  %v3420_v0 = vrot.slane %v9979_v57, 1  ;;  %v10009_v37 = vpop.f32.mrf.mxu2  ;;  %vm10877_vm11 = vmmov %vm10873_vm0 }
 0x44a   : > { %v5151_v14 = vmax.f32 %v5064_v43, 0.0  ;;  %v3480_v38 = vsel %vm10868_vm12, %v3477_v9, %v3479_v1  ;;  %v9983_v10 = vor.u32 %v4003_v22, %v4000_v15  ;;  %v4751_v11 = vshrl.u32 %v4098_v5, 16  ;;  %v6313_v22 = vld [vmem:[#allocation3 + $0x7c] sm:$0xff]   ;;  %vm10876_vm12 = vmmov %vm10870_vm5 }
 0x44b   : > { %3519 = vrot.lane.b32.xlu2 %v3480_v38, %s6332_s21  ;;  %v4754_v16 = vshll.u32 %v4098_v5, 16  ;;  %v4058_v63 = vunpack.c.l.b16 %v3060_v39  ;;  %v3865_v44 = vunpack.c.l.b16 %v3058_v60  ;;  %v3512_v21 = vpop.permute.xlu1 %3511  ;;  %v3869_v12 = vsel %vm1687_vm1, %v9970_v42, %v3868_v17 }
 0x44c   : > { %3908 = vrot.lane.b32.xlu1 %v9989_v50, %s6336_s12  ;;  %v3901_v9 = vpop.permute.xlu0 %3900  ;;  %v5186_v2 = vpack.c.bf16 %v5151_v14, %v5150_v6  ;;  %v4005_v46 = vsel %vm10870_vm5, %v3995_v58, %v9983_v10  ;;  %v4753_v30 = vrot.slane %v4751_v11, 2  ;;  %v3421_v33 = vsel %vm10871_vm15, %v9785_v18, %v3420_v0  ;;  %v5288_v14 = vpop.f32.mrf.mxu3  ;;  %vm10879_vm5 = vmmov %vm10873_vm0 }
 0x44d   : > { %v4343_v4 = vsel %vm10861_vm4, %v4300_v31, %v3901_v9  ;;  %v4756_v61 = vrot.slane %v4754_v16, 3  ;;  %v3763_v48 = vpop.permute.xlu2 %3762  ;;  %v4059_v29 = vpack.c.b16 %v4058_v63, %v4058_v63  ;;  %v4133_v45 = vsel %vm2100_vm13, %v6313_v22, %v9959_v23  ;;  %vm10878_vm4 = vmmov %vm10874_vm10 }
 0x44e   : > { %v4386_v25 = vsel %vm10863_vm14, %v4343_v4, %v4044_v51  ;;  %5770 = vmatmul.msk.bf16.gmra.mxu3 %vm2100_vm13, %v5186_v2  ;;  %4053 = vrot.lane.b32.xlu0 %v4005_v46, %s6337_s15  ;;  %v10026_v6 = vpack.c.b16 %v3865_v44, %v3865_v44  ;;  %v3775_v18 = vunpack.c.l.b16 %v3055_v20  ;;  %v10060_v20 = vld [vmem:[%s10426_s9] ss:$0 sm:$0xff]  ;;  %vm10880_vm14 = vmmov %vm10878_vm4 }
 0x44f   : > { %v4657_v55 = vshrl.u32 %v4386_v25, 16  ;;  %v4660_v13 = vshll.u32 %v4386_v25, 16  ;;  %v10017_v15 = vor.u32 %v4756_v61, %v4753_v30  ;;  %v4099_v43 = vrot.slane %v4059_v29, 7  ;;  %vm10881_vm15 = vmmov %vm10873_vm0 }
 0x450   : > { %v3870_v9 = vrot.slane %v10026_v6, 6  ;;  %v3776_v31 = vpack.c.b16 %v3775_v18, %v3775_v18 }
 0x451   : > { %v4659_v53 = vrot.slane %v4657_v55, 2  ;;  %v4662_v58 = vrot.slane %v4660_v13, 3  ;;  %v4758_v39 = vsel %vm2414_vm2, %v9951_v59, %v10017_v15  ;;  %v4100_v23 = vsel %vm10872_vm3, %v4097_v49, %v4099_v43  ;;  %v10046_v63 = vpop.f32.mrf.mxu2  ;;  %vm10882_vm3 = vmmov %vm10878_vm4 }
 0x452   : > { %v4953_v41 = vpop.f32.mrf.mxu1  ;;  %v4768_v46 = vshrl.u32 %v4100_v23, 16  ;;  %v4771_v59 = vshll.u32 %v4100_v23, 16  ;;  %v3816_v13 = vrot.slane %v3776_v31, 6  ;;  %v6314_v31 = vld [vmem:[#allocation3 + $0x84] sm:$0xff]  }
 0x453   : > { %v10015_v3 = vor.u32 %v4662_v58, %v4659_v53  ;;  %3910 = vrot.lane.b32.xlu2 %v3869_v12, %s6336_s12  ;;  %v4954_v38 = vadd.f32 %v9879_v47, %v4953_v41  ;;  %v3903_v25 = vpop.permute.xlu1 %3902  ;;  %v3333_v41 = vshrl.u32 %v9894_v19, 16 }
 0x454   : > { %3460 = vrot.lane.b32.xlu1 %v3421_v33, %s6330_s19  ;;  %v3453_v51 = vpop.permute.xlu0 %3452  ;;  %v10051_v61 = vpop.f32.mrf.mxu3  ;;  %v4770_v58 = vrot.slane %v4768_v46, 2  ;;  %v4773_v44 = vrot.slane %v4771_v59, 3  ;;  %v3817_v43 = vsel %vm1687_vm1, %v9970_v42, %v3816_v13  ;;  %v4007_v42 = vshrl.u32 %v10026_v6, 16 }
 0x455   : > { %v4664_v57 = vsel %vm2414_vm2, %v9932_v62, %v10015_v3  ;;  %v4175_v5 = vsel %vm2186_vm6, %v4133_v45, %v3453_v51  ;;  %v5067_v2 = vadd.f32 %v9681_v40, %v4954_v38  ;;  %v4046_v11 = vpop.permute.xlu2 %4045  ;;  %v3335_v51 = vor.u32 %v3333_v41, %v9904_v54 }
 0x456   : > { %4987 = vmatmul.bf16.gmra.mxu1 %v4664_v57  ;;  %3521 = vrot.lane.b32.xlu0 %v3479_v1, %s6332_s21  ;;  %v4217_v62 = vsel %vm2272_vm7, %v4175_v5, %v3512_v21  ;;  %v3543_v1 = vpack.c.b16 %v9948_v28, %v9948_v28  ;;  %v3871_v28 = vsel %vm1687_vm1, %v3868_v17, %v3870_v9  ;;  %vm10875_vm1 = vsmask.f32 2304 }
 0x457   : > { %v4259_v60 = vsel %vm2358_vm8, %v4217_v62, %v3763_v48  ;;  %v5152_v30 = vmax.f32 %v5067_v2, 0.0  ;;  %v4774_v45 = vor.u32 %v4773_v44, %v4770_v58  ;;  %v5289_v38 = vadd.f32 %v10060_v20, %v5288_v14 }
 0x458   : > { %5758 = vmatmul.msk.bf16.gmra.mxu2 %vm2100_vm13, %v4758_v39  ;;  %v3727_v29 = vshll.u32 %v3543_v1, 16 }
 0x459   : > { %v10073_v9 = vpop.f32.mrf.mxu2  ;;  %v4775_v2 = vsel %vm2414_vm2, %v10017_v15, %v4774_v45 }
 0x45a   : > { %v4955_v16 = vpop.f32.mrf.mxu1  ;;  %v3729_v18 = vrot.slane %v3727_v29, 6 }
 0x45b   : > { %v4956_v4 = vadd.f32 %v9879_v47, %v4955_v16  ;;  %3462 = vrot.lane.b32.xlu2 %v3420_v0, %s6330_s19  ;;  %v3455_v62 = vpop.permute.xlu1 %3454  ;;  %v4010_v16 = vshll.u32 %v10026_v6, 16 }
 0x45c   : > { %3856 = vrot.lane.b32.xlu1 %v9989_v50, %s6335_s11  ;;  %v3849_v49 = vpop.permute.xlu0 %3848  ;;  %v3724_v50 = vshrl.u32 %v3543_v1, 16  ;;  %v5293_v1 = vpop.f32.mrf.mxu3 }
 0x45d   : > { %v5069_v40 = vadd.f32 %v9715_v27, %v4956_v4  ;;  %v4302_v55 = vsel %vm4270_vm9, %v4259_v60, %v3849_v49  ;;  %v3514_v5 = vpop.permute.xlu2 %3513  ;;  %v4009_v49 = vrot.slane %v4007_v42, 6  ;;  %v4012_v15 = vrot.slane %v4010_v16, 7 }
 0x45e   : > { %v4345_v0 = vsel %vm10873_vm0, %v4302_v55, %v3903_v25  ;;  %3912 = vrot.lane.b32.xlu0 %v3871_v28, %s6336_s12  ;;  %v3726_v57 = vrot.slane %v3724_v50, 5  ;;  %v5294_v58 = vadd.f32 %v10060_v20, %v5293_v1  ;;  %vm5554_vm0 = vcmask 261248  }
 0x45f   : > { %v5153_v53 = vmax.f32 %v5069_v40, 0.0  ;;  %v4388_v48 = vsel %vm10874_vm10, %v4345_v0, %v4046_v11  ;;  %vm10883_vm10 = vmmov %vm10879_vm5 }
 0x460   : > { %v4674_v27 = vshrl.u32 %v4388_v48, 16  ;;  %v4677_v21 = vshll.u32 %v4388_v48, 16  ;;  %v3730_v11 = vor.u32 %v3729_v18, %v3726_v57  ;;  %v5292_v57 = vadd.f32 %v10060_v20, %v10051_v61 }
 0x461   : > { %v5187_v17 = vpack.c.bf16 %v5153_v53, %v5152_v30 }
 0x462   : > { %v4676_v12 = vrot.slane %v4674_v27, 2  ;;  %v4679_v33 = vrot.slane %v4677_v21, 3  ;;  %v3731_v59 = vsel %vm10875_vm1, %v9938_v8, %v3730_v11  ;;  %v4013_v8 = vor.u32 %v4012_v15, %v4009_v49  ;;  %vm10884_vm1 = vmmov %vm10882_vm3 }
 0x463   : > { %v4958_v22 = vpop.f32.mrf.mxu1  ;;  %5771 = vmatmul.msk.bf16.gmra.mxu3 %vm2100_vm13, %v5187_v17  ;;  %3858 = vrot.lane.b32.xlu2 %v3817_v43, %s6335_s11  ;;  %v3851_v0 = vpop.permute.xlu1 %3850 }
 0x464   : > { %3376 = vrot.lane.b32.xlu1 %v3335_v51, %s6328_s30  ;;  %v3369_v39 = vpop.permute.xlu0 %3368  ;;  %v4680_v23 = vor.u32 %v4679_v33, %v4676_v12  ;;  %v4959_v4 = vadd.f32 %v9879_v47, %v4958_v22  ;;  %v4014_v27 = vsel %vm10876_vm12, %v9983_v10, %v4013_v8 }
 0x465   : > { %v4135_v14 = vsel %vm2100_vm13, %v6314_v31, %v3369_v39 }
 0x466   : > { %5433 = vrot.lane.b32.xlu0 %v5289_v38, %s6328_s30  ;;  %v4681_v54 = vsel %vm2414_vm2, %v10015_v3, %v4680_v23  ;;  %v5287_v3 = vadd.f32 %v10060_v20, %v9994_v34  ;;  %v4177_v46 = vsel %vm2186_vm6, %v4135_v14, %v3455_v62  ;;  %v5072_v60 = vadd.f32 %v9742_v24, %v4959_v4  ;;  %v3905_v34 = vpop.permute.xlu2 %3904  ;;  %v10093_v24 = vpop.f32.mrf.mxu2 }
 0x467   : > { %4992 = vmatmul.bf16.gmra.mxu1 %v4681_v54  ;;  %v4219_v55 = vsel %vm2272_vm7, %v4177_v46, %v3514_v5 }
 0x468   : > { %5759 = vmatmul.msk.bf16.gmra.mxu2 %vm2100_vm13, %v4775_v2  ;;  %v5154_v30 = vmax.f32 %v5072_v60, 0.0 }
 0x46b   : > { %v4960_v25 = vpop.f32.mrf.mxu1  ;;  %5431 = vrot.lane.b32.xlu2 %v5287_v3, %s6328_s30  ;;  %v6315_v3 = vld [vmem:[#allocation3 + $0x8c] sm:$0xff]  }
 0x46c   : > { %3772 = vrot.lane.b32.xlu1 %v3731_v59, %s6334_s23  ;;  %v4961_v6 = vadd.f32 %v9879_v47, %v4960_v25  ;;  %v3765_v40 = vpop.permute.xlu0 %3764 }
 0x46d   : > { %v4261_v13 = vsel %vm2358_vm8, %v4219_v55, %v3765_v40 }
 0x46e   : > { %v5074_v28 = vadd.f32 %v9768_v35, %v4961_v6  ;;  %v5296_v29 = vpop.f32.mrf.mxu3  ;;  %v4304_v53 = vsel %vm4270_vm9, %v4261_v13, %v3851_v0  ;;  %v3457_v51 = vpop.permute.xlu2 %3456 }
 0x46f   : > { %v5297_v48 = vadd.f32 %v10060_v20, %v5296_v29  ;;  %v4347_v21 = vsel %vm10877_vm11, %v4304_v53, %v3905_v34  ;;  %v10112_v38 = vpop.f32.mrf.mxu2 }
 0x470   : > { %v5155_v50 = vmax.f32 %v5074_v28, 0.0 }
 0x471   : > { %5439 = vrot.lane.b32.xlu0 %v5297_v48, %s6328_s30 }
 0x472   : > { %v5188_v44 = vpack.c.bf16 %v5155_v50, %v5154_v30 }
 0x473   : > { %5437 = vrot.lane.b32.xlu2 %v5294_v58, %s6328_s30 }
 0x474   : > { %4055 = vrot.lane.b32.xlu1 %v4014_v27, %s6337_s15  ;;  %v4048_v35 = vpop.permute.xlu0 %4047  ;;  %v4963_v41 = vpop.f32.mrf.mxu1  ;;  %5772 = vmatmul.msk.bf16.gmra.mxu3 %vm2100_vm13, %v5188_v44 }
 0x475   : > { %v4390_v17 = vsel %vm10878_vm4, %v4347_v21, %v4048_v35  ;;  %v4964_v10 = vadd.f32 %v9879_v47, %v4963_v41 }
 0x476   : > { %v4691_v12 = vshrl.u32 %v4390_v17, 16  ;;  %v4694_v33 = vshll.u32 %v4390_v17, 16  ;;  %v3853_v14 = vpop.permute.xlu2 %3852 }
 0x477   : > { %v5077_v62 = vadd.f32 %v9801_v56, %v4964_v10  ;;  %v10121_v11 = vpop.f32.mrf.mxu2 }
 0x478   : > { %v4693_v43 = vrot.slane %v4691_v12, 2  ;;  %v4696_v22 = vrot.slane %v4694_v33, 3  ;;  %5760 = vmatmul.msk.bf16.gmra.mxu2 %vm2100_vm13, %v4774_v45  ;;  %v5298_v45 = vpop.f32.mrf.mxu3 }
 0x479   : > { %v5156_v31 = vmax.f32 %v5077_v62, 0.0  ;;  %v5299_v2 = vadd.f32 %v10060_v20, %v5298_v45 }
 0x47a   : > { %v10110_v18 = vor.u32 %v4696_v22, %v4693_v43 }
 0x47c   : > { %5435 = vrot.lane.b32.xlu1 %v5292_v57, %s6328_s30  ;;  %v4965_v5 = vpop.f32.mrf.mxu1  ;;  %v4698_v39 = vsel %vm2414_vm2, %v4680_v23, %v10110_v18  ;;  %v3371_v23 = vpop.permute.xlu1 %3370 }
 0x47d   : > { %v4966_v54 = vadd.f32 %v9879_v47, %v4965_v5  ;;  %4997 = vmatmul.bf16.gmra.mxu1 %v4698_v39  ;;  %v4137_v46 = vsel %vm2100_vm13, %v6315_v3, %v3371_v23 }
 0x47e   : > { %v10125_v1 = vpop.permute.xlu2 %3372  ;;  %v4179_v49 = vsel %vm2186_vm6, %v4137_v46, %v3457_v51  ;;  %v6316_v46 = vld [vmem:[#allocation3 + $0x94] sm:$0xff]  }
 0x47f   : > { %v5079_v42 = vadd.f32 %v9840_v7, %v4966_v54  ;;  %v10127_v4 = vpop.f32.mrf.mxu2 }
 0x481   : > { %v5157_v61 = vmax.f32 %v5079_v42, 0.0 }
 0x483   : > { %v5189_v16 = vpack.c.bf16 %v5157_v61, %v5156_v31 }
 0x484   : > { %5441 = vrot.lane.b32.xlu1 %v5299_v2, %s6328_s30  ;;  %v3767_v15 = vpop.permute.xlu1 %3766 }
 0x485   : > { %5773 = vmatmul.msk.bf16.gmra.mxu3 %vm2100_vm13, %v5189_v16 }
 0x486   : > { %v3769_v28 = vpop.permute.xlu2 %3768 }
 0x487   : > { %v10135_v55 = vpop.f32.mrf.mxu2 }
 0x48a   : > { %v4968_v56 = vpop.f32.mrf.mxu1 }
 0x48b   : > { %v4969_v7 = vadd.f32 %v9879_v47, %v4968_v56  ;;  %v3516_v59 = vpop.permute.xlu0 %3515 }
 0x48c   : > { %v4221_v40 = vsel %vm2272_vm7, %v4179_v49, %v3516_v59  ;;  %v4139_v59 = vsel %vm2100_vm13, %v6316_v46, %v10125_v1 }
 0x48d   : > { %v5082_v60 = vadd.f32 %v9873_v32, %v4969_v7  ;;  %v4263_v8 = vsel %vm2358_vm8, %v4221_v40, %v3767_v15 }
 0x48e   : > { %v4306_v32 = vsel %vm4270_vm9, %v4263_v8, %v3853_v14 }
 0x48f   : > { %v5158_v13 = vmax.f32 %v5082_v60, 0.0  ;;  %v10145_v41 = vpop.f32.mrf.mxu2 }
 0x492   : > { %v4970_v25 = vpop.f32.mrf.mxu1 }
 0x493   : > { %v4971_v6 = vadd.f32 %v9879_v47, %v4970_v25  ;;  %v3907_v29 = vpop.permute.xlu0 %3906 }
 0x494   : > { %v4349_v48 = vsel %vm10879_vm5, %v4306_v32, %v3907_v29 }
 0x495   : > { %v5084_v34 = vadd.f32 %v9922_v36, %v4971_v6  ;;  %v5301_v0 = vpop.f32.mrf.mxu3 }
 0x496   : > { %v5302_v50 = vadd.f32 %v10060_v20, %v5301_v0 }
 0x497   : > { %v5159_v30 = vmax.f32 %v5084_v34, 0.0  ;;  %v4050_v58 = vpop.permute.xlu1 %4049  ;;  %v10155_v42 = vpop.f32.mrf.mxu2 }
 0x498   : > { %5443 = vrot.lane.b32.xlu2 %v5302_v50, %s6328_s30  ;;  %v4392_v36 = vsel %vm10880_vm14, %v4349_v48, %v4050_v58 }
 0x499   : > { %v5190_v53 = vpack.c.bf16 %v5159_v30, %v5158_v13  ;;  %v4708_v27 = vshrl.u32 %v4392_v36, 16  ;;  %v4711_v35 = vshll.u32 %v4392_v36, 16 }
 0x49b   : > { %v4973_v44 = vpop.f32.mrf.mxu1  ;;  %5774 = vmatmul.msk.bf16.gmra.mxu3 %vm2100_vm13, %v5190_v53  ;;  %v4710_v17 = vrot.slane %v4708_v27, 2  ;;  %v4713_v12 = vrot.slane %v4711_v35, 3  ;;  %v3459_v22 = vpop.permute.xlu0 %3458 }
 0x49c   : > { %v4974_v51 = vadd.f32 %v9879_v47, %v4973_v44  ;;  %v4181_v15 = vsel %vm2186_vm6, %v4139_v59, %v3459_v22 }
 0x49d   : > { %v4052_v21 = vpop.permute.xlu2 %4051  ;;  %v5303_v33 = vpop.f32.mrf.mxu3  ;;  %v4714_v10 = vor.u32 %v4713_v12, %v4710_v17 }
 0x49e   : > { %v5304_v43 = vadd.f32 %v10060_v20, %v5303_v33  ;;  %v5087_v39 = vadd.f32 %v9975_v52, %v4974_v51 }
 0x49f   : > { %v4715_v5 = vsel %vm2414_vm2, %v10110_v18, %v4714_v10  ;;  %v10160_v56 = vpop.f32.mrf.mxu2 }
 0x4a0   : > { %5445 = vrot.lane.b32.xlu0 %v5304_v43, %s6328_s30  ;;  %5002 = vmatmul.bf16.gmra.mxu1 %v4715_v5  ;;  %v5160_v31 = vmax.f32 %v5087_v39, 0.0 }
 0x4a3   : > { %v4975_v57 = vpop.f32.mrf.mxu1  ;;  %v3855_v14 = vpop.permute.xlu0 %3854 }
 0x4a4   : > { %v4976_v62 = vadd.f32 %v9879_v47, %v4975_v57 }
 0x4a5   : > { %v3520_v45 = vpop.permute.xlu2 %3519 }
 0x4a6   : > { %v5089_v54 = vadd.f32 %v10009_v37, %v4976_v62 }
 0x4a8   : > { %v5161_v61 = vmax.f32 %v5089_v54, 0.0 }
 0x4aa   : > { %v5191_v2 = vpack.c.bf16 %v5161_v61, %v5160_v31 }
 0x4ac   : > { %v4978_v16 = vpop.f32.mrf.mxu1  ;;  %5775 = vmatmul.msk.bf16.gmra.mxu3 %vm2100_vm13, %v5191_v2  ;;  %v10172_v13 = vpop.f32.mrf.mxu2 }
 0x4ad   : > { %v10158_v23 = vpop.permute.xlu2 %3910  ;;  %v4979_v52 = vadd.f32 %v9879_v47, %v4978_v16 }
 0x4af   : > { %v3375_v18 = vpop.permute.xlu0 %3374  ;;  %v5092_v37 = vadd.f32 %v10046_v63, %v4979_v52 }
 0x4b1   : > { %v5162_v34 = vmax.f32 %v5092_v37, 0.0 }
 0x4b4   : > { %v4980_v7 = vpop.f32.mrf.mxu1  ;;  %v10183_v36 = vpop.f32.mrf.mxu2 }
 0x4b5   : > { %v4981_v3 = vadd.f32 %v9879_v47, %v4980_v7  ;;  %v10167_v49 = vpop.permute.xlu2 %3462 }
 0x4b6   : > { %v3518_v25 = vpop.permute.xlu1 %3517 }
 0x4b7   : > { %v5094_v60 = vadd.f32 %v10073_v9, %v4981_v3  ;;  %v4223_v6 = vsel %vm2272_vm7, %v4181_v15, %v3518_v25 }
 0x4b8   : > { %v3771_v40 = vpop.permute.xlu0 %3770  ;;  %v4265_v8 = vsel %vm2358_vm8, %v4223_v6, %v3769_v28 }
 0x4b9   : > { %v5163_v63 = vmax.f32 %v5094_v60, 0.0  ;;  %v4308_v0 = vsel %vm4270_vm9, %v4265_v8, %v3855_v14 }
 0x4bb   : > { %v5192_v30 = vpack.c.bf16 %v5163_v63, %v5162_v34 }
 0x4bd   : > { %5776 = vmatmul.msk.bf16.gmra.mxu3 %vm2100_vm13, %v5192_v30  ;;  %v10177_v50 = vpop.permute.xlu2 %3858 }
 0x4be   : > { %v3909_v1 = vpop.permute.xlu1 %3908  ;;  %v5306_v9 = vpop.f32.mrf.mxu3 }
 0x4bf   : > { %v4351_v29 = vsel %vm10881_vm15, %v4308_v0, %v3909_v1  ;;  %v5307_v32 = vadd.f32 %v10060_v20, %v5306_v9 }
 0x4c0   : > { %v4394_v53 = vsel %vm10882_vm3, %v4351_v29, %v4052_v21  ;;  %v4054_v48 = vpop.permute.xlu0 %4053  ;;  %v4141_v21 = vsel %vm2100_vm13, %v9778_v26, %v3375_v18 }
 0x4c1   : > { %v4725_v58 = vshrl.u32 %v4394_v53, 16  ;;  %v4728_v44 = vshll.u32 %v4394_v53, 16  ;;  %5447 = vrot.lane.b32.xlu1 %v5307_v32, %s6328_s30 }
 0x4c2   : > { %v4983_v28 = vpop.f32.mrf.mxu1 }
 0x4c3   : > { %v4727_v27 = vrot.slane %v4725_v58, 2  ;;  %v4730_v35 = vrot.slane %v4728_v44, 3  ;;  %v4984_v51 = vadd.f32 %v9879_v47, %v4983_v28 }
 0x4c5   : > { %v4731_v17 = vor.u32 %v4730_v35, %v4727_v27  ;;  %v5432_v33 = vpop.permute.xlu2 %5431  ;;  %v5097_v54 = vadd.f32 %v10093_v24, %v4984_v51 }
 0x4c6   : > { %v3461_v12 = vpop.permute.xlu1 %3460  ;;  %5555 = vst.msk [vmem:[%s7907_s29] sm:$0xff] %vm5554_vm0, %v5432_v33  ;;  %v5308_v43 = vpop.f32.mrf.mxu3 }
 0x4c7   : > { %v4732_v22 = vsel %vm2414_vm2, %v4714_v10, %v4731_v17  ;;  %v4183_v57 = vsel %vm2186_vm6, %v4141_v21, %v3461_v12  ;;  %v5309_v5 = vadd.f32 %v10060_v20, %v5308_v43  ;;  %v5164_v18 = vmax.f32 %v5097_v54, 0.0 }
 0x4c8   : > { %5007 = vmatmul.bf16.gmra.mxu1 %v4732_v22  ;;  %v3522_v39 = vpop.permute.xlu0 %3521  ;;  %v4225_v26 = vsel %vm2272_vm7, %v4183_v57, %v3520_v45 }
 0x4c9   : > { %5449 = vrot.lane.b32.xlu2 %v5309_v5, %s6328_s30  ;;  %v4267_v2 = vsel %vm2358_vm8, %v4225_v26, %v3771_v40 }
 0x4ca   : > { %v4985_v62 = vpop.f32.mrf.mxu1 }
 0x4cb   : > { %v10196_v31 = vpop.f32.mrf.mxu2  ;;  %v4986_v61 = vadd.f32 %v9879_v47, %v4985_v62 }
 0x4cd   : > { %v5099_v10 = vadd.f32 %v10112_v38, %v4986_v61  ;;  %v5438_v16 = vpop.permute.xlu2 %5437 }
 0x4ce   : > { %v3857_v14 = vpop.permute.xlu1 %3856  ;;  %5558 = vst.msk [vmem:[%s7907_s29 + $0x18] sm:$0xff] %vm5554_vm0, %v5438_v16 }
 0x4cf   : > { %v5165_v52 = vmax.f32 %v5099_v10, 0.0  ;;  %v4310_v7 = vsel %vm4270_vm9, %v4267_v2, %v3857_v14 }
 0x4d0   : > { %v4353_v24 = vsel %vm10883_vm10, %v4310_v7, %v10158_v23  ;;  %v3913_v45 = vpop.permute.xlu0 %3912 }
 0x4d1   : > { %v5193_v37 = vpack.c.bf16 %v5165_v52, %v5164_v18  ;;  %v4396_v3 = vsel %vm10884_vm1, %v4353_v24, %v4054_v48  ;;  %v5311_v46 = vpop.f32.mrf.mxu3 }
 0x4d2   : > { %v4742_v59 = vshrl.u32 %v4396_v3, 16  ;;  %v4745_v38 = vshll.u32 %v4396_v3, 16  ;;  %v5312_v25 = vadd.f32 %v10060_v20, %v5311_v46 }
 0x4d3   : > { %v10208_v15 = vpop.f32.mrf.mxu2  ;;  %v4988_v60 = vpop.f32.mrf.mxu1  ;;  %5777 = vmatmul.msk.bf16.gmra.mxu3 %vm2100_vm13, %v5193_v37 }
 0x4d4   : > { %v4744_v6 = vrot.slane %v4742_v59, 2  ;;  %v4747_v40 = vrot.slane %v4745_v38, 3  ;;  %5451 = vrot.lane.b32.xlu0 %v5312_v25, %s6328_s30  ;;  %v4989_v63 = vadd.f32 %v9879_v47, %v4988_v60 }
 0x4d6   : > { %v3377_v23 = vpop.permute.xlu1 %3376  ;;  %v4748_v34 = vor.u32 %v4747_v40, %v4744_v6  ;;  %v5102_v32 = vadd.f32 %v10121_v11, %v4989_v63 }
 0x4d7   : > { %v4143_v1 = vsel %vm2100_vm13, %v9894_v19, %v3377_v23 }
 0x4d8   : > { %v4749_v8 = vsel %vm2414_vm2, %v4731_v17, %v4748_v34  ;;  %v5434_v30 = vpop.permute.xlu0 %5433  ;;  %v4185_v48 = vsel %vm2186_vm6, %v4143_v1, %v10167_v49  ;;  %v5166_v27 = vmax.f32 %v5102_v32, 0.0  ;;  %vm10885_vm6 = vmmov %vm10879_vm5 }
 0x4d9   : > { %5012 = vmatmul.bf16.gmra.mxu1 %v4749_v8  ;;  %v5313_v0 = vpop.f32.mrf.mxu3  ;;  %5556 = vst.msk [vmem:[%s7907_s29 + $0x8] sm:$0xff] %vm5554_vm0, %v5434_v30  ;;  %v4227_v28 = vsel %vm2272_vm7, %v4185_v48, %v3522_v39  ;;  %vm10886_vm7 = vmmov %vm10884_vm1 }
 0x4da   : > { %v5314_v29 = vadd.f32 %v10060_v20, %v5313_v0 }
 0x4db   : > { %v10219_v9 = vpop.f32.mrf.mxu2  ;;  %v4990_v53 = vpop.f32.mrf.mxu1 }
 0x4dc   : > { %5453 = vrot.lane.b32.xlu1 %v5314_v29, %s6328_s30  ;;  %v4991_v58 = vadd.f32 %v9879_v47, %v4990_v53 }
 0x4de   : > { %v5104_v19 = vadd.f32 %v10127_v4, %v4991_v58  ;;  %v3773_v44 = vpop.permute.xlu1 %3772 }
 0x4df   : > { %v4269_v17 = vsel %vm2358_vm8, %v4227_v28, %v3773_v44 }
 0x4e0   : > { %v5167_v35 = vmax.f32 %v5104_v19, 0.0  ;;  %v4312_v11 = vsel %vm4270_vm9, %v4269_v17, %v10177_v50 }
 0x4e1   : > { %v4355_v4 = vsel %vm10885_vm6, %v4312_v11, %v3913_v45 }
 0x4e2   : > { %v5194_v12 = vpack.c.bf16 %v5167_v35, %v5166_v27 }
 0x4e3   : > { %v10231_v33 = vpop.f32.mrf.mxu2  ;;  %v5440_v21 = vpop.permute.xlu0 %5439 }
 0x4e4   : > { %v4993_v49 = vpop.f32.mrf.mxu1  ;;  %5778 = vmatmul.msk.bf16.gmra.mxu3 %vm2100_vm13, %v5194_v12  ;;  %5559 = vst.msk [vmem:[%s7907_s29 + $0x20] sm:$0xff] %vm5554_vm0, %v5440_v21  ;;  %v10286_v21 = vld [vmem:[%s10424_s7] ss:$0 sm:$0xff] }
 0x4e5   : > { %v4994_v50 = vadd.f32 %v9879_v47, %v4993_v49 }
 0x4e6   : > { %v4056_v51 = vpop.permute.xlu1 %4055  ;;  %v5316_v43 = vpop.f32.mrf.mxu3 }
 0x4e7   : > { %v4398_v22 = vsel %vm10886_vm7, %v4355_v4, %v4056_v51  ;;  %v5317_v57 = vadd.f32 %v10060_v20, %v5316_v43  ;;  %v5107_v14 = vadd.f32 %v10135_v55, %v4994_v50 }
 0x4e8   : > { %v4759_v5 = vshrl.u32 %v4398_v22, 16  ;;  %v4762_v39 = vshll.u32 %v4398_v22, 16 }
 0x4e9   : > { %5455 = vrot.lane.b32.xlu2 %v5317_v57, %s6328_s30  ;;  %v5168_v45 = vmax.f32 %v5107_v14, 0.0 }
 0x4ea   : > { %v4761_v62 = vrot.slane %v4759_v5, 2  ;;  %v4764_v54 = vrot.slane %v4762_v39, 3 }
 0x4eb   : > { %v10241_v26 = vpop.f32.mrf.mxu2 }
 0x4ec   : > { %v4765_v61 = vor.u32 %v4764_v54, %v4761_v62  ;;  %v4995_v10 = vpop.f32.mrf.mxu1 }
 0x4ed   : > { %v4996_v2 = vadd.f32 %v9879_v47, %v4995_v10 }
 0x4ee   : > { %v5436_v16 = vpop.permute.xlu1 %5435  ;;  %v4766_v18 = vsel %vm2414_vm2, %v4748_v34, %v4765_v61  ;;  %v5318_v52 = vpop.f32.mrf.mxu3 }
 0x4ef   : > { %v5109_v7 = vadd.f32 %v10145_v41, %v4996_v2  ;;  %5557 = vst.msk [vmem:[%s7907_s29 + $0x10] sm:$0xff] %vm5554_vm0, %v5436_v16  ;;  %5017 = vmatmul.bf16.gmra.mxu1 %v4766_v18  ;;  %v5319_v24 = vadd.f32 %v10060_v20, %v5318_v52 }
 0x4f1   : > { %v5169_v37 = vmax.f32 %v5109_v7, 0.0  ;;  %5457 = vrot.lane.b32.xlu0 %v5319_v24, %s6328_s30 }
 0x4f2   : > { %v5444_v46 = vpop.permute.xlu2 %5443 }
 0x4f3   : > { %v5195_v3 = vpack.c.bf16 %v5169_v37, %v5168_v45  ;;  %v10251_v55 = vpop.f32.mrf.mxu2  ;;  %5561 = vst.msk [vmem:[%s7907_s29 + $0x30] sm:$0xff] %vm5554_vm0, %v5444_v46 }
 0x4f5   : > { %5779 = vmatmul.msk.bf16.gmra.mxu3 %vm2100_vm13, %v5195_v3 }
 0x4f6   : > { %v5442_v59 = vpop.permute.xlu1 %5441 }
 0x4f7   : > { %5560 = vst.msk [vmem:[%s7907_s29 + $0x28] sm:$0xff] %vm5554_vm0, %v5442_v59  ;;  %v5321_v41 = vpop.f32.mrf.mxu3 }
 0x4f8   : > { %v5322_v38 = vadd.f32 %v10060_v20, %v5321_v41 }
 0x4fa   : > { %v4998_v25 = vpop.f32.mrf.mxu1  ;;  %5459 = vrot.lane.b32.xlu1 %v5322_v38, %s6328_s30 }
 0x4fb   : > { %v10259_v60 = vpop.f32.mrf.mxu2  ;;  %v4999_v6 = vadd.f32 %v9879_v47, %v4998_v25 }
 0x4fd   : > { %v5112_v63 = vadd.f32 %v10155_v42, %v4999_v6 }
 0x4ff   : > { %5022 = vmatmul.bf16.gmra.mxu1 %v4765_v61  ;;  %v5323_v40 = vpop.f32.mrf.mxu3  ;;  %v5170_v0 = vmax.f32 %v5112_v63, 0.0 }
 0x500   : > { %v5324_v23 = vadd.f32 %v10060_v20, %v5323_v40 }
 0x502   : > { %v5000_v34 = vpop.f32.mrf.mxu1  ;;  %5461 = vrot.lane.b32.xlu2 %v5324_v23, %s6328_s30 }
 0x503   : > { %v5138_v8 = vpop.f32.mrf.mxu2  ;;  %v5001_v30 = vadd.f32 %v9879_v47, %v5000_v34 }
 0x505   : > { %v5114_v1 = vadd.f32 %v10160_v56, %v5001_v30 }
 0x507   : > { %v5171_v29 = vmax.f32 %v5114_v1, 0.0 }
 0x508   : > { %v5326_v53 = vpop.f32.mrf.mxu3 }
 0x509   : > { %v5196_v32 = vpack.c.bf16 %v5171_v29, %v5170_v0  ;;  %v5327_v48 = vadd.f32 %v10060_v20, %v5326_v53 }
 0x50b   : > { %5463 = vrot.lane.b32.xlu0 %v5327_v48, %s6328_s30  ;;  %5780 = vmatmul.msk.bf16.gmra.mxu3 %vm2100_vm13, %v5196_v32 }
 0x510   : > { %v5328_v42 = vpop.f32.mrf.mxu3 }
 0x511   : > { %v5329_v58 = vadd.f32 %v10060_v20, %v5328_v42 }
 0x512   : > { %v5446_v19 = vpop.permute.xlu0 %5445 }
 0x513   : > { %5465 = vrot.lane.b32.xlu1 %v5329_v58, %s6328_s30  ;;  %5562 = vst.msk [vmem:[%s7907_s29 + $0x38] sm:$0xff] %vm5554_vm0, %v5446_v19 }
 0x51d   : > { %v5003_v28 = vpop.f32.mrf.mxu1 }
 0x51e   : > { %v5331_v56 = vpop.f32.mrf.mxu3  ;;  %v5004_v35 = vadd.f32 %v9879_v47, %v5003_v28 }
 0x51f   : > { %v5332_v44 = vadd.f32 %v10060_v20, %v5331_v56 }
 0x520   : > { %v5117_v49 = vadd.f32 %v10172_v13, %v5004_v35 }
 0x521   : > { %5467 = vrot.lane.b32.xlu2 %v5332_v44, %s6328_s30 }
 0x522   : > { %v5172_v43 = vmax.f32 %v5117_v49, 0.0 }
 0x523   : > { %v5450_v27 = vpop.permute.xlu2 %5449 }
 0x524   : > { %5564 = vst.msk [vmem:[%s7907_s29 + $0x48] sm:$0xff] %vm5554_vm0, %v5450_v27 }
 0x525   : > { %v5005_v11 = vpop.f32.mrf.mxu1 }
 0x526   : > { %v5333_v17 = vpop.f32.mrf.mxu3  ;;  %v5006_v51 = vadd.f32 %v10286_v21, %v5005_v11 }
 0x527   : > { %v5334_v12 = vadd.f32 %v10060_v20, %v5333_v17 }
 0x528   : > { %v5119_v4 = vadd.f32 %v10183_v36, %v5006_v51 }
 0x529   : > { %5469 = vrot.lane.b32.xlu0 %v5334_v12, %s6328_s30 }
 0x52a   : > { %v5173_v47 = vmax.f32 %v5119_v4, 0.0 }
 0x52c   : > { %v5197_v57 = vpack.c.bf16 %v5173_v47, %v5172_v43 }
 0x52e   : > { %5781 = vmatmul.msk.bf16.gmra.mxu3 %vm2100_vm13, %v5197_v57 }
 0x52f   : > { %v5336_v22 = vpop.f32.mrf.mxu3 }
 0x530   : > { %v5337_v5 = vadd.f32 %v10060_v20, %v5336_v22 }
 0x532   : > { %5471 = vrot.lane.b32.xlu1 %v5337_v5, %s6328_s30 }
 0x533   : > { %v5448_v13 = vpop.permute.xlu1 %5447 }
 0x534   : > { %5563 = vst.msk [vmem:[%s7907_s29 + $0x40] sm:$0xff] %vm5554_vm0, %v5448_v13 }
 0x537   : > { %v5338_v39 = vpop.f32.mrf.mxu3 }
 0x538   : > { %v5339_v50 = vadd.f32 %v10060_v20, %v5338_v39 }
 0x53a   : > { %5473 = vrot.lane.b32.xlu2 %v5339_v50, %s6328_s30 }
 0x540   : > { %v5341_v36 = vpop.f32.mrf.mxu3 }
 0x541   : > { %v5342_v62 = vadd.f32 %v10060_v20, %v5341_v36 }
 0x543   : > { %5475 = vrot.lane.b32.xlu0 %v5342_v62, %s6328_s30  ;;  %v5456_v54 = vpop.permute.xlu2 %5455 }
 0x544   : > { %5567 = vst.msk [vmem:[%s7907_s29 + $0x60] sm:$0xff] %vm5554_vm0, %v5456_v54 }
 0x545   : > { %v5008_v61 = vpop.f32.mrf.mxu1 }
 0x546   : > { %v5452_v10 = vpop.permute.xlu0 %5451  ;;  %v5009_v16 = vadd.f32 %v10286_v21, %v5008_v61 }
 0x547   : > { %5565 = vst.msk [vmem:[%s7907_s29 + $0x50] sm:$0xff] %vm5554_vm0, %v5452_v10 }
 0x548   : > { %v5343_v14 = vpop.f32.mrf.mxu3  ;;  %v5122_v52 = vadd.f32 %v10196_v31, %v5009_v16 }
 0x549   : > { %v5344_v2 = vadd.f32 %v10060_v20, %v5343_v14 }
 0x54a   : > { %v5174_v37 = vmax.f32 %v5122_v52, 0.0 }
 0x54b   : > { %5477 = vrot.lane.b32.xlu1 %v5344_v2, %s6328_s30 }
 0x54d   : > { %v5010_v18 = vpop.f32.mrf.mxu1 }
 0x54e   : > { %v5011_v7 = vadd.f32 %v10286_v21, %v5010_v18  ;;  %v5454_v24 = vpop.permute.xlu1 %5453 }
 0x54f   : > { %5566 = vst.msk [vmem:[%s7907_s29 + $0x58] sm:$0xff] %vm5554_vm0, %v5454_v24 }
 0x550   : > { %v5124_v45 = vadd.f32 %v10208_v15, %v5011_v7 }
 0x552   : > { %v5175_v3 = vmax.f32 %v5124_v45, 0.0 }
 0x554   : > { %v5198_v46 = vpack.c.bf16 %v5175_v3, %v5174_v37 }
 0x556   : > { %v5013_v59 = vpop.f32.mrf.mxu1  ;;  %5782 = vmatmul.msk.bf16.gmra.mxu3 %vm2100_vm13, %v5198_v46  ;;  %v5346_v41 = vpop.f32.mrf.mxu3 }
 0x557   : > { %v5347_v38 = vadd.f32 %v10060_v20, %v5346_v41  ;;  %v5014_v31 = vadd.f32 %v10286_v21, %v5013_v59 }
 0x559   : > { %5479 = vrot.lane.b32.xlu2 %v5347_v38, %s6328_s30  ;;  %v5127_v15 = vadd.f32 %v10219_v9, %v5014_v31 }
 0x55b   : > { %v5176_v8 = vmax.f32 %v5127_v15, 0.0 }
 0x55c   : > { %v5462_v25 = vpop.permute.xlu2 %5461 }
 0x55d   : > { %5570 = vst.msk [vmem:[%s7907_s29 + $0x78] sm:$0xff] %vm5554_vm0, %v5462_v25 }
 0x55e   : > { %v5015_v6 = vpop.f32.mrf.mxu1  ;;  %v5348_v40 = vpop.f32.mrf.mxu3 }
 0x55f   : > { %v5016_v23 = vadd.f32 %v10286_v21, %v5015_v6  ;;  %v5349_v34 = vadd.f32 %v10060_v20, %v5348_v40 }
 0x561   : > { %v5129_v63 = vadd.f32 %v10231_v33, %v5016_v23  ;;  %5481 = vrot.lane.b32.xlu0 %v5349_v34, %s6328_s30 }
 0x563   : > { %v5177_v30 = vmax.f32 %v5129_v63, 0.0  ;;  %v5458_v1 = vpop.permute.xlu0 %5457 }
 0x564   : > { %5568 = vst.msk [vmem:[%s7907_s29 + $0x68] sm:$0xff] %vm5554_vm0, %v5458_v1 }
 0x565   : > { %v5199_v0 = vpack.c.bf16 %v5177_v30, %v5176_v8 }
 0x567   : > { %5783 = vmatmul.msk.bf16.gmra.mxu3 %vm2100_vm13, %v5199_v0  ;;  %v5351_v29 = vpop.f32.mrf.mxu3 }
 0x568   : > { %v5352_v9 = vadd.f32 %v10060_v20, %v5351_v29 }
 0x56a   : > { %5483 = vrot.lane.b32.xlu1 %v5352_v9, %s6328_s30 }
 0x56c   : > { %v5018_v53 = vpop.f32.mrf.mxu1  ;;  %v5460_v32 = vpop.permute.xlu1 %5459 }
 0x56d   : > { %5569 = vst.msk [vmem:[%s7907_s29 + $0x70] sm:$0xff] %vm5554_vm0, %v5460_v32  ;;  %v5019_v42 = vadd.f32 %v10286_v21, %v5018_v53 }
 0x56f   : > { %v5353_v33 = vpop.f32.mrf.mxu3  ;;  %v5132_v19 = vadd.f32 %v10241_v26, %v5019_v42 }
 0x570   : > { %v5354_v48 = vadd.f32 %v10060_v20, %v5353_v33 }
 0x571   : > { %v5178_v27 = vmax.f32 %v5132_v19, 0.0 }
 0x572   : > { %5485 = vrot.lane.b32.xlu2 %v5354_v48, %s6328_s30 }
 0x574   : > { %v5020_v58 = vpop.f32.mrf.mxu1 }
 0x575   : > { %v5021_v56 = vadd.f32 %v10286_v21, %v5020_v58 }
 0x577   : > { %v5134_v44 = vadd.f32 %v10251_v55, %v5021_v56 }
 0x578   : > { %v5356_v28 = vpop.f32.mrf.mxu3 }
 0x579   : > { %v5179_v35 = vmax.f32 %v5134_v44, 0.0  ;;  %v5357_v17 = vadd.f32 %v10060_v20, %v5356_v28 }
 0x57b   : > { %v5200_v12 = vpack.c.bf16 %v5179_v35, %v5178_v27  ;;  %5487 = vrot.lane.b32.xlu0 %v5357_v17, %s6328_s30  ;;  %v5468_v11 = vpop.permute.xlu2 %5467 }
 0x57c   : > { %v5023_v49 = vpop.f32.mrf.mxu1  ;;  %5573 = vst.msk [vmem:[%s7907_s29 + $0x90] sm:$0xff] %vm5554_vm0, %v5468_v11 }
 0x57d   : > { %5784 = vmatmul.msk.bf16.gmra.mxu3 %vm2100_vm13, %v5200_v12  ;;  %v5464_v26 = vpop.permute.xlu0 %5463  ;;  %v5024_v55 = vadd.f32 %v10286_v21, %v5023_v49 }
 0x57e   : > { %5571 = vst.msk [vmem:[%s7907_s29 + $0x80] sm:$0xff] %vm5554_vm0, %v5464_v26 }
 0x57f   : > { %v5137_v43 = vadd.f32 %v10259_v60, %v5024_v55 }
 0x580   : > { %v5358_v51 = vpop.f32.mrf.mxu3 }
 0x581   : > { %v5359_v4 = vadd.f32 %v10060_v20, %v5358_v51  ;;  %v5180_v57 = vmax.f32 %v5137_v43, 0.0 }
 0x583   : > { %5489 = vrot.lane.b32.xlu1 %v5359_v4, %s6328_s30  ;;  %v5201_v5 = vpack.c.bf16 %v5180_v57, %v5180_v57 }
 0x584   : > { %v5025_v47 = vpop.f32.mrf.mxu1 }
 0x585   : > { %v5466_v22 = vpop.permute.xlu1 %5465 }
 0x586   : > { %5572 = vst.msk [vmem:[%s7907_s29 + $0x88] sm:$0xff] %vm5554_vm0, %v5466_v22 }
 0x58d   : > { %5785 = vmatmul.msk.bf16.gmra.mxu3 %vm2100_vm13, %v5201_v5  ;;  %vm5595_vm13 = vcmask 257152  }
 0x58e   : > { %v5361_v13 = vpop.f32.mrf.mxu3 }
 0x58f   : > { %v5362_v21 = vadd.f32 %v10060_v20, %v5361_v13 }
 0x591   : > { %5491 = vrot.lane.b32.xlu2 %v5362_v21, %s6328_s30 }
 0x594   : > { %v5474_v60 = vpop.permute.xlu2 %5473 }
 0x595   : > { %5576 = vst.msk [vmem:[%s7907_s29 + $0xa8] sm:$0xff] %vm5554_vm0, %v5474_v60 }
 0x596   : > { %v5363_v39 = vpop.f32.mrf.mxu3 }
 0x597   : > { %v5364_v50 = vadd.f32 %v10060_v20, %v5363_v39 }
 0x599   : > { %5493 = vrot.lane.b32.xlu0 %v5364_v50, %s6328_s30 }
 0x59b   : > { %v5470_v36 = vpop.permute.xlu0 %5469 }
 0x59c   : > { %5574 = vst.msk [vmem:[%s7907_s29 + $0x98] sm:$0xff] %vm5554_vm0, %v5470_v36 }
 0x5a4   : > { %v5472_v62 = vpop.permute.xlu1 %5471 }
 0x5a5   : > { %5575 = vst.msk [vmem:[%s7907_s29 + $0xa0] sm:$0xff] %vm5554_vm0, %v5472_v62 }
 0x5b1   : > { %v5366_v10 = vpop.f32.mrf.mxu3 }
 0x5b2   : > { %v5367_v14 = vadd.f32 %v10060_v20, %v5366_v10 }
 0x5b3   : > { %v5480_v54 = vpop.permute.xlu2 %5479 }
 0x5b4   : > { %5579 = vst.msk [vmem:[%s7907_s29 + $0xc0] sm:$0xff] %vm5554_vm0, %v5480_v54  ;;  %5495 = vrot.lane.b32.xlu1 %v5367_v14, %s6328_s30 }
 0x5b5   : > { %v5476_v61 = vpop.permute.xlu0 %5475 }
 0x5b6   : > { %5577 = vst.msk [vmem:[%s7907_s29 + $0xb0] sm:$0xff] %vm5554_vm0, %v5476_v61 }
 0x5b9   : > { %v5368_v16 = vpop.f32.mrf.mxu3 }
 0x5ba   : > { %v5369_v18 = vadd.f32 %v10060_v20, %v5368_v16 }
 0x5bc   : > { %5497 = vrot.lane.b32.xlu2 %v5369_v18, %s6328_s30 }
 0x5bd   : > { %v5478_v2 = vpop.permute.xlu1 %5477 }
 0x5be   : > { %5578 = vst.msk [vmem:[%s7907_s29 + $0xb8] sm:$0xff] %vm5554_vm0, %v5478_v2 }
 0x5cc   : > { %v5486_v52 = vpop.permute.xlu2 %5485 }
 0x5cd   : > { %5582 = vst.msk [vmem:[%s7907_s29 + $0xd8] sm:$0xff] %vm5554_vm0, %v5486_v52 }
 0x5d3   : > { %v5482_v7 = vpop.permute.xlu0 %5481 }
 0x5d4   : > { %5580 = vst.msk [vmem:[%s7907_s29 + $0xc8] sm:$0xff] %vm5554_vm0, %v5482_v7 }
 0x5d9   : > { %v5371_v24 = vpop.f32.mrf.mxu3 }
 0x5da   : > { %v5372_v45 = vadd.f32 %v10060_v20, %v5371_v24 }
 0x5dc   : > { %5499 = vrot.lane.b32.xlu0 %v5372_v45, %s6328_s30  ;;  %v5484_v37 = vpop.permute.xlu1 %5483 }
 0x5dd   : > { %5581 = vst.msk [vmem:[%s7907_s29 + $0xd0] sm:$0xff] %vm5554_vm0, %v5484_v37 }
 0x5e1   : > { %v5373_v3 = vpop.f32.mrf.mxu3 }
 0x5e2   : > { %v5374_v46 = vadd.f32 %v10060_v20, %v5373_v3 }
 0x5e4   : > { %5501 = vrot.lane.b32.xlu1 %v5374_v46, %s6328_s30 }
 0x5ea   : > { %v5376_v59 = vpop.f32.mrf.mxu3 }
 0x5eb   : > { %v5377_v41 = vadd.f32 %v10060_v20, %v5376_v59  ;;  %v5492_v38 = vpop.permute.xlu2 %5491 }
 0x5ec   : > { %5585 = vst.msk [vmem:[%s7907_s29 + $0xf0] sm:$0xff] %vm5554_vm0, %v5492_v38 }
 0x5ed   : > { %5503 = vrot.lane.b32.xlu2 %v5377_v41, %s6328_s30  ;;  %v5488_v31 = vpop.permute.xlu0 %5487 }
 0x5ee   : > { %5583 = vst.msk [vmem:[%s7907_s29 + $0xe0] sm:$0xff] %vm5554_vm0, %v5488_v31 }
 0x5f2   : > { %v5378_v25 = vpop.f32.mrf.mxu3 }
 0x5f3   : > { %v5379_v6 = vadd.f32 %v10060_v20, %v5378_v25 }
 0x5f5   : > { %5505 = vrot.lane.b32.xlu0 %v5379_v6, %s6328_s30  ;;  %v5490_v40 = vpop.permute.xlu1 %5489 }
 0x5f6   : > { %5584 = vst.msk [vmem:[%s7907_s29 + $0xe8] sm:$0xff] %vm5554_vm0, %v5490_v40 }
 0x600   : > { %v5381_v15 = vpop.f32.mrf.mxu3 }
 0x601   : > { %v5382_v23 = vadd.f32 %v10060_v20, %v5381_v15 }
 0x603   : > { %5507 = vrot.lane.b32.xlu1 %v5382_v23, %s6328_s30 }
 0x608   : > { %v5383_v34 = vpop.f32.mrf.mxu3 }
 0x609   : > { %v5384_v63 = vadd.f32 %v10060_v20, %v5383_v34 }
 0x60b   : > { %5509 = vrot.lane.b32.xlu2 %v5384_v63, %s6328_s30  ;;  %v5494_v8 = vpop.permute.xlu0 %5493 }
 0x60c   : > { %5586 = vst.msk [vmem:[%s7907_s29 + $0xf8] sm:$0xff] %vm5554_vm0, %v5494_v8 }
 0x610   : > { %v5386_v30 = vpop.f32.mrf.mxu3 }
 0x611   : > { %v5387_v1 = vadd.f32 %v10060_v20, %v5386_v30 }
 0x613   : > { %5511 = vrot.lane.b32.xlu0 %v5387_v1, %s6328_s30 }
 0x616   : > { %v5498_v29 = vpop.permute.xlu2 %5497 }
 0x617   : > { %5588 = vst.msk [vmem:[%s7907_s29 + $0x108] sm:$0xff] %vm5554_vm0, %v5498_v29 }
 0x618   : > { %v5388_v0 = vpop.f32.mrf.mxu3 }
 0x626   : > { %v5496_v9 = vpop.permute.xlu1 %5495 }
 0x627   : > { %5587 = vst.msk [vmem:[%s7907_s29 + $0x100] sm:$0xff] %vm5554_vm0, %v5496_v9 }
 0x647   : > { %v5504_v53 = vpop.permute.xlu2 %5503 }
 0x648   : > { %5591 = vst.msk [vmem:[%s7907_s29 + $0x120] sm:$0xff] %vm5554_vm0, %v5504_v53 }
 0x64e   : > { %v5500_v32 = vpop.permute.xlu0 %5499 }
 0x64f   : > { %5589 = vst.msk [vmem:[%s7907_s29 + $0x110] sm:$0xff] %vm5554_vm0, %v5500_v32 }
 0x656   : > { %v5502_v33 = vpop.permute.xlu1 %5501 }
 0x657   : > { %5590 = vst.msk [vmem:[%s7907_s29 + $0x118] sm:$0xff] %vm5554_vm0, %v5502_v33 }
 0x665   : > { %v5510_v20 = vpop.permute.xlu2 %5509 }
 0x666   : > { %5594 = vst.msk [vmem:[%s7907_s29 + $0x138] sm:$0xff] %vm5554_vm0, %v5510_v20 }
 0x667   : > { %v5506_v48 = vpop.permute.xlu0 %5505 }
 0x668   : > { %5592 = vst.msk [vmem:[%s7907_s29 + $0x128] sm:$0xff] %vm5554_vm0, %v5506_v48 }
 0x675   : > { %v5508_v42 = vpop.permute.xlu1 %5507 }
 0x676   : > { %5593 = vst.msk [vmem:[%s7907_s29 + $0x130] sm:$0xff] %vm5554_vm0, %v5508_v42 }
 0x685   : > { %v5512_v58 = vpop.permute.xlu0 %5511 }
 0x686   : > { %5596 = vst.msk [vmem:[%s7907_s29 + $0x140] sm:$0xf] %vm5595_vm13, %v5512_v58 }
 0x687 PF: > { %s20_s13 = sadd.s32 1, %s6324_s13  }
 0x688   : > { %p17_p4 = scmp.ge.s32.totalorder %s20_s13, 4  }
 0x68a   :  { %19 = sbr.rel (!%p17_p4) target bundleno = 1 (0x1), region = 90 }

// kernel: generalized_rcnn_forward.3
= control target key start
LH: loop header
LB: loop body
LE: loop exit
PB: predicated region body
PF: predicated region fallthrough
CT: control target
= control target key end

     0   :  { %vm263_vm0 = vcmask 523264   ;;  %vm363_vm2 = vcmask 261120   ;;  %s787_s1 = inlined_call_operand.vmem [shape: bf16[256,64], index: 1, kind: input, shape index: {}]   ;;  %s788_s2 = inlined_call_operand.vmem [shape: f32[1,64], index: 2, kind: input, shape index: {}]   ;;  %s789_s0 = inlined_call_operand.vmem [shape: bf16[32,256], index: 0, kind: input, shape index: {}]   ;;  %s790_s4 = inlined_call_operand.vmem [shape: f32[1,64], index: 4, kind: input, shape index: {}]   ;;  %s791_s3 = inlined_call_operand.vmem [shape: bf16[64,64], index: 3, kind: input, shape index: {}]   ;;  %s792_s6 = inlined_call_operand.vmem [shape: f32[1,32], index: 6, kind: input, shape index: {}]   ;;  %s793_s5 = inlined_call_operand.vmem [shape: bf16[64,32], index: 5, kind: input, shape index: {}]   ;;  %s794_s7 = inlined_call_operand.vmem [shape: f32[32,32], index: 7, kind: output, shape index: {}]  }
   0x1   :  { %v551_v0 = vld [vmem:[%s787_s1 + $0x38] sm:$0xff]  ;;  %v550_v2 = vld [vmem:[%s787_s1 + $0x30] sm:$0xff]  ;;  %v549_v4 = vld [vmem:[%s787_s1 + $0x28] sm:$0xff] }
   0x2   :  { %v559_v1 = vld [vmem:[%s787_s1 + $0x78] sm:$0xff]  ;;  %183 = vmatpush.bf16.msra.mxu0 %v551_v0  ;;  %v558_v3 = vld [vmem:[%s787_s1 + $0x70] sm:$0xff]  ;;  %v557_v5 = vld [vmem:[%s787_s1 + $0x68] sm:$0xff] }
   0x3   :  { %202 = vmatpush.bf16.msra.mxu1 %v559_v1  ;;  %v548_v6 = vld [vmem:[%s787_s1 + $0x20] sm:$0xff]  ;;  %v547_v8 = vld [vmem:[%s787_s1 + $0x18] sm:$0xff]  ;;  %v546_v10 = vld [vmem:[%s787_s1 + $0x10] sm:$0xff] }
   0x4   :  { %v556_v7 = vld [vmem:[%s787_s1 + $0x60] sm:$0xff]  ;;  %v555_v9 = vld [vmem:[%s787_s1 + $0x58] sm:$0xff]  ;;  %v554_v11 = vld [vmem:[%s787_s1 + $0x50] sm:$0xff] }
   0x5   :  { %v545_v12 = vld [vmem:[%s787_s1 + $0x8] sm:$0xff]  ;;  %v544_v14 = vld [vmem:[%s787_s1] sm:$0xff]  ;;  %v434_v22 = vld [vmem:[%s789_s0 + $0x10] sm:$0xf] }
   0x6   :  { %184 = vmatpush.bf16.msra.mxu0 %v550_v2  ;;  %v553_v13 = vld [vmem:[%s787_s1 + $0x48] sm:$0xff]  ;;  %v552_v15 = vld [vmem:[%s787_s1 + $0x40] sm:$0xff]  ;;  %v543_v23 = vld [vmem:[%s789_s0 + $0x14] sm:$0xf0] }
   0x7   :  { %203 = vmatpush.bf16.msra.mxu1 %v558_v3  ;;  %v426_v16 = vld [vmem:[%s789_s0] sm:$0xf]  ;;  %v541_v17 = vld [vmem:[%s789_s0 + $0x4] sm:$0xf0]  ;;  %v540_v18 = vld [vmem:[%s789_s0 + $0x4] sm:$0xf]  ;;  %v435_v26 = vor.u32 %v543_v23, %v434_v22 }
   0x8   :  { %v428_v19 = vld [vmem:[%s789_s0 + $0x8] sm:$0xf0]  ;;  %v427_v20 = vor.u32 %v541_v17, %v426_v16  ;;  %v542_v24 = vld [vmem:[%s789_s0 + $0x14] sm:$0xf]  ;;  %v436_v25 = vld [vmem:[%s789_s0 + $0x18] sm:$0xf0] }
   0x9   :  { %v431_v21 = vor.u32 %v540_v18, %v428_v19  ;;  %v439_v27 = vor.u32 %v542_v24, %v436_v25  ;;  %v563_v28 = vld [vmem:[%s791_s3 + $0x18] sm:$0xff]  ;;  %v562_v29 = vld [vmem:[%s791_s3 + $0x10] sm:$0xff]  ;;  %v561_v30 = vld [vmem:[%s791_s3 + $0x8] sm:$0xff] }
   0xa   :  { %185 = vmatpush.bf16.msra.mxu0 %v549_v4  ;;  %274 = vmatpush.bf16.msra.mxu2 %v563_v28  ;;  %v560_v31 = vld [vmem:[%s791_s3] sm:$0xff]  ;;  %v567_v55 = vld [vmem:[%s793_s5 + $0x18] sm:$0xff]  ;;  %v566_v56 = vld [vmem:[%s793_s5 + $0x10] sm:$0xff] }
   0xb   :  { %204 = vmatpush.bf16.msra.mxu1 %v557_v5  ;;  %v568_v34 = vld [vmem:[%s788_s2] ss:$0 sm:$0xff]  ;;  %341 = vmatpush.bf16.msra.mxu3 %v567_v55  ;;  %v565_v57 = vld [vmem:[%s793_s5 + $0x8] sm:$0xff] }
   0xc   :  { %v564_v58 = vld [vmem:[%s793_s5] sm:$0xff] }
   0xd   :  { %v569_v60 = vld [vmem:[%s790_s4] ss:$0 sm:$0xff] }
   0xe   :  { %186 = vmatpush.bf16.msra.mxu0 %v548_v6  ;;  %275 = vmatpush.bf16.msra.mxu2 %v562_v29 }
   0xf   :  { %205 = vmatpush.bf16.msra.mxu1 %v556_v7  ;;  %342 = vmatpush.bf16.msra.mxu3 %v566_v56 }
  0x12   :  { %187 = vmatpush.bf16.msra.mxu0 %v547_v8  ;;  %276 = vmatpush.bf16.msra.mxu2 %v561_v30 }
  0x13   :  { %206 = vmatpush.bf16.msra.mxu1 %v555_v9  ;;  %343 = vmatpush.bf16.msra.mxu3 %v565_v57 }
  0x16   :  { %188 = vmatpush.bf16.msra.mxu0 %v546_v10  ;;  %277 = vmatpush.bf16.msra.mxu2 %v560_v31  ;;  %v356_v10 = vlaneseq }
  0x17   :  { %207 = vmatpush.bf16.msra.mxu1 %v554_v11  ;;  %344 = vmatpush.bf16.msra.mxu3 %v564_v58 }
  0x18   :  { %v733_v11 = vand.u32 127, %v356_v10 }
  0x1a   :  { %189 = vmatpush.bf16.msra.mxu0 %v545_v12  ;;  %v570_v12 = vld [vmem:[%s792_s6] ss:$0 sm:$0xff]  ;;  %vm358_vm1 = vcmp.lt.s32.totalorder %v733_v11, 5 }
  0x1b   :  { %208 = vmatpush.bf16.msra.mxu1 %v553_v13 }
  0x1e   :  { %190 = vmatpush.bf16.msra.mxu0 %v544_v14 }
  0x1f   :  { %209 = vmatpush.bf16.msra.mxu1 %v552_v15 }
  0x21   :  { %191 = vmatmul.bf16.vlgmr.msra.gmra.mxu0 %v427_v20 }
  0x22   :  { %210 = vmatmul.bf16.vlgmr.msra.gmra.mxu1 %v431_v21 }
  0x31   :  { %196 = vmatmul.bf16.gmra.mxu0 %v435_v26 }
  0x32   :  { %215 = vmatmul.bf16.gmra.mxu1 %v439_v27 }
  0x9e   :  { %v192_v32 = vpop.f32.mrf.mxu0 }
  0x9f   :  { %v211_v33 = vpop.f32.mrf.mxu1  ;;  %v193_v35 = vadd.f32 %v568_v34, %v192_v32 }
  0xa1   :  { %v212_v38 = vadd.f32 %v211_v33, %v193_v35 }
  0xa3   :  { %v221_v41 = vmax.f32 %v212_v38, 0.0 }
  0xa6   :  { %v194_v36 = vpop.f32.mrf.mxu0 }
  0xa7   :  { %v213_v37 = vpop.f32.mrf.mxu1  ;;  %v195_v39 = vadd.f32 %v568_v34, %v194_v36 }
  0xa9   :  { %v214_v40 = vadd.f32 %v213_v37, %v195_v39 }
  0xab   :  { %v222_v42 = vmax.f32 %v214_v40, 0.0 }
  0xad   :  { %v225_v43 = vpack.c.bf16 %v222_v42, %v221_v41 }
  0xae   :  { %v197_v44 = vpop.f32.mrf.mxu0 }
  0xaf   :  { %v216_v45 = vpop.f32.mrf.mxu1  ;;  %520 = vmatmul.msk.bf16.vlgmr.msra.gmra.mxu2 %vm263_vm0, %v225_v43  ;;  %v198_v46 = vadd.f32 %v568_v34, %v197_v44 }
  0xb1   :  { %v217_v48 = vadd.f32 %v216_v45, %v198_v46 }
  0xb3   :  { %v223_v52 = vmax.f32 %v217_v48, 0.0 }
  0xb6   :  { %v199_v47 = vpop.f32.mrf.mxu0 }
  0xb7   :  { %v200_v49 = vadd.f32 %v568_v34, %v199_v47  ;;  %v218_v50 = vpop.f32.mrf.mxu1 }
  0xb9   :  { %v219_v51 = vadd.f32 %v218_v50, %v200_v49 }
  0xbb   :  { %v224_v53 = vmax.f32 %v219_v51, 0.0 }
  0xbd   :  { %v226_v54 = vpack.c.bf16 %v224_v53, %v223_v52 }
  0xbf   :  { %521 = vmatmul.msk.bf16.gmra.mxu2 %vm263_vm0, %v226_v54 }
 0x132   :  { %v279_v59 = vpop.f32.mrf.mxu2 }
 0x133   :  { %v280_v61 = vadd.f32 %v569_v60, %v279_v59 }
 0x135   :  { %v289_v0 = vmax.f32 %v280_v61, 0.0 }
 0x13a   :  { %v281_v62 = vpop.f32.mrf.mxu2 }
 0x13b   :  { %v282_v63 = vadd.f32 %v569_v60, %v281_v62 }
 0x13d   :  { %v290_v1 = vmax.f32 %v282_v63, 0.0 }
 0x13f   :  { %v293_v2 = vpack.c.bf16 %v290_v1, %v289_v0 }
 0x141   :  { %538 = vmatmul.msk.bf16.vlgmr.msra.gmra.mxu3 %vm263_vm0, %v293_v2 }
 0x142   :  { %v284_v3 = vpop.f32.mrf.mxu2 }
 0x143   :  { %v285_v4 = vadd.f32 %v569_v60, %v284_v3 }
 0x145   :  { %v291_v7 = vmax.f32 %v285_v4, 0.0 }
 0x14a   :  { %v286_v5 = vpop.f32.mrf.mxu2 }
 0x14b   :  { %v287_v6 = vadd.f32 %v569_v60, %v286_v5 }
 0x14d   :  { %v292_v8 = vmax.f32 %v287_v6, 0.0 }
 0x14f   :  { %v294_v9 = vpack.c.bf16 %v292_v8, %v291_v7 }
 0x151   :  { %539 = vmatmul.msk.bf16.gmra.mxu3 %vm263_vm0, %v294_v9 }
 0x1c4   :  { %v346_v13 = vpop.f32.mrf.mxu3 }
 0x1c5   :  { %v347_v14 = vadd.f32 %v570_v12, %v346_v13 }
 0x1c7   :  { %v359_v15 = vsel %vm358_vm1, %v347_v14, -1e+30 }
 0x1c8   :  { %v364_v16 = vsel %vm363_vm2, %v359_v15, -inf }
 0x1c9   :  { %365 = vmax.xlane.f32.xlu0 %v364_v16 }
 0x1cc   :  { %v348_v17 = vpop.f32.mrf.mxu3 }
 0x1cd   :  { %v349_v18 = vadd.f32 %v570_v12, %v348_v17 }
 0x1cf   :  { %v360_v19 = vsel %vm358_vm1, %v349_v18, -1e+30 }
 0x1d0   :  { %v367_v20 = vsel %vm363_vm2, %v360_v19, -inf }
 0x1d1   :  { %368 = vmax.xlane.f32.xlu0 %v367_v20 }
 0x1d4   :  { %v351_v21 = vpop.f32.mrf.mxu3 }
 0x1d5   :  { %v352_v22 = vadd.f32 %v570_v12, %v351_v21 }
 0x1d7   :  { %v361_v23 = vsel %vm358_vm1, %v352_v22, -1e+30 }
 0x1d8   :  { %v370_v24 = vsel %vm363_vm2, %v361_v23, -inf }
 0x1d9   :  { %371 = vmax.xlane.f32.xlu1 %v370_v24 }
 0x1dc   :  { %v353_v25 = vpop.f32.mrf.mxu3 }
 0x1dd   :  { %v354_v26 = vadd.f32 %v570_v12, %v353_v25 }
 0x1df   :  { %v362_v27 = vsel %vm358_vm1, %v354_v26, -1e+30 }
 0x1e0   :  { %v373_v28 = vsel %vm363_vm2, %v362_v27, -inf }
 0x1e1   :  { %374 = vmax.xlane.f32.xlu1 %v373_v28 }
 0x23c   :  { %v366_v29 = vpop.xlane.xlu0 %365 }
 0x23d   :  { %v376_v30 = vsub.f32 %v359_v15, %v366_v29 }
 0x23f   :  { %v380_v31 = vmul.f32 1.442695, %v376_v30 }
 0x241   :  { %571 = vpow2.f32 %v380_v31 }
 0x244   :  { %v369_v32 = vpop.xlane.xlu0 %368 }
 0x245   :  { %v377_v33 = vsub.f32 %v360_v19, %v369_v32 }
 0x247   :  { %v572_v34 = vpop.eup %571  ;;  %v382_v35 = vmul.f32 1.442695, %v377_v33 }
 0x248   :  { %v388_v36 = vsel %vm358_vm1, %v572_v34, 0.0 }
 0x249   :  { %573 = vpow2.f32 %v382_v35  ;;  %v392_v37 = vsel %vm363_vm2, %v388_v36, 0.0 }
 0x24a   :  { %393 = vadd.xlane.f32.xlu2 %v392_v37 }
 0x24c   :  { %v372_v38 = vpop.xlane.xlu1 %371 }
 0x24d   :  { %v378_v39 = vsub.f32 %v361_v23, %v372_v38 }
 0x24f   :  { %v574_v40 = vpop.eup %573  ;;  %v384_v41 = vmul.f32 1.442695, %v378_v39 }
 0x250   :  { %v389_v42 = vsel %vm358_vm1, %v574_v40, 0.0 }
 0x251   :  { %575 = vpow2.f32 %v384_v41  ;;  %v395_v43 = vsel %vm363_vm2, %v389_v42, 0.0 }
 0x252   :  { %396 = vadd.xlane.f32.xlu2 %v395_v43 }
 0x254   :  { %v375_v44 = vpop.xlane.xlu1 %374 }
 0x255   :  { %v379_v45 = vsub.f32 %v362_v27, %v375_v44 }
 0x257   :  { %v576_v46 = vpop.eup %575  ;;  %v386_v47 = vmul.f32 1.442695, %v379_v45 }
 0x258   :  { %v390_v48 = vsel %vm358_vm1, %v576_v46, 0.0 }
 0x259   :  { %577 = vpow2.f32 %v386_v47  ;;  %v398_v49 = vsel %vm363_vm2, %v390_v48, 0.0 }
 0x25a   :  { %399 = vadd.xlane.f32.xlu0 %v398_v49 }
 0x25f   :  { %v578_v50 = vpop.eup %577 }
 0x260   :  { %v391_v51 = vsel %vm358_vm1, %v578_v50, 0.0 }
 0x261   :  { %v401_v52 = vsel %vm363_vm2, %v391_v51, 0.0 }
 0x262   :  { %402 = vadd.xlane.f32.xlu1 %v401_v52 }
 0x2bd   :  { %v394_v53 = vpop.xlane.xlu2 %393 }
 0x2be   :  { %579 = vrcp.f32 %v394_v53 }
 0x2c4   :  { %v580_v54 = vpop.eup %579 }
 0x2c5   :  { %v408_v55 = vmul.f32 %v580_v54, %v388_v36  ;;  %v397_v56 = vpop.xlane.xlu2 %396 }
 0x2c6   :  { %581 = vrcp.f32 %v397_v56 }
 0x2c7   :  { %v412_v57 = vsel %vm358_vm1, %v408_v55, %v347_v14 }
 0x2c8   :  { %416 = vst.msk [vmem:[%s794_s7] sm:$0xff] %vm363_vm2, %v412_v57 }
 0x2cc   :  { %v582_v58 = vpop.eup %581 }
 0x2cd   :  { %v409_v59 = vmul.f32 %v582_v58, %v389_v42  ;;  %v400_v60 = vpop.xlane.xlu0 %399 }
 0x2ce   :  { %583 = vrcp.f32 %v400_v60 }
 0x2cf   :  { %v413_v61 = vsel %vm358_vm1, %v409_v59, %v349_v18 }
 0x2d0   :  { %417 = vst.msk [vmem:[%s794_s7 + $0x8] sm:$0xff] %vm363_vm2, %v413_v61 }
 0x2d4   :  { %v584_v62 = vpop.eup %583 }
 0x2d5   :  { %v410_v63 = vmul.f32 %v584_v62, %v390_v48  ;;  %v403_v0 = vpop.xlane.xlu1 %402 }
 0x2d6   :  { %585 = vrcp.f32 %v403_v0 }
 0x2d7   :  { %v414_v1 = vsel %vm358_vm1, %v410_v63, %v352_v22 }
 0x2d8   :  { %418 = vst.msk [vmem:[%s794_s7 + $0x10] sm:$0xff] %vm363_vm2, %v414_v1 }
 0x2dc   :  { %v586_v2 = vpop.eup %585 }
 0x2dd   :  { %v411_v3 = vmul.f32 %v586_v2, %v391_v51 }
 0x2df   :  { %v415_v4 = vsel %vm358_vm1, %v411_v3, %v354_v26 }
 0x2e0   :  { %419 = vst.msk [vmem:[%s794_s7 + $0x18] sm:$0xff] %vm363_vm2, %v415_v4 }

</bundles_post_ra>
